<compile_context>
chip_gen: v7x
topology: tpu7x:2x2x1
jax: 0.10.0
libtpu: 0.0.40
codegen_flags: <defaults>
</compile_context>

<pallas_src>
import jax
import jax.numpy as jnp
from jax.experimental import pallas as pl
from jax.experimental.pallas import tpu as pltpu

VARIANCE_FOCUS = 0.85
T_VALID = 1e-4
EPS = 1e-10

LANES = 128          # TPU lane width
BLK_ROWS = 1024      # rows per block -> 1024*128*4B = 512 KiB per f32 input block
NUM_CORES = 2        # leading "parallel" grid axis (sharded across TCs on v7x)


def _make_kernel(n_elems, nb_per_core):
    """Kernel closure capturing the true element count and per-core block count."""
    blk_elems = BLK_ROWS * LANES

    def kernel(pred_ref, gt_ref, acc_ref):
        i = pl.program_id(0)   # parallel (core) axis
        j = pl.program_id(1)   # streaming reduction axis

        @pl.when(j == 0)
        def _():
            acc_ref[...] = jnp.zeros_like(acc_ref)

        # Cast in-kernel (inputs are streamed in their native dtype).
        p = pred_ref[...].astype(jnp.float32)
        g = gt_ref[...].astype(jnp.float32)
        p = jnp.maximum(p - EPS, 0.0) + EPS
        g = jnp.maximum(g - EPS, 0.0) + EPS

        # Global flat index of each element of this *logical* (unclamped) block:
        # masks the ragged tail and any duplicated/clamped out-of-range blocks.
        bi = i * nb_per_core + j
        base = bi * blk_elems
        row_ids = jax.lax.broadcasted_iota(jnp.int32, (BLK_ROWS, LANES), 0)
        col_ids = jax.lax.broadcasted_iota(jnp.int32, (BLK_ROWS, LANES), 1)
        in_bounds = (base + row_ids * LANES + col_ids) < n_elems

        mask = (g > T_VALID) & in_bounds
        d = jnp.where(mask, jnp.log(p) - jnp.log(g), 0.0)

        # VPU-only accumulation into (8,128) vector accumulators: fold the
        # block's rows 8-at-a-time (sum over the leading, non-tiled axis).
        d3 = d.reshape(BLK_ROWS // 8, 8, LANES)
        m3 = mask.astype(jnp.float32).reshape(BLK_ROWS // 8, 8, LANES)

        acc_ref[0, 0, :, :] += jnp.sum(d3, axis=0)
        acc_ref[0, 1, :, :] += jnp.sum(d3 * d3, axis=0)
        acc_ref[0, 2, :, :] += jnp.sum(m3, axis=0)

    return kernel


def silog_loss(pred, gt):
    pred_f = pred.reshape(-1)
    gt_f = gt.reshape(-1)
    n = pred_f.shape[0]

    # Only a (rare, tiny) pad up to lane alignment; no pad emitted when aligned.
    pad = (-n) % LANES
    if pad:
        pred_f = jnp.pad(pred_f, (0, pad))
        gt_f = jnp.pad(gt_f, (0, pad))
    rows = (n + pad) // LANES
    pred2 = pred_f.reshape(rows, LANES)
    gt2 = gt_f.reshape(rows, LANES)

    total_blocks = pl.cdiv(rows, BLK_ROWS)
    nb_per_core = pl.cdiv(total_blocks, NUM_CORES)

    def in_map(i, j):
        # Clamp: out-of-range logical blocks re-read a valid block; their
        # contribution is zeroed by the in-kernel global-index mask.
        return (jnp.minimum(i * nb_per_core + j, total_blocks - 1), 0)

    in_bytes = n * (pred.dtype.itemsize + gt.dtype.itemsize)
    out_bytes = NUM_CORES * 3 * 8 * LANES * 4

    partials = pl.pallas_call(
        _make_kernel(n, nb_per_core),
        out_shape=jax.ShapeDtypeStruct((NUM_CORES, 3, 8, LANES), jnp.float32),
        grid_spec=pltpu.PrefetchScalarGridSpec(
            num_scalar_prefetch=0,
            grid=(NUM_CORES, nb_per_core),
            in_specs=[
                pl.BlockSpec((BLK_ROWS, LANES), in_map),
                pl.BlockSpec((BLK_ROWS, LANES), in_map),
            ],
            # Output block depends only on the parallel axis -> it is the
            # per-core accumulator, resident across the reduction axis.
            out_specs=pl.BlockSpec((1, 3, 8, LANES), lambda i, j: (i, 0, 0, 0)),
        ),
        compiler_params=pltpu.CompilerParams(
            dimension_semantics=("parallel", "arbitrary")),
        cost_estimate=pl.CostEstimate(
            flops=8 * n,
            transcendentals=2 * n,
            bytes_accessed=in_bytes + out_bytes),
    )(pred2, gt2)

    # Tiny epilogue in plain JAX: final cross-lane reduce + scalar finish.
    d_sum = jnp.sum(partials[:, 0])
    d2_sum = jnp.sum(partials[:, 1])
    cnt = jnp.sum(partials[:, 2])
    d_mean = d_sum / cnt
    d2_mean = d2_sum / cnt
    return jnp.sqrt(d2_mean - VARIANCE_FOCUS * d_mean * d_mean) * 10.0


def silog_loss_ref(pred, gt):
    """Pure-JAX reference mirroring the PyTorch forward."""
    pred = jnp.maximum(pred - EPS, 0.0) + EPS
    gt = jnp.maximum(gt - EPS, 0.0) + EPS
    mask = gt > T_VALID
    d = jnp.where(mask, jnp.log(pred) - jnp.log(gt), 0.0)
    cnt = jnp.sum(mask.astype(jnp.float32))
    d_mean = jnp.sum(d) / cnt
    d2_mean = jnp.sum(d * d) / cnt
    return jnp.sqrt(d2_mean - VARIANCE_FOCUS * d_mean ** 2) * 10.0


if __name__ == "__main__":
    key = jax.random.PRNGKey(0)
    k1, k2, k3 = jax.random.split(key, 3)
    # Depth-style NCHW inputs: batch=2, channels=1, spatial=16x16.
    pred = jax.random.uniform(k1, (2, 1, 16, 16), jnp.float32, 0.1, 10.0)
    gt = jax.random.uniform(k2, (2, 1, 16, 16), jnp.float32, 0.0, 10.0)
    # Zero out some gt pixels so the validity mask is exercised.
    drop = jax.random.uniform(k3, (2, 1, 16, 16)) < 0.2
    gt = jnp.where(drop, 0.0, gt)

    loss = jax.block_until_ready(silog_loss(pred, gt))
    ref = jax.block_until_ready(silog_loss_ref(pred, gt))
    assert jnp.allclose(loss, ref, rtol=1e-5, atol=1e-5), (loss, ref)
    print("KERNEL_OK")
</pallas_src>

<mosaic_0001>
module attributes {stable_mosaic.version = 11 : i64} {
  func.func @kernel(%arg0: i32, %arg1: i32, %arg2: memref<1024x128xf32, #tpu.memory_space<vmem>>, %arg3: memref<1024x128xf32, #tpu.memory_space<vmem>>, %arg4: memref<1x3x8x128xf32, #tpu.memory_space<vmem>>) attributes {dimension_semantics = [#tpu.dimension_semantics<parallel>, #tpu.dimension_semantics<arbitrary>], iteration_bounds = array<i64: 2, 1>, scalar_prefetch = 0 : i64, scratch_operands = 0 : i64, tpu.core_type = #tpu.core_type<tc>, window_params = [{transform_indices = @transform_0, window_bounds = array<i64: 1024, 128>}, {transform_indices = @transform_1, window_bounds = array<i64: 1024, 128>}, {transform_indices = @transform_2, window_bounds = array<i64: 1, 3, 8, 128>}]} {
    %c0_i32 = arith.constant 0 : i32
    %0 = arith.cmpi eq, %arg1, %c0_i32 : i32
    %1 = arith.extui %0 : i1 to i32
    %c0_i32_0 = arith.constant 0 : i32
    %2 = arith.cmpi ne, %1, %c0_i32_0 : i32
    scf.if %2 {
      %cst_36 = arith.constant 0.000000e+00 : f32
      %63 = vector.broadcast %cst_36 : f32 to vector<1x3x8x128xf32>
      %c0_37 = arith.constant 0 : index
      %c0_38 = arith.constant 0 : index
      %c0_39 = arith.constant 0 : index
      %c0_40 = arith.constant 0 : index
      %64 = vector.load %arg4[%c0_37, %c0_38, %c0_39, %c0_40] : memref<1x3x8x128xf32, #tpu.memory_space<vmem>>, vector<1x3x8x128xf32>
      tpu.vector_store %arg4[%c0_37, %c0_38, %c0_39, %c0_40], %63 {strides = array<i32>} : memref<1x3x8x128xf32, #tpu.memory_space<vmem>>, vector<1x3x8x128xf32>,
    } else {
    }
    %c0 = arith.constant 0 : index
    %c0_1 = arith.constant 0 : index
    %3 = vector.load %arg2[%c0, %c0_1] : memref<1024x128xf32, #tpu.memory_space<vmem>>, vector<1024x128xf32>
    %c0_2 = arith.constant 0 : index
    %c0_3 = arith.constant 0 : index
    %4 = vector.load %arg3[%c0_2, %c0_3] : memref<1024x128xf32, #tpu.memory_space<vmem>>, vector<1024x128xf32>
    %cst = arith.constant 1.000000e-10 : f32
    %5 = vector.broadcast %cst : f32 to vector<1024x128xf32>
    %6 = arith.subf %3, %5 : vector<1024x128xf32>
    %cst_4 = arith.constant 0.000000e+00 : f32
    %7 = vector.broadcast %cst_4 : f32 to vector<1024x128xf32>
    %8 = arith.maximumf %6, %7 : vector<1024x128xf32>
    %cst_5 = arith.constant 1.000000e-10 : f32
    %9 = vector.broadcast %cst_5 : f32 to vector<1024x128xf32>
    %10 = arith.addf %8, %9 : vector<1024x128xf32>
    %cst_6 = arith.constant 1.000000e-10 : f32
    %11 = vector.broadcast %cst_6 : f32 to vector<1024x128xf32>
    %12 = arith.subf %4, %11 : vector<1024x128xf32>
    %cst_7 = arith.constant 0.000000e+00 : f32
    %13 = vector.broadcast %cst_7 : f32 to vector<1024x128xf32>
    %14 = arith.maximumf %12, %13 : vector<1024x128xf32>
    %cst_8 = arith.constant 1.000000e-10 : f32
    %15 = vector.broadcast %cst_8 : f32 to vector<1024x128xf32>
    %16 = arith.addf %14, %15 : vector<1024x128xf32>
    %c1_i32 = arith.constant 1 : i32
    %17 = arith.muli %arg0, %c1_i32 : i32
    %18 = arith.addi %17, %arg1 : i32
    %c131072_i32 = arith.constant 131072 : i32
    %19 = arith.muli %18, %c131072_i32 : i32
    %20 = tpu.iota {dimensions = array<i32: 0>} : vector<1024x128xi32>
    %21 = tpu.iota {dimensions = array<i32: 1>} : vector<1024x128xi32>
    %c128_i32 = arith.constant 128 : i32
    %22 = vector.broadcast %c128_i32 : i32 to vector<1024x128xi32>
    %23 = arith.muli %20, %22 : vector<1024x128xi32>
    %24 = vector.broadcast %19 : i32 to vector<1024x128xi32>
    %25 = arith.addi %24, %23 : vector<1024x128xi32>
    %26 = arith.addi %25, %21 : vector<1024x128xi32>
    %c512_i32 = arith.constant 512 : i32
    %27 = vector.broadcast %c512_i32 : i32 to vector<1024x128xi32>
    %28 = arith.cmpi slt, %26, %27 : vector<1024x128xi32>
    %cst_9 = arith.constant 9.99999974E-5 : f32
    %29 = vector.broadcast %cst_9 : f32 to vector<1024x128xf32>
    %30 = arith.cmpf ogt, %16, %29 : vector<1024x128xf32>
    %31 = arith.andi %30, %28 : vector<1024x128xi1>
    %32 = math.log %10 : vector<1024x128xf32>
    %33 = math.log %16 : vector<1024x128xf32>
    %34 = arith.subf %32, %33 : vector<1024x128xf32>
    %cst_10 = arith.constant 0.000000e+00 : f32
    %35 = vector.broadcast %cst_10 : f32 to vector<1024x128xf32>
    %36 = arith.select %31, %34, %35 : vector<1024x128xi1>, vector<1024x128xf32>
    %37 = vector.shape_cast %36 : vector<1024x128xf32> to vector<128x8x128xf32>
    %38 = arith.extui %31 : vector<1024x128xi1> to vector<1024x128xi32>
    %39 = arith.sitofp %38 : vector<1024x128xi32> to vector<1024x128xf32>
    %40 = vector.shape_cast %39 : vector<1024x128xf32> to vector<128x8x128xf32>
    %c0_11 = arith.constant 0 : index
    %c0_12 = arith.constant 0 : index
    %c0_13 = arith.constant 0 : index
    %c0_14 = arith.constant 0 : index
    %41 = vector.load %arg4[%c0_11, %c0_12, %c0_13, %c0_14] : memref<1x3x8x128xf32, #tpu.memory_space<vmem>>, vector<1x1x8x128xf32>
    %42 = vector.shape_cast %41 : vector<1x1x8x128xf32> to vector<8x128xf32>
    %cst_15 = arith.constant dense<0.000000e+00> : vector<8x128xf32>
    %43 = vector.multi_reduction <add>, %37, %cst_15 [0] : vector<128x8x128xf32> to vector<8x128xf32>
    %44 = arith.addf %42, %43 : vector<8x128xf32>
    %c0_16 = arith.constant 0 : index
    %c0_17 = arith.constant 0 : index
    %c0_18 = arith.constant 0 : index
    %c0_19 = arith.constant 0 : index
    %45 = vector.load %arg4[%c0_16, %c0_17, %c0_18, %c0_19] : memref<1x3x8x128xf32, #tpu.memory_space<vmem>>, vector<1x1x8x128xf32>
    %46 = vector.shape_cast %45 : vector<1x1x8x128xf32> to vector<8x128xf32>
    %47 = vector.shape_cast %44 : vector<8x128xf32> to vector<1x1x8x128xf32>
    tpu.vector_store %arg4[%c0_16, %c0_17, %c0_18, %c0_19], %47 {strides = array<i32>} : memref<1x3x8x128xf32, #tpu.memory_space<vmem>>, vector<1x1x8x128xf32>,
    %c0_20 = arith.constant 0 : index
    %c1 = arith.constant 1 : index
    %c0_21 = arith.constant 0 : index
    %c0_22 = arith.constant 0 : index
    %48 = vector.load %arg4[%c0_20, %c1, %c0_21, %c0_22] : memref<1x3x8x128xf32, #tpu.memory_space<vmem>>, vector<1x1x8x128xf32>
    %49 = vector.shape_cast %48 : vector<1x1x8x128xf32> to vector<8x128xf32>
    %50 = arith.mulf %37, %37 : vector<128x8x128xf32>
    %cst_23 = arith.constant dense<0.000000e+00> : vector<8x128xf32>
    %51 = vector.multi_reduction <add>, %50, %cst_23 [0] : vector<128x8x128xf32> to vector<8x128xf32>
    %52 = arith.addf %49, %51 : vector<8x128xf32>
    %c0_24 = arith.constant 0 : index
    %c1_25 = arith.constant 1 : index
    %c0_26 = arith.constant 0 : index
    %c0_27 = arith.constant 0 : index
    %53 = vector.load %arg4[%c0_24, %c1_25, %c0_26, %c0_27] : memref<1x3x8x128xf32, #tpu.memory_space<vmem>>, vector<1x1x8x128xf32>
    %54 = vector.shape_cast %53 : vector<1x1x8x128xf32> to vector<8x128xf32>
    %55 = vector.shape_cast %52 : vector<8x128xf32> to vector<1x1x8x128xf32>
    tpu.vector_store %arg4[%c0_24, %c1_25, %c0_26, %c0_27], %55 {strides = array<i32>} : memref<1x3x8x128xf32, #tpu.memory_space<vmem>>, vector<1x1x8x128xf32>,
    %c0_28 = arith.constant 0 : index
    %c2 = arith.constant 2 : index
    %c0_29 = arith.constant 0 : index
    %c0_30 = arith.constant 0 : index
    %56 = vector.load %arg4[%c0_28, %c2, %c0_29, %c0_30] : memref<1x3x8x128xf32, #tpu.memory_space<vmem>>, vector<1x1x8x128xf32>
    %57 = vector.shape_cast %56 : vector<1x1x8x128xf32> to vector<8x128xf32>
    %cst_31 = arith.constant dense<0.000000e+00> : vector<8x128xf32>
    %58 = vector.multi_reduction <add>, %40, %cst_31 [0] : vector<128x8x128xf32> to vector<8x128xf32>
    %59 = arith.addf %57, %58 : vector<8x128xf32>
    %c0_32 = arith.constant 0 : index
    %c2_33 = arith.constant 2 : index
    %c0_34 = arith.constant 0 : index
    %c0_35 = arith.constant 0 : index
    %60 = vector.load %arg4[%c0_32, %c2_33, %c0_34, %c0_35] : memref<1x3x8x128xf32, #tpu.memory_space<vmem>>, vector<1x1x8x128xf32>
    %61 = vector.shape_cast %60 : vector<1x1x8x128xf32> to vector<8x128xf32>
    %62 = vector.shape_cast %59 : vector<8x128xf32> to vector<1x1x8x128xf32>
    tpu.vector_store %arg4[%c0_32, %c2_33, %c0_34, %c0_35], %62 {strides = array<i32>} : memref<1x3x8x128xf32, #tpu.memory_space<vmem>>, vector<1x1x8x128xf32>,
    return
  }
  func.func @transform_0(%arg0: i32, %arg1: i32) -> (i32, i32) {
    %c1_i32 = arith.constant 1 : i32
    %0 = arith.muli %arg0, %c1_i32 : i32
    %1 = arith.addi %0, %arg1 : i32
    %c0_i32 = arith.constant 0 : i32
    %2 = arith.minsi %1, %c0_i32 : i32
    %c0_i32_0 = arith.constant 0 : i32
    %c0_i32_1 = arith.constant 0 : i32
    return %2, %c0_i32_0 : i32, i32
  }
  func.func @transform_1(%arg0: i32, %arg1: i32) -> (i32, i32) {
    %c1_i32 = arith.constant 1 : i32
    %0 = arith.muli %arg0, %c1_i32 : i32
    %1 = arith.addi %0, %arg1 : i32
    %c0_i32 = arith.constant 0 : i32
    %2 = arith.minsi %1, %c0_i32 : i32
    %c0_i32_0 = arith.constant 0 : i32
    %c0_i32_1 = arith.constant 0 : i32
    return %2, %c0_i32_0 : i32, i32
  }
  func.func @transform_2(%arg0: i32, %arg1: i32) -> (i32, i32, i32, i32) {
    %c0_i32 = arith.constant 0 : i32
    %c0_i32_0 = arith.constant 0 : i32
    %c0_i32_1 = arith.constant 0 : i32
    %c0_i32_2 = arith.constant 0 : i32
    return %arg0, %c0_i32, %c0_i32_0, %c0_i32_1 : i32, i32, i32, i32
  }
}

</mosaic_0001>

<bundles_post_ra>
// kernel: tpu_custom_call.1
= control target key start
LH: loop header
LB: loop body
LE: loop exit
PB: predicated region body
PF: predicated region fallthrough
CT: control target
= control target key end

     0   :  { %7 = vsyncpa [#allocation3], 0  ;;  %s12713_s0 = inlined_call_operand.hbm [shape: f32[4,128], index: 0, kind: input, shape index: {}]   ;;  %s12714_s1 = inlined_call_operand.hbm [shape: f32[4,128], index: 1, kind: input, shape index: {}]   ;;  %s12715_s2 = inlined_call_operand.hbm [shape: f32[2,3,8,128], index: 2, kind: output, shape index: {}]  }
   0x1   :  { %9 = vsyncpa [#allocation3 + $0x1], 0 }
   0x2   :  { %10 = vsyncpa [#allocation6], 0 }
   0x3   :  { %12 = vsyncpa [#allocation6 + $0x1], 0 }
   0x4   :  { %13 = vsyncpa [#allocation4], 0 }
   0x5   :  { %15 = vsyncpa [#allocation4 + $0x1], 0  ;;  %s5058_s9 = smov 0   ;;  %s5060_s10 = smov 0  }
   0x6   :  { %s5062_s11 = smov 0   ;;  %s5064_s12 = smov 0  }
   0x7   :  { %s5066_s13 = smov 0   ;;  %s5068_s14 = smov 0  }
   0x8   :  { %s5070_s15 = smov 0   ;;  %s5072_s16 = smov 0  }
   0x9 LB: > { %s3847_s17 = sadd.s32 4294967295, %s5031_s16   ;;  %s3848_s18 = sadd.s32 4294967294, %s5031_s16   ;;  %s5031_s16 = sphi %s5072_s16, %s21_s16   ;;  %s5027_s15 = sphi %s5070_s15, %s16261_s15   ;;  %s5023_s14 = sphi %s5068_s14, %s16260_s14   ;;  %s5019_s13 = sphi %s5066_s13, %s12703_s13   ;;  %s5015_s12 = sphi %s5064_s12, %s16259_s12   ;;  %s5011_s11 = sphi %s5062_s11, %s16258_s11   ;;  %s5007_s10 = sphi %s5060_s10, %s16257_s10   ;;  %s5003_s9 = sphi %s5058_s9, %s16256_s9  }
   0xa   : > { %s33_s19 = sadd.s32 1, %s5027_s15  ;;  %p5000_p1 = scmp.ne.s32.totalorder %s5019_s13, 0 }
   0xb   : > { %p35_p0 = scmp.ge.s32.totalorder %s33_s19, 2  ;;  %p54_p2 = scmp.eq.s32.totalorder %s5031_s16, 0 }
   0xc   : > { %p59_p3 = scmp.ne.s32.totalorder %s5019_s13, %s5015_s12  ;;  %p60_p5 = scmp.eq.s32.totalorder %s3847_s17, 0 }
   0xd   : > { %s16263_s19 = smov (%p35_p0, %s33_s19), 0  ;;  %p5104_p4 = por %p5000_p1, %p54_p2 }
   0xe   : > { %p5108_p6 = por %p60_p5, %p59_p3  ;;  %s101_s22 = ssub.s32 %s5027_s15, %s16263_s19 }
   0xf   : > { %p102_p7 = scmp.eq.s32.totalorder %s101_s22, 0  ;;  %s104_s23 = sadd.s32 1, %s5011_s11 }
  0x10   : > { %p114_p8 = scmp.ne.s32.totalorder %s5011_s11, %s5007_s10  ;;  %p115_p9 = scmp.eq.s32.totalorder %s3847_s17, 1 }
  0x11   : > { %s5116_s24 = scalar_select %p102_p7, %s5011_s11, %s104_s23  }
  0x12   : > { %p120_p10 = scmp.ne.s32.totalorder %s5007_s10, %s5003_s9  ;;  %p121_p11 = scmp.eq.s32.totalorder %s3848_s18, 1 }
  0x13   : > { %p5122_p12 = por %p115_p9, %p114_p8  ;;  %p12716_p0 = scmp.ge.s32.totalorder %s5031_s16, 2 }
  0x14   : > { %p5126_p13 = por %p121_p11, %p120_p10 }
  0x15   : > { %137 = sbr.rel (%p12716_p0) target bundleno = 82 (0x52), region = 16 }
  0x1c   : > { %140 = sbr.rel (!%p5104_p4) target bundleno = 55 (0x37), region = 20 }
  0x23   : > { %154 = vsyncadd [#allocation3], 16320  ;;  %s5033_s27 = smov [#allocation2]   ;;  %s4864_s3 = scalar_lea.hbm %s12713_s0, 64 }
  0x24   : > { %s159_s28 = sshll.u32 %s5033_s27, 4  ;;  %p4865_p1 = scmp.ne.s32.totalorder %s12713_s0, %s4864_s3  ;;  %s160_s28 = int_to_ptr.vmem [resolvable:$true] %s159_s28 }
  0x25   : > { %p4870_p2 = scmp.lt.u32.totalorder %s4864_s3, %s4864_s3  ;;  %p4872_p3 = scmp.lt.u32.totalorder %s4864_s3, %s12713_s0 }
  0x27   : > { %p4873_p5 = por %p4872_p3, %p4870_p2 }
  0x29   : > { %p4874_p7 = pnand %p4873_p5, %p4865_p1 }
  0x2b   : > { %4877 = shalt.err (!%p4874_p7)
}
  0x2c   : > { %s4878_s8 = scalar_lea.vmem %s160_s28, 64  ;;  %s4884_s12 = scalar_lea.vmem %s160_s28, 32768 }
  0x2d   : > { %p4879_p8 = scmp.ne.s32.totalorder %s160_s28, %s4878_s8  ;;  %p4885_p9 = scmp.lt.s32.totalorder %s160_s28, %s160_s28 }
  0x2e   : > { %p4886_p10 = scmp.lt.s32.totalorder %s4884_s12, %s4878_s8 }
  0x30   : > { %p4887_p11 = por %p4886_p10, %p4885_p9 }
  0x32   : > { %p4888_p0 = pnand %p4887_p11, %p4879_p8 }
  0x34   : > { %4891 = shalt.err (!%p4888_p0)
}
  0x35   : > { %s5034_s17 = smov 64   ;;  %s5035_s18 = smov 4  }
  0x36   : > { %165 = dma.hbm_to_vmem [thread:$0]  %s12713_s0, 64, %s160_s28, [#allocation3], %s5034_s17, %s5034_s17, %s5035_s18  }
  0x37 PF: > { %168 = sbr.rel (!%p5104_p4) target bundleno = 82 (0x52), region = 24 }
  0x3e   : > { %182 = vsyncadd [#allocation6], 16320  ;;  %s5036_s27 = smov [#allocation5]   ;;  %s4892_s4 = scalar_lea.hbm %s12714_s1, 64 }
  0x3f   : > { %s187_s29 = sshll.u32 %s5036_s27, 4  ;;  %p4893_p0 = scmp.ne.s32.totalorder %s12714_s1, %s4892_s4  ;;  %s188_s29 = int_to_ptr.vmem [resolvable:$true] %s187_s29 }
  0x40   : > { %p4898_p1 = scmp.lt.u32.totalorder %s4892_s4, %s4892_s4  ;;  %p4900_p2 = scmp.lt.u32.totalorder %s4892_s4, %s12714_s1 }
  0x42   : > { %p4901_p3 = por %p4900_p2, %p4898_p1 }
  0x44   : > { %p4902_p5 = pnand %p4901_p3, %p4893_p0 }
  0x46   : > { %4905 = shalt.err (!%p4902_p5)
}
  0x47   : > { %s4906_s20 = scalar_lea.vmem %s188_s29, 64  ;;  %s4912_s28 = scalar_lea.vmem %s188_s29, 32768 }
  0x48   : > { %p4907_p4 = scmp.ne.s32.totalorder %s188_s29, %s4906_s20  ;;  %p4913_p7 = scmp.lt.s32.totalorder %s188_s29, %s188_s29 }
  0x49   : > { %p4914_p8 = scmp.lt.s32.totalorder %s4912_s28, %s4906_s20 }
  0x4b   : > { %p4915_p9 = por %p4914_p8, %p4913_p7 }
  0x4d   : > { %p4916_p10 = pnand %p4915_p9, %p4907_p4 }
  0x4f   : > { %4919 = shalt.err (!%p4916_p10)
}
  0x50   : > { %s5037_s12 = smov 64   ;;  %s5038_s17 = smov 4  }
  0x51   : > { %193 = dma.hbm_to_vmem [thread:$0]  %s12714_s1, 64, %s188_s29, [#allocation6], %s5037_s12, %s5037_s12, %s5038_s17  }
  0x52 PF: > { %p3865_p11 = scmp.ge.s32.totalorder %s5031_s16, 1  ;;  %p195_p0 = scmp.lt.s32.totalorder %s5031_s16, 3 }
  0x54   : > { %p196_p1 = pnand %p3865_p11, %p195_p0 }
  0x56   : > { %199 = sbr.rel (%p196_p1) target bundleno = 1189 (0x4a5), region = 28 }
  0x5d   : > { %s201_s23 = sand.u32 1, %s5019_s13  }
  0x5e   : > { %s3866_s27 = sshll.u32 %s201_s23, 10  ;;  %s202_s30 = scalar_lea.sflag [#allocation3], %s201_s23 }
  0x5f   : > { %s5164_s3 = scalar_lea.vmem [#allocation2], %s3866_s27 }
  0x60   : > { %4985 = dma.done.wait (%p5108_p6), %s202_s30, 16384  }
  0x61   : > { %4987 = vsyncadd (%p5108_p6), %s202_s30, 4294950912  ;;  %s211_s29 = scalar_lea.sflag [#allocation6], %s201_s23  ;;  %s5170_s4 = scalar_lea.vmem [#allocation5], %s3866_s27 }
  0x62   : > { %4989 = dma.done.wait (%p5108_p6), %s211_s29, 16384  }
  0x63   : > { %4991 = vsyncadd (%p5108_p6), %s211_s29, 4294950912  ;;  %v259_v0 = vld [vmem:[%s5164_s3] sm:$0xff]  ;;  %v260_v1 = vld [vmem:[%s5164_s3 + $0x8] sm:$0xff]  ;;  %s4124_s21 = sshll.u32 %s5023_s14, 17  ;;  %s237_s5 = sand.u32 1, %s5007_s10  }
  0x64   : > { %v5178_v2 = vadd.f32 -1e-10, %v259_v0  ;;  %v261_v3 = vld [vmem:[%s5164_s3 + $0x10] sm:$0xff]  ;;  %v262_v4 = vld [vmem:[%s5164_s3 + $0x18] sm:$0xff]  ;;  %v263_v5 = vld [vmem:[%s5164_s3 + $0x20] sm:$0xff]  ;;  %s4262_s6 = smul.u32 24, %s237_s5 }
  0x65   : > { %v5183_v6 = vadd.f32 -1e-10, %v260_v1  ;;  %v264_v7 = vld [vmem:[%s5164_s3 + $0x28] sm:$0xff]  ;;  %v265_v8 = vld [vmem:[%s5164_s3 + $0x30] sm:$0xff]  ;;  %v266_v9 = vld [vmem:[%s5164_s3 + $0x38] sm:$0xff]  ;;  %s4263_s8 = smul.u32 384, %s5023_s14 }
  0x66   : > { %13337 = vst [vmem:[#allocation11_spill] sm:$0xff] %v5178_v2  ;;  %v267_v10 = vld [vmem:[%s5164_s3 + $0x40] sm:$0xff]  ;;  %v268_v11 = vld [vmem:[%s5164_s3 + $0x48] sm:$0xff]  ;;  %v269_v12 = vld [vmem:[%s5164_s3 + $0x50] sm:$0xff]  ;;  %v5192_v14 = vadd.f32 -1e-10, %v261_v3 }
  0x67   : > { %13338 = vst [vmem:[#allocation12_spill] sm:$0xff] %v5183_v6  ;;  %v270_v13 = vld [vmem:[%s5164_s3 + $0x58] sm:$0xff]  ;;  %v5194_v15 = vadd.f32 -1e-10, %v262_v4  ;;  %v271_v17 = vld [vmem:[%s5164_s3 + $0x60] sm:$0xff]  ;;  %v272_v21 = vld [vmem:[%s5164_s3 + $0x68] sm:$0xff]  ;;  %s12653_s17 = scalar_lea.hbm %s12715_s2, %s4263_s8 }
  0x68   : > { %13339 = vst [vmem:[#allocation13_spill] sm:$0xff] %v5192_v14  ;;  %v5198_v18 = vadd.f32 -1e-10, %v263_v5  ;;  %v5200_v19 = vadd.f32 -1e-10, %v264_v7  ;;  %v273_v22 = vld [vmem:[%s5164_s3 + $0x70] sm:$0xff] }
  0x69   : > { %13340 = vst [vmem:[#allocation14_spill] sm:$0xff] %v5194_v15  ;;  %v5205_v23 = vadd.f32 -1e-10, %v265_v8  ;;  %v5207_v24 = vadd.f32 -1e-10, %v266_v9  ;;  %v274_v26 = vld [vmem:[%s5164_s3 + $0x78] sm:$0xff] }
  0x6a   : > { %13341 = vst [vmem:[#allocation15_spill] sm:$0xff] %v5198_v18  ;;  %13342 = vst [vmem:[#allocation16_spill] sm:$0xff] %v5200_v19  ;;  %v5209_v25 = vadd.f32 -1e-10, %v267_v10  ;;  %v275_v27 = vld [vmem:[%s5164_s3 + $0x80] sm:$0xff]  ;;  %v276_v30 = vld [vmem:[%s5164_s3 + $0x88] sm:$0xff] }
  0x6b   : > { %13343 = vst [vmem:[#allocation17_spill] sm:$0xff] %v5205_v23  ;;  %13344 = vst [vmem:[#allocation18_spill] sm:$0xff] %v5207_v24  ;;  %v5213_v28 = vadd.f32 -1e-10, %v268_v11  ;;  %v5215_v29 = vadd.f32 -1e-10, %v269_v12 }
  0x6c   : > { %13345 = vst [vmem:[#allocation19_spill] sm:$0xff] %v5209_v25  ;;  %v277_v31 = vld [vmem:[%s5164_s3 + $0x90] sm:$0xff]  ;;  %v278_v32 = vld [vmem:[%s5164_s3 + $0x98] sm:$0xff]  ;;  %v5220_v33 = vadd.f32 -1e-10, %v270_v13  ;;  %v279_v35 = vld [vmem:[%s5164_s3 + $0xa0] sm:$0xff] }
  0x6d   : > { %13346 = vst [vmem:[#allocation20_spill] sm:$0xff] %v5213_v28  ;;  %13347 = vst [vmem:[#allocation21_spill] sm:$0xff] %v5215_v29  ;;  %v5222_v34 = vadd.f32 -1e-10, %v271_v17  ;;  %v280_v36 = vld [vmem:[%s5164_s3 + $0xa8] sm:$0xff]  ;;  %v281_v37 = vld [vmem:[%s5164_s3 + $0xb0] sm:$0xff] }
  0x6e   : > { %13348 = vst [vmem:[#allocation22_spill] sm:$0xff] %v5220_v33  ;;  %v282_v41 = vld [vmem:[%s5164_s3 + $0xb8] sm:$0xff]  ;;  %v283_v42 = vld [vmem:[%s5164_s3 + $0xc0] sm:$0xff]  ;;  %v284_v43 = vld [vmem:[%s5164_s3 + $0xc8] sm:$0xff]  ;;  %v5239_v50 = vadd.f32 -1e-10, %v272_v21 }
  0x6f   : > { %13349 = vst [vmem:[#allocation23_spill] sm:$0xff] %v5222_v34  ;;  %v285_v48 = vld [vmem:[%s5164_s3 + $0xd0] sm:$0xff]  ;;  %v286_v49 = vld [vmem:[%s5164_s3 + $0xd8] sm:$0xff]  ;;  %v5241_v51 = vadd.f32 -1e-10, %v273_v22  ;;  %v287_v61 = vld [vmem:[%s5164_s3 + $0xe0] sm:$0xff] }
  0x70   : > { %13350 = vst [vmem:[#allocation24_spill] sm:$0xff] %v5239_v50  ;;  %v5245_v54 = vadd.f32 -1e-10, %v274_v26  ;;  %v5247_v55 = vadd.f32 -1e-10, %v275_v27  ;;  %v288_v1 = vld [vmem:[%s5164_s3 + $0xe8] sm:$0xff] }
  0x71   : > { %13351 = vst [vmem:[#allocation25_spill] sm:$0xff] %v5241_v51  ;;  %v5251_v58 = vadd.f32 -1e-10, %v276_v30  ;;  %v5253_v59 = vadd.f32 -1e-10, %v277_v31  ;;  %v289_v3 = vld [vmem:[%s5164_s3 + $0xf0] sm:$0xff] }
  0x72   : > { %13352 = vst [vmem:[#allocation26_spill] sm:$0xff] %v5245_v54  ;;  %13353 = vst [vmem:[#allocation27_spill] sm:$0xff] %v5247_v55  ;;  %v5255_v60 = vadd.f32 -1e-10, %v278_v32  ;;  %v5258_v62 = vadd.f32 -1e-10, %v279_v35 }
  0x73   : > { %13354 = vst [vmem:[#allocation28_spill] sm:$0xff] %v5251_v58  ;;  %13355 = vst [vmem:[#allocation29_spill] sm:$0xff] %v5253_v59  ;;  %v5260_v63 = vadd.f32 -1e-10, %v280_v36  ;;  %v5262_v0 = vadd.f32 -1e-10, %v281_v37 }
  0x74   : > { %13356 = vst [vmem:[#allocation30_spill] sm:$0xff] %v5255_v60  ;;  %13357 = vst [vmem:[#allocation31_spill] sm:$0xff] %v5258_v62  ;;  %v5266_v4 = vadd.f32 -1e-10, %v282_v41  ;;  %v5268_v5 = vadd.f32 -1e-10, %v283_v42 }
  0x75   : > { %13358 = vst [vmem:[#allocation32_spill] sm:$0xff] %v5260_v63  ;;  %13359 = vst [vmem:[#allocation33_spill] sm:$0xff] %v5262_v0  ;;  %v5270_v7 = vadd.f32 -1e-10, %v284_v43  ;;  %v290_v8 = vld [vmem:[%s5164_s3 + $0xf8] sm:$0xff]  ;;  %v291_v9 = vld [vmem:[%s5164_s3 + $0x100] sm:$0xff] }
  0x76   : > { %13360 = vst [vmem:[#allocation34_spill] sm:$0xff] %v5266_v4  ;;  %13361 = vst [vmem:[#allocation35_spill] sm:$0xff] %v5268_v5  ;;  %v292_v10 = vld [vmem:[%s5164_s3 + $0x108] sm:$0xff]  ;;  %v5275_v11 = vadd.f32 -1e-10, %v285_v48  ;;  %v293_v21 = vld [vmem:[%s5164_s3 + $0x110] sm:$0xff] }
  0x77   : > { %13362 = vst [vmem:[#allocation36_spill] sm:$0xff] %v5270_v7  ;;  %v5277_v12 = vadd.f32 -1e-10, %v286_v49  ;;  %v294_v22 = vld [vmem:[%s5164_s3 + $0x118] sm:$0xff]  ;;  %v295_v26 = vld [vmem:[%s5164_s3 + $0x120] sm:$0xff]  ;;  %v296_v35 = vld [vmem:[%s5164_s3 + $0x128] sm:$0xff] }
  0x78   : > { %13363 = vst [vmem:[#allocation37_spill] sm:$0xff] %v5275_v11  ;;  %v297_v36 = vld [vmem:[%s5164_s3 + $0x130] sm:$0xff]  ;;  %v298_v37 = vld [vmem:[%s5164_s3 + $0x138] sm:$0xff]  ;;  %v299_v49 = vld [vmem:[%s5164_s3 + $0x140] sm:$0xff]  ;;  %v5296_v27 = vadd.f32 -1e-10, %v287_v61 }
  0x79   : > { %13364 = vst [vmem:[#allocation38_spill] sm:$0xff] %v5277_v12  ;;  %v300_v17 = vld [vmem:[%s5164_s3 + $0x148] sm:$0xff]  ;;  %v5302_v41 = vadd.f32 -1e-10, %v288_v1  ;;  %v5304_v42 = vadd.f32 -1e-10, %v289_v3 }
  0x7a   : > { %13365 = vst [vmem:[#allocation39_spill] sm:$0xff] %v5296_v27  ;;  %v5308_v13 = vadd.f32 -1e-10, %v290_v8  ;;  %v5310_v61 = vadd.f32 -1e-10, %v291_v9  ;;  %v301_v32 = vld [vmem:[%s5164_s3 + $0x150] sm:$0xff] }
  0x7b   : > { %13366 = vst [vmem:[#allocation40_spill] sm:$0xff] %v5302_v41  ;;  %13367 = vst [vmem:[#allocation41_spill] sm:$0xff] %v5304_v42  ;;  %v5312_v31 = vadd.f32 -1e-10, %v292_v10  ;;  %v5315_v30 = vadd.f32 -1e-10, %v293_v21 }
  0x7c   : > { %13368 = vst [vmem:[#allocation42_spill] sm:$0xff] %v5308_v13  ;;  %13369 = vst [vmem:[#allocation43_spill] sm:$0xff] %v5310_v61  ;;  %v5317_v57 = vadd.f32 -1e-10, %v294_v22  ;;  %v5319_v1 = vadd.f32 -1e-10, %v295_v26 }
  0x7d   : > { %13370 = vst [vmem:[#allocation44_spill] sm:$0xff] %v5312_v31  ;;  %13371 = vst [vmem:[#allocation45_spill] sm:$0xff] %v5315_v30  ;;  %v302_v3 = vld [vmem:[%s5164_s3 + $0x158] sm:$0xff]  ;;  %v5322_v43 = vadd.f32 -1e-10, %v296_v35  ;;  %v303_v9 = vld [vmem:[%s5164_s3 + $0x160] sm:$0xff] }
  0x7e   : > { %13372 = vst [vmem:[#allocation46_spill] sm:$0xff] %v5317_v57  ;;  %13373 = vst [vmem:[#allocation47_spill] sm:$0xff] %v5319_v1  ;;  %v5324_v8 = vadd.f32 -1e-10, %v297_v36  ;;  %v5326_v48 = vadd.f32 -1e-10, %v298_v37  ;;  %v12717_v37 = vlaneseq }
  0x7f   : > { %13374 = vst [vmem:[#allocation48_spill] sm:$0xff] %v5322_v43  ;;  %v5329_v56 = vadd.f32 -1e-10, %v299_v49  ;;  %v304_v26 = vld [vmem:[%s5164_s3 + $0x168] sm:$0xff]  ;;  %v305_v53 = vld [vmem:[%s5164_s3 + $0x170] sm:$0xff]  ;;  %v306_v47 = vld [vmem:[%s5164_s3 + $0x178] sm:$0xff] }
  0x80   : > { %13375 = vst [vmem:[#allocation49_spill] sm:$0xff] %v5324_v8  ;;  %13376 = vst [vmem:[#allocation50_spill] sm:$0xff] %v5326_v48  ;;  %v5336_v52 = vadd.f32 -1e-10, %v300_v17  ;;  %v307_v49 = vld [vmem:[%s5164_s3 + $0x180] sm:$0xff]  ;;  %v308_v45 = vld [vmem:[%s5164_s3 + $0x188] sm:$0xff] }
  0x81   : > { %13377 = vst [vmem:[#allocation51_spill] sm:$0xff] %v5329_v56  ;;  %v5347_v44 = vadd.f32 -1e-10, %v301_v32  ;;  %v5352_v40 = vadd.f32 -1e-10, %v302_v3  ;;  %v5364_v22 = vshrl.u32 %v12717_v37, 7 }
  0x82   : > { %13378 = vst [vmem:[#allocation52_spill] sm:$0xff] %v5336_v52  ;;  %v5354_v39 = vadd.f32 -1e-10, %v303_v9  ;;  %v5358_v10 = vadd.f32 -1e-10, %v304_v26  ;;  %v5381_v26 = vstv %s4124_s21  ;;  %s12615_s7 = scalar_lea.vmem [#allocation7], %s4262_s6 }
  0x83   : > { %13379 = vst [vmem:[#allocation53_spill] sm:$0xff] %v5347_v44  ;;  %13380 = vst [vmem:[#allocation54_spill] sm:$0xff] %v5352_v40  ;;  %v5360_v21 = vadd.f32 -1e-10, %v305_v53  ;;  %v5366_v17 = vadd.f32 -1e-10, %v306_v47 }
  0x84   : > { %13381 = vst [vmem:[#allocation55_spill] sm:$0xff] %v5354_v39  ;;  %13382 = vst [vmem:[#allocation56_spill] sm:$0xff] %v5358_v10  ;;  %v5368_v35 = vadd.f32 -1e-10, %v307_v49  ;;  %v5370_v3 = vadd.f32 -1e-10, %v308_v45 }
  0x85   : > { %13383 = vst [vmem:[#allocation57_spill] sm:$0xff] %v5360_v21  ;;  %13384 = vst [vmem:[#allocation58_spill] sm:$0xff] %v5364_v22  ;;  %v5373_v9 = vadd.s32 264, %v5364_v22  ;;  %v5376_v46 = vadd.s32 272, %v5364_v22  ;;  %v5379_v53 = vadd.s32 280, %v5364_v22  ;;  %v5384_v32 = vadd.s32 288, %v5364_v22 }
  0x86   : > { %13385 = vst [vmem:[#allocation59_spill] sm:$0xff] %v5366_v17  ;;  %13386 = vst [vmem:[#allocation60_spill] sm:$0xff] %v5368_v35  ;;  %v5387_v47 = vadd.s32 296, %v5364_v22  ;;  %v5390_v45 = vadd.s32 304, %v5364_v22  ;;  %v5393_v49 = vadd.s32 312, %v5364_v22  ;;  %v5396_v36 = vadd.s32 320, %v5364_v22 }
  0x87   : > { %13387 = vst [vmem:[#allocation61_spill] sm:$0xff] %v5370_v3  ;;  %13388 = vst [vmem:[#allocation62_spill] sm:$0xff] %v5381_v26  ;;  %v5399_v38 = vadd.s32 328, %v5364_v22  ;;  %v5402_v20 = vadd.s32 336, %v5364_v22  ;;  %v5405_v16 = vadd.s32 344, %v5364_v22  ;;  %v5408_v37 = vadd.s32 352, %v5364_v22 }
  0x88   : > { %v5411_v52 = vadd.s32 360, %v5364_v22  ;;  %v5414_v56 = vadd.s32 368, %v5364_v22  ;;  %v5417_v48 = vadd.s32 376, %v5364_v22  ;;  %v5420_v8 = vadd.s32 384, %v5364_v22  ;;  %s3743_s20 = sshll.u32 %s12615_s7, 4  ;;  %s12661_s18 = scalar_lea.sflag [#allocation4], %s237_s5  ;;  %s12655_s20 = int_to_ptr.vmem [resolvable:$true] %s3743_s20 }
  0x89   : > { %v5423_v43 = vadd.s32 392, %v5364_v22  ;;  %v5426_v1 = vadd.s32 400, %v5364_v22  ;;  %v5429_v57 = vadd.s32 408, %v5364_v22  ;;  %v5432_v30 = vadd.s32 416, %v5364_v22  ;;  %s4920_s14 = scalar_lea.vmem %s12655_s20, 384  ;;  %s5040_s22 = smov [#allocation7]  }
  0x8a   : > { %v5435_v31 = vadd.s32 424, %v5364_v22  ;;  %v5438_v61 = vadd.s32 432, %v5364_v22  ;;  %v5441_v13 = vadd.s32 440, %v5364_v22  ;;  %v5444_v42 = vadd.s32 448, %v5364_v22  ;;  %p4921_p6 = scmp.ne.s32.totalorder %s12655_s20, %s4920_s14  ;;  %s4924_s23 = sshll.u32 %s5040_s22, 4  ;;  %s4925_s23 = int_to_ptr.vmem [resolvable:$false] %s4924_s23 }
  0x8b   : > { %v5447_v41 = vadd.s32 456, %v5364_v22  ;;  %v5450_v27 = vadd.s32 464, %v5364_v22  ;;  %v5453_v12 = vadd.s32 472, %v5364_v22  ;;  %v5456_v11 = vadd.s32 480, %v5364_v22  ;;  %s4926_s27 = scalar_lea.vmem %s4925_s23, 768  ;;  %p4927_p5 = scmp.lt.s32.totalorder %s12655_s20, %s4925_s23 }
  0x8c   : > { %v5459_v7 = vadd.s32 488, %v5364_v22  ;;  %v5462_v5 = vadd.s32 496, %v5364_v22  ;;  %v5465_v4 = vadd.s32 504, %v5364_v22  ;;  %v5468_v0 = vadd.s32 512, %v5364_v22  ;;  %p4922_p2 = pnand %p4921_p6, %p5122_p12  ;;  %p4928_p4 = scmp.lt.s32.totalorder %s4926_s27, %s4920_s14 }
  0x8d   : > { %v5471_v63 = vadd.s32 520, %v5364_v22  ;;  %v5474_v62 = vadd.s32 528, %v5364_v22  ;;  %v5477_v60 = vadd.s32 536, %v5364_v22  ;;  %v5480_v59 = vadd.s32 544, %v5364_v22 }
  0x8e   : > { %v5483_v58 = vadd.s32 552, %v5364_v22  ;;  %v5486_v55 = vadd.s32 560, %v5364_v22  ;;  %v5489_v54 = vadd.s32 568, %v5364_v22  ;;  %v5492_v51 = vadd.s32 576, %v5364_v22  ;;  %p4923_p3 = pneg %p4922_p2  ;;  %p4929_p7 = por %p4928_p4, %p4927_p5 }
  0x8f   : > { %v5495_v50 = vadd.s32 584, %v5364_v22  ;;  %v5498_v34 = vadd.s32 592, %v5364_v22  ;;  %v5501_v33 = vadd.s32 600, %v5364_v22  ;;  %v5504_v29 = vadd.s32 608, %v5364_v22 }
  0x90   : > { %v5507_v28 = vadd.s32 616, %v5364_v22  ;;  %v5510_v25 = vadd.s32 624, %v5364_v22  ;;  %v5513_v24 = vadd.s32 632, %v5364_v22  ;;  %v5516_v23 = vadd.s32 640, %v5364_v22  ;;  %p4930_p8 = pnand %p4929_p7, %p4923_p3 }
  0x91   : > { %v5519_v19 = vadd.s32 648, %v5364_v22  ;;  %v5522_v18 = vadd.s32 656, %v5364_v22  ;;  %v5525_v15 = vadd.s32 664, %v5364_v22  ;;  %v5528_v14 = vadd.s32 672, %v5364_v22 }
  0x92   : > { %v5531_v6 = vadd.s32 680, %v5364_v22  ;;  %v5534_v2 = vadd.s32 688, %v5364_v22  ;;  %v5537_v3 = vadd.s32 696, %v5364_v22  ;;  %v5540_v35 = vadd.s32 704, %v5364_v22 }
  0x93   : > { %v5543_v17 = vadd.s32 712, %v5364_v22  ;;  %v5546_v21 = vadd.s32 720, %v5364_v22  ;;  %v5549_v10 = vadd.s32 728, %v5364_v22  ;;  %v5552_v39 = vadd.s32 736, %v5364_v22 }
  0x94   : > { %13389 = vst [vmem:[#allocation63_spill] sm:$0xff] %v5534_v2  ;;  %13390 = vst [vmem:[#allocation64_spill] sm:$0xff] %v5537_v3  ;;  %v5555_v40 = vadd.s32 744, %v5364_v22  ;;  %v5558_v44 = vadd.s32 752, %v5364_v22  ;;  %v1450_v3 = vmul.u32 128, %v5376_v46  ;;  %v1453_v2 = vmul.u32 128, %v5387_v47 }
  0x95   : > { %13391 = vst [vmem:[#allocation65_spill] sm:$0xff] %v5540_v35  ;;  %13392 = vst [vmem:[#allocation66_spill] sm:$0xff] %v5543_v17  ;;  %v5561_v35 = vadd.s32 760, %v5364_v22  ;;  %v5564_v17 = vadd.s32 768, %v5364_v22  ;;  %v1455_v46 = vmul.u32 128, %v5393_v49  ;;  %v1458_v47 = vmul.u32 128, %v5402_v20 }
  0x96   : > { %13393 = vst [vmem:[#allocation67_spill] sm:$0xff] %v5546_v21  ;;  %13394 = vst [vmem:[#allocation68_spill] sm:$0xff] %v5549_v10  ;;  %v5567_v21 = vadd.s32 776, %v5364_v22  ;;  %v5570_v10 = vadd.s32 784, %v5364_v22  ;;  %v1462_v20 = vmul.u32 128, %v5414_v56  ;;  %v1466_v56 = vmul.u32 128, %v5426_v1 }
  0x97   : > { %13395 = vst [vmem:[#allocation69_spill] sm:$0xff] %v5552_v39  ;;  %13396 = vst [vmem:[#allocation70_spill] sm:$0xff] %v5555_v40  ;;  %v5573_v39 = vadd.s32 792, %v5364_v22  ;;  %v5576_v40 = vadd.s32 800, %v5364_v22  ;;  %v1470_v1 = vmul.u32 128, %v5438_v61  ;;  %v1474_v61 = vmul.u32 128, %v5450_v27 }
  0x98   : > { %13397 = vst [vmem:[#allocation71_spill] sm:$0xff] %v5558_v44  ;;  %13398 = vst [vmem:[#allocation72_spill] sm:$0xff] %v5561_v35  ;;  %v5579_v44 = vadd.s32 808, %v5364_v22  ;;  %v5582_v35 = vadd.s32 816, %v5364_v22  ;;  %v1478_v27 = vmul.u32 128, %v5462_v5  ;;  %v1482_v5 = vmul.u32 128, %v5474_v62 }
  0x99   : > { %13399 = vst [vmem:[#allocation73_spill] sm:$0xff] %v5564_v17  ;;  %13400 = vst [vmem:[#allocation74_spill] sm:$0xff] %v5567_v21  ;;  %v5585_v17 = vadd.s32 824, %v5364_v22  ;;  %v5588_v21 = vadd.s32 832, %v5364_v22  ;;  %v1486_v62 = vmul.u32 128, %v5486_v55  ;;  %v1490_v55 = vmul.u32 128, %v5498_v34 }
  0x9a   : > { %13401 = vst [vmem:[#allocation75_spill] sm:$0xff] %v5570_v10  ;;  %13402 = vst [vmem:[#allocation76_spill] sm:$0xff] %v5573_v39  ;;  %v5591_v10 = vadd.s32 840, %v5364_v22  ;;  %v5594_v39 = vadd.s32 848, %v5364_v22  ;;  %v1494_v34 = vmul.u32 128, %v5510_v25  ;;  %v1498_v25 = vmul.u32 128, %v5522_v18 }
  0x9b   : > { %13403 = vst [vmem:[#allocation77_spill] sm:$0xff] %v5576_v40  ;;  %13404 = vst [vmem:[#allocation78_spill] sm:$0xff] %v5579_v44  ;;  %v5597_v40 = vadd.s32 856, %v5364_v22  ;;  %v5600_v44 = vadd.s32 864, %v5364_v22 }
  0x9c   : > { %13405 = vst [vmem:[#allocation79_spill] sm:$0xff] %v5582_v35  ;;  %13406 = vst [vmem:[#allocation80_spill] sm:$0xff] %v5585_v17  ;;  %v5603_v35 = vadd.s32 872, %v5364_v22  ;;  %v5606_v17 = vadd.s32 880, %v5364_v22 }
  0x9d   : > { %13407 = vst [vmem:[#allocation81_spill] sm:$0xff] %v5588_v21  ;;  %13408 = vst [vmem:[#allocation82_spill] sm:$0xff] %v5591_v10  ;;  %v5609_v21 = vadd.s32 888, %v5364_v22  ;;  %v5612_v10 = vadd.s32 896, %v5364_v22 }
  0x9e   : > { %13409 = vst [vmem:[#allocation83_spill] sm:$0xff] %v5594_v39  ;;  %13410 = vst [vmem:[#allocation84_spill] sm:$0xff] %v5597_v40  ;;  %v5615_v39 = vadd.s32 904, %v5364_v22  ;;  %v5618_v40 = vadd.s32 912, %v5364_v22 }
  0x9f   : > { %13411 = vst [vmem:[#allocation85_spill] sm:$0xff] %v5600_v44  ;;  %13412 = vst [vmem:[#allocation86_spill] sm:$0xff] %v5603_v35  ;;  %v5621_v44 = vadd.s32 920, %v5364_v22  ;;  %v5624_v35 = vadd.s32 928, %v5364_v22 }
  0xa0   : > { %13413 = vst [vmem:[#allocation87_spill] sm:$0xff] %v5606_v17  ;;  %13414 = vst [vmem:[#allocation88_spill] sm:$0xff] %v5609_v21  ;;  %v5627_v17 = vadd.s32 936, %v5364_v22  ;;  %v5630_v21 = vadd.s32 944, %v5364_v22 }
  0xa1   : > { %13415 = vst [vmem:[#allocation89_spill] sm:$0xff] %v5612_v10  ;;  %13416 = vst [vmem:[#allocation90_spill] sm:$0xff] %v5615_v39  ;;  %v5633_v10 = vadd.s32 952, %v5364_v22  ;;  %v5636_v39 = vadd.s32 960, %v5364_v22 }
  0xa2   : > { %13417 = vst [vmem:[#allocation91_spill] sm:$0xff] %v5618_v40  ;;  %13418 = vst [vmem:[#allocation92_spill] sm:$0xff] %v5621_v44  ;;  %v5639_v40 = vadd.s32 968, %v5364_v22  ;;  %v5642_v44 = vadd.s32 976, %v5364_v22 }
  0xa3   : > { %13419 = vst [vmem:[#allocation93_spill] sm:$0xff] %v5624_v35  ;;  %13420 = vst [vmem:[#allocation94_spill] sm:$0xff] %v5627_v17  ;;  %v5645_v35 = vadd.s32 984, %v5364_v22  ;;  %v5648_v17 = vadd.s32 992, %v5364_v22 }
  0xa4   : > { %13421 = vst [vmem:[#allocation95_spill] sm:$0xff] %v5630_v21  ;;  %13422 = vst [vmem:[#allocation96_spill] sm:$0xff] %v5633_v10  ;;  %v5651_v21 = vadd.s32 1000, %v5364_v22  ;;  %v1449_v10 = vmul.u32 128, %v5373_v9  ;;  %v5669_v9 = vadd.s32 %v5381_v26, %v1450_v3 }
  0xa5   : > { %13423 = vst [vmem:[#allocation97_spill] sm:$0xff] %v5636_v39  ;;  %13424 = vst [vmem:[#allocation98_spill] sm:$0xff] %v5639_v40  ;;  %v5656_v39 = vadd.s32 1008, %v5364_v22  ;;  %v5659_v40 = vadd.s32 1016, %v5364_v22 }
  0xa6   : > { %13425 = vst [vmem:[#allocation99_spill] sm:$0xff] %v5642_v44  ;;  %13426 = vst [vmem:[#allocation100_spill] sm:$0xff] %v5645_v35  ;;  %v1451_v44 = vmul.u32 128, %v5379_v53  ;;  %v1452_v35 = vmul.u32 128, %v5384_v32 }
  0xa7   : > { %13427 = vst [vmem:[#allocation101_spill] sm:$0xff] %v5648_v17  ;;  %13428 = vst [vmem:[#allocation102_spill] sm:$0xff] %v5651_v21  ;;  %v1454_v17 = vmul.u32 128, %v5390_v45  ;;  %v5666_v21 = vadd.s32 %v5381_v26, %v1449_v10  ;;  %v1457_v32 = vmul.u32 128, %v5399_v38  ;;  %v5682_v10 = vadd.s32 %v5381_v26, %v1453_v2 }
  0xa8   : > { %13429 = vst [vmem:[#allocation103_spill] sm:$0xff] %v5656_v39  ;;  %v1456_v39 = vmul.u32 128, %v5396_v36  ;;  %v5674_v22 = vadd.s32 %v5381_v26, %v1451_v44  ;;  %v5677_v53 = vadd.s32 %v5381_v26, %v1452_v35  ;;  %v1459_v45 = vmul.u32 128, %v5405_v16 }
  0xa9   : > { %v5685_v3 = vadd.s32 %v5381_v26, %v1454_v17  ;;  %v1460_v36 = vmul.u32 128, %v5408_v37  ;;  %v5690_v44 = vadd.s32 %v5381_v26, %v1455_v46  ;;  %v1461_v38 = vmul.u32 128, %v5411_v52 }
  0xaa   : > { %v5693_v35 = vadd.s32 %v5381_v26, %v1456_v39  ;;  %v5698_v2 = vadd.s32 %v5381_v26, %v1457_v32  ;;  %v5701_v17 = vadd.s32 %v5381_v26, %v1458_v47  ;;  %v1463_v16 = vmul.u32 128, %v5417_v48 }
  0xab   : > { %v1464_v37 = vmul.u32 128, %v5420_v8  ;;  %v5706_v49 = vadd.s32 %v5381_v26, %v1459_v45  ;;  %v5709_v39 = vadd.s32 %v5381_v26, %v1460_v36  ;;  %v1465_v52 = vmul.u32 128, %v5423_v43 }
  0xac   : > { %v5714_v46 = vadd.s32 %v5381_v26, %v1461_v38  ;;  %v5717_v32 = vadd.s32 %v5381_v26, %v1462_v20  ;;  %v1467_v48 = vmul.u32 128, %v5429_v57  ;;  %v1468_v8 = vmul.u32 128, %v5432_v30 }
  0xad   : > { %v5722_v47 = vadd.s32 %v5381_v26, %v1463_v16  ;;  %v5725_v45 = vadd.s32 %v5381_v26, %v1464_v37  ;;  %v1469_v43 = vmul.u32 128, %v5435_v31  ;;  %v5730_v36 = vadd.s32 %v5381_v26, %v1465_v52 }
  0xae   : > { %v5733_v38 = vadd.s32 %v5381_v26, %v1466_v56  ;;  %v1471_v57 = vmul.u32 128, %v5441_v13  ;;  %v1472_v30 = vmul.u32 128, %v5444_v42  ;;  %v5738_v20 = vadd.s32 %v5381_v26, %v1467_v48 }
  0xaf   : > { %v5741_v16 = vadd.s32 %v5381_v26, %v1468_v8  ;;  %v1473_v31 = vmul.u32 128, %v5447_v41  ;;  %v5746_v37 = vadd.s32 %v5381_v26, %v1469_v43  ;;  %v5749_v52 = vadd.s32 %v5381_v26, %v1470_v1 }
  0xb0   : > { %v1475_v13 = vmul.u32 128, %v5453_v12  ;;  %v1476_v42 = vmul.u32 128, %v5456_v11  ;;  %v5754_v56 = vadd.s32 %v5381_v26, %v1471_v57  ;;  %v5757_v48 = vadd.s32 %v5381_v26, %v1472_v30 }
  0xb1   : > { %v1477_v41 = vmul.u32 128, %v5459_v7  ;;  %v5762_v8 = vadd.s32 %v5381_v26, %v1473_v31  ;;  %v5765_v43 = vadd.s32 %v5381_v26, %v1474_v61  ;;  %v1479_v12 = vmul.u32 128, %v5465_v4 }
  0xb2   : > { %v1480_v11 = vmul.u32 128, %v5468_v0  ;;  %v5770_v1 = vadd.s32 %v5381_v26, %v1475_v13  ;;  %v5773_v57 = vadd.s32 %v5381_v26, %v1476_v42  ;;  %v1481_v7 = vmul.u32 128, %v5471_v63 }
  0xb3   : > { %v5778_v30 = vadd.s32 %v5381_v26, %v1477_v41  ;;  %v5781_v31 = vadd.s32 %v5381_v26, %v1478_v27  ;;  %v1483_v4 = vmul.u32 128, %v5477_v60  ;;  %v1484_v0 = vmul.u32 128, %v5480_v59 }
  0xb4   : > { %v5786_v61 = vadd.s32 %v5381_v26, %v1479_v12  ;;  %v5789_v13 = vadd.s32 %v5381_v26, %v1480_v11  ;;  %v1485_v63 = vmul.u32 128, %v5483_v58  ;;  %v5794_v42 = vadd.s32 %v5381_v26, %v1481_v7 }
  0xb5   : > { %v5797_v41 = vadd.s32 %v5381_v26, %v1482_v5  ;;  %v1487_v60 = vmul.u32 128, %v5489_v54  ;;  %v1488_v59 = vmul.u32 128, %v5492_v51  ;;  %v5802_v27 = vadd.s32 %v5381_v26, %v1483_v4 }
  0xb6   : > { %13430 = vst [vmem:[#allocation104_spill] sm:$0xff] %v5789_v13  ;;  %13431 = vst [vmem:[#allocation105_spill] sm:$0xff] %v5794_v42  ;;  %v5805_v12 = vadd.s32 %v5381_v26, %v1484_v0  ;;  %v1489_v58 = vmul.u32 128, %v5495_v50  ;;  %v5810_v11 = vadd.s32 %v5381_v26, %v1485_v63  ;;  %v5813_v7 = vadd.s32 %v5381_v26, %v1486_v62  ;;  %v325_v42 = vld [vmem:[%s5164_s3 + $0x210] sm:$0xff] }
  0xb7   : > { %13432 = vst [vmem:[#allocation106_spill] sm:$0xff] %v5797_v41  ;;  %13433 = vst [vmem:[#allocation107_spill] sm:$0xff] %v5802_v27  ;;  %v1491_v54 = vmul.u32 128, %v5501_v33  ;;  %v1492_v51 = vmul.u32 128, %v5504_v29  ;;  %v5818_v5 = vadd.s32 %v5381_v26, %v1487_v60  ;;  %v5821_v4 = vadd.s32 %v5381_v26, %v1488_v59  ;;  %v13542_v41 = vld [vmem:[#allocation59_spill] sm:$0xff] }
  0xb8   : > { %13434 = vst [vmem:[#allocation108_spill] sm:$0xff] %v5805_v12  ;;  %13435 = vst [vmem:[#allocation109_spill] sm:$0xff] %v5810_v11  ;;  %v1493_v50 = vmul.u32 128, %v5507_v28  ;;  %v5826_v0 = vadd.s32 %v5381_v26, %v1489_v58  ;;  %v5829_v63 = vadd.s32 %v5381_v26, %v1490_v55  ;;  %v1495_v33 = vmul.u32 128, %v5513_v24  ;;  %v323_v11 = vld [vmem:[%s5164_s3 + $0x200] sm:$0xff] }
  0xb9   : > { %13436 = vst [vmem:[#allocation110_spill] sm:$0xff] %v5813_v7  ;;  %13437 = vst [vmem:[#allocation111_spill] sm:$0xff] %v5818_v5  ;;  %v1496_v29 = vmul.u32 128, %v5516_v23  ;;  %v5834_v62 = vadd.s32 %v5381_v26, %v1491_v54  ;;  %v5837_v60 = vadd.s32 %v5381_v26, %v1492_v51  ;;  %v1497_v28 = vmul.u32 128, %v5519_v19  ;;  %v13447_v51 = vld [vmem:[#allocation63_spill] sm:$0xff]  ;;  %v13541_v12 = vld [vmem:[#allocation57_spill] sm:$0xff] }
  0xba   : > { %13438 = vst [vmem:[#allocation112_spill] sm:$0xff] %v5821_v4  ;;  %13439 = vst [vmem:[#allocation113_spill] sm:$0xff] %v5826_v0  ;;  %v5842_v59 = vadd.s32 %v5381_v26, %v1493_v50  ;;  %v5845_v58 = vadd.s32 %v5381_v26, %v1494_v34  ;;  %v1499_v24 = vmul.u32 128, %v5525_v15  ;;  %v1500_v23 = vmul.u32 128, %v5528_v14  ;;  %v321_v0 = vld [vmem:[%s5164_s3 + $0x1f0] sm:$0xff]  ;;  %v13538_v4 = vld [vmem:[#allocation54_spill] sm:$0xff] }
  0xbb   : > { %13440 = vst [vmem:[#allocation114_spill] sm:$0xff] %v5829_v63  ;;  %13441 = vst [vmem:[#allocation115_spill] sm:$0xff] %v5834_v62  ;;  %v5850_v55 = vadd.s32 %v5381_v26, %v1495_v33  ;;  %v5853_v54 = vadd.s32 %v5381_v26, %v1496_v29  ;;  %v1501_v19 = vmul.u32 128, %v5531_v6  ;;  %v1502_v18 = vmul.u32 128, %v13447_v51  ;;  %v314_v62 = vld [vmem:[%s5164_s3 + $0x1b8] sm:$0xff]  ;;  %v320_v63 = vld [vmem:[%s5164_s3 + $0x1e8] sm:$0xff] }
  0xbc   : > { %13442 = vst [vmem:[#allocation116_spill] sm:$0xff] %v5837_v60  ;;  %13443 = vst [vmem:[#allocation117_spill] sm:$0xff] %v5842_v59  ;;  %v5858_v50 = vadd.s32 %v5381_v26, %v1497_v28  ;;  %v5861_v34 = vadd.s32 %v5381_v26, %v1498_v25  ;;  %v13451_v59 = vld [vmem:[#allocation65_spill] sm:$0xff]  ;;  %v5866_v33 = vadd.s32 %v5381_v26, %v1499_v24  ;;  %v6097_v5 = vadd.f32 -1e-10, %v321_v0 }
  0xbd   : > { %13444 = vst [vmem:[#allocation118_spill] sm:$0xff] %v5845_v58  ;;  %13445 = vst [vmem:[#allocation119_spill] sm:$0xff] %v5850_v55  ;;  %v13450_v58 = vld [vmem:[#allocation64_spill] sm:$0xff]  ;;  %v1504_v14 = vmul.u32 128, %v13451_v59  ;;  %v5869_v29 = vadd.s32 %v5381_v26, %v1500_v23  ;;  %v13455_v55 = vld [vmem:[#allocation67_spill] sm:$0xff]  ;;  %v5874_v28 = vadd.s32 %v5381_v26, %v1501_v19  ;;  %v5877_v25 = vadd.s32 %v5381_v26, %v1502_v18 }
  0xbe   : > { %13446 = vst [vmem:[#allocation120_spill] sm:$0xff] %v5853_v54  ;;  %13448 = vst [vmem:[#allocation63_spill] sm:$0xff] %v5858_v50  ;;  %v1503_v15 = vmul.u32 128, %v13450_v58  ;;  %v13454_v54 = vld [vmem:[#allocation66_spill] sm:$0xff]  ;;  %v1506_v51 = vmul.u32 128, %v13455_v55  ;;  %v13459_v50 = vld [vmem:[#allocation69_spill] sm:$0xff] }
  0xbf   : > { %13449 = vst [vmem:[#allocation121_spill] sm:$0xff] %v5861_v34  ;;  %13452 = vst [vmem:[#allocation64_spill] sm:$0xff] %v5866_v33  ;;  %v1505_v6 = vmul.u32 128, %v13454_v54  ;;  %v13458_v34 = vld [vmem:[#allocation68_spill] sm:$0xff]  ;;  %v1508_v59 = vmul.u32 128, %v13459_v50  ;;  %v5885_v23 = vadd.s32 %v5381_v26, %v1504_v14  ;;  %v13463_v33 = vld [vmem:[#allocation71_spill] sm:$0xff] }
  0xc0   : > { %13453 = vst [vmem:[#allocation65_spill] sm:$0xff] %v5869_v29  ;;  %13456 = vst [vmem:[#allocation66_spill] sm:$0xff] %v5874_v28  ;;  %v1507_v58 = vmul.u32 128, %v13458_v34  ;;  %v5882_v24 = vadd.s32 %v5381_v26, %v1503_v15  ;;  %v13462_v29 = vld [vmem:[#allocation70_spill] sm:$0xff]  ;;  %v1510_v55 = vmul.u32 128, %v13463_v33  ;;  %v5893_v18 = vadd.s32 %v5381_v26, %v1506_v51  ;;  %v13467_v28 = vld [vmem:[#allocation73_spill] sm:$0xff] }
  0xc1   : > { %13457 = vst [vmem:[#allocation67_spill] sm:$0xff] %v5877_v25  ;;  %13461 = vst [vmem:[#allocation69_spill] sm:$0xff] %v5885_v23  ;;  %v1509_v54 = vmul.u32 128, %v13462_v29  ;;  %v5890_v19 = vadd.s32 %v5381_v26, %v1505_v6  ;;  %v13466_v25 = vld [vmem:[#allocation72_spill] sm:$0xff]  ;;  %v1512_v50 = vmul.u32 128, %v13467_v28  ;;  %v5901_v14 = vadd.s32 %v5381_v26, %v1508_v59  ;;  %v13470_v23 = vld [vmem:[#allocation74_spill] sm:$0xff] }
  0xc2   : > { %13460 = vst [vmem:[#allocation68_spill] sm:$0xff] %v5882_v24  ;;  %13465 = vst [vmem:[#allocation71_spill] sm:$0xff] %v5893_v18  ;;  %v1511_v34 = vmul.u32 128, %v13466_v25  ;;  %v5898_v15 = vadd.s32 %v5381_v26, %v1507_v58  ;;  %v1513_v29 = vmul.u32 128, %v13470_v23  ;;  %v13471_v24 = vld [vmem:[#allocation75_spill] sm:$0xff]  ;;  %v5909_v51 = vadd.s32 %v5381_v26, %v1510_v55  ;;  %v13474_v18 = vld [vmem:[#allocation76_spill] sm:$0xff] }
  0xc3   : > { %13464 = vst [vmem:[#allocation70_spill] sm:$0xff] %v5890_v19  ;;  %13469 = vst [vmem:[#allocation73_spill] sm:$0xff] %v5901_v14  ;;  %v1514_v33 = vmul.u32 128, %v13471_v24  ;;  %v5906_v6 = vadd.s32 %v5381_v26, %v1509_v54  ;;  %v1515_v25 = vmul.u32 128, %v13474_v18  ;;  %v13475_v19 = vld [vmem:[#allocation77_spill] sm:$0xff]  ;;  %v5917_v59 = vadd.s32 %v5381_v26, %v1512_v50  ;;  %v13478_v14 = vld [vmem:[#allocation78_spill] sm:$0xff] }
  0xc4   : > { %13468 = vst [vmem:[#allocation72_spill] sm:$0xff] %v5898_v15  ;;  %13473 = vst [vmem:[#allocation75_spill] sm:$0xff] %v5909_v51  ;;  %v1516_v28 = vmul.u32 128, %v13475_v19  ;;  %v5914_v58 = vadd.s32 %v5381_v26, %v1511_v34  ;;  %v1517_v23 = vmul.u32 128, %v13478_v14  ;;  %v13479_v15 = vld [vmem:[#allocation79_spill] sm:$0xff]  ;;  %v5922_v54 = vadd.s32 %v5381_v26, %v1513_v29  ;;  %v13482_v51 = vld [vmem:[#allocation80_spill] sm:$0xff] }
  0xc5   : > { %13472 = vst [vmem:[#allocation74_spill] sm:$0xff] %v5906_v6  ;;  %13477 = vst [vmem:[#allocation77_spill] sm:$0xff] %v5917_v59  ;;  %v1518_v24 = vmul.u32 128, %v13479_v15  ;;  %v5925_v55 = vadd.s32 %v5381_v26, %v1514_v33  ;;  %v1519_v18 = vmul.u32 128, %v13482_v51  ;;  %v13483_v6 = vld [vmem:[#allocation81_spill] sm:$0xff]  ;;  %v5930_v34 = vadd.s32 %v5381_v26, %v1515_v25  ;;  %v13486_v59 = vld [vmem:[#allocation82_spill] sm:$0xff] }
  0xc6   : > { %13476 = vst [vmem:[#allocation76_spill] sm:$0xff] %v5914_v58  ;;  %13480 = vst [vmem:[#allocation78_spill] sm:$0xff] %v5922_v54  ;;  %v1520_v19 = vmul.u32 128, %v13483_v6  ;;  %v5933_v50 = vadd.s32 %v5381_v26, %v1516_v28  ;;  %v1521_v14 = vmul.u32 128, %v13486_v59  ;;  %v13487_v58 = vld [vmem:[#allocation83_spill] sm:$0xff]  ;;  %v5938_v29 = vadd.s32 %v5381_v26, %v1517_v23  ;;  %v13491_v54 = vld [vmem:[#allocation85_spill] sm:$0xff] }
  0xc7   : > { %13481 = vst [vmem:[#allocation79_spill] sm:$0xff] %v5925_v55  ;;  %13484 = vst [vmem:[#allocation80_spill] sm:$0xff] %v5930_v34  ;;  %v1522_v15 = vmul.u32 128, %v13487_v58  ;;  %v5941_v33 = vadd.s32 %v5381_v26, %v1518_v24  ;;  %v13490_v55 = vld [vmem:[#allocation84_spill] sm:$0xff]  ;;  %v1524_v6 = vmul.u32 128, %v13491_v54  ;;  %v5946_v25 = vadd.s32 %v5381_v26, %v1519_v18  ;;  %v13495_v34 = vld [vmem:[#allocation87_spill] sm:$0xff] }
  0xc8   : > { %13485 = vst [vmem:[#allocation81_spill] sm:$0xff] %v5933_v50  ;;  %13488 = vst [vmem:[#allocation82_spill] sm:$0xff] %v5938_v29  ;;  %v1523_v51 = vmul.u32 128, %v13490_v55  ;;  %v5949_v28 = vadd.s32 %v5381_v26, %v1520_v19  ;;  %v13494_v50 = vld [vmem:[#allocation86_spill] sm:$0xff]  ;;  %v1526_v58 = vmul.u32 128, %v13495_v34  ;;  %v5954_v23 = vadd.s32 %v5381_v26, %v1521_v14  ;;  %v13499_v29 = vld [vmem:[#allocation89_spill] sm:$0xff] }
  0xc9   : > { %13489 = vst [vmem:[#allocation83_spill] sm:$0xff] %v5941_v33  ;;  %13492 = vst [vmem:[#allocation84_spill] sm:$0xff] %v5946_v25  ;;  %v1525_v59 = vmul.u32 128, %v13494_v50  ;;  %v5957_v24 = vadd.s32 %v5381_v26, %v1522_v15  ;;  %v13498_v33 = vld [vmem:[#allocation88_spill] sm:$0xff]  ;;  %v1528_v54 = vmul.u32 128, %v13499_v29  ;;  %v5965_v19 = vadd.s32 %v5381_v26, %v1524_v6  ;;  %v13503_v25 = vld [vmem:[#allocation91_spill] sm:$0xff] }
  0xca   : > { %13493 = vst [vmem:[#allocation85_spill] sm:$0xff] %v5949_v28  ;;  %13496 = vst [vmem:[#allocation86_spill] sm:$0xff] %v5954_v23  ;;  %v1527_v55 = vmul.u32 128, %v13498_v33  ;;  %v5962_v18 = vadd.s32 %v5381_v26, %v1523_v51  ;;  %v13502_v28 = vld [vmem:[#allocation90_spill] sm:$0xff]  ;;  %v1530_v34 = vmul.u32 128, %v13503_v25  ;;  %v5973_v15 = vadd.s32 %v5381_v26, %v1526_v58  ;;  %v13506_v33 = vld [vmem:[#allocation92_spill] sm:$0xff] }
  0xcb   : > { %13497 = vst [vmem:[#allocation87_spill] sm:$0xff] %v5957_v24  ;;  %13501 = vst [vmem:[#allocation89_spill] sm:$0xff] %v5965_v19  ;;  %v1529_v50 = vmul.u32 128, %v13502_v28  ;;  %v5970_v14 = vadd.s32 %v5381_v26, %v1525_v59  ;;  %v1531_v24 = vmul.u32 128, %v13506_v33  ;;  %v13507_v29 = vld [vmem:[#allocation93_spill] sm:$0xff]  ;;  %v5981_v6 = vadd.s32 %v5381_v26, %v1528_v54  ;;  %v13510_v28 = vld [vmem:[#allocation94_spill] sm:$0xff] }
  0xcc   : > { %13500 = vst [vmem:[#allocation88_spill] sm:$0xff] %v5962_v18  ;;  %13505 = vst [vmem:[#allocation91_spill] sm:$0xff] %v5973_v15  ;;  %v1532_v23 = vmul.u32 128, %v13507_v29  ;;  %v5978_v51 = vadd.s32 %v5381_v26, %v1527_v55  ;;  %v1533_v25 = vmul.u32 128, %v13510_v28  ;;  %v13511_v19 = vld [vmem:[#allocation95_spill] sm:$0xff]  ;;  %v5989_v58 = vadd.s32 %v5381_v26, %v1530_v34  ;;  %v13514_v33 = vld [vmem:[#allocation96_spill] sm:$0xff] }
  0xcd   : > { %13504 = vst [vmem:[#allocation90_spill] sm:$0xff] %v5970_v14  ;;  %13509 = vst [vmem:[#allocation93_spill] sm:$0xff] %v5981_v6  ;;  %v1534_v59 = vmul.u32 128, %v13511_v19  ;;  %v5986_v14 = vadd.s32 %v5381_v26, %v1529_v50  ;;  %v1535_v29 = vmul.u32 128, %v13514_v33  ;;  %v13515_v15 = vld [vmem:[#allocation97_spill] sm:$0xff]  ;;  %v309_v28 = vld [vmem:[%s5164_s3 + $0x190] sm:$0xff] }
  0xce   : > { %13508 = vst [vmem:[#allocation92_spill] sm:$0xff] %v5978_v51  ;;  %13513 = vst [vmem:[#allocation95_spill] sm:$0xff] %v5989_v58  ;;  %v1536_v55 = vmul.u32 128, %v13515_v15  ;;  %v5994_v51 = vadd.s32 %v5381_v26, %v1531_v24  ;;  %v5997_v54 = vadd.s32 %v5381_v26, %v1532_v23  ;;  %v13518_v19 = vld [vmem:[#allocation98_spill] sm:$0xff]  ;;  %v13519_v50 = vld [vmem:[#allocation99_spill] sm:$0xff]  ;;  %v6003_v34 = vadd.s32 %v5381_v26, %v1533_v25 }
  0xcf   : > { %13512 = vst [vmem:[#allocation94_spill] sm:$0xff] %v5986_v14  ;;  %v1537_v6 = vmul.u32 128, %v13518_v19  ;;  %v1538_v14 = vmul.u32 128, %v13519_v50  ;;  %v6006_v33 = vadd.s32 %v5381_v26, %v1534_v59  ;;  %v310_v15 = vld [vmem:[%s5164_s3 + $0x198] sm:$0xff]  ;;  %v311_v58 = vld [vmem:[%s5164_s3 + $0x1a0] sm:$0xff]  ;;  %v6013_v19 = vadd.s32 %v5381_v26, %v1535_v29  ;;  %v313_v25 = vld [vmem:[%s5164_s3 + $0x1b0] sm:$0xff] }
  0xd0   : > { %13516 = vst [vmem:[#allocation96_spill] sm:$0xff] %v5994_v51  ;;  %13517 = vst [vmem:[#allocation97_spill] sm:$0xff] %v5997_v54  ;;  %v13522_v24 = vld [vmem:[#allocation100_spill] sm:$0xff]  ;;  %v13523_v18 = vld [vmem:[#allocation101_spill] sm:$0xff]  ;;  %v6016_v50 = vadd.s32 %v5381_v26, %v1536_v55  ;;  %v1543_v55 = vmul.u32 128, %v5659_v40 }
  0xd1   : > { %13520 = vst [vmem:[#allocation98_spill] sm:$0xff] %v6003_v34  ;;  %13521 = vst [vmem:[#allocation99_spill] sm:$0xff] %v6006_v33  ;;  %v1539_v51 = vmul.u32 128, %v13522_v24  ;;  %v1540_v23 = vmul.u32 128, %v13523_v18  ;;  %v312_v54 = vld [vmem:[%s5164_s3 + $0x1a8] sm:$0xff]  ;;  %v13527_v59 = vld [vmem:[#allocation103_spill] sm:$0xff]  ;;  %v6023_v24 = vadd.s32 %v5381_v26, %v1537_v6  ;;  %v6026_v18 = vadd.s32 %v5381_v26, %v1538_v14 }
  0xd2   : > { %13524 = vst [vmem:[#allocation100_spill] sm:$0xff] %v6013_v19  ;;  %13525 = vst [vmem:[#allocation101_spill] sm:$0xff] %v6016_v50  ;;  %v13526_v34 = vld [vmem:[#allocation102_spill] sm:$0xff]  ;;  %v1542_v33 = vmul.u32 128, %v13527_v59  ;;  %v315_v29 = vld [vmem:[%s5164_s3 + $0x1c0] sm:$0xff] }
  0xd3   : > { %v1541_v60 = vmul.u32 128, %v13526_v34  ;;  %13528 = vst [vmem:[#allocation102_spill] sm:$0xff] %v6023_v24  ;;  %13529 = vst [vmem:[#allocation103_spill] sm:$0xff] %v6026_v18  ;;  %v6030_v19 = vadd.f32 -1e-10, %v309_v28  ;;  %v6034_v34 = vadd.s32 %v5381_v26, %v1539_v51  ;;  %v6037_v59 = vadd.s32 %v5381_v26, %v1540_v23  ;;  %v316_v6 = vld [vmem:[%s5164_s3 + $0x1c8] sm:$0xff] }
  0xd4   : > { %v317_v24 = vld [vmem:[%s5164_s3 + $0x1d0] sm:$0xff]  ;;  %v6041_v50 = vadd.f32 -1e-10, %v310_v15  ;;  %v6043_v14 = vadd.f32 -1e-10, %v311_v58  ;;  %v6049_v40 = vadd.s32 %v5381_v26, %v1542_v33  ;;  %v318_v51 = vld [vmem:[%s5164_s3 + $0x1d8] sm:$0xff]  ;;  %v6059_v58 = vadd.s32 %v5381_v26, %v1543_v55 }
  0xd5   : > { %13530 = vst [vmem:[#allocation122_spill] sm:$0xff] %v6034_v34  ;;  %13531 = vst [vmem:[#allocation123_spill] sm:$0xff] %v6037_v59  ;;  %v6046_v28 = vadd.s32 %v5381_v26, %v1541_v60  ;;  %v319_v34 = vld [vmem:[%s5164_s3 + $0x1e0] sm:$0xff]  ;;  %v6053_v18 = vadd.f32 -1e-10, %v312_v54  ;;  %v322_v60 = vld [vmem:[%s5164_s3 + $0x1f8] sm:$0xff]  ;;  %v13550_v26 = vlaneseq }
  0xd6   : > { %13533 = vst [vmem:[#allocation125_spill] sm:$0xff] %v6049_v40  ;;  %v6055_v23 = vadd.f32 -1e-10, %v313_v25  ;;  %13536 = vst [vmem:[#allocation127_spill] sm:$0xff] %v6059_v58  ;;  %v13539_v40 = vld [vmem:[#allocation55_spill] sm:$0xff]  ;;  %v324_v25 = vld [vmem:[%s5164_s3 + $0x208] sm:$0xff] }
  0xd7   : > { %13532 = vst [vmem:[#allocation124_spill] sm:$0xff] %v6046_v28  ;;  %v6064_v28 = vadd.f32 -1e-10, %v314_v62  ;;  %v13543_v59 = vld [vmem:[#allocation60_spill] sm:$0xff]  ;;  %v6076_v13 = vadd.f32 -1e-10, %v315_v29 }
  0xd8   : > { %13534 = vst [vmem:[#allocation126_spill] sm:$0xff] %v6055_v23  ;;  %v6081_v54 = vadd.f32 -1e-10, %v316_v6  ;;  %v6083_v7 = vadd.f32 -1e-10, %v317_v24  ;;  %v6093_v62 = vand.u32 127, %v13550_v26 }
  0xd9   : > { %13537 = vst [vmem:[#allocation128_spill] sm:$0xff] %v6064_v28  ;;  %13545 = vst [vmem:[#allocation54_spill] sm:$0xff] %v6076_v13  ;;  %v6087_v55 = vadd.f32 -1e-10, %v318_v51  ;;  %v6089_v58 = vadd.f32 -1e-10, %v319_v34 }
  0xda   : > { %13546 = vst [vmem:[#allocation55_spill] sm:$0xff] %v6081_v54  ;;  %13547 = vst [vmem:[#allocation57_spill] sm:$0xff] %v6083_v7  ;;  %v6095_v33 = vadd.f32 -1e-10, %v320_v63  ;;  %v6099_v6 = vadd.f32 -1e-10, %v322_v60  ;;  %v6109_v34 = vadd.s32 %v5666_v21, %v6093_v62  ;;  %v6113_v26 = vadd.s32 %v5669_v9, %v6093_v62 }
  0xdb   : > { %13548 = vst [vmem:[#allocation59_spill] sm:$0xff] %v6087_v55  ;;  %13549 = vst [vmem:[#allocation60_spill] sm:$0xff] %v6089_v58  ;;  %v6101_v24 = vadd.f32 -1e-10, %v323_v11  ;;  %v6103_v27 = vadd.f32 -1e-10, %v324_v25  ;;  %v6117_v0 = vadd.s32 %v5674_v22, %v6093_v62  ;;  %v6121_v11 = vadd.s32 %v5677_v53, %v6093_v62 }
  0xdc   : > { %13551 = vst [vmem:[#allocation129_spill] sm:$0xff] %v6093_v62  ;;  %13552 = vst [vmem:[#allocation130_spill] sm:$0xff] %v6095_v33  ;;  %v6105_v15 = vadd.f32 -1e-10, %v325_v42  ;;  %v6125_v42 = vadd.s32 %v5682_v10, %v6093_v62  ;;  %v6129_v21 = vadd.s32 %v5685_v3, %v6093_v62  ;;  %v6133_v9 = vadd.s32 %v5690_v44, %v6093_v62  ;;  %v13589_v63 = vld [vmem:[#allocation104_spill] sm:$0xff]  ;;  %v13591_v51 = vld [vmem:[#allocation105_spill] sm:$0xff] }
  0xdd   : > { %13553 = vst [vmem:[#allocation131_spill] sm:$0xff] %v6097_v5  ;;  %13554 = vst [vmem:[#allocation132_spill] sm:$0xff] %v6099_v6  ;;  %v6137_v22 = vadd.s32 %v5693_v35, %v6093_v62  ;;  %v6141_v53 = vadd.s32 %v5698_v2, %v6093_v62  ;;  %v6145_v10 = vadd.s32 %v5701_v17, %v6093_v62  ;;  %v13593_v60 = vld [vmem:[#allocation106_spill] sm:$0xff]  ;;  %v13595_v25 = vld [vmem:[#allocation107_spill] sm:$0xff] }
  0xde   : > { %13555 = vst [vmem:[#allocation133_spill] sm:$0xff] %v6101_v24  ;;  %13556 = vst [vmem:[#allocation134_spill] sm:$0xff] %v6103_v27  ;;  %v6149_v3 = vadd.s32 %v5706_v49, %v6093_v62  ;;  %v6153_v44 = vadd.s32 %v5709_v39, %v6093_v62  ;;  %v6157_v35 = vadd.s32 %v5714_v46, %v6093_v62  ;;  %v13597_v29 = vld [vmem:[#allocation108_spill] sm:$0xff]  ;;  %v379_v27 = vld [vmem:[%s5164_s3 + $0x3c0] sm:$0xff] }
  0xdf   : > { %13557 = vst [vmem:[#allocation135_spill] sm:$0xff] %v6105_v15  ;;  %13558 = vst [vmem:[#allocation136_spill] sm:$0xff] %v6109_v34  ;;  %v6161_v2 = vadd.s32 %v5717_v32, %v6093_v62  ;;  %v6165_v17 = vadd.s32 %v5722_v47, %v6093_v62  ;;  %v6169_v49 = vadd.s32 %v5725_v45, %v6093_v62  ;;  %v381_v24 = vld [vmem:[%s5164_s3 + $0x3d0] sm:$0xff]  ;;  %v382_v5 = vld [vmem:[%s5164_s3 + $0x3d8] sm:$0xff]  ;;  %v6681_v23 = vadd.f32 -1e-10, %v379_v27 }
  0xe0   : > { %13559 = vst [vmem:[#allocation137_spill] sm:$0xff] %v6113_v26  ;;  %13560 = vst [vmem:[#allocation138_spill] sm:$0xff] %v6117_v0  ;;  %v6173_v39 = vadd.s32 %v5730_v36, %v6093_v62  ;;  %v6177_v46 = vadd.s32 %v5733_v38, %v6093_v62  ;;  %v6181_v32 = vadd.s32 %v5738_v20, %v6093_v62  ;;  %v360_v26 = vld [vmem:[%s5164_s3 + $0x328] sm:$0xff]  ;;  %v362_v0 = vld [vmem:[%s5164_s3 + $0x338] sm:$0xff] }
  0xe1   : > { %13561 = vst [vmem:[#allocation139_spill] sm:$0xff] %v6121_v11  ;;  %13562 = vst [vmem:[#allocation140_spill] sm:$0xff] %v6125_v42  ;;  %v6185_v47 = vadd.s32 %v5741_v16, %v6093_v62  ;;  %v6189_v45 = vadd.s32 %v5746_v37, %v6093_v62  ;;  %v6193_v36 = vadd.s32 %v5749_v52, %v6093_v62  ;;  %v357_v42 = vld [vmem:[%s5164_s3 + $0x310] sm:$0xff]  ;;  %v383_v33 = vld [vmem:[%s5164_s3 + $0x3e0] sm:$0xff] }
  0xe2   : > { %13563 = vst [vmem:[#allocation141_spill] sm:$0xff] %v6129_v21  ;;  %13564 = vst [vmem:[#allocation142_spill] sm:$0xff] %v6133_v9  ;;  %v6197_v38 = vadd.s32 %v5754_v56, %v6093_v62  ;;  %v6201_v20 = vadd.s32 %v5757_v48, %v6093_v62  ;;  %v6205_v16 = vadd.s32 %v5762_v8, %v6093_v62  ;;  %v358_v21 = vld [vmem:[%s5164_s3 + $0x318] sm:$0xff]  ;;  %v384_v58 = vld [vmem:[%s5164_s3 + $0x3e8] sm:$0xff] }
  0xe3   : > { %13565 = vst [vmem:[#allocation143_spill] sm:$0xff] %v6137_v22  ;;  %13566 = vst [vmem:[#allocation144_spill] sm:$0xff] %v6141_v53  ;;  %v6209_v37 = vadd.s32 %v5765_v43, %v6093_v62  ;;  %v6213_v52 = vadd.s32 %v5770_v1, %v6093_v62  ;;  %v6217_v56 = vadd.s32 %v5773_v57, %v6093_v62  ;;  %v354_v22 = vld [vmem:[%s5164_s3 + $0x2f8] sm:$0xff]  ;;  %v356_v53 = vld [vmem:[%s5164_s3 + $0x308] sm:$0xff] }
  0xe4   : > { %13567 = vst [vmem:[#allocation145_spill] sm:$0xff] %v6145_v10  ;;  %13568 = vst [vmem:[#allocation146_spill] sm:$0xff] %v6149_v3  ;;  %v6221_v48 = vadd.s32 %v5778_v30, %v6093_v62  ;;  %v6225_v8 = vadd.s32 %v5781_v31, %v6093_v62  ;;  %v6229_v43 = vadd.s32 %v5786_v61, %v6093_v62  ;;  %v351_v3 = vld [vmem:[%s5164_s3 + $0x2e0] sm:$0xff]  ;;  %v386_v7 = vld [vmem:[%s5164_s3 + $0x3f8] sm:$0xff] }
  0xe5   : > { %13569 = vst [vmem:[#allocation147_spill] sm:$0xff] %v6153_v44  ;;  %13570 = vst [vmem:[#allocation148_spill] sm:$0xff] %v6157_v35  ;;  %v6233_v1 = vadd.s32 %v13589_v63, %v6093_v62  ;;  %v6237_v57 = vadd.s32 %v13591_v51, %v6093_v62  ;;  %v6241_v30 = vadd.s32 %v13593_v60, %v6093_v62  ;;  %v353_v44 = vld [vmem:[%s5164_s3 + $0x2f0] sm:$0xff]  ;;  %v355_v10 = vld [vmem:[%s5164_s3 + $0x300] sm:$0xff] }
  0xe6   : > { %13571 = vst [vmem:[#allocation149_spill] sm:$0xff] %v6161_v2  ;;  %13572 = vst [vmem:[#allocation150_spill] sm:$0xff] %v6165_v17  ;;  %v6245_v31 = vadd.s32 %v13595_v25, %v6093_v62  ;;  %v6249_v61 = vadd.s32 %v13597_v29, %v6093_v62  ;;  %v348_v2 = vld [vmem:[%s5164_s3 + $0x2c8] sm:$0xff]  ;;  %v13751_v27 = vld [vmem:[#allocation15_spill] sm:$0xff] }
  0xe7   : > { %13573 = vst [vmem:[#allocation151_spill] sm:$0xff] %v6169_v49  ;;  %13574 = vst [vmem:[#allocation152_spill] sm:$0xff] %v6173_v39  ;;  %v343_v49 = vld [vmem:[%s5164_s3 + $0x2a0] sm:$0xff] }
  0xe8   : > { %13575 = vst [vmem:[#allocation153_spill] sm:$0xff] %v6177_v46  ;;  %13576 = vst [vmem:[#allocation154_spill] sm:$0xff] %v6181_v32  ;;  %v340_v32 = vld [vmem:[%s5164_s3 + $0x288] sm:$0xff]  ;;  %v6576_v11 = vadd.f32 -1e-10, %v343_v49 }
  0xe9   : > { %13577 = vst [vmem:[#allocation155_spill] sm:$0xff] %v6185_v47  ;;  %13578 = vst [vmem:[#allocation156_spill] sm:$0xff] %v6189_v45  ;;  %v338_v45 = vld [vmem:[%s5164_s3 + $0x278] sm:$0xff]  ;;  %v339_v47 = vld [vmem:[%s5164_s3 + $0x280] sm:$0xff]  ;;  %v6551_v35 = vadd.f32 -1e-10, %v340_v32 }
  0xea   : > { %13579 = vst [vmem:[#allocation157_spill] sm:$0xff] %v6193_v36  ;;  %13580 = vst [vmem:[#allocation158_spill] sm:$0xff] %v6197_v38  ;;  %v341_v38 = vld [vmem:[%s5164_s3 + $0x290] sm:$0xff]  ;;  %v6544_v17 = vadd.f32 -1e-10, %v339_v47  ;;  %v359_v47 = vld [vmem:[%s5164_s3 + $0x320] sm:$0xff] }
  0xeb   : > { %13581 = vst [vmem:[#allocation159_spill] sm:$0xff] %v6201_v20  ;;  %13582 = vst [vmem:[#allocation160_spill] sm:$0xff] %v6205_v16  ;;  %v334_v16 = vld [vmem:[%s5164_s3 + $0x258] sm:$0xff]  ;;  %v337_v20 = vld [vmem:[%s5164_s3 + $0x270] sm:$0xff] }
  0xec   : > { %13583 = vst [vmem:[#allocation161_spill] sm:$0xff] %v6209_v37  ;;  %13584 = vst [vmem:[#allocation162_spill] sm:$0xff] %v6213_v52  ;;  %v332_v52 = vld [vmem:[%s5164_s3 + $0x248] sm:$0xff]  ;;  %v333_v37 = vld [vmem:[%s5164_s3 + $0x250] sm:$0xff]  ;;  %v6530_v39 = vadd.f32 -1e-10, %v334_v16 }
  0xed   : > { %13585 = vst [vmem:[#allocation163_spill] sm:$0xff] %v6217_v56  ;;  %13586 = vst [vmem:[#allocation164_spill] sm:$0xff] %v6221_v48  ;;  %v330_v48 = vld [vmem:[%s5164_s3 + $0x238] sm:$0xff]  ;;  %v331_v56 = vld [vmem:[%s5164_s3 + $0x240] sm:$0xff] }
  0xee   : > { %13587 = vst [vmem:[#allocation165_spill] sm:$0xff] %v6225_v8  ;;  %13588 = vst [vmem:[#allocation166_spill] sm:$0xff] %v6229_v43  ;;  %v13599_v43 = vld [vmem:[#allocation109_spill] sm:$0xff]  ;;  %v329_v8 = vld [vmem:[%s5164_s3 + $0x230] sm:$0xff] }
  0xef   : > { %13590 = vst [vmem:[#allocation104_spill] sm:$0xff] %v6233_v1  ;;  %13592 = vst [vmem:[#allocation105_spill] sm:$0xff] %v6237_v57  ;;  %v6253_v63 = vadd.s32 %v13599_v43, %v6093_v62  ;;  %v13601_v1 = vld [vmem:[#allocation110_spill] sm:$0xff]  ;;  %v13603_v57 = vld [vmem:[#allocation111_spill] sm:$0xff]  ;;  %v6520_v46 = vadd.f32 -1e-10, %v329_v8 }
  0xf0   : > { %13594 = vst [vmem:[#allocation106_spill] sm:$0xff] %v6241_v30  ;;  %13596 = vst [vmem:[#allocation107_spill] sm:$0xff] %v6245_v31  ;;  %v6257_v51 = vadd.s32 %v13601_v1, %v6093_v62  ;;  %v6261_v60 = vadd.s32 %v13603_v57, %v6093_v62  ;;  %v13605_v30 = vld [vmem:[#allocation112_spill] sm:$0xff]  ;;  %v13607_v31 = vld [vmem:[#allocation113_spill] sm:$0xff] }
  0xf1   : > { %13598 = vst [vmem:[#allocation108_spill] sm:$0xff] %v6249_v61  ;;  %13600 = vst [vmem:[#allocation109_spill] sm:$0xff] %v6253_v63  ;;  %v6265_v25 = vadd.s32 %v13605_v30, %v6093_v62  ;;  %v6269_v29 = vadd.s32 %v13607_v31, %v6093_v62  ;;  %v13609_v61 = vld [vmem:[#allocation114_spill] sm:$0xff]  ;;  %v13611_v63 = vld [vmem:[#allocation115_spill] sm:$0xff] }
  0xf2   : > { %13602 = vst [vmem:[#allocation110_spill] sm:$0xff] %v6257_v51  ;;  %13604 = vst [vmem:[#allocation111_spill] sm:$0xff] %v6261_v60  ;;  %v6273_v43 = vadd.s32 %v13609_v61, %v6093_v62  ;;  %v6277_v1 = vadd.s32 %v13611_v63, %v6093_v62  ;;  %v13613_v51 = vld [vmem:[#allocation116_spill] sm:$0xff]  ;;  %v13615_v60 = vld [vmem:[#allocation117_spill] sm:$0xff] }
  0xf3   : > { %13606 = vst [vmem:[#allocation112_spill] sm:$0xff] %v6265_v25  ;;  %13608 = vst [vmem:[#allocation113_spill] sm:$0xff] %v6269_v29  ;;  %v6281_v57 = vadd.s32 %v13613_v51, %v6093_v62  ;;  %v6285_v30 = vadd.s32 %v13615_v60, %v6093_v62  ;;  %v13617_v25 = vld [vmem:[#allocation118_spill] sm:$0xff]  ;;  %v13619_v29 = vld [vmem:[#allocation119_spill] sm:$0xff] }
  0xf4   : > { %13610 = vst [vmem:[#allocation114_spill] sm:$0xff] %v6273_v43  ;;  %13612 = vst [vmem:[#allocation115_spill] sm:$0xff] %v6277_v1  ;;  %v6289_v31 = vadd.s32 %v13617_v25, %v6093_v62  ;;  %v6293_v61 = vadd.s32 %v13619_v29, %v6093_v62  ;;  %v13621_v43 = vld [vmem:[#allocation120_spill] sm:$0xff]  ;;  %v13623_v1 = vld [vmem:[#allocation63_spill] sm:$0xff] }
  0xf5   : > { %13614 = vst [vmem:[#allocation116_spill] sm:$0xff] %v6281_v57  ;;  %13616 = vst [vmem:[#allocation117_spill] sm:$0xff] %v6285_v30  ;;  %v6297_v63 = vadd.s32 %v13621_v43, %v6093_v62  ;;  %v6301_v51 = vadd.s32 %v13623_v1, %v6093_v62  ;;  %v13625_v57 = vld [vmem:[#allocation121_spill] sm:$0xff]  ;;  %v13627_v30 = vld [vmem:[#allocation64_spill] sm:$0xff] }
  0xf6   : > { %13618 = vst [vmem:[#allocation118_spill] sm:$0xff] %v6289_v31  ;;  %13620 = vst [vmem:[#allocation119_spill] sm:$0xff] %v6293_v61  ;;  %v6305_v60 = vadd.s32 %v13625_v57, %v6093_v62  ;;  %v6309_v25 = vadd.s32 %v13627_v30, %v6093_v62  ;;  %v13629_v31 = vld [vmem:[#allocation65_spill] sm:$0xff]  ;;  %v13631_v61 = vld [vmem:[#allocation66_spill] sm:$0xff] }
  0xf7   : > { %13622 = vst [vmem:[#allocation120_spill] sm:$0xff] %v6297_v63  ;;  %13624 = vst [vmem:[#allocation63_spill] sm:$0xff] %v6301_v51  ;;  %v6313_v29 = vadd.s32 %v13629_v31, %v6093_v62  ;;  %v6317_v43 = vadd.s32 %v13631_v61, %v6093_v62  ;;  %v13633_v63 = vld [vmem:[#allocation67_spill] sm:$0xff]  ;;  %v13635_v51 = vld [vmem:[#allocation68_spill] sm:$0xff] }
  0xf8   : > { %13626 = vst [vmem:[#allocation121_spill] sm:$0xff] %v6305_v60  ;;  %13628 = vst [vmem:[#allocation64_spill] sm:$0xff] %v6309_v25  ;;  %v6321_v1 = vadd.s32 %v13633_v63, %v6093_v62  ;;  %v6325_v57 = vadd.s32 %v13635_v51, %v6093_v62  ;;  %v13637_v60 = vld [vmem:[#allocation69_spill] sm:$0xff]  ;;  %v13639_v25 = vld [vmem:[#allocation70_spill] sm:$0xff] }
  0xf9   : > { %13630 = vst [vmem:[#allocation65_spill] sm:$0xff] %v6313_v29  ;;  %13632 = vst [vmem:[#allocation66_spill] sm:$0xff] %v6317_v43  ;;  %v6329_v30 = vadd.s32 %v13637_v60, %v6093_v62  ;;  %v6333_v31 = vadd.s32 %v13639_v25, %v6093_v62  ;;  %v13641_v29 = vld [vmem:[#allocation71_spill] sm:$0xff]  ;;  %v13643_v43 = vld [vmem:[#allocation72_spill] sm:$0xff] }
  0xfa   : > { %13634 = vst [vmem:[#allocation67_spill] sm:$0xff] %v6321_v1  ;;  %13636 = vst [vmem:[#allocation68_spill] sm:$0xff] %v6325_v57  ;;  %v6337_v61 = vadd.s32 %v13641_v29, %v6093_v62  ;;  %v6341_v63 = vadd.s32 %v13643_v43, %v6093_v62  ;;  %v13645_v1 = vld [vmem:[#allocation73_spill] sm:$0xff]  ;;  %v13647_v57 = vld [vmem:[#allocation74_spill] sm:$0xff] }
  0xfb   : > { %13638 = vst [vmem:[#allocation69_spill] sm:$0xff] %v6329_v30  ;;  %13640 = vst [vmem:[#allocation70_spill] sm:$0xff] %v6333_v31  ;;  %v6345_v51 = vadd.s32 %v13645_v1, %v6093_v62  ;;  %v6349_v60 = vadd.s32 %v13647_v57, %v6093_v62  ;;  %v13649_v30 = vld [vmem:[#allocation75_spill] sm:$0xff]  ;;  %v13651_v31 = vld [vmem:[#allocation76_spill] sm:$0xff] }
  0xfc   : > { %13642 = vst [vmem:[#allocation71_spill] sm:$0xff] %v6337_v61  ;;  %13644 = vst [vmem:[#allocation72_spill] sm:$0xff] %v6341_v63  ;;  %v6353_v25 = vadd.s32 %v13649_v30, %v6093_v62  ;;  %v6357_v29 = vadd.s32 %v13651_v31, %v6093_v62  ;;  %v13653_v61 = vld [vmem:[#allocation77_spill] sm:$0xff]  ;;  %v13655_v63 = vld [vmem:[#allocation78_spill] sm:$0xff] }
  0xfd   : > { %13646 = vst [vmem:[#allocation73_spill] sm:$0xff] %v6345_v51  ;;  %13648 = vst [vmem:[#allocation74_spill] sm:$0xff] %v6349_v60  ;;  %v6361_v43 = vadd.s32 %v13653_v61, %v6093_v62  ;;  %v6365_v1 = vadd.s32 %v13655_v63, %v6093_v62  ;;  %v13657_v51 = vld [vmem:[#allocation79_spill] sm:$0xff]  ;;  %v13659_v60 = vld [vmem:[#allocation80_spill] sm:$0xff] }
  0xfe   : > { %13650 = vst [vmem:[#allocation75_spill] sm:$0xff] %v6353_v25  ;;  %13652 = vst [vmem:[#allocation76_spill] sm:$0xff] %v6357_v29  ;;  %v6369_v57 = vadd.s32 %v13657_v51, %v6093_v62  ;;  %v6373_v30 = vadd.s32 %v13659_v60, %v6093_v62  ;;  %v13661_v25 = vld [vmem:[#allocation81_spill] sm:$0xff]  ;;  %v13663_v29 = vld [vmem:[#allocation82_spill] sm:$0xff] }
  0xff   : > { %13654 = vst [vmem:[#allocation77_spill] sm:$0xff] %v6361_v43  ;;  %13656 = vst [vmem:[#allocation78_spill] sm:$0xff] %v6365_v1  ;;  %v6377_v31 = vadd.s32 %v13661_v25, %v6093_v62  ;;  %v6381_v61 = vadd.s32 %v13663_v29, %v6093_v62  ;;  %v13665_v43 = vld [vmem:[#allocation83_spill] sm:$0xff]  ;;  %v13667_v1 = vld [vmem:[#allocation84_spill] sm:$0xff] }
 0x100   : > { %13658 = vst [vmem:[#allocation79_spill] sm:$0xff] %v6369_v57  ;;  %13660 = vst [vmem:[#allocation80_spill] sm:$0xff] %v6373_v30  ;;  %v6385_v63 = vadd.s32 %v13665_v43, %v6093_v62  ;;  %v6389_v51 = vadd.s32 %v13667_v1, %v6093_v62  ;;  %v13669_v60 = vld [vmem:[#allocation85_spill] sm:$0xff]  ;;  %v13671_v25 = vld [vmem:[#allocation86_spill] sm:$0xff] }
 0x101   : > { %13662 = vst [vmem:[#allocation81_spill] sm:$0xff] %v6377_v31  ;;  %13664 = vst [vmem:[#allocation82_spill] sm:$0xff] %v6381_v61  ;;  %v6393_v30 = vadd.s32 %v13669_v60, %v6093_v62  ;;  %v6397_v31 = vadd.s32 %v13671_v25, %v6093_v62  ;;  %v13673_v29 = vld [vmem:[#allocation87_spill] sm:$0xff]  ;;  %v13675_v43 = vld [vmem:[#allocation88_spill] sm:$0xff] }
 0x102   : > { %13666 = vst [vmem:[#allocation83_spill] sm:$0xff] %v6385_v63  ;;  %13668 = vst [vmem:[#allocation84_spill] sm:$0xff] %v6389_v51  ;;  %v6401_v61 = vadd.s32 %v13673_v29, %v6093_v62  ;;  %v6405_v63 = vadd.s32 %v13675_v43, %v6093_v62  ;;  %v13677_v1 = vld [vmem:[#allocation89_spill] sm:$0xff]  ;;  %v13679_v60 = vld [vmem:[#allocation90_spill] sm:$0xff] }
 0x103   : > { %13670 = vst [vmem:[#allocation85_spill] sm:$0xff] %v6393_v30  ;;  %13672 = vst [vmem:[#allocation86_spill] sm:$0xff] %v6397_v31  ;;  %v6409_v51 = vadd.s32 %v13677_v1, %v6093_v62  ;;  %v6413_v30 = vadd.s32 %v13679_v60, %v6093_v62  ;;  %v13681_v57 = vld [vmem:[#allocation91_spill] sm:$0xff]  ;;  %v13683_v29 = vld [vmem:[#allocation92_spill] sm:$0xff] }
 0x104   : > { %13674 = vst [vmem:[#allocation87_spill] sm:$0xff] %v6401_v61  ;;  %13676 = vst [vmem:[#allocation88_spill] sm:$0xff] %v6405_v63  ;;  %v6417_v25 = vadd.s32 %v13681_v57, %v6093_v62  ;;  %v6421_v61 = vadd.s32 %v13683_v29, %v6093_v62  ;;  %v13685_v43 = vld [vmem:[#allocation93_spill] sm:$0xff]  ;;  %v13687_v1 = vld [vmem:[#allocation94_spill] sm:$0xff] }
 0x105   : > { %13678 = vst [vmem:[#allocation89_spill] sm:$0xff] %v6409_v51  ;;  %13680 = vst [vmem:[#allocation90_spill] sm:$0xff] %v6413_v30  ;;  %v6425_v63 = vadd.s32 %v13685_v43, %v6093_v62  ;;  %v6429_v51 = vadd.s32 %v13687_v1, %v6093_v62  ;;  %v13689_v60 = vld [vmem:[#allocation95_spill] sm:$0xff]  ;;  %v13691_v57 = vld [vmem:[#allocation96_spill] sm:$0xff] }
 0x106   : > { %13682 = vst [vmem:[#allocation91_spill] sm:$0xff] %v6417_v25  ;;  %13684 = vst [vmem:[#allocation92_spill] sm:$0xff] %v6421_v61  ;;  %v6433_v30 = vadd.s32 %v13689_v60, %v6093_v62  ;;  %v6437_v25 = vadd.s32 %v13691_v57, %v6093_v62  ;;  %v13693_v29 = vld [vmem:[#allocation97_spill] sm:$0xff]  ;;  %v13695_v31 = vld [vmem:[#allocation98_spill] sm:$0xff] }
 0x107   : > { %13686 = vst [vmem:[#allocation93_spill] sm:$0xff] %v6425_v63  ;;  %13688 = vst [vmem:[#allocation94_spill] sm:$0xff] %v6429_v51  ;;  %v6441_v61 = vadd.s32 %v13693_v29, %v6093_v62  ;;  %v6445_v43 = vadd.s32 %v13695_v31, %v6093_v62  ;;  %v326_v1 = vld [vmem:[%s5164_s3 + $0x218] sm:$0xff]  ;;  %v327_v51 = vld [vmem:[%s5164_s3 + $0x220] sm:$0xff] }
 0x108   : > { %13690 = vst [vmem:[#allocation95_spill] sm:$0xff] %v6433_v30  ;;  %13692 = vst [vmem:[#allocation96_spill] sm:$0xff] %v6437_v25  ;;  %v328_v63 = vld [vmem:[%s5164_s3 + $0x228] sm:$0xff]  ;;  %v13697_v60 = vld [vmem:[#allocation99_spill] sm:$0xff]  ;;  %v6514_v36 = vadd.f32 -1e-10, %v327_v51 }
 0x109   : > { %13694 = vst [vmem:[#allocation97_spill] sm:$0xff] %v6441_v61  ;;  %13696 = vst [vmem:[#allocation98_spill] sm:$0xff] %v6445_v43  ;;  %v6452_v30 = vadd.s32 %v13697_v60, %v6093_v62  ;;  %v13699_v57 = vld [vmem:[#allocation100_spill] sm:$0xff]  ;;  %v13701_v29 = vld [vmem:[#allocation101_spill] sm:$0xff]  ;;  %v6528_v51 = vadd.f32 -1e-10, %v333_v37 }
 0x10a   : > { %v6456_v25 = vadd.s32 %v13699_v57, %v6093_v62  ;;  %v6460_v61 = vadd.s32 %v13701_v29, %v6093_v62  ;;  %v13703_v31 = vld [vmem:[#allocation102_spill] sm:$0xff]  ;;  %v13705_v60 = vld [vmem:[#allocation103_spill] sm:$0xff]  ;;  %13718 = vst [vmem:[#allocation168_spill] sm:$0xff] %v6514_v36  ;;  %13720 = vst [vmem:[#allocation170_spill] sm:$0xff] %v6520_v46 }
 0x10b   : > { %13698 = vst [vmem:[#allocation99_spill] sm:$0xff] %v6452_v30  ;;  %v6464_v43 = vadd.s32 %v13703_v31, %v6093_v62  ;;  %v6471_v30 = vadd.s32 %v13705_v60, %v6093_v62  ;;  %v13707_v57 = vld [vmem:[#allocation122_spill] sm:$0xff]  ;;  %v13709_v29 = vld [vmem:[#allocation123_spill] sm:$0xff]  ;;  %v13711_v31 = vld [vmem:[#allocation124_spill] sm:$0xff]  ;;  %v6516_v60 = vadd.f32 -1e-10, %v328_v63 }
 0x10c   : > { %13700 = vst [vmem:[#allocation100_spill] sm:$0xff] %v6456_v25  ;;  %13702 = vst [vmem:[#allocation101_spill] sm:$0xff] %v6460_v61  ;;  %v6475_v25 = vadd.s32 %v13707_v57, %v6093_v62  ;;  %v6479_v61 = vadd.s32 %v13709_v29, %v6093_v62  ;;  %v13713_v57 = vld [vmem:[#allocation125_spill] sm:$0xff]  ;;  %v13715_v29 = vld [vmem:[#allocation127_spill] sm:$0xff] }
 0x10d   : > { %13704 = vst [vmem:[#allocation102_spill] sm:$0xff] %v6464_v43  ;;  %13706 = vst [vmem:[#allocation103_spill] sm:$0xff] %v6471_v30  ;;  %v6483_v43 = vadd.s32 %v13711_v31, %v6093_v62  ;;  %v335_v31 = vld [vmem:[%s5164_s3 + $0x260] sm:$0xff]  ;;  %v342_v63 = vld [vmem:[%s5164_s3 + $0x298] sm:$0xff] }
 0x10e   : > { %13708 = vst [vmem:[#allocation122_spill] sm:$0xff] %v6475_v25  ;;  %13710 = vst [vmem:[#allocation123_spill] sm:$0xff] %v6479_v61  ;;  %v6492_v25 = vadd.s32 %v13713_v57, %v6093_v62  ;;  %v6496_v61 = vadd.s32 %v13715_v29, %v6093_v62  ;;  %v6507_v57 = vadd.f32 -1e-10, %v326_v1  ;;  %v6524_v29 = vadd.f32 -1e-10, %v331_v56 }
 0x10f   : > { %13712 = vst [vmem:[#allocation124_spill] sm:$0xff] %v6483_v43  ;;  %v336_v43 = vld [vmem:[%s5164_s3 + $0x268] sm:$0xff]  ;;  %13719 = vst [vmem:[#allocation169_spill] sm:$0xff] %v6516_v60  ;;  %v6534_v30 = vadd.f32 -1e-10, %v335_v31  ;;  %v345_v1 = vld [vmem:[%s5164_s3 + $0x2b0] sm:$0xff] }
 0x110   : > { %13714 = vst [vmem:[#allocation125_spill] sm:$0xff] %v6492_v25  ;;  %13716 = vst [vmem:[#allocation127_spill] sm:$0xff] %v6496_v61  ;;  %v6522_v25 = vadd.f32 -1e-10, %v330_v48  ;;  %v6526_v61 = vadd.f32 -1e-10, %v332_v52 }
 0x111   : > { %13717 = vst [vmem:[#allocation167_spill] sm:$0xff] %v6507_v57  ;;  %13722 = vst [vmem:[#allocation172_spill] sm:$0xff] %v6524_v29  ;;  %v6536_v8 = vadd.f32 -1e-10, %v336_v43  ;;  %v6538_v48 = vadd.f32 -1e-10, %v337_v20 }
 0x112   : > { %13721 = vst [vmem:[#allocation171_spill] sm:$0xff] %v6522_v25  ;;  %13723 = vst [vmem:[#allocation173_spill] sm:$0xff] %v6526_v61  ;;  %v344_v56 = vld [vmem:[%s5164_s3 + $0x2a8] sm:$0xff]  ;;  %v6542_v52 = vadd.f32 -1e-10, %v338_v45  ;;  %v346_v31 = vld [vmem:[%s5164_s3 + $0x2b8] sm:$0xff] }
 0x113   : > { %13724 = vst [vmem:[#allocation174_spill] sm:$0xff] %v6528_v51  ;;  %13725 = vst [vmem:[#allocation175_spill] sm:$0xff] %v6530_v39  ;;  %v347_v43 = vld [vmem:[%s5164_s3 + $0x2c0] sm:$0xff]  ;;  %v6553_v20 = vadd.f32 -1e-10, %v341_v38  ;;  %v349_v45 = vld [vmem:[%s5164_s3 + $0x2d0] sm:$0xff] }
 0x114   : > { %13726 = vst [vmem:[#allocation176_spill] sm:$0xff] %v6534_v30  ;;  %13727 = vst [vmem:[#allocation177_spill] sm:$0xff] %v6536_v8  ;;  %v350_v16 = vld [vmem:[%s5164_s3 + $0x2d8] sm:$0xff]  ;;  %v352_v38 = vld [vmem:[%s5164_s3 + $0x2e8] sm:$0xff]  ;;  %v6574_v32 = vadd.f32 -1e-10, %v342_v63 }
 0x115   : > { %13728 = vst [vmem:[#allocation178_spill] sm:$0xff] %v6538_v48  ;;  %13729 = vst [vmem:[#allocation179_spill] sm:$0xff] %v6542_v52  ;;  %v6583_v37 = vadd.f32 -1e-10, %v344_v56  ;;  %v6585_v34 = vadd.f32 -1e-10, %v345_v1 }
 0x116   : > { %13730 = vst [vmem:[#allocation180_spill] sm:$0xff] %v6544_v17  ;;  %13731 = vst [vmem:[#allocation181_spill] sm:$0xff] %v6551_v35  ;;  %v361_v62 = vld [vmem:[%s5164_s3 + $0x330] sm:$0xff]  ;;  %v363_v52 = vld [vmem:[%s5164_s3 + $0x340] sm:$0xff]  ;;  %v6592_v9 = vadd.f32 -1e-10, %v346_v31 }
 0x117   : > { %13732 = vst [vmem:[#allocation182_spill] sm:$0xff] %v6553_v20  ;;  %v6594_v17 = vadd.f32 -1e-10, %v347_v43  ;;  %v6596_v56 = vadd.f32 -1e-10, %v348_v2  ;;  %v364_v1 = vld [vmem:[%s5164_s3 + $0x348] sm:$0xff] }
 0x118   : > { %v365_v48 = vld [vmem:[%s5164_s3 + $0x350] sm:$0xff]  ;;  %v366_v8 = vld [vmem:[%s5164_s3 + $0x358] sm:$0xff]  ;;  %v6601_v63 = vadd.f32 -1e-10, %v349_v45  ;;  %v6603_v49 = vadd.f32 -1e-10, %v350_v16 }
 0x119   : > { %v6605_v20 = vadd.f32 -1e-10, %v351_v3  ;;  %v367_v31 = vld [vmem:[%s5164_s3 + $0x360] sm:$0xff]  ;;  %v368_v35 = vld [vmem:[%s5164_s3 + $0x368] sm:$0xff]  ;;  %v369_v30 = vld [vmem:[%s5164_s3 + $0x370] sm:$0xff]  ;;  %13735 = vst [vmem:[#allocation185_spill] sm:$0xff] %v6681_v23 }
 0x11a   : > { %v6610_v43 = vadd.f32 -1e-10, %v352_v38  ;;  %v6612_v2 = vadd.f32 -1e-10, %v353_v44  ;;  %v6614_v39 = vadd.f32 -1e-10, %v354_v22 }
 0x11b   : > { %v370_v45 = vld [vmem:[%s5164_s3 + $0x378] sm:$0xff]  ;;  %v371_v51 = vld [vmem:[%s5164_s3 + $0x380] sm:$0xff]  ;;  %v372_v61 = vld [vmem:[%s5164_s3 + $0x388] sm:$0xff]  ;;  %v6619_v16 = vadd.f32 -1e-10, %v355_v10 }
 0x11c   : > { %v6621_v3 = vadd.f32 -1e-10, %v356_v53  ;;  %v6623_v29 = vadd.f32 -1e-10, %v357_v42  ;;  %v373_v38 = vld [vmem:[%s5164_s3 + $0x390] sm:$0xff]  ;;  %v374_v25 = vld [vmem:[%s5164_s3 + $0x398] sm:$0xff] }
 0x11d   : > { %v375_v46 = vld [vmem:[%s5164_s3 + $0x3a0] sm:$0xff]  ;;  %v6628_v44 = vadd.f32 -1e-10, %v358_v21  ;;  %v6630_v22 = vadd.f32 -1e-10, %v359_v47  ;;  %v376_v10 = vld [vmem:[%s5164_s3 + $0x3a8] sm:$0xff] }
 0x11e   : > { %v6632_v60 = vadd.f32 -1e-10, %v360_v26  ;;  %v377_v36 = vld [vmem:[%s5164_s3 + $0x3b0] sm:$0xff]  ;;  %v378_v57 = vld [vmem:[%s5164_s3 + $0x3b8] sm:$0xff]  ;;  %v6637_v53 = vadd.f32 -1e-10, %v361_v62 }
 0x11f   : > { %v6639_v42 = vadd.f32 -1e-10, %v362_v0  ;;  %v6641_v15 = vadd.f32 -1e-10, %v363_v52  ;;  %v380_v21 = vld [vmem:[%s5164_s3 + $0x3c8] sm:$0xff]  ;;  %v385_v52 = vld [vmem:[%s5164_s3 + $0x3f0] sm:$0xff] }
 0x120   : > { %v6646_v6 = vadd.f32 -1e-10, %v364_v1  ;;  %v6648_v47 = vadd.f32 -1e-10, %v365_v48  ;;  %v6650_v26 = vadd.f32 -1e-10, %v366_v8 }
 0x121   : > { %v6655_v55 = vadd.f32 -1e-10, %v367_v31  ;;  %v6657_v62 = vadd.f32 -1e-10, %v368_v35  ;;  %v6659_v0 = vadd.f32 -1e-10, %v369_v30 }
 0x122   : > { %v6663_v54 = vadd.f32 -1e-10, %v370_v45  ;;  %v6665_v13 = vadd.f32 -1e-10, %v371_v51  ;;  %v6667_v1 = vadd.f32 -1e-10, %v372_v61 }
 0x123   : > { %v6669_v48 = vadd.f32 -1e-10, %v373_v38  ;;  %v6671_v8 = vadd.f32 -1e-10, %v374_v25  ;;  %v6673_v28 = vadd.f32 -1e-10, %v375_v46 }
 0x124   : > { %v6675_v31 = vadd.f32 -1e-10, %v376_v10  ;;  %v6677_v35 = vadd.f32 -1e-10, %v377_v36  ;;  %v6679_v30 = vadd.f32 -1e-10, %v378_v57 }
 0x125   : > { %v6683_v45 = vadd.f32 -1e-10, %v380_v21  ;;  %v6685_v51 = vadd.f32 -1e-10, %v381_v24  ;;  %v6687_v61 = vadd.f32 -1e-10, %v382_v5 }
 0x126   : > { %13733 = vst [vmem:[#allocation183_spill] sm:$0xff] %v6675_v31  ;;  %13734 = vst [vmem:[#allocation184_spill] sm:$0xff] %v6677_v35  ;;  %v6689_v38 = vadd.f32 -1e-10, %v383_v33  ;;  %v6691_v25 = vadd.f32 -1e-10, %v384_v58 }
 0x127   : > { %13736 = vst [vmem:[#allocation186_spill] sm:$0xff] %v6685_v51  ;;  %v6693_v46 = vadd.f32 -1e-10, %v385_v52  ;;  %v6695_v10 = vadd.f32 -1e-10, %v386_v7  ;;  %v13739_v31 = vld [vmem:[#allocation11_spill] sm:$0xff] }
 0x128   : > { %13737 = vst [vmem:[#allocation187_spill] sm:$0xff] %v6689_v38  ;;  %v13740_v5 = vmax.f32 %v13739_v31, 0.0  ;;  %v13742_v33 = vld [vmem:[#allocation12_spill] sm:$0xff]  ;;  %v13745_v52 = vld [vmem:[#allocation13_spill] sm:$0xff]  ;;  %v13748_v36 = vld [vmem:[#allocation14_spill] sm:$0xff]  ;;  %v13752_v21 = vmax.f32 %v13751_v27, 0.0 }
 0x129   : > { %13738 = vst [vmem:[#allocation188_spill] sm:$0xff] %v6693_v46  ;;  %v13743_v58 = vmax.f32 %v13742_v33, 0.0  ;;  %v13746_v7 = vmax.f32 %v13745_v52, 0.0  ;;  %v13749_v57 = vmax.f32 %v13748_v36, 0.0  ;;  %v13754_v24 = vld [vmem:[#allocation16_spill] sm:$0xff] }
 0x12a   : > { %v6744_v35 = vadd.f32 1e-10, %v13740_v5  ;;  %v6760_v46 = vadd.f32 1e-10, %v13752_v21  ;;  %v13755_v31 = vmax.f32 %v13754_v24, 0.0 }
 0x12b   : > { %v6748_v23 = vadd.f32 1e-10, %v13743_v58  ;;  %v6752_v51 = vadd.f32 1e-10, %v13746_v7  ;;  %v6756_v38 = vadd.f32 1e-10, %v13749_v57 }
 0x12c   : > { %13741 = vst [vmem:[#allocation11_spill] sm:$0xff] %v6744_v35  ;;  %13753 = vst [vmem:[#allocation15_spill] sm:$0xff] %v6760_v46  ;;  %v6764_v5 = vadd.f32 1e-10, %v13755_v31  ;;  %v13757_v35 = vld [vmem:[#allocation17_spill] sm:$0xff] }
 0x12d   : > { %13744 = vst [vmem:[#allocation12_spill] sm:$0xff] %v6748_v23  ;;  %13747 = vst [vmem:[#allocation13_spill] sm:$0xff] %v6752_v51  ;;  %v13758_v33 = vmax.f32 %v13757_v35, 0.0  ;;  %v13760_v23 = vld [vmem:[#allocation18_spill] sm:$0xff]  ;;  %v13763_v51 = vld [vmem:[#allocation19_spill] sm:$0xff] }
 0x12e   : > { %13750 = vst [vmem:[#allocation14_spill] sm:$0xff] %v6756_v38  ;;  %13756 = vst [vmem:[#allocation16_spill] sm:$0xff] %v6764_v5  ;;  %v13761_v52 = vmax.f32 %v13760_v23, 0.0  ;;  %v13764_v36 = vmax.f32 %v13763_v51, 0.0  ;;  %v13766_v38 = vld [vmem:[#allocation20_spill] sm:$0xff]  ;;  %v13769_v46 = vld [vmem:[#allocation21_spill] sm:$0xff] }
 0x12f   : > { %v6768_v58 = vadd.f32 1e-10, %v13758_v33  ;;  %v13767_v27 = vmax.f32 %v13766_v38, 0.0  ;;  %v13770_v24 = vmax.f32 %v13769_v46, 0.0  ;;  %v13772_v5 = vld [vmem:[#allocation22_spill] sm:$0xff] }
 0x130   : > { %v6772_v7 = vadd.f32 1e-10, %v13761_v52  ;;  %v6776_v57 = vadd.f32 1e-10, %v13764_v36  ;;  %v13773_v35 = vmax.f32 %v13772_v5, 0.0 }
 0x131   : > { %13759 = vst [vmem:[#allocation17_spill] sm:$0xff] %v6768_v58  ;;  %v6780_v21 = vadd.f32 1e-10, %v13767_v27  ;;  %v6784_v31 = vadd.f32 1e-10, %v13770_v24  ;;  %v13775_v58 = vld [vmem:[#allocation23_spill] sm:$0xff] }
 0x132   : > { %13762 = vst [vmem:[#allocation18_spill] sm:$0xff] %v6772_v7  ;;  %13765 = vst [vmem:[#allocation19_spill] sm:$0xff] %v6776_v57  ;;  %v6788_v33 = vadd.f32 1e-10, %v13773_v35  ;;  %v13776_v23 = vmax.f32 %v13775_v58, 0.0  ;;  %v13778_v7 = vld [vmem:[#allocation24_spill] sm:$0xff] }
 0x133   : > { %13768 = vst [vmem:[#allocation20_spill] sm:$0xff] %v6780_v21  ;;  %13771 = vst [vmem:[#allocation21_spill] sm:$0xff] %v6784_v31  ;;  %v13779_v51 = vmax.f32 %v13778_v7, 0.0  ;;  %v13781_v57 = vld [vmem:[#allocation25_spill] sm:$0xff]  ;;  %v13784_v21 = vld [vmem:[#allocation26_spill] sm:$0xff] }
 0x134   : > { %13774 = vst [vmem:[#allocation22_spill] sm:$0xff] %v6788_v33  ;;  %v6792_v52 = vadd.f32 1e-10, %v13776_v23  ;;  %v13782_v38 = vmax.f32 %v13781_v57, 0.0  ;;  %v13785_v46 = vmax.f32 %v13784_v21, 0.0  ;;  %v13787_v31 = vld [vmem:[#allocation27_spill] sm:$0xff] }
 0x135   : > { %v6796_v36 = vadd.f32 1e-10, %v13779_v51  ;;  %v13788_v5 = vmax.f32 %v13787_v31, 0.0  ;;  %v13790_v33 = vld [vmem:[#allocation28_spill] sm:$0xff] }
 0x136   : > { %13777 = vst [vmem:[#allocation23_spill] sm:$0xff] %v6792_v52  ;;  %v6800_v27 = vadd.f32 1e-10, %v13782_v38  ;;  %v6804_v24 = vadd.f32 1e-10, %v13785_v46  ;;  %v13791_v58 = vmax.f32 %v13790_v33, 0.0 }
 0x137   : > { %13780 = vst [vmem:[#allocation24_spill] sm:$0xff] %v6796_v36  ;;  %v6808_v35 = vadd.f32 1e-10, %v13788_v5  ;;  %v13793_v52 = vld [vmem:[#allocation29_spill] sm:$0xff]  ;;  %v13796_v36 = vld [vmem:[#allocation30_spill] sm:$0xff] }
 0x138   : > { %13783 = vst [vmem:[#allocation25_spill] sm:$0xff] %v6800_v27  ;;  %13786 = vst [vmem:[#allocation26_spill] sm:$0xff] %v6804_v24  ;;  %v6812_v23 = vadd.f32 1e-10, %v13791_v58  ;;  %v13794_v7 = vmax.f32 %v13793_v52, 0.0  ;;  %v13797_v57 = vmax.f32 %v13796_v36, 0.0 }
 0x139   : > { %13789 = vst [vmem:[#allocation27_spill] sm:$0xff] %v6808_v35  ;;  %v13799_v27 = vld [vmem:[#allocation31_spill] sm:$0xff]  ;;  %v13802_v24 = vld [vmem:[#allocation32_spill] sm:$0xff]  ;;  %v13805_v35 = vld [vmem:[#allocation33_spill] sm:$0xff] }
 0x13a   : > { %13792 = vst [vmem:[#allocation28_spill] sm:$0xff] %v6812_v23  ;;  %v6816_v51 = vadd.f32 1e-10, %v13794_v7  ;;  %v6820_v38 = vadd.f32 1e-10, %v13797_v57  ;;  %v13800_v21 = vmax.f32 %v13799_v27, 0.0 }
 0x13b   : > { %v13803_v31 = vmax.f32 %v13802_v24, 0.0  ;;  %v13806_v33 = vmax.f32 %v13805_v35, 0.0  ;;  %v13808_v23 = vld [vmem:[#allocation34_spill] sm:$0xff] }
 0x13c   : > { %13795 = vst [vmem:[#allocation29_spill] sm:$0xff] %v6816_v51  ;;  %13798 = vst [vmem:[#allocation30_spill] sm:$0xff] %v6820_v38  ;;  %v6824_v46 = vadd.f32 1e-10, %v13800_v21  ;;  %v13809_v52 = vmax.f32 %v13808_v23, 0.0  ;;  %v13811_v51 = vld [vmem:[#allocation35_spill] sm:$0xff] }
 0x13d   : > { %v6828_v5 = vadd.f32 1e-10, %v13803_v31  ;;  %v6832_v58 = vadd.f32 1e-10, %v13806_v33  ;;  %v13812_v36 = vmax.f32 %v13811_v51, 0.0  ;;  %v13814_v38 = vld [vmem:[#allocation36_spill] sm:$0xff] }
 0x13e   : > { %13801 = vst [vmem:[#allocation31_spill] sm:$0xff] %v6824_v46  ;;  %v6836_v7 = vadd.f32 1e-10, %v13809_v52  ;;  %v13815_v27 = vmax.f32 %v13814_v38, 0.0  ;;  %v13817_v46 = vld [vmem:[#allocation37_spill] sm:$0xff] }
 0x13f   : > { %13804 = vst [vmem:[#allocation32_spill] sm:$0xff] %v6828_v5  ;;  %13807 = vst [vmem:[#allocation33_spill] sm:$0xff] %v6832_v58  ;;  %v6840_v57 = vadd.f32 1e-10, %v13812_v36  ;;  %v13818_v24 = vmax.f32 %v13817_v46, 0.0  ;;  %v13820_v5 = vld [vmem:[#allocation38_spill] sm:$0xff] }
 0x140   : > { %13810 = vst [vmem:[#allocation34_spill] sm:$0xff] %v6836_v7  ;;  %v6844_v21 = vadd.f32 1e-10, %v13815_v27  ;;  %v13821_v35 = vmax.f32 %v13820_v5, 0.0  ;;  %v13823_v58 = vld [vmem:[#allocation39_spill] sm:$0xff]  ;;  %v13826_v7 = vld [vmem:[#allocation40_spill] sm:$0xff] }
 0x141   : > { %13813 = vst [vmem:[#allocation35_spill] sm:$0xff] %v6840_v57  ;;  %v6848_v31 = vadd.f32 1e-10, %v13818_v24  ;;  %v13824_v23 = vmax.f32 %v13823_v58, 0.0  ;;  %v13827_v51 = vmax.f32 %v13826_v7, 0.0  ;;  %v13829_v57 = vld [vmem:[#allocation41_spill] sm:$0xff] }
 0x142   : > { %13816 = vst [vmem:[#allocation36_spill] sm:$0xff] %v6844_v21  ;;  %v6852_v33 = vadd.f32 1e-10, %v13821_v35  ;;  %v13830_v38 = vmax.f32 %v13829_v57, 0.0  ;;  %v13832_v21 = vld [vmem:[#allocation42_spill] sm:$0xff] }
 0x143   : > { %13819 = vst [vmem:[#allocation37_spill] sm:$0xff] %v6848_v31  ;;  %v6856_v52 = vadd.f32 1e-10, %v13824_v23  ;;  %v6860_v36 = vadd.f32 1e-10, %v13827_v51  ;;  %v13833_v46 = vmax.f32 %v13832_v21, 0.0 }
 0x144   : > { %13822 = vst [vmem:[#allocation38_spill] sm:$0xff] %v6852_v33  ;;  %v6864_v27 = vadd.f32 1e-10, %v13830_v38  ;;  %v13835_v31 = vld [vmem:[#allocation43_spill] sm:$0xff]  ;;  %v13838_v33 = vld [vmem:[#allocation44_spill] sm:$0xff] }
 0x145   : > { %13825 = vst [vmem:[#allocation39_spill] sm:$0xff] %v6856_v52  ;;  %13828 = vst [vmem:[#allocation40_spill] sm:$0xff] %v6860_v36  ;;  %v6868_v24 = vadd.f32 1e-10, %v13833_v46  ;;  %v13836_v5 = vmax.f32 %v13835_v31, 0.0  ;;  %v13839_v58 = vmax.f32 %v13838_v33, 0.0 }
 0x146   : > { %13831 = vst [vmem:[#allocation41_spill] sm:$0xff] %v6864_v27  ;;  %v13841_v52 = vld [vmem:[#allocation45_spill] sm:$0xff]  ;;  %v13844_v36 = vld [vmem:[#allocation46_spill] sm:$0xff]  ;;  %v13847_v27 = vld [vmem:[#allocation47_spill] sm:$0xff] }
 0x147   : > { %13834 = vst [vmem:[#allocation42_spill] sm:$0xff] %v6868_v24  ;;  %v6872_v35 = vadd.f32 1e-10, %v13836_v5  ;;  %v6876_v23 = vadd.f32 1e-10, %v13839_v58  ;;  %v13842_v7 = vmax.f32 %v13841_v52, 0.0 }
 0x148   : > { %v13845_v57 = vmax.f32 %v13844_v36, 0.0  ;;  %v13848_v21 = vmax.f32 %v13847_v27, 0.0  ;;  %v13850_v24 = vld [vmem:[#allocation48_spill] sm:$0xff] }
 0x149   : > { %13837 = vst [vmem:[#allocation43_spill] sm:$0xff] %v6872_v35  ;;  %13840 = vst [vmem:[#allocation44_spill] sm:$0xff] %v6876_v23  ;;  %v6880_v51 = vadd.f32 1e-10, %v13842_v7  ;;  %v13851_v31 = vmax.f32 %v13850_v24, 0.0  ;;  %v13853_v35 = vld [vmem:[#allocation49_spill] sm:$0xff] }
 0x14a   : > { %v6884_v38 = vadd.f32 1e-10, %v13845_v57  ;;  %v6888_v46 = vadd.f32 1e-10, %v13848_v21  ;;  %v13854_v33 = vmax.f32 %v13853_v35, 0.0  ;;  %v13856_v23 = vld [vmem:[#allocation50_spill] sm:$0xff] }
 0x14b   : > { %13843 = vst [vmem:[#allocation45_spill] sm:$0xff] %v6880_v51  ;;  %v6892_v5 = vadd.f32 1e-10, %v13851_v31  ;;  %v13857_v52 = vmax.f32 %v13856_v23, 0.0  ;;  %v13859_v51 = vld [vmem:[#allocation51_spill] sm:$0xff]  ;;  %v13868_v35 = vmax.f32 %v13538_v4, 0.0 }
 0x14c   : > { %13846 = vst [vmem:[#allocation46_spill] sm:$0xff] %v6884_v38  ;;  %13849 = vst [vmem:[#allocation47_spill] sm:$0xff] %v6888_v46  ;;  %v6896_v58 = vadd.f32 1e-10, %v13854_v33  ;;  %v13860_v36 = vmax.f32 %v13859_v51, 0.0  ;;  %v13862_v38 = vld [vmem:[#allocation52_spill] sm:$0xff] }
 0x14d   : > { %13852 = vst [vmem:[#allocation48_spill] sm:$0xff] %v6892_v5  ;;  %v6900_v7 = vadd.f32 1e-10, %v13857_v52  ;;  %v13863_v27 = vmax.f32 %v13862_v38, 0.0  ;;  %v13865_v46 = vld [vmem:[#allocation53_spill] sm:$0xff]  ;;  %v13870_v23 = vmax.f32 %v13539_v40, 0.0 }
 0x14e   : > { %13855 = vst [vmem:[#allocation49_spill] sm:$0xff] %v6896_v58  ;;  %v6904_v57 = vadd.f32 1e-10, %v13860_v36  ;;  %v13866_v24 = vmax.f32 %v13865_v46, 0.0  ;;  %v6916_v33 = vadd.f32 1e-10, %v13868_v35 }
 0x14f   : > { %13858 = vst [vmem:[#allocation50_spill] sm:$0xff] %v6900_v7  ;;  %v6908_v21 = vadd.f32 1e-10, %v13863_v27  ;;  %v6920_v52 = vadd.f32 1e-10, %v13870_v23  ;;  %v13872_v7 = vld [vmem:[#allocation56_spill] sm:$0xff] }
 0x150   : > { %13861 = vst [vmem:[#allocation51_spill] sm:$0xff] %v6904_v57  ;;  %v6912_v31 = vadd.f32 1e-10, %v13866_v24  ;;  %13869 = vst [vmem:[#allocation189_spill] sm:$0xff] %v6916_v33  ;;  %v13873_v51 = vmax.f32 %v13872_v7, 0.0  ;;  %v13875_v38 = vmax.f32 %v13541_v12, 0.0 }
 0x151   : > { %13864 = vst [vmem:[#allocation52_spill] sm:$0xff] %v6908_v21  ;;  %13871 = vst [vmem:[#allocation190_spill] sm:$0xff] %v6920_v52  ;;  %v13877_v46 = vmax.f32 %v13542_v41, 0.0  ;;  %v13879_v4 = vmax.f32 %v13543_v59, 0.0  ;;  %v13881_v33 = vld [vmem:[#allocation61_spill] sm:$0xff]  ;;  %v13884_v7 = vmax.f32 %v6030_v19, 0.0 }
 0x152   : > { %13867 = vst [vmem:[#allocation53_spill] sm:$0xff] %v6912_v31  ;;  %v6924_v36 = vadd.f32 1e-10, %v13873_v51  ;;  %v6928_v27 = vadd.f32 1e-10, %v13875_v38  ;;  %v13882_v40 = vmax.f32 %v13881_v33, 0.0 }
 0x153   : > { %v6932_v24 = vadd.f32 1e-10, %v13877_v46  ;;  %v6936_v35 = vadd.f32 1e-10, %v13879_v4  ;;  %v6944_v51 = vadd.f32 1e-10, %v13884_v7 }
 0x154   : > { %13874 = vst [vmem:[#allocation56_spill] sm:$0xff] %v6924_v36  ;;  %13876 = vst [vmem:[#allocation191_spill] sm:$0xff] %v6928_v27  ;;  %v6940_v23 = vadd.f32 1e-10, %v13882_v40  ;;  %v13886_v12 = vmax.f32 %v6041_v50, 0.0  ;;  %v13888_v41 = vmax.f32 %v6043_v14, 0.0 }
 0x155   : > { %13878 = vst [vmem:[#allocation192_spill] sm:$0xff] %v6932_v24  ;;  %13880 = vst [vmem:[#allocation193_spill] sm:$0xff] %v6936_v35  ;;  %v13890_v59 = vmax.f32 %v6053_v18, 0.0  ;;  %v13892_v35 = vld [vmem:[#allocation126_spill] sm:$0xff]  ;;  %v438_v27 = vld [vmem:[%s5170_s4 + $0x198] sm:$0xff] }
 0x156   : > { %13883 = vst [vmem:[#allocation61_spill] sm:$0xff] %v6940_v23  ;;  %13885 = vst [vmem:[#allocation194_spill] sm:$0xff] %v6944_v51  ;;  %v6948_v38 = vadd.f32 1e-10, %v13886_v12  ;;  %v6952_v46 = vadd.f32 1e-10, %v13888_v41 }
 0x157   : > { %v6956_v4 = vadd.f32 1e-10, %v13890_v59  ;;  %v13893_v33 = vmax.f32 %v13892_v35, 0.0  ;;  %v13895_v23 = vld [vmem:[#allocation128_spill] sm:$0xff]  ;;  %v13898_v51 = vld [vmem:[#allocation54_spill] sm:$0xff]  ;;  %v439_v36 = vld [vmem:[%s5170_s4 + $0x1a0] sm:$0xff] }
 0x158   : > { %13887 = vst [vmem:[#allocation195_spill] sm:$0xff] %v6948_v38  ;;  %13889 = vst [vmem:[#allocation196_spill] sm:$0xff] %v6952_v46  ;;  %v13896_v19 = vmax.f32 %v13895_v23, 0.0  ;;  %v13899_v50 = vmax.f32 %v13898_v51, 0.0  ;;  %v13901_v38 = vld [vmem:[#allocation55_spill] sm:$0xff]  ;;  %v13904_v46 = vld [vmem:[#allocation57_spill] sm:$0xff] }
 0x159   : > { %13891 = vst [vmem:[#allocation197_spill] sm:$0xff] %v6956_v4  ;;  %v6960_v40 = vadd.f32 1e-10, %v13893_v33  ;;  %v13902_v14 = vmax.f32 %v13901_v38, 0.0  ;;  %v13905_v18 = vmax.f32 %v13904_v46, 0.0  ;;  %v13907_v4 = vld [vmem:[#allocation59_spill] sm:$0xff] }
 0x15a   : > { %v6964_v7 = vadd.f32 1e-10, %v13896_v19  ;;  %v6968_v12 = vadd.f32 1e-10, %v13899_v50  ;;  %v13908_v35 = vmax.f32 %v13907_v4, 0.0  ;;  %v441_v31 = vld [vmem:[%s5170_s4 + $0x1b0] sm:$0xff] }
 0x15b   : > { %13894 = vst [vmem:[#allocation126_spill] sm:$0xff] %v6960_v40  ;;  %v6972_v41 = vadd.f32 1e-10, %v13902_v14  ;;  %v6976_v59 = vadd.f32 1e-10, %v13905_v18  ;;  %v13910_v40 = vld [vmem:[#allocation60_spill] sm:$0xff] }
 0x15c   : > { %13897 = vst [vmem:[#allocation128_spill] sm:$0xff] %v6964_v7  ;;  %13900 = vst [vmem:[#allocation54_spill] sm:$0xff] %v6968_v12  ;;  %v6980_v33 = vadd.f32 1e-10, %v13908_v35  ;;  %v13911_v23 = vmax.f32 %v13910_v40, 0.0  ;;  %v13913_v7 = vld [vmem:[#allocation130_spill] sm:$0xff] }
 0x15d   : > { %13903 = vst [vmem:[#allocation55_spill] sm:$0xff] %v6972_v41  ;;  %13906 = vst [vmem:[#allocation57_spill] sm:$0xff] %v6976_v59  ;;  %v13914_v51 = vmax.f32 %v13913_v7, 0.0  ;;  %v13916_v12 = vld [vmem:[#allocation131_spill] sm:$0xff]  ;;  %v13919_v41 = vld [vmem:[#allocation132_spill] sm:$0xff] }
 0x15e   : > { %13909 = vst [vmem:[#allocation59_spill] sm:$0xff] %v6980_v33  ;;  %v6984_v19 = vadd.f32 1e-10, %v13911_v23  ;;  %v13917_v38 = vmax.f32 %v13916_v12, 0.0  ;;  %v13920_v46 = vmax.f32 %v13919_v41, 0.0  ;;  %v13922_v59 = vld [vmem:[#allocation133_spill] sm:$0xff] }
 0x15f   : > { %v6988_v50 = vadd.f32 1e-10, %v13914_v51  ;;  %v13923_v4 = vmax.f32 %v13922_v59, 0.0  ;;  %v13925_v33 = vld [vmem:[#allocation134_spill] sm:$0xff]  ;;  %v442_v21 = vld [vmem:[%s5170_s4 + $0x1b8] sm:$0xff]  ;;  %v445_v5 = vld [vmem:[%s5170_s4 + $0x1d0] sm:$0xff] }
 0x160   : > { %13912 = vst [vmem:[#allocation60_spill] sm:$0xff] %v6984_v19  ;;  %v6992_v14 = vadd.f32 1e-10, %v13917_v38  ;;  %v6996_v18 = vadd.f32 1e-10, %v13920_v46  ;;  %v13926_v40 = vmax.f32 %v13925_v33, 0.0 }
 0x161   : > { %13915 = vst [vmem:[#allocation130_spill] sm:$0xff] %v6988_v50  ;;  %v7000_v35 = vadd.f32 1e-10, %v13923_v4  ;;  %v13928_v19 = vld [vmem:[#allocation135_spill] sm:$0xff]  ;;  %v444_v58 = vld [vmem:[%s5170_s4 + $0x1c8] sm:$0xff] }
 0x162   : > { %13918 = vst [vmem:[#allocation131_spill] sm:$0xff] %v6992_v14  ;;  %13921 = vst [vmem:[#allocation132_spill] sm:$0xff] %v6996_v18  ;;  %v7004_v23 = vadd.f32 1e-10, %v13926_v40  ;;  %v13929_v7 = vmax.f32 %v13928_v19, 0.0  ;;  %v13931_v50 = vld [vmem:[#allocation167_spill] sm:$0xff] }
 0x163   : > { %13924 = vst [vmem:[#allocation133_spill] sm:$0xff] %v7000_v35  ;;  %v13932_v12 = vmax.f32 %v13931_v50, 0.0  ;;  %v13934_v14 = vld [vmem:[#allocation168_spill] sm:$0xff]  ;;  %v13937_v18 = vld [vmem:[#allocation169_spill] sm:$0xff]  ;;  %v13940_v35 = vld [vmem:[#allocation170_spill] sm:$0xff] }
 0x164   : > { %13927 = vst [vmem:[#allocation134_spill] sm:$0xff] %v7004_v23  ;;  %v7008_v51 = vadd.f32 1e-10, %v13929_v7  ;;  %v13935_v41 = vmax.f32 %v13934_v14, 0.0  ;;  %v13938_v59 = vmax.f32 %v13937_v18, 0.0  ;;  %v13941_v33 = vmax.f32 %v13940_v35, 0.0 }
 0x165   : > { %v7012_v38 = vadd.f32 1e-10, %v13932_v12  ;;  %v13943_v23 = vld [vmem:[#allocation171_spill] sm:$0xff] }
 0x166   : > { %13930 = vst [vmem:[#allocation135_spill] sm:$0xff] %v7008_v51  ;;  %v7016_v46 = vadd.f32 1e-10, %v13935_v41  ;;  %v7020_v4 = vadd.f32 1e-10, %v13938_v59  ;;  %v13944_v19 = vmax.f32 %v13943_v23, 0.0 }
 0x167   : > { %13933 = vst [vmem:[#allocation167_spill] sm:$0xff] %v7012_v38  ;;  %v7024_v40 = vadd.f32 1e-10, %v13941_v33  ;;  %v13946_v51 = vld [vmem:[#allocation172_spill] sm:$0xff]  ;;  %v13949_v38 = vld [vmem:[#allocation173_spill] sm:$0xff] }
 0x168   : > { %13936 = vst [vmem:[#allocation168_spill] sm:$0xff] %v7016_v46  ;;  %13939 = vst [vmem:[#allocation169_spill] sm:$0xff] %v7020_v4  ;;  %v7028_v7 = vadd.f32 1e-10, %v13944_v19  ;;  %v13947_v50 = vmax.f32 %v13946_v51, 0.0  ;;  %v13950_v14 = vmax.f32 %v13949_v38, 0.0 }
 0x169   : > { %13942 = vst [vmem:[#allocation170_spill] sm:$0xff] %v7024_v40  ;;  %v13952_v46 = vld [vmem:[#allocation174_spill] sm:$0xff]  ;;  %v13955_v4 = vld [vmem:[#allocation175_spill] sm:$0xff]  ;;  %v13958_v40 = vld [vmem:[#allocation176_spill] sm:$0xff] }
 0x16a   : > { %13945 = vst [vmem:[#allocation171_spill] sm:$0xff] %v7028_v7  ;;  %v7032_v12 = vadd.f32 1e-10, %v13947_v50  ;;  %v7036_v41 = vadd.f32 1e-10, %v13950_v14  ;;  %v13953_v18 = vmax.f32 %v13952_v46, 0.0 }
 0x16b   : > { %v13956_v35 = vmax.f32 %v13955_v4, 0.0  ;;  %v13959_v23 = vmax.f32 %v13958_v40, 0.0  ;;  %v13961_v7 = vld [vmem:[#allocation177_spill] sm:$0xff] }
 0x16c   : > { %13948 = vst [vmem:[#allocation172_spill] sm:$0xff] %v7032_v12  ;;  %13951 = vst [vmem:[#allocation173_spill] sm:$0xff] %v7036_v41  ;;  %v7040_v59 = vadd.f32 1e-10, %v13953_v18  ;;  %v13962_v51 = vmax.f32 %v13961_v7, 0.0  ;;  %v13964_v12 = vld [vmem:[#allocation178_spill] sm:$0xff] }
 0x16d   : > { %v7044_v33 = vadd.f32 1e-10, %v13956_v35  ;;  %v7048_v19 = vadd.f32 1e-10, %v13959_v23  ;;  %v13965_v38 = vmax.f32 %v13964_v12, 0.0  ;;  %v13967_v41 = vld [vmem:[#allocation179_spill] sm:$0xff] }
 0x16e   : > { %13954 = vst [vmem:[#allocation174_spill] sm:$0xff] %v7040_v59  ;;  %v7052_v50 = vadd.f32 1e-10, %v13962_v51  ;;  %v13968_v46 = vmax.f32 %v13967_v41, 0.0  ;;  %v13970_v59 = vld [vmem:[#allocation180_spill] sm:$0xff]  ;;  %v13979_v12 = vmax.f32 %v6574_v32, 0.0 }
 0x16f   : > { %13957 = vst [vmem:[#allocation175_spill] sm:$0xff] %v7044_v33  ;;  %13960 = vst [vmem:[#allocation176_spill] sm:$0xff] %v7048_v19  ;;  %v7056_v14 = vadd.f32 1e-10, %v13965_v38  ;;  %v13971_v4 = vmax.f32 %v13970_v59, 0.0  ;;  %v13973_v33 = vld [vmem:[#allocation181_spill] sm:$0xff] }
 0x170   : > { %13963 = vst [vmem:[#allocation177_spill] sm:$0xff] %v7052_v50  ;;  %v7060_v18 = vadd.f32 1e-10, %v13968_v46  ;;  %v13974_v40 = vmax.f32 %v13973_v33, 0.0  ;;  %v13976_v19 = vld [vmem:[#allocation182_spill] sm:$0xff]  ;;  %v13981_v41 = vmax.f32 %v6576_v11, 0.0 }
 0x171   : > { %13966 = vst [vmem:[#allocation178_spill] sm:$0xff] %v7056_v14  ;;  %v7064_v35 = vadd.f32 1e-10, %v13971_v4  ;;  %v13977_v7 = vmax.f32 %v13976_v19, 0.0  ;;  %v7076_v38 = vadd.f32 1e-10, %v13979_v12 }
 0x172   : > { %13969 = vst [vmem:[#allocation179_spill] sm:$0xff] %v7060_v18  ;;  %v7068_v23 = vadd.f32 1e-10, %v13974_v40  ;;  %v7080_v46 = vadd.f32 1e-10, %v13981_v41  ;;  %v13983_v59 = vmax.f32 %v6583_v37, 0.0 }
 0x173   : > { %13972 = vst [vmem:[#allocation180_spill] sm:$0xff] %v7064_v35  ;;  %v7072_v51 = vadd.f32 1e-10, %v13977_v7  ;;  %13980 = vst [vmem:[#allocation198_spill] sm:$0xff] %v7076_v38  ;;  %v13985_v33 = vmax.f32 %v6585_v34, 0.0  ;;  %v13987_v19 = vmax.f32 %v6592_v9, 0.0 }
 0x174   : > { %13975 = vst [vmem:[#allocation181_spill] sm:$0xff] %v7068_v23  ;;  %13982 = vst [vmem:[#allocation199_spill] sm:$0xff] %v7080_v46  ;;  %v7084_v4 = vadd.f32 1e-10, %v13983_v59  ;;  %v13989_v32 = vmax.f32 %v6594_v17, 0.0  ;;  %v13991_v11 = vmax.f32 %v6596_v56, 0.0 }
 0x175   : > { %13978 = vst [vmem:[#allocation182_spill] sm:$0xff] %v7072_v51  ;;  %v7088_v40 = vadd.f32 1e-10, %v13985_v33  ;;  %v7092_v7 = vadd.f32 1e-10, %v13987_v19  ;;  %v13993_v37 = vmax.f32 %v6601_v63, 0.0 }
 0x176   : > { %13984 = vst [vmem:[#allocation200_spill] sm:$0xff] %v7084_v4  ;;  %v7096_v12 = vadd.f32 1e-10, %v13989_v32  ;;  %v7100_v41 = vadd.f32 1e-10, %v13991_v11  ;;  %v13995_v34 = vmax.f32 %v6603_v49, 0.0 }
 0x177   : > { %13986 = vst [vmem:[#allocation201_spill] sm:$0xff] %v7088_v40  ;;  %13988 = vst [vmem:[#allocation202_spill] sm:$0xff] %v7092_v7  ;;  %v7104_v59 = vadd.f32 1e-10, %v13993_v37  ;;  %v13997_v9 = vmax.f32 %v6605_v20, 0.0  ;;  %v13999_v17 = vmax.f32 %v6610_v43, 0.0 }
 0x178   : > { %13990 = vst [vmem:[#allocation203_spill] sm:$0xff] %v7096_v12  ;;  %13992 = vst [vmem:[#allocation204_spill] sm:$0xff] %v7100_v41  ;;  %v7108_v33 = vadd.f32 1e-10, %v13995_v34  ;;  %v14001_v56 = vmax.f32 %v6612_v2, 0.0  ;;  %v14003_v63 = vmax.f32 %v6614_v39, 0.0 }
 0x179   : > { %13994 = vst [vmem:[#allocation205_spill] sm:$0xff] %v7104_v59  ;;  %v7112_v19 = vadd.f32 1e-10, %v13997_v9  ;;  %v7116_v32 = vadd.f32 1e-10, %v13999_v17  ;;  %v14005_v49 = vmax.f32 %v6619_v16, 0.0 }
 0x17a   : > { %13996 = vst [vmem:[#allocation206_spill] sm:$0xff] %v7108_v33  ;;  %v7120_v11 = vadd.f32 1e-10, %v14001_v56  ;;  %v7124_v37 = vadd.f32 1e-10, %v14003_v63  ;;  %v14007_v20 = vmax.f32 %v6621_v3, 0.0 }
 0x17b   : > { %13998 = vst [vmem:[#allocation207_spill] sm:$0xff] %v7112_v19  ;;  %14000 = vst [vmem:[#allocation208_spill] sm:$0xff] %v7116_v32  ;;  %v7128_v34 = vadd.f32 1e-10, %v14005_v49  ;;  %v14009_v43 = vmax.f32 %v6623_v29, 0.0  ;;  %v14011_v2 = vmax.f32 %v6628_v44, 0.0 }
 0x17c   : > { %14002 = vst [vmem:[#allocation209_spill] sm:$0xff] %v7120_v11  ;;  %14004 = vst [vmem:[#allocation210_spill] sm:$0xff] %v7124_v37  ;;  %v7132_v9 = vadd.f32 1e-10, %v14007_v20  ;;  %v14013_v39 = vmax.f32 %v6630_v22, 0.0  ;;  %v14015_v16 = vmax.f32 %v6632_v60, 0.0 }
 0x17d   : > { %14006 = vst [vmem:[#allocation211_spill] sm:$0xff] %v7128_v34  ;;  %v7136_v17 = vadd.f32 1e-10, %v14009_v43  ;;  %v7140_v56 = vadd.f32 1e-10, %v14011_v2  ;;  %v14017_v3 = vmax.f32 %v6637_v53, 0.0 }
 0x17e   : > { %14008 = vst [vmem:[#allocation212_spill] sm:$0xff] %v7132_v9  ;;  %v7144_v63 = vadd.f32 1e-10, %v14013_v39  ;;  %v7148_v49 = vadd.f32 1e-10, %v14015_v16  ;;  %v14019_v29 = vmax.f32 %v6639_v42, 0.0 }
 0x17f   : > { %14010 = vst [vmem:[#allocation213_spill] sm:$0xff] %v7136_v17  ;;  %14012 = vst [vmem:[#allocation214_spill] sm:$0xff] %v7140_v56  ;;  %v7152_v20 = vadd.f32 1e-10, %v14017_v3  ;;  %v14021_v44 = vmax.f32 %v6641_v15, 0.0  ;;  %v14023_v2 = vmax.f32 %v6646_v6, 0.0 }
 0x180   : > { %14014 = vst [vmem:[#allocation215_spill] sm:$0xff] %v7144_v63  ;;  %14016 = vst [vmem:[#allocation216_spill] sm:$0xff] %v7148_v49  ;;  %v7156_v43 = vadd.f32 1e-10, %v14019_v29  ;;  %v14025_v39 = vmax.f32 %v6648_v47, 0.0  ;;  %v14027_v16 = vmax.f32 %v6650_v26, 0.0 }
 0x181   : > { %14018 = vst [vmem:[#allocation217_spill] sm:$0xff] %v7152_v20  ;;  %v7160_v22 = vadd.f32 1e-10, %v14021_v44  ;;  %v7164_v60 = vadd.f32 1e-10, %v14023_v2  ;;  %v14029_v42 = vmax.f32 %v6655_v55, 0.0 }
 0x182   : > { %14020 = vst [vmem:[#allocation218_spill] sm:$0xff] %v7156_v43  ;;  %v7168_v53 = vadd.f32 1e-10, %v14025_v39  ;;  %v7172_v3 = vadd.f32 1e-10, %v14027_v16  ;;  %v14031_v15 = vmax.f32 %v6657_v62, 0.0 }
 0x183   : > { %14022 = vst [vmem:[#allocation219_spill] sm:$0xff] %v7160_v22  ;;  %14024 = vst [vmem:[#allocation220_spill] sm:$0xff] %v7164_v60  ;;  %v7176_v29 = vadd.f32 1e-10, %v14029_v42  ;;  %v14033_v6 = vmax.f32 %v6659_v0, 0.0  ;;  %v14035_v2 = vmax.f32 %v6663_v54, 0.0 }
 0x184   : > { %14026 = vst [vmem:[#allocation221_spill] sm:$0xff] %v7168_v53  ;;  %14028 = vst [vmem:[#allocation222_spill] sm:$0xff] %v7172_v3  ;;  %v7180_v44 = vadd.f32 1e-10, %v14031_v15  ;;  %v387_v39 = vld [vmem:[%s5170_s4] sm:$0xff]  ;;  %v388_v16 = vld [vmem:[%s5170_s4 + $0x8] sm:$0xff] }
 0x185   : > { %14030 = vst [vmem:[#allocation223_spill] sm:$0xff] %v7176_v29  ;;  %v7184_v47 = vadd.f32 1e-10, %v14033_v6  ;;  %v7188_v26 = vadd.f32 1e-10, %v14035_v2  ;;  %v14037_v55 = vmax.f32 %v6665_v13, 0.0 }
 0x186   : > { %14032 = vst [vmem:[#allocation224_spill] sm:$0xff] %v7180_v44  ;;  %v14039_v62 = vmax.f32 %v6667_v1, 0.0  ;;  %v14041_v0 = vmax.f32 %v6669_v48, 0.0  ;;  %v389_v54 = vld [vmem:[%s5170_s4 + $0x10] sm:$0xff]  ;;  %v390_v2 = vld [vmem:[%s5170_s4 + $0x18] sm:$0xff]  ;;  %v14058_v3 = vmax.f32 %v6683_v45, 0.0 }
 0x187   : > { %14034 = vst [vmem:[#allocation225_spill] sm:$0xff] %v7184_v47  ;;  %14036 = vst [vmem:[#allocation226_spill] sm:$0xff] %v7188_v26  ;;  %v7194_v42 = vadd.f32 1e-10, %v14037_v55  ;;  %v391_v26 = vld [vmem:[%s5170_s4 + $0x20] sm:$0xff]  ;;  %v14043_v47 = vmax.f32 %v6671_v8, 0.0 }
 0x188   : > { %v7198_v15 = vadd.f32 1e-10, %v14039_v62  ;;  %v7202_v6 = vadd.f32 1e-10, %v14041_v0  ;;  %v14045_v55 = vmax.f32 %v6673_v28, 0.0  ;;  %v14047_v62 = vld [vmem:[#allocation183_spill] sm:$0xff] }
 0x189   : > { %14038 = vst [vmem:[#allocation227_spill] sm:$0xff] %v7194_v42  ;;  %v7209_v13 = vadd.f32 1e-10, %v14043_v47  ;;  %v392_v0 = vld [vmem:[%s5170_s4 + $0x28] sm:$0xff]  ;;  %v394_v42 = vld [vmem:[%s5170_s4 + $0x38] sm:$0xff]  ;;  %v14053_v47 = vmax.f32 %v6679_v30, 0.0 }
 0x18a   : > { %14040 = vst [vmem:[#allocation228_spill] sm:$0xff] %v7198_v15  ;;  %14042 = vst [vmem:[#allocation229_spill] sm:$0xff] %v7202_v6  ;;  %v7213_v1 = vadd.f32 1e-10, %v14045_v55  ;;  %v14048_v15 = vmax.f32 %v14047_v62, 0.0  ;;  %v393_v6 = vld [vmem:[%s5170_s4 + $0x30] sm:$0xff] }
 0x18b   : > { %14044 = vst [vmem:[#allocation230_spill] sm:$0xff] %v7209_v13  ;;  %v14050_v44 = vld [vmem:[#allocation184_spill] sm:$0xff]  ;;  %v7228_v28 = vadd.f32 1e-10, %v14053_v47  ;;  %v14055_v55 = vld [vmem:[#allocation185_spill] sm:$0xff]  ;;  %v397_v13 = vld [vmem:[%s5170_s4 + $0x50] sm:$0xff] }
 0x18c   : > { %14046 = vst [vmem:[#allocation231_spill] sm:$0xff] %v7213_v1  ;;  %v7217_v48 = vadd.f32 1e-10, %v14048_v15  ;;  %v14051_v29 = vmax.f32 %v14050_v44, 0.0  ;;  %v14056_v1 = vmax.f32 %v14055_v55, 0.0  ;;  %v395_v15 = vld [vmem:[%s5170_s4 + $0x40] sm:$0xff] }
 0x18d   : > { %14054 = vst [vmem:[#allocation232_spill] sm:$0xff] %v7228_v28  ;;  %v7239_v44 = vadd.f32 1e-10, %v14058_v3  ;;  %v14063_v47 = vmax.f32 %v6687_v61, 0.0  ;;  %v400_v28 = vld [vmem:[%s5170_s4 + $0x68] sm:$0xff]  ;;  %v14065_v53 = vld [vmem:[#allocation187_spill] sm:$0xff] }
 0x18e   : > { %14049 = vst [vmem:[#allocation183_spill] sm:$0xff] %v7217_v48  ;;  %v7224_v8 = vadd.f32 1e-10, %v14051_v29  ;;  %v7232_v62 = vadd.f32 1e-10, %v14056_v1  ;;  %v396_v48 = vld [vmem:[%s5170_s4 + $0x48] sm:$0xff] }
 0x18f   : > { %14059 = vst [vmem:[#allocation233_spill] sm:$0xff] %v7239_v44  ;;  %v14060_v29 = vld [vmem:[#allocation186_spill] sm:$0xff]  ;;  %v7247_v55 = vadd.f32 1e-10, %v14063_v47  ;;  %v398_v1 = vld [vmem:[%s5170_s4 + $0x58] sm:$0xff]  ;;  %v14066_v60 = vmax.f32 %v14065_v53, 0.0 }
 0x190   : > { %14052 = vst [vmem:[#allocation184_spill] sm:$0xff] %v7224_v8  ;;  %14057 = vst [vmem:[#allocation185_spill] sm:$0xff] %v7232_v62  ;;  %v14061_v8 = vmax.f32 %v14060_v29, 0.0  ;;  %v399_v62 = vld [vmem:[%s5170_s4 + $0x60] sm:$0xff]  ;;  %v14068_v3 = vmax.f32 %v6691_v25, 0.0  ;;  %v401_v47 = vld [vmem:[%s5170_s4 + $0x70] sm:$0xff] }
 0x191   : > { %14064 = vst [vmem:[#allocation234_spill] sm:$0xff] %v7247_v55  ;;  %v7254_v45 = vadd.f32 1e-10, %v14066_v60  ;;  %v402_v55 = vld [vmem:[%s5170_s4 + $0x78] sm:$0xff]  ;;  %v403_v44 = vld [vmem:[%s5170_s4 + $0x80] sm:$0xff]  ;;  %v14073_v22 = vmax.f32 %v6695_v10, 0.0 }
 0x192   : > { %v7243_v30 = vadd.f32 1e-10, %v14061_v8  ;;  %v7258_v29 = vadd.f32 1e-10, %v14068_v3  ;;  %v14070_v8 = vld [vmem:[#allocation188_spill] sm:$0xff]  ;;  %v404_v3 = vld [vmem:[%s5170_s4 + $0x88] sm:$0xff] }
 0x193   : > { %14067 = vst [vmem:[#allocation187_spill] sm:$0xff] %v7254_v45  ;;  %v7269_v53 = vadd.f32 1e-10, %v14073_v22  ;;  %v7271_v60 = vadd.f32 -1e-10, %v387_v39  ;;  %v407_v22 = vld [vmem:[%s5170_s4 + $0xa0] sm:$0xff] }
 0x194   : > { %14062 = vst [vmem:[#allocation186_spill] sm:$0xff] %v7243_v30  ;;  %14069 = vst [vmem:[#allocation235_spill] sm:$0xff] %v7258_v29  ;;  %v14071_v30 = vmax.f32 %v14070_v8, 0.0  ;;  %v7273_v25 = vadd.f32 -1e-10, %v388_v16  ;;  %v405_v29 = vld [vmem:[%s5170_s4 + $0x90] sm:$0xff] }
 0x195   : > { %14074 = vst [vmem:[#allocation236_spill] sm:$0xff] %v7269_v53  ;;  %v406_v8 = vld [vmem:[%s5170_s4 + $0x98] sm:$0xff]  ;;  %v7282_v10 = vadd.f32 -1e-10, %v391_v26  ;;  %v408_v53 = vld [vmem:[%s5170_s4 + $0xa8] sm:$0xff]  ;;  %v409_v45 = vld [vmem:[%s5170_s4 + $0xb0] sm:$0xff] }
 0x196   : > { %v7262_v61 = vadd.f32 1e-10, %v14071_v30  ;;  %v7278_v30 = vadd.f32 -1e-10, %v389_v54  ;;  %v7287_v39 = vadd.f32 -1e-10, %v392_v0 }
 0x197   : > { %v7289_v16 = vadd.f32 -1e-10, %v393_v6  ;;  %v7291_v43 = vadd.f32 -1e-10, %v394_v42  ;;  %v410_v54 = vld [vmem:[%s5170_s4 + $0xb8] sm:$0xff]  ;;  %v411_v20 = vld [vmem:[%s5170_s4 + $0xc0] sm:$0xff] }
 0x198   : > { %14072 = vst [vmem:[#allocation188_spill] sm:$0xff] %v7262_v61  ;;  %v7280_v61 = vadd.f32 -1e-10, %v390_v2  ;;  %v412_v49 = vld [vmem:[%s5170_s4 + $0xc8] sm:$0xff]  ;;  %v7296_v2 = vadd.f32 -1e-10, %v395_v15 }
 0x199   : > { %v7298_v26 = vadd.f32 -1e-10, %v396_v48  ;;  %v7300_v63 = vadd.f32 -1e-10, %v397_v13  ;;  %v413_v0 = vld [vmem:[%s5170_s4 + $0xd0] sm:$0xff]  ;;  %v414_v56 = vld [vmem:[%s5170_s4 + $0xd8] sm:$0xff] }
 0x19a   : > { %v415_v17 = vld [vmem:[%s5170_s4 + $0xe0] sm:$0xff]  ;;  %v7305_v6 = vadd.f32 -1e-10, %v398_v1  ;;  %v7307_v42 = vadd.f32 -1e-10, %v399_v62  ;;  %v416_v15 = vld [vmem:[%s5170_s4 + $0xe8] sm:$0xff] }
 0x19b   : > { %v7309_v9 = vadd.f32 -1e-10, %v400_v28  ;;  %v417_v34 = vld [vmem:[%s5170_s4 + $0xf0] sm:$0xff]  ;;  %v418_v37 = vld [vmem:[%s5170_s4 + $0xf8] sm:$0xff]  ;;  %v7314_v48 = vadd.f32 -1e-10, %v401_v47 }
 0x19c   : > { %v7316_v13 = vadd.f32 -1e-10, %v402_v55  ;;  %v7318_v11 = vadd.f32 -1e-10, %v403_v44  ;;  %v419_v1 = vld [vmem:[%s5170_s4 + $0x100] sm:$0xff]  ;;  %v420_v32 = vld [vmem:[%s5170_s4 + $0x108] sm:$0xff] }
 0x19d   : > { %v421_v19 = vld [vmem:[%s5170_s4 + $0x110] sm:$0xff]  ;;  %v7323_v62 = vadd.f32 -1e-10, %v404_v3  ;;  %v7325_v28 = vadd.f32 -1e-10, %v405_v29  ;;  %v422_v47 = vld [vmem:[%s5170_s4 + $0x118] sm:$0xff] }
 0x19e   : > { %v7327_v33 = vadd.f32 -1e-10, %v406_v8  ;;  %v423_v59 = vld [vmem:[%s5170_s4 + $0x120] sm:$0xff]  ;;  %v424_v41 = vld [vmem:[%s5170_s4 + $0x128] sm:$0xff]  ;;  %v7332_v55 = vadd.f32 -1e-10, %v407_v22 }
 0x19f   : > { %v7334_v44 = vadd.f32 -1e-10, %v408_v53  ;;  %v7336_v12 = vadd.f32 -1e-10, %v409_v45  ;;  %v425_v3 = vld [vmem:[%s5170_s4 + $0x130] sm:$0xff]  ;;  %v426_v7 = vld [vmem:[%s5170_s4 + $0x138] sm:$0xff] }
 0x1a0   : > { %v427_v40 = vld [vmem:[%s5170_s4 + $0x140] sm:$0xff]  ;;  %v7341_v29 = vadd.f32 -1e-10, %v410_v54  ;;  %v7343_v8 = vadd.f32 -1e-10, %v411_v20  ;;  %v428_v22 = vld [vmem:[%s5170_s4 + $0x148] sm:$0xff] }
 0x1a1   : > { %14075 = vst [vmem:[#allocation237_spill] sm:$0xff] %v7336_v12  ;;  %v7345_v4 = vadd.f32 -1e-10, %v412_v49  ;;  %v429_v46 = vld [vmem:[%s5170_s4 + $0x150] sm:$0xff]  ;;  %v430_v38 = vld [vmem:[%s5170_s4 + $0x158] sm:$0xff]  ;;  %v431_v54 = vld [vmem:[%s5170_s4 + $0x160] sm:$0xff] }
 0x1a2   : > { %14076 = vst [vmem:[#allocation238_spill] sm:$0xff] %v7341_v29  ;;  %14077 = vst [vmem:[#allocation239_spill] sm:$0xff] %v7343_v8  ;;  %v7350_v53 = vadd.f32 -1e-10, %v413_v0  ;;  %v7352_v45 = vadd.f32 -1e-10, %v414_v56 }
 0x1a3   : > { %14078 = vst [vmem:[#allocation240_spill] sm:$0xff] %v7345_v4  ;;  %v7354_v51 = vadd.f32 -1e-10, %v415_v17  ;;  %v432_v23 = vld [vmem:[%s5170_s4 + $0x168] sm:$0xff]  ;;  %v433_v35 = vld [vmem:[%s5170_s4 + $0x170] sm:$0xff]  ;;  %v434_v0 = vld [vmem:[%s5170_s4 + $0x178] sm:$0xff] }
 0x1a4   : > { %14079 = vst [vmem:[#allocation241_spill] sm:$0xff] %v7350_v53  ;;  %14080 = vst [vmem:[#allocation242_spill] sm:$0xff] %v7352_v45  ;;  %v7359_v20 = vadd.f32 -1e-10, %v416_v15  ;;  %v7361_v49 = vadd.f32 -1e-10, %v417_v34 }
 0x1a5   : > { %14081 = vst [vmem:[#allocation243_spill] sm:$0xff] %v7354_v51  ;;  %v7363_v18 = vadd.f32 -1e-10, %v418_v37  ;;  %v435_v14 = vld [vmem:[%s5170_s4 + $0x180] sm:$0xff]  ;;  %v436_v50 = vld [vmem:[%s5170_s4 + $0x188] sm:$0xff]  ;;  %v437_v15 = vld [vmem:[%s5170_s4 + $0x190] sm:$0xff] }
 0x1a6   : > { %14082 = vst [vmem:[#allocation244_spill] sm:$0xff] %v7359_v20  ;;  %14083 = vst [vmem:[#allocation245_spill] sm:$0xff] %v7361_v49  ;;  %v7368_v56 = vadd.f32 -1e-10, %v419_v1  ;;  %v7370_v17 = vadd.f32 -1e-10, %v420_v32 }
 0x1a7   : > { %14084 = vst [vmem:[#allocation246_spill] sm:$0xff] %v7363_v18  ;;  %v7372_v24 = vadd.f32 -1e-10, %v421_v19  ;;  %v7377_v34 = vadd.f32 -1e-10, %v422_v47  ;;  %v440_v1 = vld [vmem:[%s5170_s4 + $0x1a8] sm:$0xff] }
 0x1a8   : > { %14085 = vst [vmem:[#allocation247_spill] sm:$0xff] %v7368_v56  ;;  %14086 = vst [vmem:[#allocation248_spill] sm:$0xff] %v7370_v17  ;;  %v7379_v37 = vadd.f32 -1e-10, %v423_v59  ;;  %v7381_v52 = vadd.f32 -1e-10, %v424_v41 }
 0x1a9   : > { %14087 = vst [vmem:[#allocation249_spill] sm:$0xff] %v7372_v24  ;;  %14088 = vst [vmem:[#allocation250_spill] sm:$0xff] %v7377_v34  ;;  %v7386_v32 = vadd.f32 -1e-10, %v425_v3  ;;  %v7388_v19 = vadd.f32 -1e-10, %v426_v7 }
 0x1aa   : > { %14089 = vst [vmem:[#allocation251_spill] sm:$0xff] %v7379_v37  ;;  %14090 = vst [vmem:[#allocation252_spill] sm:$0xff] %v7381_v52  ;;  %v7390_v57 = vadd.f32 -1e-10, %v427_v40  ;;  %v443_v47 = vld [vmem:[%s5170_s4 + $0x1c0] sm:$0xff]  ;;  %v446_v3 = vld [vmem:[%s5170_s4 + $0x1d8] sm:$0xff] }
 0x1ab   : > { %14091 = vst [vmem:[#allocation253_spill] sm:$0xff] %v7386_v32  ;;  %14092 = vst [vmem:[#allocation254_spill] sm:$0xff] %v7388_v19  ;;  %v7395_v59 = vadd.f32 -1e-10, %v428_v22  ;;  %v7397_v41 = vadd.f32 -1e-10, %v429_v46 }
 0x1ac   : > { %14093 = vst [vmem:[#allocation255_spill] sm:$0xff] %v7390_v57  ;;  %v7399_v52 = vadd.f32 -1e-10, %v430_v38  ;;  %v447_v32 = vld [vmem:[%s5170_s4 + $0x1e0] sm:$0xff]  ;;  %v448_v37 = vld [vmem:[%s5170_s4 + $0x1e8] sm:$0xff]  ;;  %v449_v22 = vld [vmem:[%s5170_s4 + $0x1f0] sm:$0xff] }
 0x1ad   : > { %14094 = vst [vmem:[#allocation256_spill] sm:$0xff] %v7395_v59  ;;  %14095 = vst [vmem:[#allocation257_spill] sm:$0xff] %v7397_v41  ;;  %v7404_v7 = vadd.f32 -1e-10, %v431_v54  ;;  %v7406_v40 = vadd.f32 -1e-10, %v432_v23 }
 0x1ae   : > { %14096 = vst [vmem:[#allocation258_spill] sm:$0xff] %v7399_v52  ;;  %v7408_v57 = vadd.f32 -1e-10, %v433_v35  ;;  %v450_v59 = vld [vmem:[%s5170_s4 + $0x1f8] sm:$0xff]  ;;  %v451_v19 = vld [vmem:[%s5170_s4 + $0x200] sm:$0xff]  ;;  %v452_v54 = vld [vmem:[%s5170_s4 + $0x208] sm:$0xff] }
 0x1af   : > { %14097 = vst [vmem:[#allocation259_spill] sm:$0xff] %v7404_v7  ;;  %14098 = vst [vmem:[#allocation260_spill] sm:$0xff] %v7406_v40  ;;  %v7413_v46 = vadd.f32 -1e-10, %v434_v0  ;;  %v7415_v38 = vadd.f32 -1e-10, %v435_v14 }
 0x1b0   : > { %14099 = vst [vmem:[#allocation261_spill] sm:$0xff] %v7408_v57  ;;  %v7417_v52 = vadd.f32 -1e-10, %v436_v50  ;;  %v453_v7 = vld [vmem:[%s5170_s4 + $0x210] sm:$0xff]  ;;  %v454_v41 = vld [vmem:[%s5170_s4 + $0x218] sm:$0xff]  ;;  %v455_v0 = vld [vmem:[%s5170_s4 + $0x220] sm:$0xff] }
 0x1b1   : > { %14100 = vst [vmem:[#allocation262_spill] sm:$0xff] %v7413_v46  ;;  %14101 = vst [vmem:[#allocation263_spill] sm:$0xff] %v7415_v38  ;;  %v7422_v23 = vadd.f32 -1e-10, %v437_v15  ;;  %v7424_v35 = vadd.f32 -1e-10, %v438_v27 }
 0x1b2   : > { %14102 = vst [vmem:[#allocation264_spill] sm:$0xff] %v7417_v52  ;;  %v7426_v57 = vadd.f32 -1e-10, %v439_v36  ;;  %v456_v46 = vld [vmem:[%s5170_s4 + $0x228] sm:$0xff]  ;;  %v457_v40 = vld [vmem:[%s5170_s4 + $0x230] sm:$0xff]  ;;  %v458_v15 = vld [vmem:[%s5170_s4 + $0x238] sm:$0xff] }
 0x1b3   : > { %14103 = vst [vmem:[#allocation265_spill] sm:$0xff] %v7422_v23  ;;  %14104 = vst [vmem:[#allocation266_spill] sm:$0xff] %v7424_v35  ;;  %v7431_v14 = vadd.f32 -1e-10, %v440_v1  ;;  %v7433_v50 = vadd.f32 -1e-10, %v441_v31 }
 0x1b4   : > { %14105 = vst [vmem:[#allocation267_spill] sm:$0xff] %v7426_v57  ;;  %v7435_v52 = vadd.f32 -1e-10, %v442_v21  ;;  %v459_v23 = vld [vmem:[%s5170_s4 + $0x240] sm:$0xff]  ;;  %v460_v38 = vld [vmem:[%s5170_s4 + $0x248] sm:$0xff]  ;;  %v461_v1 = vld [vmem:[%s5170_s4 + $0x250] sm:$0xff] }
 0x1b5   : > { %14106 = vst [vmem:[#allocation268_spill] sm:$0xff] %v7431_v14  ;;  %14107 = vst [vmem:[#allocation269_spill] sm:$0xff] %v7433_v50  ;;  %v7440_v27 = vadd.f32 -1e-10, %v443_v47  ;;  %v7442_v36 = vadd.f32 -1e-10, %v444_v58 }
 0x1b6   : > { %14108 = vst [vmem:[#allocation270_spill] sm:$0xff] %v7435_v52  ;;  %v7444_v57 = vadd.f32 -1e-10, %v445_v5  ;;  %v462_v14 = vld [vmem:[%s5170_s4 + $0x258] sm:$0xff]  ;;  %v463_v35 = vld [vmem:[%s5170_s4 + $0x260] sm:$0xff]  ;;  %v464_v47 = vld [vmem:[%s5170_s4 + $0x268] sm:$0xff] }
 0x1b7   : > { %14109 = vst [vmem:[#allocation271_spill] sm:$0xff] %v7440_v27  ;;  %14110 = vst [vmem:[#allocation272_spill] sm:$0xff] %v7442_v36  ;;  %v7449_v31 = vadd.f32 -1e-10, %v446_v3  ;;  %v7451_v21 = vadd.f32 -1e-10, %v447_v32 }
 0x1b8   : > { %14111 = vst [vmem:[#allocation273_spill] sm:$0xff] %v7444_v57  ;;  %v7453_v52 = vadd.f32 -1e-10, %v448_v37  ;;  %v465_v27 = vld [vmem:[%s5170_s4 + $0x270] sm:$0xff]  ;;  %v466_v50 = vld [vmem:[%s5170_s4 + $0x278] sm:$0xff]  ;;  %v467_v3 = vld [vmem:[%s5170_s4 + $0x280] sm:$0xff] }
 0x1b9   : > { %14112 = vst [vmem:[#allocation274_spill] sm:$0xff] %v7449_v31  ;;  %14113 = vst [vmem:[#allocation275_spill] sm:$0xff] %v7451_v21  ;;  %v7458_v58 = vadd.f32 -1e-10, %v449_v22  ;;  %v7460_v5 = vadd.f32 -1e-10, %v450_v59 }
 0x1ba   : > { %14114 = vst [vmem:[#allocation276_spill] sm:$0xff] %v7453_v52  ;;  %v7462_v57 = vadd.f32 -1e-10, %v451_v19  ;;  %v468_v31 = vld [vmem:[%s5170_s4 + $0x288] sm:$0xff]  ;;  %v469_v36 = vld [vmem:[%s5170_s4 + $0x290] sm:$0xff]  ;;  %v470_v22 = vld [vmem:[%s5170_s4 + $0x298] sm:$0xff] }
 0x1bb   : > { %14115 = vst [vmem:[#allocation277_spill] sm:$0xff] %v7458_v58  ;;  %14116 = vst [vmem:[#allocation278_spill] sm:$0xff] %v7460_v5  ;;  %v7467_v32 = vadd.f32 -1e-10, %v452_v54  ;;  %v7469_v37 = vadd.f32 -1e-10, %v453_v7 }
 0x1bc   : > { %14117 = vst [vmem:[#allocation279_spill] sm:$0xff] %v7462_v57  ;;  %v7471_v52 = vadd.f32 -1e-10, %v454_v41  ;;  %v471_v58 = vld [vmem:[%s5170_s4 + $0x2a0] sm:$0xff]  ;;  %v472_v21 = vld [vmem:[%s5170_s4 + $0x2a8] sm:$0xff]  ;;  %v473_v54 = vld [vmem:[%s5170_s4 + $0x2b0] sm:$0xff] }
 0x1bd   : > { %14118 = vst [vmem:[#allocation280_spill] sm:$0xff] %v7467_v32  ;;  %14119 = vst [vmem:[#allocation281_spill] sm:$0xff] %v7469_v37  ;;  %v7476_v59 = vadd.f32 -1e-10, %v455_v0  ;;  %v7478_v19 = vadd.f32 -1e-10, %v456_v46 }
 0x1be   : > { %14120 = vst [vmem:[#allocation282_spill] sm:$0xff] %v7471_v52  ;;  %v7480_v57 = vadd.f32 -1e-10, %v457_v40  ;;  %v474_v32 = vld [vmem:[%s5170_s4 + $0x2b8] sm:$0xff]  ;;  %v475_v5 = vld [vmem:[%s5170_s4 + $0x2c0] sm:$0xff]  ;;  %v476_v0 = vld [vmem:[%s5170_s4 + $0x2c8] sm:$0xff] }
 0x1bf   : > { %14121 = vst [vmem:[#allocation283_spill] sm:$0xff] %v7476_v59  ;;  %14122 = vst [vmem:[#allocation284_spill] sm:$0xff] %v7478_v19  ;;  %v7485_v7 = vadd.f32 -1e-10, %v458_v15  ;;  %v7487_v41 = vadd.f32 -1e-10, %v459_v23 }
 0x1c0   : > { %14123 = vst [vmem:[#allocation285_spill] sm:$0xff] %v7480_v57  ;;  %v7489_v52 = vadd.f32 -1e-10, %v460_v38  ;;  %v477_v59 = vld [vmem:[%s5170_s4 + $0x2d0] sm:$0xff]  ;;  %v478_v37 = vld [vmem:[%s5170_s4 + $0x2d8] sm:$0xff]  ;;  %v479_v15 = vld [vmem:[%s5170_s4 + $0x2e0] sm:$0xff] }
 0x1c1   : > { %14124 = vst [vmem:[#allocation286_spill] sm:$0xff] %v7485_v7  ;;  %14125 = vst [vmem:[#allocation287_spill] sm:$0xff] %v7487_v41  ;;  %v7494_v46 = vadd.f32 -1e-10, %v461_v1  ;;  %v7496_v40 = vadd.f32 -1e-10, %v462_v14 }
 0x1c2   : > { %14126 = vst [vmem:[#allocation288_spill] sm:$0xff] %v7489_v52  ;;  %v7498_v57 = vadd.f32 -1e-10, %v463_v35  ;;  %v480_v7 = vld [vmem:[%s5170_s4 + $0x2e8] sm:$0xff]  ;;  %v481_v19 = vld [vmem:[%s5170_s4 + $0x2f0] sm:$0xff]  ;;  %v482_v1 = vld [vmem:[%s5170_s4 + $0x2f8] sm:$0xff] }
 0x1c3   : > { %14127 = vst [vmem:[#allocation289_spill] sm:$0xff] %v7494_v46  ;;  %14128 = vst [vmem:[#allocation290_spill] sm:$0xff] %v7496_v40  ;;  %v7503_v23 = vadd.f32 -1e-10, %v464_v47  ;;  %v7505_v38 = vadd.f32 -1e-10, %v465_v27 }
 0x1c4   : > { %14129 = vst [vmem:[#allocation291_spill] sm:$0xff] %v7498_v57  ;;  %v7507_v52 = vadd.f32 -1e-10, %v466_v50  ;;  %v483_v46 = vld [vmem:[%s5170_s4 + $0x300] sm:$0xff]  ;;  %v484_v41 = vld [vmem:[%s5170_s4 + $0x308] sm:$0xff]  ;;  %v485_v47 = vld [vmem:[%s5170_s4 + $0x310] sm:$0xff] }
 0x1c5   : > { %14130 = vst [vmem:[#allocation292_spill] sm:$0xff] %v7503_v23  ;;  %14131 = vst [vmem:[#allocation293_spill] sm:$0xff] %v7505_v38  ;;  %v7512_v14 = vadd.f32 -1e-10, %v467_v3  ;;  %v7514_v35 = vadd.f32 -1e-10, %v468_v31 }
 0x1c6   : > { %14132 = vst [vmem:[#allocation294_spill] sm:$0xff] %v7507_v52  ;;  %v7516_v57 = vadd.f32 -1e-10, %v469_v36  ;;  %v486_v23 = vld [vmem:[%s5170_s4 + $0x318] sm:$0xff]  ;;  %v487_v40 = vld [vmem:[%s5170_s4 + $0x320] sm:$0xff]  ;;  %v488_v3 = vld [vmem:[%s5170_s4 + $0x328] sm:$0xff] }
 0x1c7   : > { %14133 = vst [vmem:[#allocation295_spill] sm:$0xff] %v7512_v14  ;;  %14134 = vst [vmem:[#allocation296_spill] sm:$0xff] %v7514_v35  ;;  %v7521_v27 = vadd.f32 -1e-10, %v470_v22  ;;  %v7523_v50 = vadd.f32 -1e-10, %v471_v58 }
 0x1c8   : > { %14135 = vst [vmem:[#allocation297_spill] sm:$0xff] %v7516_v57  ;;  %v7525_v52 = vadd.f32 -1e-10, %v472_v21  ;;  %v489_v14 = vld [vmem:[%s5170_s4 + $0x330] sm:$0xff]  ;;  %v490_v38 = vld [vmem:[%s5170_s4 + $0x338] sm:$0xff]  ;;  %v491_v22 = vld [vmem:[%s5170_s4 + $0x340] sm:$0xff] }
 0x1c9   : > { %14136 = vst [vmem:[#allocation298_spill] sm:$0xff] %v7521_v27  ;;  %14137 = vst [vmem:[#allocation299_spill] sm:$0xff] %v7523_v50  ;;  %v7530_v31 = vadd.f32 -1e-10, %v473_v54  ;;  %v7532_v36 = vadd.f32 -1e-10, %v474_v32 }
 0x1ca   : > { %14138 = vst [vmem:[#allocation300_spill] sm:$0xff] %v7525_v52  ;;  %v7534_v57 = vadd.f32 -1e-10, %v475_v5  ;;  %v492_v27 = vld [vmem:[%s5170_s4 + $0x348] sm:$0xff]  ;;  %v493_v35 = vld [vmem:[%s5170_s4 + $0x350] sm:$0xff]  ;;  %v494_v54 = vld [vmem:[%s5170_s4 + $0x358] sm:$0xff] }
 0x1cb   : > { %14139 = vst [vmem:[#allocation301_spill] sm:$0xff] %v7530_v31  ;;  %14140 = vst [vmem:[#allocation302_spill] sm:$0xff] %v7532_v36  ;;  %v7539_v58 = vadd.f32 -1e-10, %v476_v0  ;;  %v7541_v21 = vadd.f32 -1e-10, %v477_v59 }
 0x1cc   : > { %14141 = vst [vmem:[#allocation303_spill] sm:$0xff] %v7534_v57  ;;  %v7543_v52 = vadd.f32 -1e-10, %v478_v37  ;;  %v495_v31 = vld [vmem:[%s5170_s4 + $0x360] sm:$0xff]  ;;  %v496_v50 = vld [vmem:[%s5170_s4 + $0x368] sm:$0xff]  ;;  %v497_v0 = vld [vmem:[%s5170_s4 + $0x370] sm:$0xff] }
 0x1cd   : > { %14142 = vst [vmem:[#allocation304_spill] sm:$0xff] %v7539_v58  ;;  %14143 = vst [vmem:[#allocation305_spill] sm:$0xff] %v7541_v21  ;;  %v7548_v32 = vadd.f32 -1e-10, %v479_v15  ;;  %v7550_v5 = vadd.f32 -1e-10, %v480_v7 }
 0x1ce   : > { %14144 = vst [vmem:[#allocation306_spill] sm:$0xff] %v7543_v52  ;;  %v7552_v57 = vadd.f32 -1e-10, %v481_v19  ;;  %v498_v58 = vld [vmem:[%s5170_s4 + $0x378] sm:$0xff]  ;;  %v499_v36 = vld [vmem:[%s5170_s4 + $0x380] sm:$0xff]  ;;  %v500_v15 = vld [vmem:[%s5170_s4 + $0x388] sm:$0xff] }
 0x1cf   : > { %14145 = vst [vmem:[#allocation307_spill] sm:$0xff] %v7548_v32  ;;  %14146 = vst [vmem:[#allocation308_spill] sm:$0xff] %v7550_v5  ;;  %v7557_v59 = vadd.f32 -1e-10, %v482_v1  ;;  %v7559_v37 = vadd.f32 -1e-10, %v483_v46 }
 0x1d0   : > { %14147 = vst [vmem:[#allocation309_spill] sm:$0xff] %v7552_v57  ;;  %v7561_v52 = vadd.f32 -1e-10, %v484_v41  ;;  %v501_v32 = vld [vmem:[%s5170_s4 + $0x390] sm:$0xff]  ;;  %v502_v21 = vld [vmem:[%s5170_s4 + $0x398] sm:$0xff]  ;;  %v503_v1 = vld [vmem:[%s5170_s4 + $0x3a0] sm:$0xff] }
 0x1d1   : > { %14148 = vst [vmem:[#allocation310_spill] sm:$0xff] %v7557_v59  ;;  %14149 = vst [vmem:[#allocation311_spill] sm:$0xff] %v7559_v37  ;;  %v7566_v7 = vadd.f32 -1e-10, %v485_v47  ;;  %v7568_v19 = vadd.f32 -1e-10, %v486_v23 }
 0x1d2   : > { %14150 = vst [vmem:[#allocation312_spill] sm:$0xff] %v7561_v52  ;;  %v7570_v57 = vadd.f32 -1e-10, %v487_v40  ;;  %v504_v59 = vld [vmem:[%s5170_s4 + $0x3a8] sm:$0xff]  ;;  %v505_v5 = vld [vmem:[%s5170_s4 + $0x3b0] sm:$0xff]  ;;  %v506_v47 = vld [vmem:[%s5170_s4 + $0x3b8] sm:$0xff] }
 0x1d3   : > { %14151 = vst [vmem:[#allocation313_spill] sm:$0xff] %v7566_v7  ;;  %14152 = vst [vmem:[#allocation314_spill] sm:$0xff] %v7568_v19  ;;  %v7575_v46 = vadd.f32 -1e-10, %v488_v3  ;;  %v7577_v41 = vadd.f32 -1e-10, %v489_v14 }
 0x1d4   : > { %14153 = vst [vmem:[#allocation315_spill] sm:$0xff] %v7570_v57  ;;  %v7579_v52 = vadd.f32 -1e-10, %v490_v38  ;;  %v507_v7 = vld [vmem:[%s5170_s4 + $0x3c0] sm:$0xff]  ;;  %v508_v37 = vld [vmem:[%s5170_s4 + $0x3c8] sm:$0xff]  ;;  %v509_v57 = vld [vmem:[%s5170_s4 + $0x3d0] sm:$0xff] }
 0x1d5   : > { %14154 = vst [vmem:[#allocation316_spill] sm:$0xff] %v7575_v46  ;;  %14155 = vst [vmem:[#allocation317_spill] sm:$0xff] %v7577_v41  ;;  %v7584_v23 = vadd.f32 -1e-10, %v491_v22  ;;  %v7586_v19 = vadd.f32 -1e-10, %v492_v27 }
 0x1d6   : > { %14156 = vst [vmem:[#allocation318_spill] sm:$0xff] %v7579_v52  ;;  %v7588_v40 = vadd.f32 -1e-10, %v493_v35  ;;  %v510_v34 = vld [vmem:[%s5170_s4 + $0x3d8] sm:$0xff]  ;;  %v511_v24 = vld [vmem:[%s5170_s4 + $0x3e0] sm:$0xff]  ;;  %v512_v38 = vld [vmem:[%s5170_s4 + $0x3e8] sm:$0xff] }
 0x1d7   : > { %14157 = vst [vmem:[#allocation319_spill] sm:$0xff] %v7586_v19  ;;  %v7593_v3 = vadd.f32 -1e-10, %v494_v54  ;;  %v7595_v46 = vadd.f32 -1e-10, %v495_v31  ;;  %v513_v52 = vld [vmem:[%s5170_s4 + $0x3f0] sm:$0xff] }
 0x1d8   : > { %14158 = vst [vmem:[#allocation320_spill] sm:$0xff] %v7588_v40  ;;  %v7597_v14 = vadd.f32 -1e-10, %v496_v50  ;;  %v514_v41 = vld [vmem:[%s5170_s4 + $0x3f8] sm:$0xff]  ;;  %v7602_v17 = vadd.f32 -1e-10, %v497_v0 }
 0x1d9   : > { %v7604_v22 = vadd.f32 -1e-10, %v498_v58  ;;  %v7606_v27 = vadd.f32 -1e-10, %v499_v36  ;;  %v7608_v35 = vadd.f32 -1e-10, %v500_v15 }
 0x1da   : > { %14159 = vst [vmem:[#allocation321_spill] sm:$0xff] %v7597_v14  ;;  %v7610_v40 = vadd.f32 -1e-10, %v501_v32  ;;  %v7612_v19 = vadd.f32 -1e-10, %v502_v21  ;;  %v14221_v45 = vld [vmem:[#allocation308_spill] sm:$0xff] }
 0x1db   : > { %v7614_v54 = vadd.f32 -1e-10, %v503_v1  ;;  %v7616_v31 = vadd.f32 -1e-10, %v504_v59  ;;  %v7618_v50 = vadd.f32 -1e-10, %v505_v5 }
 0x1dc   : > { %v7620_v14 = vadd.f32 -1e-10, %v506_v47  ;;  %v7622_v0 = vadd.f32 -1e-10, %v507_v7  ;;  %v7624_v58 = vadd.f32 -1e-10, %v508_v37 }
 0x1dd   : > { %14160 = vst [vmem:[#allocation322_spill] sm:$0xff] %v7618_v50  ;;  %v7626_v36 = vadd.f32 -1e-10, %v509_v57  ;;  %v7628_v15 = vadd.f32 -1e-10, %v510_v34  ;;  %v14224_v49 = vld [vmem:[#allocation311_spill] sm:$0xff] }
 0x1de   : > { %v7630_v32 = vadd.f32 -1e-10, %v511_v24  ;;  %v7632_v21 = vadd.f32 -1e-10, %v512_v38  ;;  %v7634_v1 = vadd.f32 -1e-10, %v513_v52 }
 0x1df   : > { %v7636_v59 = vadd.f32 -1e-10, %v514_v41  ;;  %v14225_v18 = vld [vmem:[#allocation312_spill] sm:$0xff]  ;;  %v14227_v12 = vld [vmem:[#allocation314_spill] sm:$0xff]  ;;  %v14228_v29 = vld [vmem:[#allocation315_spill] sm:$0xff]  ;;  %v14235_v52 = vmax.f32 %v7271_v60, 0.0 }
 0x1e0   : > { %v14229_v8 = vld [vmem:[#allocation316_spill] sm:$0xff]  ;;  %v14230_v4 = vld [vmem:[#allocation317_spill] sm:$0xff]  ;;  %v14231_v53 = vld [vmem:[#allocation318_spill] sm:$0xff]  ;;  %v14237_v5 = vmax.f32 %v7273_v25, 0.0  ;;  %v14239_v7 = vmax.f32 %v7278_v30, 0.0  ;;  %v14241_v57 = vmax.f32 %v7280_v61, 0.0 }
 0x1e1   : > { %v14232_v51 = vld [vmem:[#allocation319_spill] sm:$0xff]  ;;  %v14233_v20 = vld [vmem:[#allocation320_spill] sm:$0xff]  ;;  %v14234_v56 = vld [vmem:[#allocation321_spill] sm:$0xff]  ;;  %v7768_v50 = vadd.f32 1e-10, %v14235_v52  ;;  %v14243_v24 = vmax.f32 %v7282_v10, 0.0 }
 0x1e2   : > { %v7772_v41 = vadd.f32 1e-10, %v14237_v5  ;;  %v7776_v47 = vadd.f32 1e-10, %v14239_v7  ;;  %v7780_v37 = vadd.f32 1e-10, %v14241_v57 }
 0x1e3   : > { %14236 = vst [vmem:[#allocation308_spill] sm:$0xff] %v7768_v50  ;;  %v7784_v34 = vadd.f32 1e-10, %v14243_v24  ;;  %v14245_v60 = vmax.f32 %v7287_v39, 0.0  ;;  %v14247_v25 = vmax.f32 %v7289_v16, 0.0  ;;  %v14249_v30 = vmax.f32 %v7291_v43, 0.0 }
 0x1e4   : > { %14238 = vst [vmem:[#allocation311_spill] sm:$0xff] %v7772_v41  ;;  %14240 = vst [vmem:[#allocation312_spill] sm:$0xff] %v7776_v47  ;;  %v14251_v61 = vmax.f32 %v7296_v2, 0.0  ;;  %v14253_v10 = vmax.f32 %v7298_v26, 0.0  ;;  %v14255_v39 = vmax.f32 %v7300_v63, 0.0  ;;  %v14257_v16 = vmax.f32 %v7305_v6, 0.0 }
 0x1e5   : > { %14242 = vst [vmem:[#allocation314_spill] sm:$0xff] %v7780_v37  ;;  %14244 = vst [vmem:[#allocation315_spill] sm:$0xff] %v7784_v34  ;;  %v7788_v52 = vadd.f32 1e-10, %v14245_v60  ;;  %v7792_v5 = vadd.f32 1e-10, %v14247_v25 }
 0x1e6   : > { %v7796_v7 = vadd.f32 1e-10, %v14249_v30  ;;  %v7800_v57 = vadd.f32 1e-10, %v14251_v61  ;;  %v7804_v24 = vadd.f32 1e-10, %v14253_v10 }
 0x1e7   : > { %14246 = vst [vmem:[#allocation316_spill] sm:$0xff] %v7788_v52  ;;  %14248 = vst [vmem:[#allocation317_spill] sm:$0xff] %v7792_v5  ;;  %v7808_v60 = vadd.f32 1e-10, %v14255_v39  ;;  %v7812_v25 = vadd.f32 1e-10, %v14257_v16 }
 0x1e8   : > { %14250 = vst [vmem:[#allocation318_spill] sm:$0xff] %v7796_v7  ;;  %14252 = vst [vmem:[#allocation319_spill] sm:$0xff] %v7800_v57  ;;  %v14259_v43 = vmax.f32 %v7307_v42, 0.0  ;;  %v14261_v2 = vmax.f32 %v7309_v9, 0.0  ;;  %v14263_v26 = vmax.f32 %v7314_v48, 0.0  ;;  %v14265_v63 = vmax.f32 %v7316_v13, 0.0 }
 0x1e9   : > { %14254 = vst [vmem:[#allocation320_spill] sm:$0xff] %v7804_v24  ;;  %14256 = vst [vmem:[#allocation321_spill] sm:$0xff] %v7808_v60  ;;  %v14267_v6 = vmax.f32 %v7318_v11, 0.0  ;;  %v14269_v42 = vmax.f32 %v7323_v62, 0.0  ;;  %v14271_v9 = vmax.f32 %v7325_v28, 0.0  ;;  %v14273_v48 = vmax.f32 %v7327_v33, 0.0 }
 0x1ea   : > { %14258 = vst [vmem:[#allocation323_spill] sm:$0xff] %v7812_v25  ;;  %v7816_v30 = vadd.f32 1e-10, %v14259_v43  ;;  %v7820_v61 = vadd.f32 1e-10, %v14261_v2  ;;  %v14275_v13 = vmax.f32 %v7332_v55, 0.0 }
 0x1eb   : > { %v7824_v10 = vadd.f32 1e-10, %v14263_v26  ;;  %v7828_v39 = vadd.f32 1e-10, %v14265_v63  ;;  %v7832_v16 = vadd.f32 1e-10, %v14267_v6 }
 0x1ec   : > { %14260 = vst [vmem:[#allocation324_spill] sm:$0xff] %v7816_v30  ;;  %14262 = vst [vmem:[#allocation325_spill] sm:$0xff] %v7820_v61  ;;  %v7836_v43 = vadd.f32 1e-10, %v14269_v42  ;;  %v7840_v2 = vadd.f32 1e-10, %v14271_v9 }
 0x1ed   : > { %14264 = vst [vmem:[#allocation326_spill] sm:$0xff] %v7824_v10  ;;  %14266 = vst [vmem:[#allocation327_spill] sm:$0xff] %v7828_v39  ;;  %v7844_v26 = vadd.f32 1e-10, %v14273_v48  ;;  %v7848_v63 = vadd.f32 1e-10, %v14275_v13 }
 0x1ee   : > { %14268 = vst [vmem:[#allocation328_spill] sm:$0xff] %v7832_v16  ;;  %14270 = vst [vmem:[#allocation329_spill] sm:$0xff] %v7836_v43  ;;  %v14277_v11 = vmax.f32 %v7334_v44, 0.0  ;;  %v14279_v38 = vld [vmem:[#allocation237_spill] sm:$0xff]  ;;  %v14282_v43 = vld [vmem:[#allocation238_spill] sm:$0xff] }
 0x1ef   : > { %14272 = vst [vmem:[#allocation330_spill] sm:$0xff] %v7840_v2  ;;  %14274 = vst [vmem:[#allocation331_spill] sm:$0xff] %v7844_v26  ;;  %v14280_v62 = vmax.f32 %v14279_v38, 0.0  ;;  %v14283_v28 = vmax.f32 %v14282_v43, 0.0  ;;  %v14285_v2 = vld [vmem:[#allocation239_spill] sm:$0xff]  ;;  %v14288_v26 = vld [vmem:[#allocation240_spill] sm:$0xff] }
 0x1f0   : > { %14276 = vst [vmem:[#allocation332_spill] sm:$0xff] %v7848_v63  ;;  %v7852_v6 = vadd.f32 1e-10, %v14277_v11  ;;  %v14286_v33 = vmax.f32 %v14285_v2, 0.0  ;;  %v14289_v55 = vmax.f32 %v14288_v26, 0.0  ;;  %v14291_v63 = vld [vmem:[#allocation241_spill] sm:$0xff] }
 0x1f1   : > { %v7856_v42 = vadd.f32 1e-10, %v14280_v62  ;;  %v7860_v9 = vadd.f32 1e-10, %v14283_v28  ;;  %v14292_v44 = vmax.f32 %v14291_v63, 0.0  ;;  %v14295_v38 = vld [vmem:[#allocation242_spill] sm:$0xff] }
 0x1f2   : > { %14278 = vst [vmem:[#allocation333_spill] sm:$0xff] %v7852_v6  ;;  %v7864_v48 = vadd.f32 1e-10, %v14286_v33  ;;  %v7868_v13 = vadd.f32 1e-10, %v14289_v55  ;;  %v14294_v6 = vld [vmem:[#allocation11_spill] sm:$0xff] }
 0x1f3   : > { %14281 = vst [vmem:[#allocation237_spill] sm:$0xff] %v7856_v42  ;;  %14284 = vst [vmem:[#allocation238_spill] sm:$0xff] %v7860_v9  ;;  %v7872_v11 = vadd.f32 1e-10, %v14292_v44  ;;  %4352 = vlog2.f32 %v14294_v6  ;;  %v14296_v62 = vmax.f32 %v14295_v38, 0.0  ;;  %v14298_v43 = vld [vmem:[#allocation243_spill] sm:$0xff] }
 0x1f4   : > { %14287 = vst [vmem:[#allocation239_spill] sm:$0xff] %v7864_v48  ;;  %14290 = vst [vmem:[#allocation240_spill] sm:$0xff] %v7868_v13  ;;  %v14299_v28 = vmax.f32 %v14298_v43, 0.0  ;;  %v14301_v2 = vld [vmem:[#allocation244_spill] sm:$0xff]  ;;  %v14305_v55 = vld [vmem:[#allocation245_spill] sm:$0xff] }
 0x1f5   : > { %14293 = vst [vmem:[#allocation241_spill] sm:$0xff] %v7872_v11  ;;  %v7877_v42 = vadd.f32 1e-10, %v14296_v62  ;;  %v14302_v33 = vmax.f32 %v14301_v2, 0.0  ;;  %v14304_v26 = vld [vmem:[#allocation12_spill] sm:$0xff]  ;;  %v14306_v63 = vmax.f32 %v14305_v55, 0.0 }
 0x1f6   : > { %v7881_v9 = vadd.f32 1e-10, %v14299_v28  ;;  %4354 = vlog2.f32 %v14304_v26  ;;  %v14308_v11 = vld [vmem:[#allocation246_spill] sm:$0xff]  ;;  %v14311_v38 = vld [vmem:[#allocation247_spill] sm:$0xff]  ;;  %v14314_v43 = vld [vmem:[#allocation13_spill] sm:$0xff] }
 0x1f7   : > { %14297 = vst [vmem:[#allocation11_spill] sm:$0xff] %v7877_v42  ;;  %v7885_v48 = vadd.f32 1e-10, %v14302_v33  ;;  %v7890_v44 = vadd.f32 1e-10, %v14306_v63  ;;  %v14309_v6 = vmax.f32 %v14308_v11, 0.0  ;;  %4356 = vlog2.f32 %v14314_v43 }
 0x1f8   : > { %14300 = vst [vmem:[#allocation242_spill] sm:$0xff] %v7881_v9  ;;  %v14312_v62 = vmax.f32 %v14311_v38, 0.0  ;;  %v14315_v28 = vld [vmem:[#allocation248_spill] sm:$0xff]  ;;  %v14321_v55 = vld [vmem:[#allocation250_spill] sm:$0xff]  ;;  %v14418_v39 = vld [vmem:[#allocation279_spill] sm:$0xff] }
 0x1f9   : > { %14303 = vst [vmem:[#allocation243_spill] sm:$0xff] %v7885_v48  ;;  %14307 = vst [vmem:[#allocation244_spill] sm:$0xff] %v7890_v44  ;;  %v7894_v13 = vadd.f32 1e-10, %v14309_v6  ;;  %v14316_v2 = vmax.f32 %v14315_v28, 0.0  ;;  %v14318_v48 = vld [vmem:[#allocation249_spill] sm:$0xff] }
 0x1fa   : > { %v7898_v42 = vadd.f32 1e-10, %v14312_v62  ;;  %v14319_v26 = vmax.f32 %v14318_v48, 0.0  ;;  %v14322_v63 = vmax.f32 %v14321_v55, 0.0  ;;  %v14324_v11 = vld [vmem:[#allocation14_spill] sm:$0xff]  ;;  %v14325_v6 = vld [vmem:[#allocation251_spill] sm:$0xff] }
 0x1fb   : > { %14310 = vst [vmem:[#allocation12_spill] sm:$0xff] %v7894_v13  ;;  %v7903_v33 = vadd.f32 1e-10, %v14316_v2  ;;  %4358 = vlog2.f32 %v14324_v11  ;;  %v14326_v38 = vmax.f32 %v14325_v6, 0.0  ;;  %v14331_v28 = vld [vmem:[#allocation253_spill] sm:$0xff]  ;;  %v14334_v48 = vld [vmem:[#allocation15_spill] sm:$0xff] }
 0x1fc   : > { %14313 = vst [vmem:[#allocation245_spill] sm:$0xff] %v7898_v42  ;;  %v7907_v9 = vadd.f32 1e-10, %v14319_v26  ;;  %v7911_v44 = vadd.f32 1e-10, %v14322_v63  ;;  %v14328_v42 = vld [vmem:[#allocation252_spill] sm:$0xff]  ;;  %4360 = vlog2.f32 %v14334_v48 }
 0x1fd   : > { %14317 = vst [vmem:[#allocation246_spill] sm:$0xff] %v7903_v33  ;;  %v7916_v62 = vadd.f32 1e-10, %v14326_v38  ;;  %v14329_v43 = vmax.f32 %v14328_v42, 0.0  ;;  %v14332_v2 = vmax.f32 %v14331_v28, 0.0  ;;  %v14335_v26 = vld [vmem:[#allocation254_spill] sm:$0xff] }
 0x1fe   : > { %14320 = vst [vmem:[#allocation247_spill] sm:$0xff] %v7907_v9  ;;  %14323 = vst [vmem:[#allocation13_spill] sm:$0xff] %v7911_v44  ;;  %v14336_v55 = vmax.f32 %v14335_v26, 0.0  ;;  %v14338_v44 = vld [vmem:[#allocation255_spill] sm:$0xff]  ;;  %v14341_v6 = vld [vmem:[#allocation256_spill] sm:$0xff] }
 0x1ff   : > { %14327 = vst [vmem:[#allocation248_spill] sm:$0xff] %v7916_v62  ;;  %v7920_v13 = vadd.f32 1e-10, %v14329_v43  ;;  %v7924_v33 = vadd.f32 1e-10, %v14332_v2  ;;  %v14339_v11 = vmax.f32 %v14338_v44, 0.0 }
 0x200   : > { %v7929_v63 = vadd.f32 1e-10, %v14336_v55  ;;  %v14342_v38 = vmax.f32 %v14341_v6, 0.0  ;;  %v14344_v42 = vld [vmem:[#allocation16_spill] sm:$0xff]  ;;  %v14345_v43 = vld [vmem:[#allocation257_spill] sm:$0xff]  ;;  %v14351_v26 = vld [vmem:[#allocation259_spill] sm:$0xff] }
 0x201   : > { %14330 = vst [vmem:[#allocation249_spill] sm:$0xff] %v7920_v13  ;;  %14333 = vst [vmem:[#allocation250_spill] sm:$0xff] %v7924_v33  ;;  %v7933_v9 = vadd.f32 1e-10, %v14339_v11  ;;  %4362 = vlog2.f32 %v14344_v42  ;;  %v14346_v28 = vmax.f32 %v14345_v43, 0.0  ;;  %v14348_v33 = vld [vmem:[#allocation258_spill] sm:$0xff] }
 0x202   : > { %14337 = vst [vmem:[#allocation14_spill] sm:$0xff] %v7929_v63  ;;  %v7937_v62 = vadd.f32 1e-10, %v14342_v38  ;;  %v14349_v48 = vmax.f32 %v14348_v33, 0.0  ;;  %v14352_v55 = vmax.f32 %v14351_v26, 0.0  ;;  %v14354_v44 = vld [vmem:[#allocation17_spill] sm:$0xff] }
 0x203   : > { %14340 = vst [vmem:[#allocation251_spill] sm:$0xff] %v7933_v9  ;;  %v7942_v2 = vadd.f32 1e-10, %v14346_v28  ;;  %4364 = vlog2.f32 %v14354_v44  ;;  %v14355_v11 = vld [vmem:[#allocation260_spill] sm:$0xff]  ;;  %v14361_v43 = vld [vmem:[#allocation262_spill] sm:$0xff]  ;;  %v14439_v61 = vld [vmem:[#allocation285_spill] sm:$0xff] }
 0x204   : > { %14343 = vst [vmem:[#allocation252_spill] sm:$0xff] %v7937_v62  ;;  %v7946_v13 = vadd.f32 1e-10, %v14349_v48  ;;  %v7950_v63 = vadd.f32 1e-10, %v14352_v55  ;;  %v14356_v6 = vmax.f32 %v14355_v11, 0.0 }
 0x205   : > { %14347 = vst [vmem:[#allocation253_spill] sm:$0xff] %v7942_v2  ;;  %v14358_v62 = vld [vmem:[#allocation261_spill] sm:$0xff]  ;;  %v14362_v28 = vmax.f32 %v14361_v43, 0.0  ;;  %v14364_v33 = vld [vmem:[#allocation18_spill] sm:$0xff]  ;;  %v14365_v48 = vld [vmem:[#allocation263_spill] sm:$0xff] }
 0x206   : > { %14350 = vst [vmem:[#allocation15_spill] sm:$0xff] %v7946_v13  ;;  %14353 = vst [vmem:[#allocation254_spill] sm:$0xff] %v7950_v63  ;;  %v7955_v38 = vadd.f32 1e-10, %v14356_v6  ;;  %v14359_v42 = vmax.f32 %v14358_v62, 0.0  ;;  %4366 = vlog2.f32 %v14364_v33  ;;  %v14366_v26 = vmax.f32 %v14365_v48, 0.0 }
 0x207   : > { %v7963_v2 = vadd.f32 1e-10, %v14362_v28  ;;  %v14368_v63 = vld [vmem:[#allocation264_spill] sm:$0xff]  ;;  %v14371_v11 = vld [vmem:[#allocation265_spill] sm:$0xff]  ;;  %v14374_v62 = vld [vmem:[#allocation19_spill] sm:$0xff] }
 0x208   : > { %14357 = vst [vmem:[#allocation255_spill] sm:$0xff] %v7955_v38  ;;  %v7959_v9 = vadd.f32 1e-10, %v14359_v42  ;;  %v7968_v55 = vadd.f32 1e-10, %v14366_v26  ;;  %v14369_v44 = vmax.f32 %v14368_v63, 0.0  ;;  %4368 = vlog2.f32 %v14374_v62 }
 0x209   : > { %14363 = vst [vmem:[#allocation16_spill] sm:$0xff] %v7963_v2  ;;  %v14372_v6 = vmax.f32 %v14371_v11, 0.0  ;;  %v14375_v42 = vld [vmem:[#allocation266_spill] sm:$0xff]  ;;  %v14378_v2 = vld [vmem:[#allocation267_spill] sm:$0xff]  ;;  %v14381_v48 = vld [vmem:[#allocation268_spill] sm:$0xff] }
 0x20a   : > { %14360 = vst [vmem:[#allocation256_spill] sm:$0xff] %v7959_v9  ;;  %14367 = vst [vmem:[#allocation257_spill] sm:$0xff] %v7968_v55  ;;  %v7972_v13 = vadd.f32 1e-10, %v14369_v44  ;;  %v14376_v43 = vmax.f32 %v14375_v42, 0.0  ;;  %v14379_v33 = vmax.f32 %v14378_v2, 0.0  ;;  %v7992_v44 = vpop.eup %4352 }
 0x20b   : > { %v7976_v38 = vadd.f32 1e-10, %v14372_v6  ;;  %v14382_v26 = vmax.f32 %v14381_v48, 0.0  ;;  %v14384_v63 = vld [vmem:[#allocation20_spill] sm:$0xff]  ;;  %v14385_v11 = vld [vmem:[#allocation269_spill] sm:$0xff]  ;;  %v14388_v62 = vld [vmem:[#allocation270_spill] sm:$0xff]  ;;  %v8007_v48 = vpop.eup %4354 }
 0x20c   : > { %14370 = vst [vmem:[#allocation258_spill] sm:$0xff] %v7972_v13  ;;  %v7981_v28 = vadd.f32 1e-10, %v14376_v43  ;;  %v7985_v9 = vadd.f32 1e-10, %v14379_v33  ;;  %4370 = vlog2.f32 %v14384_v63  ;;  %v14386_v6 = vmax.f32 %v14385_v11, 0.0 }
 0x20d   : > { %14373 = vst [vmem:[#allocation259_spill] sm:$0xff] %v7976_v38  ;;  %v7989_v55 = vadd.f32 1e-10, %v14382_v26  ;;  %v14389_v42 = vmax.f32 %v14388_v62, 0.0  ;;  %v14395_v26 = vld [vmem:[#allocation272_spill] sm:$0xff]  ;;  %v14398_v13 = vld [vmem:[#allocation273_spill] sm:$0xff] }
 0x20e   : > { %14377 = vst [vmem:[#allocation17_spill] sm:$0xff] %v7981_v28  ;;  %14380 = vst [vmem:[#allocation260_spill] sm:$0xff] %v7985_v9  ;;  %v7996_v38 = vadd.f32 1e-10, %v14386_v6  ;;  %v14391_v28 = vld [vmem:[#allocation271_spill] sm:$0xff]  ;;  %v14394_v9 = vld [vmem:[#allocation21_spill] sm:$0xff] }
 0x20f   : > { %14383 = vst [vmem:[#allocation261_spill] sm:$0xff] %v7989_v55  ;;  %v8000_v43 = vadd.f32 1e-10, %v14389_v42  ;;  %v14392_v2 = vmax.f32 %v14391_v28, 0.0  ;;  %4372 = vlog2.f32 %v14394_v9  ;;  %v14396_v63 = vmax.f32 %v14395_v26, 0.0  ;;  %v8022_v28 = vpop.eup %4356  ;;  %v14408_v16 = vld [vmem:[#allocation276_spill] sm:$0xff] }
 0x210   : > { %14387 = vst [vmem:[#allocation262_spill] sm:$0xff] %v7996_v38  ;;  %v14399_v11 = vmax.f32 %v14398_v13, 0.0  ;;  %v14401_v38 = vld [vmem:[#allocation274_spill] sm:$0xff]  ;;  %v14409_v26 = vmax.f32 %v14408_v16, 0.0  ;;  %vm1929_vm0 = vcmp.gt.f32.partialorder %v7768_v50, 0.0001 }
 0x211   : > { %14390 = vst [vmem:[#allocation18_spill] sm:$0xff] %v8000_v43  ;;  %v8004_v33 = vadd.f32 1e-10, %v14392_v2  ;;  %v8011_v55 = vadd.f32 1e-10, %v14396_v63  ;;  %v14402_v62 = vmax.f32 %v14401_v38, 0.0  ;;  %v8037_v38 = vpop.eup %4358 }
 0x212   : > { %v8015_v6 = vadd.f32 1e-10, %v14399_v11  ;;  %v14404_v43 = vld [vmem:[#allocation22_spill] sm:$0xff]  ;;  %v14405_v2 = vld [vmem:[#allocation275_spill] sm:$0xff]  ;;  %v8030_v63 = vadd.f32 1e-10, %v14409_v26 }
 0x213   : > { %14393 = vst [vmem:[#allocation263_spill] sm:$0xff] %v8004_v33  ;;  %14397 = vst [vmem:[#allocation264_spill] sm:$0xff] %v8011_v55  ;;  %v8019_v42 = vadd.f32 1e-10, %v14402_v62  ;;  %4374 = vlog2.f32 %v14404_v43  ;;  %v14406_v9 = vmax.f32 %v14405_v2, 0.0  ;;  %v14411_v55 = vld [vmem:[#allocation277_spill] sm:$0xff] }
 0x214   : > { %14400 = vst [vmem:[#allocation265_spill] sm:$0xff] %v8015_v6  ;;  %14410 = vst [vmem:[#allocation267_spill] sm:$0xff] %v8030_v63  ;;  %v14412_v13 = vmax.f32 %v14411_v55, 0.0  ;;  %v14414_v6 = vld [vmem:[#allocation23_spill] sm:$0xff]  ;;  %v14415_v62 = vld [vmem:[#allocation278_spill] sm:$0xff]  ;;  %v14419_v2 = vmax.f32 %v14418_v39, 0.0  ;;  %v8052_v55 = vpop.eup %4360 }
 0x215   : > { %14403 = vst [vmem:[#allocation19_spill] sm:$0xff] %v8019_v42  ;;  %v8026_v33 = vadd.f32 1e-10, %v14406_v9  ;;  %4376 = vlog2.f32 %v14414_v6  ;;  %v14416_v43 = vmax.f32 %v14415_v62, 0.0  ;;  %v14424_v63 = vld [vmem:[#allocation24_spill] sm:$0xff]  ;;  %v14428_v10 = vld [vmem:[#allocation282_spill] sm:$0xff] }
 0x216   : > { %v8034_v11 = vadd.f32 1e-10, %v14412_v13  ;;  %v8045_v9 = vadd.f32 1e-10, %v14419_v2  ;;  %4378 = vlog2.f32 %v14424_v63  ;;  %v14425_v13 = vld [vmem:[#allocation281_spill] sm:$0xff]  ;;  %v14429_v62 = vmax.f32 %v14428_v10, 0.0 }
 0x217   : > { %14407 = vst [vmem:[#allocation266_spill] sm:$0xff] %v8026_v33  ;;  %v8041_v42 = vadd.f32 1e-10, %v14416_v43  ;;  %v14421_v33 = vld [vmem:[#allocation280_spill] sm:$0xff]  ;;  %v14426_v6 = vmax.f32 %v14425_v13, 0.0  ;;  %v14440_v13 = vmax.f32 %v14439_v61, 0.0 }
 0x218   : > { %14413 = vst [vmem:[#allocation268_spill] sm:$0xff] %v8034_v11  ;;  %14420 = vst [vmem:[#allocation269_spill] sm:$0xff] %v8045_v9  ;;  %v14422_v16 = vmax.f32 %v14421_v33, 0.0  ;;  %v8060_v43 = vadd.f32 1e-10, %v14429_v62  ;;  %v14434_v9 = vld [vmem:[#allocation25_spill] sm:$0xff]  ;;  %v8067_v33 = vpop.eup %4362 }
 0x219   : > { %14417 = vst [vmem:[#allocation20_spill] sm:$0xff] %v8041_v42  ;;  %v8056_v11 = vadd.f32 1e-10, %v14426_v6  ;;  %v14431_v42 = vld [vmem:[#allocation283_spill] sm:$0xff]  ;;  %4380 = vlog2.f32 %v14434_v9  ;;  %14435 = vst [vmem:[#allocation273_spill] sm:$0xff] %v8067_v33  ;;  %v14450_v33 = vld [vmem:[#allocation288_spill] sm:$0xff] }
 0x21a   : > { %v8049_v26 = vadd.f32 1e-10, %v14422_v16  ;;  %14430 = vst [vmem:[#allocation21_spill] sm:$0xff] %v8060_v43  ;;  %v14432_v39 = vmax.f32 %v14431_v42, 0.0  ;;  %v14436_v16 = vld [vmem:[#allocation284_spill] sm:$0xff]  ;;  %v14445_v43 = vld [vmem:[#allocation26_spill] sm:$0xff]  ;;  %v8082_v42 = vpop.eup %4364 }
 0x21b   : > { %14427 = vst [vmem:[#allocation271_spill] sm:$0xff] %v8056_v11  ;;  %v14437_v63 = vmax.f32 %v14436_v16, 0.0  ;;  %v8075_v6 = vadd.f32 1e-10, %v14440_v13  ;;  %v14442_v11 = vld [vmem:[#allocation286_spill] sm:$0xff]  ;;  %4382 = vlog2.f32 %v14445_v43  ;;  %14446 = vst [vmem:[#allocation276_spill] sm:$0xff] %v8082_v42 }
 0x21c   : > { %14423 = vst [vmem:[#allocation270_spill] sm:$0xff] %v8049_v26  ;;  %v8064_v2 = vadd.f32 1e-10, %v14432_v39  ;;  %v14443_v10 = vmax.f32 %v14442_v11, 0.0  ;;  %v14447_v39 = vld [vmem:[#allocation287_spill] sm:$0xff]  ;;  %v14451_v16 = vmax.f32 %v14450_v33, 0.0  ;;  %v8097_v11 = vpop.eup %4366 }
 0x21d   : > { %v8071_v26 = vadd.f32 1e-10, %v14437_v63  ;;  %14441 = vst [vmem:[#allocation22_spill] sm:$0xff] %v8075_v6  ;;  %v14448_v9 = vmax.f32 %v14447_v39, 0.0  ;;  %v14456_v6 = vld [vmem:[#allocation27_spill] sm:$0xff]  ;;  %14457 = vst [vmem:[#allocation279_spill] sm:$0xff] %v8097_v11 }
 0x21e   : > { %14433 = vst [vmem:[#allocation272_spill] sm:$0xff] %v8064_v2  ;;  %v8079_v62 = vadd.f32 1e-10, %v14443_v10  ;;  %v8090_v63 = vadd.f32 1e-10, %v14451_v16  ;;  %4384 = vlog2.f32 %v14456_v6  ;;  %v14458_v10 = vld [vmem:[#allocation290_spill] sm:$0xff] }
 0x21f   : > { %14438 = vst [vmem:[#allocation274_spill] sm:$0xff] %v8071_v26  ;;  %v8086_v2 = vadd.f32 1e-10, %v14448_v9  ;;  %v14453_v26 = vld [vmem:[#allocation289_spill] sm:$0xff]  ;;  %v14459_v43 = vmax.f32 %v14458_v10, 0.0  ;;  %v14461_v42 = vld [vmem:[#allocation291_spill] sm:$0xff] }
 0x220   : > { %14444 = vst [vmem:[#allocation275_spill] sm:$0xff] %v8079_v62  ;;  %14452 = vst [vmem:[#allocation23_spill] sm:$0xff] %v8090_v63  ;;  %v14454_v61 = vmax.f32 %v14453_v26, 0.0  ;;  %v14462_v39 = vmax.f32 %v14461_v42, 0.0  ;;  %v14467_v63 = vld [vmem:[#allocation28_spill] sm:$0xff]  ;;  %v8112_v26 = vpop.eup %4368  ;;  %v14472_v11 = vld [vmem:[#allocation294_spill] sm:$0xff] }
 0x221   : > { %14449 = vst [vmem:[#allocation277_spill] sm:$0xff] %v8086_v2  ;;  %v8101_v62 = vadd.f32 1e-10, %v14459_v43  ;;  %v14464_v2 = vld [vmem:[#allocation292_spill] sm:$0xff]  ;;  %4386 = vlog2.f32 %v14467_v63  ;;  %14468 = vst [vmem:[#allocation282_spill] sm:$0xff] %v8112_v26  ;;  %v14473_v10 = vmax.f32 %v14472_v11, 0.0 }
 0x222   : > { %v8094_v13 = vadd.f32 1e-10, %v14454_v61  ;;  %v8105_v9 = vadd.f32 1e-10, %v14462_v39  ;;  %v14465_v33 = vmax.f32 %v14464_v2, 0.0  ;;  %v14469_v61 = vld [vmem:[#allocation293_spill] sm:$0xff]  ;;  %v8127_v2 = vpop.eup %4370 }
 0x223   : > { %14460 = vst [vmem:[#allocation280_spill] sm:$0xff] %v8101_v62  ;;  %v14470_v6 = vmax.f32 %v14469_v61, 0.0  ;;  %v8120_v43 = vadd.f32 1e-10, %v14473_v10  ;;  %v14475_v62 = vld [vmem:[#allocation295_spill] sm:$0xff]  ;;  %14479 = vst [vmem:[#allocation285_spill] sm:$0xff] %v8127_v2 }
 0x224   : > { %14455 = vst [vmem:[#allocation278_spill] sm:$0xff] %v8094_v13  ;;  %14463 = vst [vmem:[#allocation24_spill] sm:$0xff] %v8105_v9  ;;  %v8109_v16 = vadd.f32 1e-10, %v14465_v33  ;;  %v14476_v42 = vmax.f32 %v14475_v62, 0.0  ;;  %v14478_v9 = vld [vmem:[#allocation29_spill] sm:$0xff]  ;;  %v8142_v62 = vpop.eup %4372 }
 0x225   : > { %v8116_v13 = vadd.f32 1e-10, %v14470_v6  ;;  %14474 = vst [vmem:[#allocation25_spill] sm:$0xff] %v8120_v43  ;;  %4388 = vlog2.f32 %v14478_v9  ;;  %v14480_v33 = vld [vmem:[#allocation296_spill] sm:$0xff]  ;;  %v14483_v26 = vld [vmem:[#allocation297_spill] sm:$0xff]  ;;  %v14489_v43 = vld [vmem:[#allocation30_spill] sm:$0xff] }
 0x226   : > { %14466 = vst [vmem:[#allocation281_spill] sm:$0xff] %v8109_v16  ;;  %v8124_v39 = vadd.f32 1e-10, %v14476_v42  ;;  %v14481_v63 = vmax.f32 %v14480_v33, 0.0  ;;  %v14484_v61 = vmax.f32 %v14483_v26, 0.0  ;;  %4390 = vlog2.f32 %v14489_v43  ;;  %14490 = vst [vmem:[#allocation288_spill] sm:$0xff] %v8142_v62 }
 0x227   : > { %14471 = vst [vmem:[#allocation283_spill] sm:$0xff] %v8116_v13  ;;  %v14486_v13 = vld [vmem:[#allocation298_spill] sm:$0xff]  ;;  %v14491_v42 = vld [vmem:[#allocation299_spill] sm:$0xff]  ;;  %v14494_v2 = vld [vmem:[#allocation300_spill] sm:$0xff]  ;;  %vm1930_vm3 = vcmp.gt.f32.partialorder %v7772_v41, 0.0001 }
 0x228   : > { %14477 = vst [vmem:[#allocation284_spill] sm:$0xff] %v8124_v39  ;;  %v8131_v16 = vadd.f32 1e-10, %v14481_v63  ;;  %v8135_v6 = vadd.f32 1e-10, %v14484_v61  ;;  %v14487_v11 = vmax.f32 %v14486_v13, 0.0  ;;  %v8157_v13 = vpop.eup %4374 }
 0x229   : > { %v14492_v9 = vmax.f32 %v14491_v42, 0.0  ;;  %v14495_v33 = vmax.f32 %v14494_v2, 0.0  ;;  %14501 = vst [vmem:[#allocation291_spill] sm:$0xff] %v8157_v13  ;;  %v14505_v62 = vld [vmem:[#allocation303_spill] sm:$0xff]  ;;  %v14515_v13 = vld [vmem:[#allocation306_spill] sm:$0xff]  ;;  %v14780_v41 = vld [vmem:[#allocation204_spill] sm:$0xff] }
 0x22a   : > { %14482 = vst [vmem:[#allocation286_spill] sm:$0xff] %v8131_v16  ;;  %14485 = vst [vmem:[#allocation26_spill] sm:$0xff] %v8135_v6  ;;  %v8139_v10 = vadd.f32 1e-10, %v14487_v11  ;;  %v14497_v16 = vld [vmem:[#allocation301_spill] sm:$0xff]  ;;  %v14500_v6 = vld [vmem:[#allocation31_spill] sm:$0xff] }
 0x22b   : > { %v8146_v39 = vadd.f32 1e-10, %v14492_v9  ;;  %v8150_v63 = vadd.f32 1e-10, %v14495_v33  ;;  %v14498_v26 = vmax.f32 %v14497_v16, 0.0  ;;  %4392 = vlog2.f32 %v14500_v6  ;;  %v14502_v11 = vld [vmem:[#allocation302_spill] sm:$0xff]  ;;  %v8172_v16 = vpop.eup %4376 }
 0x22c   : > { %14488 = vst [vmem:[#allocation287_spill] sm:$0xff] %v8139_v10  ;;  %v14503_v43 = vmax.f32 %v14502_v11, 0.0  ;;  %v14506_v42 = vmax.f32 %v14505_v62, 0.0  ;;  %v14516_v11 = vmax.f32 %v14515_v13, 0.0  ;;  %vm1931_vm4 = vcmp.gt.f32.partialorder %v7776_v47, 0.0001 }
 0x22d   : > { %14493 = vst [vmem:[#allocation289_spill] sm:$0xff] %v8146_v39  ;;  %14496 = vst [vmem:[#allocation27_spill] sm:$0xff] %v8150_v63  ;;  %v8154_v61 = vadd.f32 1e-10, %v14498_v26  ;;  %v14508_v39 = vld [vmem:[#allocation304_spill] sm:$0xff]  ;;  %v14512_v26 = vld [vmem:[#allocation305_spill] sm:$0xff] }
 0x22e   : > { %v8161_v10 = vadd.f32 1e-10, %v14503_v43  ;;  %v8165_v9 = vadd.f32 1e-10, %v14506_v42  ;;  %v14509_v2 = vmax.f32 %v14508_v39, 0.0  ;;  %v14511_v63 = vld [vmem:[#allocation32_spill] sm:$0xff]  ;;  %v8187_v39 = vpop.eup %4378 }
 0x22f   : > { %14499 = vst [vmem:[#allocation290_spill] sm:$0xff] %v8154_v61  ;;  %4394 = vlog2.f32 %v14511_v63  ;;  %v14513_v6 = vmax.f32 %v14512_v26, 0.0  ;;  %v8180_v43 = vadd.f32 1e-10, %v14516_v11  ;;  %14522 = vst [vmem:[#allocation296_spill] sm:$0xff] %v8187_v39  ;;  %v14523_v63 = vmax.f32 %v14221_v45, 0.0 }
 0x230   : > { %14504 = vst [vmem:[#allocation292_spill] sm:$0xff] %v8161_v10  ;;  %14507 = vst [vmem:[#allocation28_spill] sm:$0xff] %v8165_v9  ;;  %v8169_v33 = vadd.f32 1e-10, %v14509_v2  ;;  %v14518_v10 = vld [vmem:[#allocation307_spill] sm:$0xff]  ;;  %v14521_v9 = vld [vmem:[#allocation33_spill] sm:$0xff] }
 0x231   : > { %v8176_v61 = vadd.f32 1e-10, %v14513_v6  ;;  %14517 = vst [vmem:[#allocation295_spill] sm:$0xff] %v8180_v43  ;;  %v14519_v62 = vmax.f32 %v14518_v10, 0.0  ;;  %4396 = vlog2.f32 %v14521_v9  ;;  %v8191_v2 = vadd.f32 1e-10, %v14523_v63  ;;  %v8202_v10 = vpop.eup %4380 }
 0x232   : > { %14510 = vst [vmem:[#allocation293_spill] sm:$0xff] %v8169_v33  ;;  %v14525_v33 = vld [vmem:[#allocation309_spill] sm:$0xff]  ;;  %v14531_v43 = vld [vmem:[#allocation34_spill] sm:$0xff]  ;;  %14532 = vst [vmem:[#allocation299_spill] sm:$0xff] %v8202_v10  ;;  %v14533_v9 = vmax.f32 %v14224_v49, 0.0  ;;  %v14535_v45 = vmax.f32 %v14225_v18, 0.0 }
 0x233   : > { %14514 = vst [vmem:[#allocation294_spill] sm:$0xff] %v8176_v61  ;;  %v8184_v42 = vadd.f32 1e-10, %v14519_v62  ;;  %14524 = vst [vmem:[#allocation297_spill] sm:$0xff] %v8191_v2  ;;  %v14526_v26 = vmax.f32 %v14525_v33, 0.0  ;;  %v14528_v61 = vld [vmem:[#allocation310_spill] sm:$0xff]  ;;  %4398 = vlog2.f32 %v14531_v43 }
 0x234   : > { %v14529_v13 = vmax.f32 %v14528_v61, 0.0  ;;  %v8206_v62 = vadd.f32 1e-10, %v14533_v9  ;;  %v8210_v63 = vadd.f32 1e-10, %v14535_v45  ;;  %v14537_v2 = vld [vmem:[#allocation313_spill] sm:$0xff]  ;;  %v8217_v61 = vpop.eup %4382 }
 0x235   : > { %14520 = vst [vmem:[#allocation29_spill] sm:$0xff] %v8184_v42  ;;  %v8195_v6 = vadd.f32 1e-10, %v14526_v26  ;;  %v14538_v33 = vmax.f32 %v14537_v2, 0.0  ;;  %14541 = vst [vmem:[#allocation302_spill] sm:$0xff] %v8217_v61  ;;  %v14542_v43 = vmax.f32 %v14227_v12, 0.0  ;;  %v8232_v2 = vpop.eup %4384 }
 0x236   : > { %v8199_v11 = vadd.f32 1e-10, %v14529_v13  ;;  %14534 = vst [vmem:[#allocation300_spill] sm:$0xff] %v8206_v62  ;;  %14536 = vst [vmem:[#allocation301_spill] sm:$0xff] %v8210_v63  ;;  %v14544_v49 = vmax.f32 %v14228_v29, 0.0  ;;  %v14546_v18 = vmax.f32 %v14229_v8, 0.0  ;;  %v8247_v8 = vpop.eup %4386 }
 0x237   : > { %14527 = vst [vmem:[#allocation298_spill] sm:$0xff] %v8195_v6  ;;  %v8214_v26 = vadd.f32 1e-10, %v14538_v33  ;;  %v14540_v6 = vld [vmem:[#allocation35_spill] sm:$0xff]  ;;  %v8221_v13 = vadd.f32 1e-10, %v14542_v43 }
 0x238   : > { %14530 = vst [vmem:[#allocation30_spill] sm:$0xff] %v8199_v11  ;;  %4400 = vlog2.f32 %v14540_v6  ;;  %v8225_v9 = vadd.f32 1e-10, %v14544_v49  ;;  %v8229_v45 = vadd.f32 1e-10, %v14546_v18  ;;  %v14548_v63 = vld [vmem:[#allocation36_spill] sm:$0xff] }
 0x239   : > { %14539 = vst [vmem:[#allocation31_spill] sm:$0xff] %v8214_v26  ;;  %14543 = vst [vmem:[#allocation303_spill] sm:$0xff] %v8221_v13  ;;  %4402 = vlog2.f32 %v14548_v63  ;;  %v14550_v6 = vmax.f32 %v14230_v4, 0.0  ;;  %v14552_v12 = vmax.f32 %v14231_v53, 0.0  ;;  %v14554_v29 = vmax.f32 %v7584_v23, 0.0  ;;  %v8262_v23 = vpop.eup %4388  ;;  %v14634_v11 = vld [vmem:[#allocation52_spill] sm:$0xff] }
 0x23a   : > { %14545 = vst [vmem:[#allocation304_spill] sm:$0xff] %v8225_v9  ;;  %14547 = vst [vmem:[#allocation32_spill] sm:$0xff] %v8229_v45  ;;  %v14556_v9 = vld [vmem:[#allocation37_spill] sm:$0xff]  ;;  %v14558_v63 = vmax.f32 %v14232_v51, 0.0  ;;  %v14560_v4 = vmax.f32 %v14233_v20, 0.0  ;;  %v14562_v53 = vmax.f32 %v7593_v3, 0.0  ;;  %v8277_v3 = vpop.eup %4390 }
 0x23b   : > { %14549 = vst [vmem:[#allocation305_spill] sm:$0xff] %v8232_v2  ;;  %v8236_v33 = vadd.f32 1e-10, %v14550_v6  ;;  %v8240_v43 = vadd.f32 1e-10, %v14552_v12  ;;  %4404 = vlog2.f32 %v14556_v9  ;;  %14557 = vst [vmem:[#allocation309_spill] sm:$0xff] %v8247_v8 }
 0x23c   : > { %v8244_v49 = vadd.f32 1e-10, %v14554_v29  ;;  %v8251_v18 = vadd.f32 1e-10, %v14558_v63  ;;  %v8255_v6 = vadd.f32 1e-10, %v14560_v4 }
 0x23d   : > { %14551 = vst [vmem:[#allocation306_spill] sm:$0xff] %v8236_v33  ;;  %14553 = vst [vmem:[#allocation307_spill] sm:$0xff] %v8240_v43  ;;  %v8259_v12 = vadd.f32 1e-10, %v14562_v53  ;;  %v14564_v43 = vld [vmem:[#allocation38_spill] sm:$0xff]  ;;  %v14566_v9 = vmax.f32 %v7595_v46, 0.0 }
 0x23e   : > { %14555 = vst [vmem:[#allocation33_spill] sm:$0xff] %v8244_v49  ;;  %14559 = vst [vmem:[#allocation310_spill] sm:$0xff] %v8251_v18  ;;  %4406 = vlog2.f32 %v14564_v43  ;;  %v14568_v51 = vmax.f32 %v14234_v56, 0.0  ;;  %v14570_v20 = vmax.f32 %v7602_v17, 0.0  ;;  %v14574_v43 = vmax.f32 %v7604_v22, 0.0  ;;  %v8292_v17 = vpop.eup %4392  ;;  %v14632_v45 = vld [vmem:[#allocation51_spill] sm:$0xff] }
 0x23f   : > { %14561 = vst [vmem:[#allocation34_spill] sm:$0xff] %v8255_v6  ;;  %14563 = vst [vmem:[#allocation313_spill] sm:$0xff] %v8259_v12  ;;  %v8266_v29 = vadd.f32 1e-10, %v14566_v9  ;;  %v14572_v6 = vld [vmem:[#allocation39_spill] sm:$0xff]  ;;  %v14576_v46 = vmax.f32 %v7606_v27, 0.0 }
 0x240   : > { %14565 = vst [vmem:[#allocation35_spill] sm:$0xff] %v8262_v23  ;;  %v8270_v63 = vadd.f32 1e-10, %v14568_v51  ;;  %v8274_v4 = vadd.f32 1e-10, %v14570_v20  ;;  %4408 = vlog2.f32 %v14572_v6  ;;  %14573 = vst [vmem:[#allocation39_spill] sm:$0xff] %v8277_v3 }
 0x241   : > { %14567 = vst [vmem:[#allocation36_spill] sm:$0xff] %v8266_v29  ;;  %v8281_v53 = vadd.f32 1e-10, %v14574_v43  ;;  %v8285_v9 = vadd.f32 1e-10, %v14576_v46  ;;  %v14578_v56 = vmax.f32 %v7608_v35, 0.0  ;;  %v8307_v35 = vpop.eup %4394 }
 0x242   : > { %14569 = vst [vmem:[#allocation37_spill] sm:$0xff] %v8270_v63  ;;  %14571 = vst [vmem:[#allocation38_spill] sm:$0xff] %v8274_v4  ;;  %v14580_v63 = vld [vmem:[#allocation40_spill] sm:$0xff]  ;;  %v14582_v6 = vmax.f32 %v7610_v40, 0.0  ;;  %v14584_v22 = vmax.f32 %v7612_v19, 0.0  ;;  %v14586_v27 = vmax.f32 %v7614_v54, 0.0  ;;  %v8322_v54 = vpop.eup %4396 }
 0x243   : > { %14575 = vst [vmem:[#allocation334_spill] sm:$0xff] %v8281_v53  ;;  %14577 = vst [vmem:[#allocation335_spill] sm:$0xff] %v8285_v9  ;;  %v8289_v51 = vadd.f32 1e-10, %v14578_v56  ;;  %4410 = vlog2.f32 %v14580_v63  ;;  %v14588_v9 = vld [vmem:[#allocation41_spill] sm:$0xff]  ;;  %v14590_v63 = vmax.f32 %v7616_v31, 0.0 }
 0x244   : > { %14581 = vst [vmem:[#allocation40_spill] sm:$0xff] %v8292_v17  ;;  %v8296_v20 = vadd.f32 1e-10, %v14582_v6  ;;  %v8300_v43 = vadd.f32 1e-10, %v14584_v22  ;;  %4412 = vlog2.f32 %v14588_v9  ;;  %14589 = vst [vmem:[#allocation41_spill] sm:$0xff] %v8307_v35 }
 0x245   : > { %14579 = vst [vmem:[#allocation336_spill] sm:$0xff] %v8289_v51  ;;  %v8304_v46 = vadd.f32 1e-10, %v14586_v27  ;;  %v8311_v56 = vadd.f32 1e-10, %v14590_v63  ;;  %v14592_v51 = vld [vmem:[#allocation322_spill] sm:$0xff] }
 0x246   : > { %14583 = vst [vmem:[#allocation337_spill] sm:$0xff] %v8296_v20  ;;  %14585 = vst [vmem:[#allocation338_spill] sm:$0xff] %v8300_v43  ;;  %v14593_v40 = vmax.f32 %v14592_v51, 0.0  ;;  %v14595_v19 = vmax.f32 %v7620_v14, 0.0  ;;  %v14597_v43 = vld [vmem:[#allocation42_spill] sm:$0xff]  ;;  %v14599_v9 = vmax.f32 %v7622_v0, 0.0  ;;  %v8337_v14 = vpop.eup %4398 }
 0x247   : > { %14587 = vst [vmem:[#allocation339_spill] sm:$0xff] %v8304_v46  ;;  %14591 = vst [vmem:[#allocation340_spill] sm:$0xff] %v8311_v56  ;;  %4414 = vlog2.f32 %v14597_v43  ;;  %v14601_v31 = vmax.f32 %v7624_v58, 0.0  ;;  %v14603_v51 = vmax.f32 %v7626_v36, 0.0  ;;  %v14607_v43 = vmax.f32 %v7628_v15, 0.0  ;;  %v8352_v36 = vpop.eup %4400  ;;  %v14628_v20 = vld [vmem:[#allocation49_spill] sm:$0xff] }
 0x248   : > { %v8315_v6 = vadd.f32 1e-10, %v14593_v40  ;;  %v8319_v22 = vadd.f32 1e-10, %v14595_v19  ;;  %14598 = vst [vmem:[#allocation42_spill] sm:$0xff] %v8322_v54  ;;  %v14609_v0 = vmax.f32 %v7630_v32, 0.0 }
 0x249   : > { %v8326_v27 = vadd.f32 1e-10, %v14599_v9  ;;  %v8330_v63 = vadd.f32 1e-10, %v14601_v31  ;;  %v8334_v40 = vadd.f32 1e-10, %v14603_v51 }
 0x24a   : > { %14594 = vst [vmem:[#allocation322_spill] sm:$0xff] %v8315_v6  ;;  %14596 = vst [vmem:[#allocation341_spill] sm:$0xff] %v8319_v22  ;;  %v14605_v6 = vld [vmem:[#allocation43_spill] sm:$0xff]  ;;  %v8341_v19 = vadd.f32 1e-10, %v14607_v43  ;;  %v14611_v58 = vmax.f32 %v7632_v21, 0.0  ;;  %v8366_v21 = vpop.eup %4402 }
 0x24b   : > { %14600 = vst [vmem:[#allocation342_spill] sm:$0xff] %v8326_v27  ;;  %14602 = vst [vmem:[#allocation343_spill] sm:$0xff] %v8330_v63  ;;  %4416 = vlog2.f32 %v14605_v6  ;;  %v8345_v9 = vadd.f32 1e-10, %v14609_v0  ;;  %v14613_v63 = vld [vmem:[#allocation44_spill] sm:$0xff]  ;;  %v14615_v6 = vmax.f32 %v7634_v1, 0.0 }
 0x24c   : > { %14604 = vst [vmem:[#allocation344_spill] sm:$0xff] %v8334_v40  ;;  %14606 = vst [vmem:[#allocation43_spill] sm:$0xff] %v8337_v14  ;;  %v8349_v31 = vadd.f32 1e-10, %v14611_v58  ;;  %4418 = vlog2.f32 %v14613_v63  ;;  %v14617_v15 = vmax.f32 %v7636_v59, 0.0  ;;  %v14620_v0 = vld [vmem:[#allocation45_spill] sm:$0xff]  ;;  %v8378_v59 = vpop.eup %4404 }
 0x24d   : > { %14608 = vst [vmem:[#allocation345_spill] sm:$0xff] %v8341_v19  ;;  %14610 = vst [vmem:[#allocation346_spill] sm:$0xff] %v8345_v9  ;;  %v8356_v51 = vadd.f32 1e-10, %v14615_v6  ;;  %v14619_v19 = vld [vmem:[#allocation58_spill] sm:$0xff]  ;;  %4420 = vlog2.f32 %v14620_v0  ;;  %v14626_v27 = vld [vmem:[#allocation48_spill] sm:$0xff] }
 0x24e   : > { %14612 = vst [vmem:[#allocation347_spill] sm:$0xff] %v8349_v31  ;;  %14614 = vst [vmem:[#allocation44_spill] sm:$0xff] %v8352_v36  ;;  %v8360_v43 = vadd.f32 1e-10, %v14617_v15  ;;  %v8363_v32 = vadd.s32 8, %v14619_v19  ;;  %v8369_v58 = vadd.s32 16, %v14619_v19  ;;  %v8390_v31 = vpop.eup %4406 }
 0x24f   : > { %14616 = vst [vmem:[#allocation348_spill] sm:$0xff] %v8356_v51  ;;  %14621 = vst [vmem:[#allocation58_spill] sm:$0xff] %v8366_v21  ;;  %v8372_v63 = vadd.s32 24, %v14619_v19  ;;  %v8375_v1 = vadd.s32 32, %v14619_v19  ;;  %v14622_v6 = vld [vmem:[#allocation46_spill] sm:$0xff]  ;;  %v8381_v15 = vadd.s32 40, %v14619_v19  ;;  %v8402_v22 = vpop.eup %4408 }
 0x250   : > { %14618 = vst [vmem:[#allocation349_spill] sm:$0xff] %v8360_v43  ;;  %4422 = vlog2.f32 %v14622_v6  ;;  %14623 = vst [vmem:[#allocation45_spill] sm:$0xff] %v8378_v59  ;;  %v8384_v0 = vadd.s32 48, %v14619_v19  ;;  %v8387_v43 = vadd.s32 56, %v14619_v19  ;;  %v14624_v51 = vld [vmem:[#allocation47_spill] sm:$0xff]  ;;  %v8393_v9 = vadd.s32 64, %v14619_v19  ;;  %v8414_v53 = vpop.eup %4410 }
 0x251   : > { %4424 = vlog2.f32 %v14624_v51  ;;  %14625 = vst [vmem:[#allocation46_spill] sm:$0xff] %v8390_v31  ;;  %v8396_v6 = vadd.s32 72, %v14619_v19  ;;  %v8399_v40 = vadd.s32 80, %v14619_v19  ;;  %14627 = vst [vmem:[#allocation47_spill] sm:$0xff] %v8402_v22  ;;  %v8405_v56 = vadd.s32 88, %v14619_v19  ;;  %v14630_v12 = vld [vmem:[#allocation50_spill] sm:$0xff]  ;;  %v8426_v18 = vpop.eup %4412 }
 0x252   : > { %4426 = vlog2.f32 %v14626_v27  ;;  %v8408_v51 = vadd.s32 96, %v14619_v19  ;;  %v8411_v46 = vadd.s32 104, %v14619_v19  ;;  %14629 = vst [vmem:[#allocation48_spill] sm:$0xff] %v8414_v53  ;;  %v8417_v4 = vadd.s32 112, %v14619_v19  ;;  %14631 = vst [vmem:[#allocation49_spill] sm:$0xff] %v8426_v18  ;;  %v8438_v13 = vpop.eup %4414  ;;  %v14636_v53 = vld [vmem:[#allocation53_spill] sm:$0xff] }
 0x253   : > { %4428 = vlog2.f32 %v14628_v20  ;;  %v8420_v27 = vadd.s32 120, %v14619_v19  ;;  %v8423_v29 = vadd.s32 128, %v14619_v19  ;;  %v8429_v49 = vadd.s32 136, %v14619_v19  ;;  %14633 = vst [vmem:[#allocation50_spill] sm:$0xff] %v8438_v13  ;;  %v14638_v59 = vld [vmem:[#allocation189_spill] sm:$0xff]  ;;  %v14646_v2 = vld [vmem:[#allocation62_spill] sm:$0xff] }
 0x254   : > { %4430 = vlog2.f32 %v14630_v12  ;;  %v8432_v20 = vadd.s32 144, %v14619_v19  ;;  %v8435_v33 = vadd.s32 152, %v14619_v19  ;;  %v8441_v26 = vadd.s32 160, %v14619_v19  ;;  %v14677_v39 = vld [vmem:[#allocation131_spill] sm:$0xff] }
 0x255   : > { %4432 = vlog2.f32 %v14632_v45  ;;  %v8444_v12 = vadd.s32 168, %v14619_v19  ;;  %v8447_v62 = vadd.s32 176, %v14619_v19  ;;  %v8450_v42 = vpop.eup %4416  ;;  %v8453_v18 = vadd.s32 184, %v14619_v19 }
 0x256   : > { %4434 = vlog2.f32 %v14634_v11  ;;  %14635 = vst [vmem:[#allocation51_spill] sm:$0xff] %v8450_v42  ;;  %v8456_v45 = vadd.s32 192, %v14619_v19  ;;  %v8459_v13 = vadd.s32 200, %v14619_v19  ;;  %v8462_v22 = vpop.eup %4418  ;;  %v8465_v31 = vadd.s32 208, %v14619_v19 }
 0x257   : > { %4436 = vlog2.f32 %v14636_v53  ;;  %14637 = vst [vmem:[#allocation52_spill] sm:$0xff] %v8462_v22  ;;  %v8468_v11 = vadd.s32 216, %v14619_v19  ;;  %v1416_v42 = vmul.u32 128, %v14619_v19  ;;  %v8472_v21 = vpop.eup %4420  ;;  %v8475_v36 = vadd.s32 224, %v14619_v19  ;;  %v14640_v22 = vld [vmem:[#allocation190_spill] sm:$0xff] }
 0x258   : > { %4438 = vlog2.f32 %v14638_v59  ;;  %14639 = vst [vmem:[#allocation53_spill] sm:$0xff] %v8472_v21  ;;  %v1417_v14 = vmul.u32 128, %v8363_v32  ;;  %v1418_v53 = vmul.u32 128, %v8369_v58  ;;  %v8483_v35 = vadd.s32 232, %v14619_v19  ;;  %v14642_v21 = vld [vmem:[#allocation56_spill] sm:$0xff] }
 0x259   : > { %4440 = vlog2.f32 %v14640_v22  ;;  %v8486_v17 = vadd.s32 240, %v14619_v19  ;;  %v1419_v59 = vmul.u32 128, %v8372_v63  ;;  %v8493_v32 = vadd.s32 248, %v14619_v19 }
 0x25a   : > { %v8480_v54 = vpop.eup %4422  ;;  %4442 = vlog2.f32 %v14642_v21  ;;  %v8496_v58 = vadd.s32 256, %v14619_v19  ;;  %v1420_v22 = vmul.u32 128, %v8375_v1  ;;  %v1421_v8 = vmul.u32 128, %v8381_v15  ;;  %v14649_v1 = vld [vmem:[#allocation193_spill] sm:$0xff] }
 0x25b   : > { %14641 = vst [vmem:[#allocation189_spill] sm:$0xff] %v8480_v54  ;;  %v8490_v3 = vpop.eup %4424  ;;  %v14644_v54 = vld [vmem:[#allocation191_spill] sm:$0xff]  ;;  %v1422_v63 = vmul.u32 128, %v8384_v0  ;;  %v8505_v21 = vadd.s32 %v14646_v2, %v1416_v42  ;;  %v1423_v19 = vmul.u32 128, %v8387_v43  ;;  %v8512_v10 = vadd.s32 %v14646_v2, %v1417_v14 }
 0x25c   : > { %14643 = vst [vmem:[#allocation190_spill] sm:$0xff] %v8490_v3  ;;  %4444 = vlog2.f32 %v14644_v54  ;;  %v8500_v23 = vpop.eup %4426  ;;  %v14647_v3 = vld [vmem:[#allocation192_spill] sm:$0xff]  ;;  %v8515_v54 = vadd.s32 %v14646_v2, %v1418_v53  ;;  %v1424_v0 = vmul.u32 128, %v8393_v9  ;;  %v1425_v42 = vmul.u32 128, %v8396_v6 }
 0x25d   : > { %14645 = vst [vmem:[#allocation56_spill] sm:$0xff] %v8500_v23  ;;  %4446 = vlog2.f32 %v14647_v3  ;;  %v8508_v61 = vpop.eup %4428  ;;  %v8523_v3 = vadd.s32 %v14646_v2, %v1419_v59  ;;  %v1426_v14 = vmul.u32 128, %v8399_v40  ;;  %v1427_v53 = vmul.u32 128, %v8405_v56  ;;  %v14655_v59 = vld [vmem:[#allocation195_spill] sm:$0xff] }
 0x25e   : > { %14648 = vst [vmem:[#allocation191_spill] sm:$0xff] %v8508_v61  ;;  %4448 = vlog2.f32 %v14649_v1  ;;  %v8518_v15 = vpop.eup %4430  ;;  %v14651_v61 = vld [vmem:[#allocation61_spill] sm:$0xff]  ;;  %v8531_v23 = vadd.s32 %v14646_v2, %v1420_v22  ;;  %v14653_v1 = vld [vmem:[#allocation194_spill] sm:$0xff]  ;;  %v1428_v9 = vmul.u32 128, %v8408_v51  ;;  %v8538_v6 = vadd.s32 %v14646_v2, %v1421_v8 }
 0x25f   : > { %14650 = vst [vmem:[#allocation62_spill] sm:$0xff] %v8518_v15  ;;  %4450 = vlog2.f32 %v14651_v61  ;;  %v8526_v43 = vpop.eup %4432  ;;  %v8541_v61 = vadd.s32 %v14646_v2, %v1422_v63  ;;  %v1429_v56 = vmul.u32 128, %v8411_v46  ;;  %v1430_v22 = vmul.u32 128, %v8417_v4 }
 0x260   : > { %14652 = vst [vmem:[#allocation192_spill] sm:$0xff] %v8526_v43  ;;  %4452 = vlog2.f32 %v14653_v1  ;;  %v8534_v15 = vpop.eup %4434  ;;  %v8549_v1 = vadd.s32 %v14646_v2, %v1423_v19  ;;  %v1431_v8 = vmul.u32 128, %v8420_v27  ;;  %v8556_v63 = vadd.s32 %v14646_v2, %v1424_v0 }
 0x261   : > { %14654 = vst [vmem:[#allocation193_spill] sm:$0xff] %v8534_v15  ;;  %4454 = vlog2.f32 %v14655_v59  ;;  %v8544_v40 = vpop.eup %4436  ;;  %v14657_v15 = vld [vmem:[#allocation196_spill] sm:$0xff]  ;;  %v8559_v59 = vadd.s32 %v14646_v2, %v1425_v42  ;;  %v1432_v4 = vmul.u32 128, %v8423_v29  ;;  %v8566_v19 = vadd.s32 %v14646_v2, %v1426_v14 }
 0x262   : > { %14656 = vst [vmem:[#allocation61_spill] sm:$0xff] %v8544_v40  ;;  %4456 = vlog2.f32 %v14657_v15  ;;  %v8552_v51 = vpop.eup %4438  ;;  %v14659_v40 = vld [vmem:[#allocation197_spill] sm:$0xff]  ;;  %v8569_v15 = vadd.s32 %v14646_v2, %v1427_v53  ;;  %v1433_v0 = vmul.u32 128, %v8429_v49  ;;  %v1434_v42 = vmul.u32 128, %v8432_v20 }
 0x263   : > { %14658 = vst [vmem:[#allocation194_spill] sm:$0xff] %v8552_v51  ;;  %4458 = vlog2.f32 %v14659_v40  ;;  %v8562_v46 = vpop.eup %4440  ;;  %v14661_v51 = vld [vmem:[#allocation126_spill] sm:$0xff]  ;;  %v8577_v40 = vadd.s32 %v14646_v2, %v1428_v9  ;;  %v1435_v14 = vmul.u32 128, %v8435_v33  ;;  %v8584_v53 = vadd.s32 %v14646_v2, %v1429_v56 }
 0x264   : > { %14660 = vst [vmem:[#allocation195_spill] sm:$0xff] %v8562_v46  ;;  %4460 = vlog2.f32 %v14661_v51  ;;  %v8572_v27 = vpop.eup %4442  ;;  %v14663_v46 = vld [vmem:[#allocation128_spill] sm:$0xff]  ;;  %v8587_v51 = vadd.s32 %v14646_v2, %v1430_v22  ;;  %v1436_v20 = vmul.u32 128, %v8441_v26  ;;  %v1437_v9 = vmul.u32 128, %v8444_v12 }
 0x265   : > { %14662 = vst [vmem:[#allocation196_spill] sm:$0xff] %v8572_v27  ;;  %4462 = vlog2.f32 %v14663_v46  ;;  %v14665_v27 = vld [vmem:[#allocation54_spill] sm:$0xff]  ;;  %v8595_v46 = vadd.s32 %v14646_v2, %v1431_v8  ;;  %v1438_v56 = vmul.u32 128, %v8447_v62  ;;  %v1439_v22 = vmul.u32 128, %v8453_v18 }
 0x266   : > { %v8580_v29 = vpop.eup %4444  ;;  %4464 = vlog2.f32 %v14665_v27  ;;  %v8603_v43 = vadd.s32 %v14646_v2, %v1432_v4  ;;  %v14669_v27 = vld [vmem:[#allocation57_spill] sm:$0xff]  ;;  %v1440_v26 = vmul.u32 128, %v8456_v45  ;;  %v1441_v12 = vmul.u32 128, %v8459_v13 }
 0x267   : > { %14664 = vst [vmem:[#allocation197_spill] sm:$0xff] %v8580_v29  ;;  %v8590_v49 = vpop.eup %4446  ;;  %v14667_v29 = vld [vmem:[#allocation55_spill] sm:$0xff]  ;;  %v8611_v8 = vadd.s32 %v14646_v2, %v1433_v0  ;;  %v1442_v62 = vmul.u32 128, %v8465_v31  ;;  %v1443_v18 = vmul.u32 128, %v8468_v11  ;;  %v8619_v4 = vadd.s32 %v14646_v2, %v1434_v42 }
 0x268   : > { %14666 = vst [vmem:[#allocation126_spill] sm:$0xff] %v8590_v49  ;;  %4466 = vlog2.f32 %v14667_v29  ;;  %v8598_v33 = vpop.eup %4448  ;;  %v14671_v29 = vld [vmem:[#allocation59_spill] sm:$0xff]  ;;  %v1444_v13 = vmul.u32 128, %v8475_v36  ;;  %v1445_v45 = vmul.u32 128, %v8483_v35  ;;  %v1564_v0 = vadd.s32 %v14646_v2, %v1435_v14 }
 0x269   : > { %14668 = vst [vmem:[#allocation128_spill] sm:$0xff] %v8598_v33  ;;  %4468 = vlog2.f32 %v14669_v27  ;;  %v8606_v49 = vpop.eup %4450  ;;  %v14673_v27 = vld [vmem:[#allocation60_spill] sm:$0xff]  ;;  %v1446_v31 = vmul.u32 128, %v8486_v17  ;;  %v1447_v11 = vmul.u32 128, %v8493_v32  ;;  %v1565_v42 = vadd.s32 %v14646_v2, %v1436_v20 }
 0x26a   : > { %14670 = vst [vmem:[#allocation54_spill] sm:$0xff] %v8606_v49  ;;  %4470 = vlog2.f32 %v14671_v29  ;;  %v8614_v33 = vpop.eup %4452  ;;  %v14675_v29 = vld [vmem:[#allocation130_spill] sm:$0xff]  ;;  %v1448_v36 = vmul.u32 128, %v8496_v58  ;;  %v1566_v35 = vadd.s32 %v14646_v2, %v1437_v9  ;;  %v1567_v14 = vadd.s32 %v14646_v2, %v1438_v56 }
 0x26b   : > { %14672 = vst [vmem:[#allocation55_spill] sm:$0xff] %v8614_v33  ;;  %4472 = vlog2.f32 %v14673_v27  ;;  %v8622_v49 = vpop.eup %4454  ;;  %v1568_v17 = vadd.s32 %v14646_v2, %v1439_v22  ;;  %v1569_v32 = vadd.s32 %v14646_v2, %v1440_v26  ;;  %v1570_v20 = vadd.s32 %v14646_v2, %v1441_v12 }
 0x26c   : > { %14674 = vst [vmem:[#allocation57_spill] sm:$0xff] %v8622_v49  ;;  %4474 = vlog2.f32 %v14675_v29  ;;  %v8628_v33 = vpop.eup %4456  ;;  %v14679_v49 = vld [vmem:[#allocation132_spill] sm:$0xff]  ;;  %v1571_v58 = vadd.s32 %v14646_v2, %v1442_v62  ;;  %v1572_v9 = vadd.s32 %v14646_v2, %v1443_v18  ;;  %v1573_v56 = vadd.s32 %v14646_v2, %v1444_v13 }
 0x26d   : > { %14676 = vst [vmem:[#allocation59_spill] sm:$0xff] %v8628_v33  ;;  %4476 = vlog2.f32 %v14677_v39  ;;  %v8634_v27 = vpop.eup %4458  ;;  %v14681_v33 = vld [vmem:[#allocation133_spill] sm:$0xff]  ;;  %v1574_v22 = vadd.s32 %v14646_v2, %v1445_v45  ;;  %v1575_v26 = vadd.s32 %v14646_v2, %v1446_v31  ;;  %v1576_v12 = vadd.s32 %v14646_v2, %v1447_v11 }
 0x26e   : > { %14678 = vst [vmem:[#allocation60_spill] sm:$0xff] %v8634_v27  ;;  %4478 = vlog2.f32 %v14679_v49  ;;  %v8640_v29 = vpop.eup %4460  ;;  %v14683_v27 = vld [vmem:[#allocation134_spill] sm:$0xff]  ;;  %v1577_v62 = vadd.s32 %v14646_v2, %v1448_v36  ;;  %vm1932_vm10 = vcmp.gt.f32.partialorder %v7780_v37, 0.0001  ;;  %vm1935_vm15 = vcmp.gt.f32.partialorder %v7792_v5, 0.0001 }
 0x26f   : > { %14680 = vst [vmem:[#allocation130_spill] sm:$0xff] %v8640_v29  ;;  %4480 = vlog2.f32 %v14681_v33  ;;  %v8646_v39 = vpop.eup %4462  ;;  %v14684_v29 = vld [vmem:[#allocation135_spill] sm:$0xff]  ;;  %vm1936_vm8 = vcmp.gt.f32.partialorder %v7796_v7, 0.0001  ;;  %vm1938_vm7 = vcmp.gt.f32.partialorder %v7804_v24, 0.0001 }
 0x270   : > { %14682 = vst [vmem:[#allocation131_spill] sm:$0xff] %v8646_v39  ;;  %4482 = vlog2.f32 %v14683_v27  ;;  %v8652_v49 = vpop.eup %4464  ;;  %v14685_v39 = vld [vmem:[#allocation129_spill] sm:$0xff]  ;;  %v14686_v27 = vld [vmem:[#allocation167_spill] sm:$0xff]  ;;  %v14846_v24 = vld [vmem:[#allocation208_spill] sm:$0xff] }
 0x271   : > { %4484 = vlog2.f32 %v14684_v29  ;;  %v8663_v18 = vadd.s32 %v8505_v21, %v14685_v39  ;;  %v8667_v13 = vadd.s32 %v8512_v10, %v14685_v39  ;;  %v8674_v31 = vadd.s32 %v8515_v54, %v14685_v39  ;;  %v14687_v21 = vld [vmem:[#allocation168_spill] sm:$0xff]  ;;  %v14689_v29 = vld [vmem:[#allocation169_spill] sm:$0xff]  ;;  %v14829_v7 = vld [vmem:[#allocation207_spill] sm:$0xff] }
 0x272   : > { %v8658_v33 = vpop.eup %4466  ;;  %4486 = vlog2.f32 %v14686_v27  ;;  %v8678_v11 = vadd.s32 %v8523_v3, %v14685_v39  ;;  %v8682_v2 = vadd.s32 %v8531_v23, %v14685_v39  ;;  %v8689_v36 = vadd.s32 %v8538_v6, %v14685_v39  ;;  %v14796_v37 = vld [vmem:[#allocation205_spill] sm:$0xff] }
 0x273   : > { %v8670_v45 = vpop.eup %4468  ;;  %4488 = vlog2.f32 %v14687_v21  ;;  %v8693_v54 = vadd.s32 %v8541_v61, %v14685_v39  ;;  %v8697_v3 = vadd.s32 %v8549_v1, %v14685_v39  ;;  %v8704_v27 = vadd.s32 %v8556_v63, %v14685_v39  ;;  %v14691_v21 = vld [vmem:[#allocation170_spill] sm:$0xff] }
 0x274   : > { %v8685_v10 = vpop.eup %4470  ;;  %4490 = vlog2.f32 %v14689_v29  ;;  %v8708_v6 = vadd.s32 %v8559_v59, %v14685_v39  ;;  %v8712_v61 = vadd.s32 %v8566_v19, %v14685_v39  ;;  %v8719_v29 = vadd.s32 %v8569_v15, %v14685_v39 }
 0x275   : > { %14688 = vst [vmem:[#allocation132_spill] sm:$0xff] %v8685_v10  ;;  %v8700_v23 = vpop.eup %4472  ;;  %4492 = vlog2.f32 %v14691_v21  ;;  %v8723_v63 = vadd.s32 %v8577_v40, %v14685_v39  ;;  %v8727_v59 = vadd.s32 %v8584_v53, %v14685_v39  ;;  %v8734_v21 = vadd.s32 %v8587_v51, %v14685_v39 }
 0x276   : > { %14690 = vst [vmem:[#allocation133_spill] sm:$0xff] %v8700_v23  ;;  %v8715_v1 = vpop.eup %4474  ;;  %v14693_v23 = vld [vmem:[#allocation171_spill] sm:$0xff]  ;;  %v8738_v15 = vadd.s32 %v8595_v46, %v14685_v39  ;;  %v8742_v40 = vadd.s32 %v8603_v43, %v14685_v39  ;;  %v8753_v51 = vadd.s32 %v8619_v4, %v14685_v39  ;;  %v14697_v46 = vld [vmem:[#allocation173_spill] sm:$0xff]  ;;  %v8762_v43 = vadd.s32 %v1565_v42, %v14685_v39 }
 0x277   : > { %14692 = vst [vmem:[#allocation134_spill] sm:$0xff] %v8715_v1  ;;  %4494 = vlog2.f32 %v14693_v23  ;;  %v8730_v19 = vpop.eup %4476  ;;  %v14695_v1 = vld [vmem:[#allocation172_spill] sm:$0xff]  ;;  %v8749_v23 = vadd.s32 %v8611_v8, %v14685_v39  ;;  %v8768_v8 = vadd.s32 %v1567_v14, %v14685_v39  ;;  %v14701_v42 = vld [vmem:[#allocation175_spill] sm:$0xff]  ;;  %v8786_v14 = vadd.s32 %v1571_v58, %v14685_v39  ;;  %v14704_v58 = vld [vmem:[#allocation177_spill] sm:$0xff] }
 0x278   : > { %14694 = vst [vmem:[#allocation135_spill] sm:$0xff] %v8730_v19  ;;  %4496 = vlog2.f32 %v14695_v1  ;;  %v8745_v53 = vpop.eup %4478  ;;  %v8756_v19 = vadd.s32 %v1564_v0, %v14685_v39  ;;  %v8765_v1 = vadd.s32 %v1566_v35, %v14685_v39  ;;  %v8774_v0 = vadd.s32 %v1568_v17, %v14685_v39  ;;  %v14703_v17 = vld [vmem:[#allocation176_spill] sm:$0xff] }
 0x279   : > { %14696 = vst [vmem:[#allocation129_spill] sm:$0xff] %v8745_v53  ;;  %4498 = vlog2.f32 %v14697_v46  ;;  %v8759_v10 = vpop.eup %4480  ;;  %v14699_v53 = vld [vmem:[#allocation174_spill] sm:$0xff]  ;;  %v8777_v46 = vadd.s32 %v1569_v32, %v14685_v39  ;;  %vm1801_vm1 = vcmp.lt.s32.totalorder %v8663_v18, 512  ;;  %vm1802_vm2 = vcmp.lt.s32.totalorder %v8667_v13, 512  ;;  %v14767_v18 = vld [vmem:[#allocation329_spill] sm:$0xff] }
 0x27a   : > { %14698 = vst [vmem:[#allocation167_spill] sm:$0xff] %v8759_v10  ;;  %4500 = vlog2.f32 %v14699_v53  ;;  %v8771_v4 = vpop.eup %4482  ;;  %v8780_v10 = vadd.s32 %v1570_v20, %v14685_v39  ;;  %v8789_v53 = vadd.s32 %v1572_v9, %v14685_v39  ;;  %v8798_v20 = vadd.s32 %v1574_v22, %v14685_v39  ;;  %v14706_v22 = vld [vmem:[#allocation178_spill] sm:$0xff]  ;;  %vm8931_vm12 = vmand %vm1929_vm0, %vm1801_vm1 }
 0x27b   : > { %14700 = vst [vmem:[#allocation168_spill] sm:$0xff] %v8771_v4  ;;  %4502 = vlog2.f32 %v14701_v42  ;;  %v8783_v35 = vpop.eup %4484  ;;  %v8792_v4 = vadd.s32 %v1573_v56, %v14685_v39  ;;  %v8801_v42 = vadd.s32 %v1575_v26, %v14685_v39  ;;  %v8811_v56 = vadd.s32 %v1577_v62, %v14685_v39  ;;  %v14710_v62 = vld [vmem:[#allocation180_spill] sm:$0xff]  ;;  %vm8953_vm1 = vmand %vm1930_vm3, %vm1802_vm2  ;;  %v14778_v13 = vld [vmem:[#allocation42_spill] sm:$0xff] }
 0x27c   : > { %14702 = vst [vmem:[#allocation169_spill] sm:$0xff] %v8783_v35  ;;  %4504 = vlog2.f32 %v14703_v17  ;;  %v8795_v32 = vpop.eup %4486  ;;  %v8804_v35 = vadd.s32 %v1576_v12, %v14685_v39  ;;  %vm1803_vm5 = vcmp.lt.s32.totalorder %v8674_v31, 512  ;;  %vm1804_vm6 = vcmp.lt.s32.totalorder %v8678_v11, 512  ;;  %v14708_v39 = vld [vmem:[#allocation179_spill] sm:$0xff]  ;;  %v14781_v31 = vld [vmem:[#allocation330_spill] sm:$0xff] }
 0x27d   : > { %4506 = vlog2.f32 %v14704_v58  ;;  %v8808_v9 = vpop.eup %4488  ;;  %vm1809_vm14 = vcmp.lt.s32.totalorder %v8704_v27, 512  ;;  %v14712_v58 = vld [vmem:[#allocation181_spill] sm:$0xff]  ;;  %vm8961_vm13 = vmand %vm1931_vm4, %vm1803_vm5  ;;  %vm14785_vm5 = vcmp.lt.s32.totalorder %v8682_v2, 512  ;;  %vm14786_vm0 = vcmp.gt.f32.partialorder %v7784_v34, 0.0001  ;;  %v14794_v11 = vld [vmem:[#allocation58_spill] sm:$0xff] }
 0x27e   : > { %14705 = vst [vmem:[#allocation170_spill] sm:$0xff] %v8808_v9  ;;  %4508 = vlog2.f32 %v14706_v22  ;;  %v8818_v26 = vpop.eup %4490  ;;  %v14750_v9 = vld [vmem:[#allocation302_spill] sm:$0xff]  ;;  %vm8983_vm4 = vmand %vm1932_vm10, %vm1804_vm6  ;;  %v14797_v2 = vld [vmem:[#allocation331_spill] sm:$0xff]  ;;  %vm14803_vm2 = vcmp.lt.s32.totalorder %v8693_v54, 512  ;;  %vm14819_vm10 = vcmp.gt.f32.partialorder %v7800_v57, 0.0001 }
 0x27f   : > { %14707 = vst [vmem:[#allocation171_spill] sm:$0xff] %v8818_v26  ;;  %4510 = vlog2.f32 %v14708_v39  ;;  %v8824_v12 = vpop.eup %4492  ;;  %v8847_v39 = vmul.f32 0.6931472, %v7992_v44  ;;  %v8864_v44 = vmul.f32 0.6931472, %v8052_v55  ;;  %v14734_v26 = vld [vmem:[#allocation285_spill] sm:$0xff]  ;;  %vm8991_vm11 = vmand %vm14786_vm0, %vm14785_vm5 }
 0x280   : > { %14709 = vst [vmem:[#allocation172_spill] sm:$0xff] %v8824_v12  ;;  %4512 = vlog2.f32 %v14710_v62  ;;  %v8850_v62 = vmul.f32 0.6931472, %v8007_v48  ;;  %vm14798_vm0 = vcmp.lt.s32.totalorder %v8689_v36, 512  ;;  %vm14799_vm5 = vcmp.gt.f32.partialorder %v7788_v52, 0.0001  ;;  %vm9021_vm9 = vmand %vm1935_vm15, %vm14803_vm2 }
 0x281   : > { %v8832_v17 = vpop.eup %4494  ;;  %4514 = vlog2.f32 %v14712_v58  ;;  %14714 = vst [vmem:[#allocation175_spill] sm:$0xff] %v8847_v39  ;;  %v8858_v58 = vmul.f32 0.6931472, %v8022_v28  ;;  %14720 = vst [vmem:[#allocation180_spill] sm:$0xff] %v8864_v44  ;;  %v14721_v39 = vld [vmem:[#allocation198_spill] sm:$0xff]  ;;  %v14811_v36 = vld [vmem:[#allocation47_spill] sm:$0xff] }
 0x282   : > { %14711 = vst [vmem:[#allocation173_spill] sm:$0xff] %v8832_v17  ;;  %v8840_v22 = vpop.eup %4496  ;;  %14715 = vst [vmem:[#allocation176_spill] sm:$0xff] %v8850_v62  ;;  %v14716_v17 = vld [vmem:[#allocation182_spill] sm:$0xff]  ;;  %v14814_v54 = vld [vmem:[#allocation332_spill] sm:$0xff]  ;;  %vm14815_vm2 = vcmp.lt.s32.totalorder %v8697_v3, 512  ;;  %vm14835_vm15 = vcmp.lt.s32.totalorder %v8712_v61, 512 }
 0x283   : > { %14713 = vst [vmem:[#allocation174_spill] sm:$0xff] %v8840_v22  ;;  %4516 = vlog2.f32 %v14716_v17  ;;  %v8853_v12 = vpop.eup %4498  ;;  %14718 = vst [vmem:[#allocation178_spill] sm:$0xff] %v8858_v58  ;;  %v8861_v22 = vmul.f32 0.6931472, %v8037_v38  ;;  %v14723_v17 = vld [vmem:[#allocation273_spill] sm:$0xff]  ;;  %v14727_v58 = vld [vmem:[#allocation279_spill] sm:$0xff] }
 0x284   : > { %14717 = vst [vmem:[#allocation177_spill] sm:$0xff] %v8853_v12  ;;  %4518 = vlog2.f32 %v14721_v39  ;;  %v8867_v48 = vpop.eup %4500  ;;  %v8872_v62 = vmul.f32 0.6931472, %v14723_v17  ;;  %v14725_v12 = vld [vmem:[#allocation276_spill] sm:$0xff]  ;;  %v8878_v38 = vmul.f32 0.6931472, %v14727_v58  ;;  %vm9013_vm3 = vmand %vm14799_vm5, %vm14798_vm0 }
 0x285   : > { %14719 = vst [vmem:[#allocation179_spill] sm:$0xff] %v8861_v22  ;;  %14722 = vst [vmem:[#allocation181_spill] sm:$0xff] %v8867_v48  ;;  %v8875_v28 = vmul.f32 0.6931472, %v14725_v12  ;;  %v14729_v22 = vld [vmem:[#allocation199_spill] sm:$0xff]  ;;  %v8881_v55 = vpop.eup %4502  ;;  %v14731_v39 = vld [vmem:[#allocation325_spill] sm:$0xff] }
 0x286   : > { %14724 = vst [vmem:[#allocation182_spill] sm:$0xff] %v8872_v62  ;;  %14728 = vst [vmem:[#allocation273_spill] sm:$0xff] %v8878_v38  ;;  %4520 = vlog2.f32 %v14729_v22  ;;  %v14732_v44 = vld [vmem:[#allocation282_spill] sm:$0xff]  ;;  %v8889_v17 = vmul.f32 0.6931472, %v14734_v26  ;;  %v14736_v62 = vld [vmem:[#allocation288_spill] sm:$0xff]  ;;  %v8895_v58 = vpop.eup %4504 }
 0x287   : > { %14726 = vst [vmem:[#allocation198_spill] sm:$0xff] %v8875_v28  ;;  %14730 = vst [vmem:[#allocation276_spill] sm:$0xff] %v8881_v55  ;;  %v8886_v48 = vmul.f32 0.6931472, %v14732_v44  ;;  %v8892_v12 = vmul.f32 0.6931472, %v14736_v62  ;;  %v8909_v62 = vpop.eup %4506 }
 0x288   : > { %14735 = vst [vmem:[#allocation199_spill] sm:$0xff] %v8889_v17  ;;  %v14738_v28 = vld [vmem:[#allocation200_spill] sm:$0xff]  ;;  %14739 = vst [vmem:[#allocation285_spill] sm:$0xff] %v8895_v58  ;;  %v14740_v22 = vld [vmem:[#allocation326_spill] sm:$0xff]  ;;  %v8903_v44 = vmul.f32 0.6931472, %v8172_v16 }
 0x289   : > { %14733 = vst [vmem:[#allocation279_spill] sm:$0xff] %v8886_v48  ;;  %14737 = vst [vmem:[#allocation282_spill] sm:$0xff] %v8892_v12  ;;  %4522 = vlog2.f32 %v14738_v28  ;;  %v14741_v38 = vld [vmem:[#allocation291_spill] sm:$0xff]  ;;  %v14744_v48 = vld [vmem:[#allocation296_spill] sm:$0xff]  ;;  %vm14836_vm0 = vcmp.gt.f32.partialorder %v7808_v60, 0.0001 }
 0x28a   : > { %v8900_v55 = vmul.f32 0.6931472, %v14741_v38  ;;  %14743 = vst [vmem:[#allocation200_spill] sm:$0xff] %v8903_v44  ;;  %v8906_v26 = vmul.f32 0.6931472, %v14744_v48  ;;  %v14746_v17 = vld [vmem:[#allocation201_spill] sm:$0xff]  ;;  %v8923_v48 = vpop.eup %4508  ;;  %vm9043_vm5 = vmand %vm1936_vm8, %vm14815_vm2 }
 0x28b   : > { %4524 = vlog2.f32 %v14746_v17  ;;  %v14747_v28 = vld [vmem:[#allocation327_spill] sm:$0xff]  ;;  %v8917_v38 = vmul.f32 0.6931472, %v14750_v9  ;;  %v14754_v44 = vld [vmem:[#allocation202_spill] sm:$0xff]  ;;  %v14756_v17 = vld [vmem:[#allocation328_spill] sm:$0xff] }
 0x28c   : > { %14742 = vst [vmem:[#allocation288_spill] sm:$0xff] %v8900_v55  ;;  %14745 = vst [vmem:[#allocation291_spill] sm:$0xff] %v8906_v26  ;;  %v14748_v12 = vld [vmem:[#allocation299_spill] sm:$0xff]  ;;  %v14752_v55 = vld [vmem:[#allocation305_spill] sm:$0xff]  ;;  %4526 = vlog2.f32 %v14754_v44 }
 0x28d   : > { %v8914_v58 = vmul.f32 0.6931472, %v14748_v12  ;;  %14751 = vst [vmem:[#allocation201_spill] sm:$0xff] %v8917_v38  ;;  %v8920_v16 = vmul.f32 0.6931472, %v14752_v55  ;;  %14755 = vst [vmem:[#allocation299_spill] sm:$0xff] %v8923_v48  ;;  %v8945_v48 = vpop.eup %4510 }
 0x28e   : > { %v14757_v12 = vmov 0  ;;  %v14760_v9 = vld [vmem:[#allocation309_spill] sm:$0xff]  ;;  %v14762_v55 = vld [vmem:[#allocation35_spill] sm:$0xff]  ;;  %v8975_v50 = vpop.eup %4512  ;;  %v14813_v52 = vld [vmem:[#allocation206_spill] sm:$0xff] }
 0x28f   : > { %14749 = vst [vmem:[#allocation296_spill] sm:$0xff] %v8914_v58  ;;  %14753 = vst [vmem:[#allocation327_spill] sm:$0xff] %v8920_v16  ;;  %v14758_v12 = vsel %vm8931_vm12, 4294967295, %v14757_v12  ;;  %v8936_v38 = vmul.f32 0.6931472, %v14760_v9  ;;  %v14764_v44 = vld [vmem:[#allocation39_spill] sm:$0xff]  ;;  %v9005_v47 = vpop.eup %4514 }
 0x290   : > { %14759 = vst [vmem:[#allocation302_spill] sm:$0xff] %v14758_v12  ;;  %v8939_v16 = vmul.f32 0.6931472, %v14762_v55  ;;  %v8942_v58 = vmul.f32 0.6931472, %v14764_v44  ;;  %v14766_v26 = vld [vmem:[#allocation203_spill] sm:$0xff]  ;;  %v9035_v34 = vpop.eup %4516  ;;  %vm9051_vm6 = vmand %vm14819_vm10, %vm1809_vm14 }
 0x291   : > { %14761 = vst [vmem:[#allocation305_spill] sm:$0xff] %v8936_v38  ;;  %4528 = vlog2.f32 %v14766_v26  ;;  %v14768_v9 = vmov 0  ;;  %v14771_v26 = vmov 0  ;;  %v14774_v55 = vld [vmem:[#allocation40_spill] sm:$0xff]  ;;  %v8972_v38 = vmul.f32 0.6931472, %v14778_v13  ;;  %v9065_v5 = vpop.eup %4518 }
 0x292   : > { %14763 = vst [vmem:[#allocation202_spill] sm:$0xff] %v8939_v16  ;;  %14765 = vst [vmem:[#allocation309_spill] sm:$0xff] %v8942_v58  ;;  %v14769_v9 = vsel %vm8953_vm1, 4294967295, %v14768_v9  ;;  %v14772_v26 = vsel %vm8961_vm13, 4294967295, %v14771_v26  ;;  %v8966_v44 = vmul.f32 0.6931472, %v14774_v55  ;;  %4530 = vlog2.f32 %v14780_v41  ;;  %v9095_v57 = vpop.eup %4520 }
 0x293   : > { %14770 = vst [vmem:[#allocation35_spill] sm:$0xff] %v14769_v9  ;;  %14773 = vst [vmem:[#allocation39_spill] sm:$0xff] %v14772_v26  ;;  %v14776_v58 = vld [vmem:[#allocation41_spill] sm:$0xff]  ;;  %v14782_v55 = vmov 0  ;;  %v14787_v41 = vmov 0  ;;  %4532 = vlog2.f32 %v14796_v37  ;;  %v14804_v37 = vmov 0 }
 0x294   : > { %14775 = vst [vmem:[#allocation203_spill] sm:$0xff] %v8966_v44  ;;  %v8969_v16 = vmul.f32 0.6931472, %v14776_v58  ;;  %14779 = vst [vmem:[#allocation41_spill] sm:$0xff] %v8972_v38  ;;  %v14783_v55 = vsel %vm8983_vm4, 4294967295, %v14782_v55  ;;  %v14788_v41 = vsel %vm8991_vm11, 4294967295, %v14787_v41  ;;  %4534 = vlog2.f32 %v14813_v52 }
 0x295   : > { %14784 = vst [vmem:[#allocation42_spill] sm:$0xff] %v14783_v55  ;;  %14789 = vst [vmem:[#allocation204_spill] sm:$0xff] %v14788_v41  ;;  %v14790_v58 = vld [vmem:[#allocation43_spill] sm:$0xff]  ;;  %v14792_v38 = vld [vmem:[#allocation44_spill] sm:$0xff]  ;;  %v9002_v44 = vmul.f32 0.6931472, %v14794_v11  ;;  %4536 = vlog2.f32 %v14829_v7 }
 0x296   : > { %14777 = vst [vmem:[#allocation40_spill] sm:$0xff] %v8969_v16  ;;  %v8996_v13 = vmul.f32 0.6931472, %v14790_v58  ;;  %v8999_v16 = vmul.f32 0.6931472, %v14792_v38  ;;  %v14800_v58 = vmov 0  ;;  %4538 = vlog2.f32 %v14846_v24 }
 0x297   : > { %14795 = vst [vmem:[#allocation58_spill] sm:$0xff] %v9002_v44  ;;  %v14801_v58 = vsel %vm9013_vm3, 4294967295, %v14800_v58  ;;  %v14805_v37 = vsel %vm9021_vm9, 4294967295, %v14804_v37  ;;  %v14807_v38 = vld [vmem:[#allocation45_spill] sm:$0xff]  ;;  %v14809_v44 = vld [vmem:[#allocation46_spill] sm:$0xff]  ;;  %v14820_v52 = vmov 0 }
 0x298   : > { %14791 = vst [vmem:[#allocation43_spill] sm:$0xff] %v8996_v13  ;;  %14793 = vst [vmem:[#allocation44_spill] sm:$0xff] %v8999_v16  ;;  %v9026_v11 = vmul.f32 0.6931472, %v14807_v38  ;;  %v9029_v16 = vmul.f32 0.6931472, %v14809_v44 }
 0x299   : > { %14802 = vst [vmem:[#allocation205_spill] sm:$0xff] %v14801_v58  ;;  %14806 = vst [vmem:[#allocation350_spill] sm:$0xff] %v14805_v37  ;;  %v9032_v13 = vmul.f32 0.6931472, %v14811_v36  ;;  %v14816_v38 = vmov 0  ;;  %v14821_v52 = vsel %vm9051_vm6, 4294967295, %v14820_v52 }
 0x29a   : > { %14808 = vst [vmem:[#allocation45_spill] sm:$0xff] %v9026_v11  ;;  %14810 = vst [vmem:[#allocation46_spill] sm:$0xff] %v9029_v16  ;;  %v14817_v38 = vsel %vm9043_vm5, 4294967295, %v14816_v38  ;;  %v14823_v44 = vld [vmem:[#allocation48_spill] sm:$0xff]  ;;  %v14827_v3 = vld [vmem:[#allocation50_spill] sm:$0xff]  ;;  %vm14831_vm10 = vcmp.lt.s32.totalorder %v8708_v6, 512 }
 0x29b   : > { %14812 = vst [vmem:[#allocation47_spill] sm:$0xff] %v9032_v13  ;;  %14818 = vst [vmem:[#allocation206_spill] sm:$0xff] %v14817_v38  ;;  %v9056_v36 = vmul.f32 0.6931472, %v14823_v44  ;;  %v14825_v13 = vld [vmem:[#allocation49_spill] sm:$0xff]  ;;  %v14832_v44 = vmov 0 }
 0x29c   : > { %14822 = vst [vmem:[#allocation351_spill] sm:$0xff] %v14821_v52  ;;  %v9059_v16 = vmul.f32 0.6931472, %v14825_v13  ;;  %v9062_v11 = vmul.f32 0.6931472, %v14827_v3  ;;  %v14830_v27 = vld [vmem:[#allocation333_spill] sm:$0xff]  ;;  %vm9073_vm2 = vmand %vm1938_vm7, %vm14831_vm10 }
 0x29d   : > { %14824 = vst [vmem:[#allocation48_spill] sm:$0xff] %v9056_v36  ;;  %v14833_v44 = vsel %vm9073_vm2, 4294967295, %v14832_v44  ;;  %vm9081_vm6 = vmand %vm14836_vm0, %vm14835_vm15  ;;  %v14837_v7 = vmov 0  ;;  %v14840_v13 = vld [vmem:[#allocation51_spill] sm:$0xff]  ;;  %v14844_v6 = vld [vmem:[#allocation53_spill] sm:$0xff]  ;;  %vm14849_vm15 = vcmp.lt.s32.totalorder %v8719_v29, 512 }
 0x29e   : > { %14826 = vst [vmem:[#allocation49_spill] sm:$0xff] %v9059_v16  ;;  %14828 = vst [vmem:[#allocation50_spill] sm:$0xff] %v9062_v11  ;;  %v14838_v7 = vsel %vm9081_vm6, 4294967295, %v14837_v7  ;;  %v9086_v3 = vmul.f32 0.6931472, %v14840_v13  ;;  %v14842_v11 = vld [vmem:[#allocation52_spill] sm:$0xff] }
 0x29f   : > { %14834 = vst [vmem:[#allocation207_spill] sm:$0xff] %v14833_v44  ;;  %14839 = vst [vmem:[#allocation352_spill] sm:$0xff] %v14838_v7  ;;  %v9089_v16 = vmul.f32 0.6931472, %v14842_v11  ;;  %v9092_v36 = vmul.f32 0.6931472, %v14844_v6 }
 0x2a0   : > { %14841 = vst [vmem:[#allocation51_spill] sm:$0xff] %v9086_v3  ;;  %14847 = vst [vmem:[#allocation208_spill] sm:$0xff] %v9095_v57  ;;  %v14848_v61 = vld [vmem:[#allocation237_spill] sm:$0xff]  ;;  %vm14850_vm10 = vcmp.gt.f32.partialorder %v7812_v25, 0.0001  ;;  %v14851_v13 = vmov 0  ;;  %v9117_v57 = vpop.eup %4522 }
 0x2a1   : > { %14843 = vst [vmem:[#allocation52_spill] sm:$0xff] %v9089_v16  ;;  %14845 = vst [vmem:[#allocation53_spill] sm:$0xff] %v9092_v36  ;;  %v14854_v11 = vld [vmem:[#allocation189_spill] sm:$0xff]  ;;  %v14856_v6 = vld [vmem:[#allocation190_spill] sm:$0xff]  ;;  %vm14864_vm7 = vcmp.gt.f32.partialorder %v7816_v30, 0.0001 }
 0x2a2   : > { %vm9103_vm14 = vmand %vm14850_vm10, %vm14849_vm15  ;;  %v9108_v16 = vmul.f32 0.6931472, %v14854_v11  ;;  %v9111_v36 = vmul.f32 0.6931472, %v14856_v6  ;;  %v14858_v24 = vld [vmem:[#allocation56_spill] sm:$0xff]  ;;  %v14860_v60 = vld [vmem:[#allocation209_spill] sm:$0xff] }
 0x2a3   : > { %v14852_v13 = vsel %vm9103_vm14, 4294967295, %v14851_v13  ;;  %v9114_v3 = vmul.f32 0.6931472, %v14858_v24  ;;  %4540 = vlog2.f32 %v14860_v60  ;;  %14861 = vst [vmem:[#allocation209_spill] sm:$0xff] %v9117_v57  ;;  %v14862_v29 = vld [vmem:[#allocation238_spill] sm:$0xff]  ;;  %vm14863_vm10 = vcmp.lt.s32.totalorder %v8723_v63, 512  ;;  %v9139_v57 = vpop.eup %4524 }
 0x2a4   : > { %14853 = vst [vmem:[#allocation353_spill] sm:$0xff] %v14852_v13  ;;  %14855 = vst [vmem:[#allocation189_spill] sm:$0xff] %v9108_v16  ;;  %v14865_v11 = vmov 0  ;;  %v14868_v6 = vld [vmem:[#allocation191_spill] sm:$0xff]  ;;  %v14870_v24 = vld [vmem:[#allocation62_spill] sm:$0xff] }
 0x2a5   : > { %14857 = vst [vmem:[#allocation190_spill] sm:$0xff] %v9111_v36  ;;  %14859 = vst [vmem:[#allocation56_spill] sm:$0xff] %v9114_v3  ;;  %v9130_v36 = vmul.f32 0.6931472, %v14868_v6  ;;  %v9133_v3 = vmul.f32 0.6931472, %v14870_v24 }
 0x2a6   : > { %vm9125_vm8 = vmand %vm14864_vm7, %vm14863_vm10  ;;  %v14872_v60 = vld [vmem:[#allocation192_spill] sm:$0xff]  ;;  %v14874_v25 = vld [vmem:[#allocation210_spill] sm:$0xff]  ;;  %vm14877_vm10 = vcmp.lt.s32.totalorder %v8727_v59, 512  ;;  %vm14878_vm0 = vcmp.gt.f32.partialorder %v14731_v39, 0.0001  ;;  %v14879_v6 = vmov 0 }
 0x2a7   : > { %v14866_v11 = vsel %vm9125_vm8, 4294967295, %v14865_v11  ;;  %14869 = vst [vmem:[#allocation191_spill] sm:$0xff] %v9130_v36  ;;  %14871 = vst [vmem:[#allocation62_spill] sm:$0xff] %v9133_v3  ;;  %v9136_v16 = vmul.f32 0.6931472, %v14872_v60  ;;  %4542 = vlog2.f32 %v14874_v25  ;;  %v14876_v63 = vld [vmem:[#allocation239_spill] sm:$0xff] }
 0x2a8   : > { %14867 = vst [vmem:[#allocation354_spill] sm:$0xff] %v14866_v11  ;;  %14875 = vst [vmem:[#allocation210_spill] sm:$0xff] %v9139_v57  ;;  %v14882_v24 = vld [vmem:[#allocation193_spill] sm:$0xff]  ;;  %v14886_v25 = vld [vmem:[#allocation194_spill] sm:$0xff]  ;;  %v9161_v57 = vpop.eup %4526  ;;  %vm14891_vm15 = vcmp.gt.f32.partialorder %v14740_v22, 0.0001 }
 0x2a9   : > { %14873 = vst [vmem:[#allocation192_spill] sm:$0xff] %v9136_v16  ;;  %vm9147_vm8 = vmand %vm14878_vm0, %vm14877_vm10  ;;  %v9152_v3 = vmul.f32 0.6931472, %v14882_v24  ;;  %v14884_v60 = vld [vmem:[#allocation61_spill] sm:$0xff]  ;;  %v9158_v36 = vmul.f32 0.6931472, %v14886_v25 }
 0x2aa   : > { %v14880_v6 = vsel %vm9147_vm8, 4294967295, %v14879_v6  ;;  %v9155_v16 = vmul.f32 0.6931472, %v14884_v60  ;;  %v14888_v30 = vld [vmem:[#allocation211_spill] sm:$0xff]  ;;  %v14889_v59 = vld [vmem:[#allocation240_spill] sm:$0xff]  ;;  %vm14890_vm10 = vcmp.lt.s32.totalorder %v8734_v21, 512  ;;  %v9185_v21 = vpop.eup %4528 }
 0x2ab   : > { %14881 = vst [vmem:[#allocation355_spill] sm:$0xff] %v14880_v6  ;;  %14883 = vst [vmem:[#allocation193_spill] sm:$0xff] %v9152_v3  ;;  %4544 = vlog2.f32 %v14888_v30  ;;  %v14892_v24 = vmov 0  ;;  %v14895_v60 = vld [vmem:[#allocation195_spill] sm:$0xff]  ;;  %v14897_v25 = vld [vmem:[#allocation196_spill] sm:$0xff]  ;;  %v13167_v3 = vmov 0.0  }
 0x2ac   : > { %14885 = vst [vmem:[#allocation61_spill] sm:$0xff] %v9155_v16  ;;  %14887 = vst [vmem:[#allocation194_spill] sm:$0xff] %v9158_v36  ;;  %v9174_v16 = vmul.f32 0.6931472, %v14895_v60  ;;  %v9177_v36 = vmul.f32 0.6931472, %v14897_v25 }
 0x2ad   : > { %vm9169_vm8 = vmand %vm14891_vm15, %vm14890_vm10  ;;  %v14899_v30 = vld [vmem:[#allocation212_spill] sm:$0xff]  ;;  %v9183_v39 = vsel %vm8931_vm12, 1.0, %v13167_v3  ;;  %v14901_v22 = vld [vmem:[#allocation241_spill] sm:$0xff]  ;;  %vm14902_vm0 = vcmp.lt.s32.totalorder %v8738_v15, 512  ;;  %vm14903_vm7 = vcmp.gt.f32.partialorder %v14747_v28, 0.0001 }
 0x2ae   : > { %v14893_v24 = vsel %vm9169_vm8, 4294967295, %v14892_v24  ;;  %14896 = vst [vmem:[#allocation195_spill] sm:$0xff] %v9174_v16  ;;  %14898 = vst [vmem:[#allocation196_spill] sm:$0xff] %v9177_v36  ;;  %4546 = vlog2.f32 %v14899_v30  ;;  %v14904_v60 = vmov 0  ;;  %v14907_v25 = vld [vmem:[#allocation197_spill] sm:$0xff]  ;;  %v9204_v16 = vsel %vm8953_vm1, 1.0, %v13167_v3 }
 0x2af   : > { %14894 = vst [vmem:[#allocation211_spill] sm:$0xff] %v14893_v24  ;;  %14900 = vst [vmem:[#allocation212_spill] sm:$0xff] %v9183_v39  ;;  %v9198_v30 = vmul.f32 0.6931472, %v14907_v25  ;;  %v14909_v36 = vld [vmem:[#allocation213_spill] sm:$0xff]  ;;  %v9209_v15 = vsel %vm8961_vm13, 1.0, %v13167_v3  ;;  %v9211_v39 = vpop.eup %4530 }
 0x2b0   : > { %vm9193_vm8 = vmand %vm14903_vm7, %vm14902_vm0  ;;  %4548 = vlog2.f32 %v14909_v36  ;;  %14910 = vst [vmem:[#allocation213_spill] sm:$0xff] %v9204_v16  ;;  %v14912_v12 = vld [vmem:[#allocation11_spill] sm:$0xff]  ;;  %vm14913_vm10 = vcmp.lt.s32.totalorder %v8742_v40, 512  ;;  %vm14914_vm15 = vcmp.gt.f32.partialorder %v14756_v17, 0.0001  ;;  %v14915_v36 = vmov 0  ;;  %v9237_v26 = vpop.eup %4532 }
 0x2b1   : > { %v14905_v60 = vsel %vm9193_vm8, 4294967295, %v14904_v60  ;;  %14908 = vst [vmem:[#allocation197_spill] sm:$0xff] %v9198_v30  ;;  %14911 = vst [vmem:[#allocation357_spill] sm:$0xff] %v9209_v15  ;;  %v14918_v25 = vld [vmem:[#allocation126_spill] sm:$0xff]  ;;  %v9230_v15 = vsel %vm8983_vm4, 1.0, %v13167_v3  ;;  %v9235_v40 = vsel %vm8991_vm11, 1.0, %v13167_v3  ;;  %v9263_v41 = vpop.eup %4534 }
 0x2b2   : > { %14906 = vst [vmem:[#allocation356_spill] sm:$0xff] %v14905_v60  ;;  %vm9219_vm12 = vmand %vm14914_vm15, %vm14913_vm10  ;;  %v9224_v30 = vmul.f32 0.6931472, %v14918_v25  ;;  %v14920_v16 = vld [vmem:[#allocation214_spill] sm:$0xff]  ;;  %vm14924_vm0 = vcmp.lt.s32.totalorder %v8749_v23, 512  ;;  %v14929_v25 = vld [vmem:[#allocation128_spill] sm:$0xff]  ;;  %v9289_v37 = vpop.eup %4536 }
 0x2b3   : > { %v14916_v36 = vsel %vm9219_vm12, 4294967295, %v14915_v36  ;;  %4550 = vlog2.f32 %v14920_v16  ;;  %14921 = vst [vmem:[#allocation214_spill] sm:$0xff] %v9230_v15  ;;  %14922 = vst [vmem:[#allocation359_spill] sm:$0xff] %v9235_v40  ;;  %v14923_v9 = vld [vmem:[#allocation242_spill] sm:$0xff]  ;;  %vm14925_vm7 = vcmp.gt.f32.partialorder %v14767_v18, 0.0001 }
 0x2b4   : > { %14917 = vst [vmem:[#allocation358_spill] sm:$0xff] %v14916_v36  ;;  %14919 = vst [vmem:[#allocation126_spill] sm:$0xff] %v9224_v30  ;;  %v14926_v16 = vmov 0  ;;  %v9250_v30 = vmul.f32 0.6931472, %v14929_v25  ;;  %v14931_v15 = vld [vmem:[#allocation215_spill] sm:$0xff] }
 0x2b5   : > { %vm9245_vm13 = vmand %vm14925_vm7, %vm14924_vm0  ;;  %4552 = vlog2.f32 %v14931_v15  ;;  %v9256_v40 = vsel %vm9013_vm3, 1.0, %v13167_v3  ;;  %v9261_v23 = vsel %vm9021_vm9, 1.0, %v13167_v3  ;;  %v14934_v55 = vld [vmem:[#allocation243_spill] sm:$0xff]  ;;  %vm14935_vm10 = vcmp.lt.s32.totalorder %v8753_v51, 512  ;;  %v14940_v25 = vld [vmem:[#allocation54_spill] sm:$0xff] }
 0x2b6   : > { %v14927_v16 = vsel %vm9245_vm13, 4294967295, %v14926_v16  ;;  %14930 = vst [vmem:[#allocation128_spill] sm:$0xff] %v9250_v30  ;;  %14932 = vst [vmem:[#allocation215_spill] sm:$0xff] %v9256_v40  ;;  %vm14936_vm15 = vcmp.gt.f32.partialorder %v14781_v31, 0.0001  ;;  %v14937_v15 = vmov 0  ;;  %vm14944_vm0 = vnez %v14821_v52  ;;  %v9315_v52 = vpop.eup %4538 }
 0x2b7   : > { %14928 = vst [vmem:[#allocation360_spill] sm:$0xff] %v14927_v16  ;;  %14933 = vst [vmem:[#allocation361_spill] sm:$0xff] %v9261_v23  ;;  %v9276_v30 = vmul.f32 0.6931472, %v14940_v25  ;;  %v14942_v40 = vld [vmem:[#allocation216_spill] sm:$0xff]  ;;  %v9282_v23 = vsel %vm9043_vm5, 1.0, %v13167_v3  ;;  %v9341_v7 = vpop.eup %4540 }
 0x2b8   : > { %vm9271_vm11 = vmand %vm14936_vm15, %vm14935_vm10  ;;  %4554 = vlog2.f32 %v14942_v40  ;;  %14943 = vst [vmem:[#allocation216_spill] sm:$0xff] %v9282_v23  ;;  %v9287_v51 = vsel %vm14944_vm0, 1.0, %v13167_v3  ;;  %v14946_v58 = vld [vmem:[#allocation244_spill] sm:$0xff]  ;;  %vm14947_vm7 = vcmp.lt.s32.totalorder %v8756_v19, 512  ;;  %vm14948_vm9 = vcmp.gt.f32.partialorder %v14797_v2, 0.0001 }
 0x2b9   : > { %v14938_v15 = vsel %vm9271_vm11, 4294967295, %v14937_v15  ;;  %14941 = vst [vmem:[#allocation54_spill] sm:$0xff] %v9276_v30  ;;  %14945 = vst [vmem:[#allocation363_spill] sm:$0xff] %v9287_v51  ;;  %v14949_v40 = vmov 0  ;;  %v14952_v25 = vld [vmem:[#allocation55_spill] sm:$0xff]  ;;  %v14954_v23 = vld [vmem:[#allocation217_spill] sm:$0xff] }
 0x2ba   : > { %14939 = vst [vmem:[#allocation362_spill] sm:$0xff] %v14938_v15  ;;  %vm9297_vm3 = vmand %vm14948_vm9, %vm14947_vm7  ;;  %v9302_v30 = vmul.f32 0.6931472, %v14952_v25  ;;  %4556 = vlog2.f32 %v14954_v23  ;;  %v9308_v51 = vsel %vm9073_vm2, 1.0, %v13167_v3  ;;  %v9313_v19 = vsel %vm9081_vm6, 1.0, %v13167_v3  ;;  %v14957_v38 = vld [vmem:[#allocation12_spill] sm:$0xff] }
 0x2bb   : > { %v14950_v40 = vsel %vm9297_vm3, 4294967295, %v14949_v40  ;;  %14955 = vst [vmem:[#allocation217_spill] sm:$0xff] %v9308_v51  ;;  %14956 = vst [vmem:[#allocation365_spill] sm:$0xff] %v9313_v19  ;;  %vm14958_vm10 = vcmp.lt.s32.totalorder %v8762_v43, 512  ;;  %vm14959_vm15 = vcmp.gt.f32.partialorder %v14814_v54, 0.0001  ;;  %vm14967_vm7 = vnez %v14866_v11  ;;  %v9367_v11 = vpop.eup %4542 }
 0x2bc   : > { %14951 = vst [vmem:[#allocation364_spill] sm:$0xff] %v14950_v40  ;;  %14953 = vst [vmem:[#allocation55_spill] sm:$0xff] %v9302_v30  ;;  %v14960_v23 = vmov 0  ;;  %v14963_v25 = vld [vmem:[#allocation57_spill] sm:$0xff]  ;;  %v14965_v51 = vld [vmem:[#allocation218_spill] sm:$0xff]  ;;  %v9334_v19 = vsel %vm9103_vm14, 1.0, %v13167_v3 }
 0x2bd   : > { %vm9323_vm0 = vmand %vm14959_vm15, %vm14958_vm10  ;;  %v9328_v30 = vmul.f32 0.6931472, %v14963_v25  ;;  %4558 = vlog2.f32 %v14965_v51  ;;  %14966 = vst [vmem:[#allocation218_spill] sm:$0xff] %v9334_v19  ;;  %v9339_v43 = vsel %vm14967_vm7, 1.0, %v13167_v3  ;;  %v14969_v44 = vld [vmem:[#allocation245_spill] sm:$0xff]  ;;  %vm14970_vm9 = vcmp.lt.s32.totalorder %v8765_v1, 512 }
 0x2be   : > { %v14961_v23 = vsel %vm9323_vm0, 4294967295, %v14960_v23  ;;  %14968 = vst [vmem:[#allocation367_spill] sm:$0xff] %v9339_v43  ;;  %vm14971_vm6 = vcmp.gt.f32.partialorder %v14830_v27, 0.0001  ;;  %v14972_v51 = vmov 0  ;;  %v14975_v25 = vld [vmem:[#allocation59_spill] sm:$0xff]  ;;  %vm14978_vm7 = vnez %v14880_v6 }
 0x2bf   : > { %14962 = vst [vmem:[#allocation366_spill] sm:$0xff] %v14961_v23  ;;  %14964 = vst [vmem:[#allocation57_spill] sm:$0xff] %v9328_v30  ;;  %v9354_v30 = vmul.f32 0.6931472, %v14975_v25  ;;  %v14977_v19 = vld [vmem:[#allocation219_spill] sm:$0xff]  ;;  %v9360_v43 = vsel %vm14978_vm7, 1.0, %v13167_v3  ;;  %vm14980_vm10 = vnez %v14893_v24  ;;  %v9393_v24 = vpop.eup %4544 }
 0x2c0   : > { %vm9349_vm2 = vmand %vm14971_vm6, %vm14970_vm9  ;;  %4560 = vlog2.f32 %v14977_v19  ;;  %14979 = vst [vmem:[#allocation219_spill] sm:$0xff] %v9360_v43  ;;  %v9365_v1 = vsel %vm14980_vm10, 1.0, %v13167_v3  ;;  %v14982_v13 = vld [vmem:[#allocation136_spill] sm:$0xff]  ;;  %v14983_v27 = vld [vmem:[#allocation246_spill] sm:$0xff]  ;;  %vm14984_vm15 = vcmp.lt.s32.totalorder %v8768_v8, 512  ;;  %v14986_v19 = vmov 0  ;;  %v9419_v36 = vpop.eup %4546 }
 0x2c1   : > { %v14973_v51 = vsel %vm9349_vm2, 4294967295, %v14972_v51  ;;  %14976 = vst [vmem:[#allocation59_spill] sm:$0xff] %v9354_v30  ;;  %14981 = vst [vmem:[#allocation369_spill] sm:$0xff] %v9365_v1  ;;  %vm14985_vm14 = vcmp.gt.f32.partialorder %v14848_v61, 0.0001  ;;  %v14989_v25 = vld [vmem:[#allocation60_spill] sm:$0xff]  ;;  %v9445_v15 = vpop.eup %4548 }
 0x2c2   : > { %14974 = vst [vmem:[#allocation368_spill] sm:$0xff] %v14973_v51  ;;  %vm9375_vm5 = vmand %vm14985_vm14, %vm14984_vm15  ;;  %v9380_v30 = vmul.f32 0.6931472, %v14989_v25  ;;  %v14991_v43 = vld [vmem:[#allocation220_spill] sm:$0xff]  ;;  %v9386_v1 = vsel %vm9193_vm8, 1.0, %v13167_v3  ;;  %v9391_v8 = vsel %vm9219_vm12, 1.0, %v13167_v3 }
 0x2c3   : > { %v14987_v19 = vsel %vm9375_vm5, 4294967295, %v14986_v19  ;;  %4562 = vlog2.f32 %v14991_v43  ;;  %14992 = vst [vmem:[#allocation220_spill] sm:$0xff] %v9386_v1  ;;  %14993 = vst [vmem:[#allocation370_spill] sm:$0xff] %v9391_v8  ;;  %v14994_v6 = vld [vmem:[#allocation137_spill] sm:$0xff]  ;;  %v14995_v61 = vld [vmem:[#allocation247_spill] sm:$0xff]  ;;  %vm14996_vm9 = vcmp.lt.s32.totalorder %v8774_v0, 512 }
 0x2c4   : > { %14988 = vst [vmem:[#allocation136_spill] sm:$0xff] %v14987_v19  ;;  %14990 = vst [vmem:[#allocation60_spill] sm:$0xff] %v9380_v30  ;;  %vm14997_vm6 = vcmp.gt.f32.partialorder %v14862_v29, 0.0001  ;;  %v14998_v43 = vmov 0  ;;  %v15001_v25 = vld [vmem:[#allocation130_spill] sm:$0xff] }
 0x2c5   : > { %vm9401_vm10 = vmand %vm14997_vm6, %vm14996_vm9  ;;  %v9406_v30 = vmul.f32 0.6931472, %v15001_v25  ;;  %v15003_v1 = vld [vmem:[#allocation221_spill] sm:$0xff]  ;;  %v9412_v8 = vsel %vm9245_vm13, 1.0, %v13167_v3  ;;  %v9417_v0 = vsel %vm9271_vm11, 1.0, %v13167_v3  ;;  %v15006_v60 = vld [vmem:[#allocation138_spill] sm:$0xff] }
 0x2c6   : > { %v14999_v43 = vsel %vm9401_vm10, 4294967295, %v14998_v43  ;;  %4564 = vlog2.f32 %v15003_v1  ;;  %15004 = vst [vmem:[#allocation221_spill] sm:$0xff] %v9412_v8  ;;  %15005 = vst [vmem:[#allocation371_spill] sm:$0xff] %v9417_v0  ;;  %v15007_v29 = vld [vmem:[#allocation13_spill] sm:$0xff]  ;;  %vm15008_vm15 = vcmp.lt.s32.totalorder %v8777_v46, 512  ;;  %v15010_v1 = vmov 0 }
 0x2c7   : > { %15000 = vst [vmem:[#allocation137_spill] sm:$0xff] %v14999_v43  ;;  %15002 = vst [vmem:[#allocation130_spill] sm:$0xff] %v9406_v30  ;;  %vm15009_vm14 = vcmp.gt.f32.partialorder %v14876_v63, 0.0001  ;;  %v15013_v25 = vld [vmem:[#allocation131_spill] sm:$0xff]  ;;  %v15015_v8 = vld [vmem:[#allocation222_spill] sm:$0xff] }
 0x2c8   : > { %vm9427_vm12 = vmand %vm15009_vm14, %vm15008_vm15  ;;  %v9432_v30 = vmul.f32 0.6931472, %v15013_v25  ;;  %4566 = vlog2.f32 %v15015_v8  ;;  %v9438_v0 = vsel %vm9297_vm3, 1.0, %v13167_v3  ;;  %v9443_v46 = vsel %vm9323_vm0, 1.0, %v13167_v3  ;;  %v15018_v16 = vld [vmem:[#allocation139_spill] sm:$0xff]  ;;  %v15019_v63 = vld [vmem:[#allocation248_spill] sm:$0xff] }
 0x2c9   : > { %v15011_v1 = vsel %vm9427_vm12, 4294967295, %v15010_v1  ;;  %15016 = vst [vmem:[#allocation222_spill] sm:$0xff] %v9438_v0  ;;  %15017 = vst [vmem:[#allocation372_spill] sm:$0xff] %v9443_v46  ;;  %vm15020_vm9 = vcmp.lt.s32.totalorder %v8780_v10, 512  ;;  %vm15021_vm6 = vcmp.gt.f32.partialorder %v14889_v59, 0.0001  ;;  %v9471_v0 = vpop.eup %4550 }
 0x2ca   : > { %15012 = vst [vmem:[#allocation138_spill] sm:$0xff] %v15011_v1  ;;  %15014 = vst [vmem:[#allocation131_spill] sm:$0xff] %v9432_v30  ;;  %v15022_v8 = vmov 0  ;;  %v9458_v25 = vmul.f32 0.6931472, %v8652_v49  ;;  %v15026_v30 = vld [vmem:[#allocation223_spill] sm:$0xff] }
 0x2cb   : > { %vm9453_vm11 = vmand %vm15021_vm6, %vm15020_vm9  ;;  %4568 = vlog2.f32 %v15026_v30  ;;  %v9464_v46 = vsel %vm9349_vm2, 1.0, %v13167_v3  ;;  %v9469_v10 = vsel %vm9375_vm5, 1.0, %v13167_v3  ;;  %v15029_v23 = vld [vmem:[#allocation140_spill] sm:$0xff]  ;;  %v15030_v40 = vld [vmem:[#allocation249_spill] sm:$0xff]  ;;  %vm15031_vm15 = vcmp.lt.s32.totalorder %v8786_v14, 512 }
 0x2cc   : > { %v15023_v8 = vsel %vm9453_vm11, 4294967295, %v15022_v8  ;;  %15025 = vst [vmem:[#allocation373_spill] sm:$0xff] %v9458_v25  ;;  %15027 = vst [vmem:[#allocation223_spill] sm:$0xff] %v9464_v46  ;;  %vm15032_vm14 = vcmp.gt.f32.partialorder %v14901_v22, 0.0001  ;;  %v15033_v49 = vmov 0  ;;  %v9497_v46 = vpop.eup %4552 }
 0x2cd   : > { %15024 = vst [vmem:[#allocation139_spill] sm:$0xff] %v15023_v8  ;;  %15028 = vst [vmem:[#allocation374_spill] sm:$0xff] %v9469_v10  ;;  %v9484_v30 = vmul.f32 0.6931472, %v8658_v33  ;;  %v15037_v25 = vld [vmem:[#allocation224_spill] sm:$0xff]  ;;  %v9490_v10 = vsel %vm9401_vm10, 1.0, %v13167_v3 }
 0x2ce   : > { %vm9479_vm0 = vmand %vm15032_vm14, %vm15031_vm15  ;;  %4570 = vlog2.f32 %v15037_v25  ;;  %15038 = vst [vmem:[#allocation224_spill] sm:$0xff] %v9490_v10  ;;  %v9495_v14 = vsel %vm9427_vm12, 1.0, %v13167_v3  ;;  %v15040_v19 = vld [vmem:[#allocation141_spill] sm:$0xff]  ;;  %v15041_v51 = vld [vmem:[#allocation250_spill] sm:$0xff]  ;;  %vm15042_vm9 = vcmp.lt.s32.totalorder %v8789_v53, 512  ;;  %v15044_v33 = vmov 0  ;;  %v9523_v10 = vpop.eup %4554 }
 0x2cf   : > { %v15034_v49 = vsel %vm9479_vm0, 4294967295, %v15033_v49  ;;  %15036 = vst [vmem:[#allocation375_spill] sm:$0xff] %v9484_v30  ;;  %15039 = vst [vmem:[#allocation376_spill] sm:$0xff] %v9495_v14  ;;  %vm15043_vm6 = vcmp.gt.f32.partialorder %v14912_v12, 0.0001  ;;  %v15048_v30 = vld [vmem:[#allocation225_spill] sm:$0xff] }
 0x2d0   : > { %15035 = vst [vmem:[#allocation140_spill] sm:$0xff] %v15034_v49  ;;  %vm9505_vm5 = vmand %vm15043_vm6, %vm15042_vm9  ;;  %v9510_v25 = vmul.f32 0.6931472, %v8670_v45  ;;  %4572 = vlog2.f32 %v15048_v30  ;;  %v9516_v14 = vsel %vm9453_vm11, 1.0, %v13167_v3  ;;  %v9521_v53 = vsel %vm9479_vm0, 1.0, %v13167_v3  ;;  %v15051_v1 = vld [vmem:[#allocation142_spill] sm:$0xff] }
 0x2d1   : > { %v15045_v33 = vsel %vm9505_vm5, 4294967295, %v15044_v33  ;;  %15049 = vst [vmem:[#allocation225_spill] sm:$0xff] %v9516_v14  ;;  %15050 = vst [vmem:[#allocation377_spill] sm:$0xff] %v9521_v53  ;;  %v15052_v43 = vld [vmem:[#allocation14_spill] sm:$0xff]  ;;  %vm15053_vm15 = vcmp.lt.s32.totalorder %v8792_v4, 512  ;;  %v15055_v45 = vmov 0  ;;  %v9547_v4 = vpop.eup %4556 }
 0x2d2   : > { %15046 = vst [vmem:[#allocation141_spill] sm:$0xff] %v15045_v33  ;;  %15047 = vst [vmem:[#allocation250_spill] sm:$0xff] %v9510_v25  ;;  %vm15054_vm14 = vcmp.gt.f32.partialorder %v14923_v9, 0.0001  ;;  %v15058_v30 = vld [vmem:[#allocation132_spill] sm:$0xff]  ;;  %v15060_v14 = vld [vmem:[#allocation133_spill] sm:$0xff] }
 0x2d3   : > { %vm9531_vm12 = vmand %vm15054_vm14, %vm15053_vm15  ;;  %v9536_v25 = vmul.f32 0.6931472, %v15058_v30  ;;  %v9539_v3 = vmul.f32 0.6931472, %v15060_v14  ;;  %v15062_v53 = vld [vmem:[#allocation226_spill] sm:$0xff]  ;;  %v15063_v49 = vmov 0.0  }
 0x2d4   : > { %v15056_v45 = vsel %vm9531_vm12, 4294967295, %v15055_v45  ;;  %4574 = vlog2.f32 %v15062_v53  ;;  %v9545_v8 = vsel %vm9505_vm5, 1.0, %v15063_v49  ;;  %v15065_v9 = vld [vmem:[#allocation143_spill] sm:$0xff]  ;;  %vm15067_vm9 = vcmp.lt.s32.totalorder %v8798_v20, 512  ;;  %v15072_v53 = vld [vmem:[#allocation134_spill] sm:$0xff]  ;;  %v9571_v20 = vpop.eup %4558  ;;  %v15079_v22 = vld [vmem:[#allocation252_spill] sm:$0xff] }
 0x2d5   : > { %15057 = vst [vmem:[#allocation142_spill] sm:$0xff] %v15056_v45  ;;  %15059 = vst [vmem:[#allocation132_spill] sm:$0xff] %v9536_v25  ;;  %v15066_v12 = vld [vmem:[#allocation251_spill] sm:$0xff]  ;;  %vm15068_vm6 = vcmp.gt.f32.partialorder %v14934_v55, 0.0001  ;;  %v15069_v14 = vmov 0 }
 0x2d6   : > { %15061 = vst [vmem:[#allocation133_spill] sm:$0xff] %v9539_v3  ;;  %15064 = vst [vmem:[#allocation226_spill] sm:$0xff] %v9545_v8  ;;  %v9560_v30 = vmul.f32 0.6931472, %v15072_v53  ;;  %v15074_v3 = vld [vmem:[#allocation135_spill] sm:$0xff]  ;;  %v9569_v33 = vsel %vm9531_vm12, 1.0, %v15063_v49 }
 0x2d7   : > { %vm9555_vm0 = vmand %vm15068_vm6, %vm15067_vm9  ;;  %v9563_v25 = vmul.f32 0.6931472, %v15074_v3  ;;  %v15076_v8 = vld [vmem:[#allocation227_spill] sm:$0xff]  ;;  %v15078_v55 = vld [vmem:[#allocation144_spill] sm:$0xff]  ;;  %vm15080_vm15 = vcmp.lt.s32.totalorder %v8801_v42, 512  ;;  %v15082_v3 = vmov 0  ;;  %v9595_v42 = vpop.eup %4560 }
 0x2d8   : > { %v15070_v14 = vsel %vm9555_vm0, 4294967295, %v15069_v14  ;;  %15073 = vst [vmem:[#allocation134_spill] sm:$0xff] %v9560_v30  ;;  %4576 = vlog2.f32 %v15076_v8  ;;  %15077 = vst [vmem:[#allocation227_spill] sm:$0xff] %v9569_v33  ;;  %vm15081_vm14 = vcmp.gt.f32.partialorder %v14946_v58, 0.0001  ;;  %v15085_v8 = vld [vmem:[#allocation129_spill] sm:$0xff] }
 0x2d9   : > { %15071 = vst [vmem:[#allocation143_spill] sm:$0xff] %v15070_v14  ;;  %15075 = vst [vmem:[#allocation135_spill] sm:$0xff] %v9563_v25  ;;  %v9584_v53 = vmul.f32 0.6931472, %v15085_v8  ;;  %v15087_v25 = vld [vmem:[#allocation167_spill] sm:$0xff]  ;;  %v15089_v33 = vld [vmem:[#allocation228_spill] sm:$0xff] }
 0x2da   : > { %vm9579_vm5 = vmand %vm15081_vm14, %vm15080_vm15  ;;  %v9587_v30 = vmul.f32 0.6931472, %v15087_v25  ;;  %4578 = vlog2.f32 %v15089_v33  ;;  %v9593_v45 = vsel %vm9555_vm0, 1.0, %v15063_v49  ;;  %v15091_v58 = vld [vmem:[#allocation145_spill] sm:$0xff]  ;;  %vm15093_vm9 = vcmp.lt.s32.totalorder %v8804_v35, 512  ;;  %v15098_v33 = vld [vmem:[#allocation168_spill] sm:$0xff]  ;;  %v9619_v35 = vpop.eup %4562 }
 0x2db   : > { %v15083_v3 = vsel %vm9579_vm5, 4294967295, %v15082_v3  ;;  %15086 = vst [vmem:[#allocation129_spill] sm:$0xff] %v9584_v53  ;;  %15090 = vst [vmem:[#allocation228_spill] sm:$0xff] %v9593_v45  ;;  %v15092_v59 = vld [vmem:[#allocation253_spill] sm:$0xff]  ;;  %vm15094_vm6 = vcmp.gt.f32.partialorder %v14957_v38, 0.0001 }
 0x2dc   : > { %15084 = vst [vmem:[#allocation144_spill] sm:$0xff] %v15083_v3  ;;  %15088 = vst [vmem:[#allocation167_spill] sm:$0xff] %v9587_v30  ;;  %v15095_v25 = vmov 0  ;;  %v9608_v8 = vmul.f32 0.6931472, %v15098_v33  ;;  %v15100_v30 = vld [vmem:[#allocation169_spill] sm:$0xff] }
 0x2dd   : > { %vm9603_vm12 = vmand %vm15094_vm6, %vm15093_vm9  ;;  %v9611_v53 = vmul.f32 0.6931472, %v15100_v30  ;;  %v15102_v45 = vld [vmem:[#allocation229_spill] sm:$0xff]  ;;  %v9617_v14 = vsel %vm9579_vm5, 1.0, %v15063_v49  ;;  %v15104_v38 = vld [vmem:[#allocation146_spill] sm:$0xff]  ;;  %vm15106_vm15 = vcmp.lt.s32.totalorder %v8811_v56, 512  ;;  %v9643_v56 = vpop.eup %4564 }
 0x2de   : > { %v15096_v25 = vsel %vm9603_vm12, 4294967295, %v15095_v25  ;;  %15099 = vst [vmem:[#allocation253_spill] sm:$0xff] %v9608_v8  ;;  %4580 = vlog2.f32 %v15102_v45  ;;  %15103 = vst [vmem:[#allocation169_spill] sm:$0xff] %v9617_v14  ;;  %v15105_v54 = vld [vmem:[#allocation15_spill] sm:$0xff]  ;;  %vm15107_vm14 = vcmp.gt.f32.partialorder %v14969_v44, 0.0001 }
 0x2df   : > { %15097 = vst [vmem:[#allocation145_spill] sm:$0xff] %v15096_v25  ;;  %15101 = vst [vmem:[#allocation168_spill] sm:$0xff] %v9611_v53  ;;  %v15108_v30 = vmov 0  ;;  %v9632_v45 = vmul.f32 0.6931472, %v8795_v32  ;;  %v15112_v33 = vld [vmem:[#allocation170_spill] sm:$0xff] }
 0x2e0   : > { %vm9627_vm0 = vmand %vm15107_vm14, %vm15106_vm15  ;;  %v9635_v53 = vmul.f32 0.6931472, %v15112_v33  ;;  %v15114_v8 = vld [vmem:[#allocation230_spill] sm:$0xff]  ;;  %v9641_v14 = vsel %vm9603_vm12, 1.0, %v15063_v49  ;;  %v15116_v3 = vld [vmem:[#allocation147_spill] sm:$0xff]  ;;  %vm15118_vm9 = vcmp.lt.s32.totalorder %v14982_v13, 512  ;;  %v9667_v13 = vpop.eup %4566 }
 0x2e1   : > { %v15109_v30 = vsel %vm9627_vm0, 4294967295, %v15108_v30  ;;  %15111 = vst [vmem:[#allocation146_spill] sm:$0xff] %v9632_v45  ;;  %4582 = vlog2.f32 %v15114_v8  ;;  %15115 = vst [vmem:[#allocation170_spill] sm:$0xff] %v9641_v14  ;;  %v15117_v44 = vld [vmem:[#allocation254_spill] sm:$0xff]  ;;  %vm15119_vm6 = vcmp.gt.f32.partialorder %v14983_v27, 0.0001 }
 0x2e2   : > { %15110 = vst [vmem:[#allocation229_spill] sm:$0xff] %v15109_v30  ;;  %15113 = vst [vmem:[#allocation15_spill] sm:$0xff] %v9635_v53  ;;  %v15120_v32 = vmov 0  ;;  %v15123_v8 = vld [vmem:[#allocation171_spill] sm:$0xff]  ;;  %v15125_v53 = vld [vmem:[#allocation172_spill] sm:$0xff]  ;;  %v9665_v25 = vsel %vm9627_vm0, 1.0, %v15063_v49 }
 0x2e3   : > { %vm9651_vm5 = vmand %vm15119_vm6, %vm15118_vm9  ;;  %v9656_v33 = vmul.f32 0.6931472, %v15123_v8  ;;  %v9659_v45 = vmul.f32 0.6931472, %v15125_v53  ;;  %v15127_v14 = vld [vmem:[#allocation231_spill] sm:$0xff]  ;;  %15128 = vst [vmem:[#allocation171_spill] sm:$0xff] %v9665_v25 }
 0x2e4   : > { %v15121_v32 = vsel %vm9651_vm5, 4294967295, %v15120_v32  ;;  %4584 = vlog2.f32 %v15127_v14  ;;  %v15129_v27 = vld [vmem:[#allocation148_spill] sm:$0xff]  ;;  %v15130_v2 = vld [vmem:[#allocation255_spill] sm:$0xff]  ;;  %vm15131_vm15 = vcmp.lt.s32.totalorder %v14994_v6, 512  ;;  %vm15132_vm14 = vcmp.gt.f32.partialorder %v14995_v61, 0.0001  ;;  %v9691_v6 = vpop.eup %4568 }
 0x2e5   : > { %15122 = vst [vmem:[#allocation230_spill] sm:$0xff] %v15121_v32  ;;  %15124 = vst [vmem:[#allocation147_spill] sm:$0xff] %v9656_v33  ;;  %v15133_v53 = vmov 0  ;;  %v15136_v14 = vld [vmem:[#allocation173_spill] sm:$0xff]  ;;  %v15140_v25 = vld [vmem:[#allocation183_spill] sm:$0xff]  ;;  %v9689_v30 = vsel %vm9651_vm5, 1.0, %v15063_v49 }
 0x2e6   : > { %15126 = vst [vmem:[#allocation254_spill] sm:$0xff] %v9659_v45  ;;  %vm9675_vm12 = vmand %vm15132_vm14, %vm15131_vm15  ;;  %v9680_v8 = vmul.f32 0.6931472, %v15136_v14  ;;  %v15138_v45 = vld [vmem:[#allocation174_spill] sm:$0xff]  ;;  %4586 = vlog2.f32 %v15140_v25  ;;  %v15142_v61 = vld [vmem:[#allocation149_spill] sm:$0xff]  ;;  %vm15144_vm9 = vcmp.lt.s32.totalorder %v15006_v60, 512  ;;  %v9715_v60 = vpop.eup %4570 }
 0x2e7   : > { %v15134_v53 = vsel %vm9675_vm12, 4294967295, %v15133_v53  ;;  %v9683_v33 = vmul.f32 0.6931472, %v15138_v45  ;;  %15141 = vst [vmem:[#allocation255_spill] sm:$0xff] %v9689_v30  ;;  %v15143_v31 = vld [vmem:[#allocation256_spill] sm:$0xff]  ;;  %v15146_v45 = vmov 0 }
 0x2e8   : > { %15135 = vst [vmem:[#allocation172_spill] sm:$0xff] %v15134_v53  ;;  %15137 = vst [vmem:[#allocation231_spill] sm:$0xff] %v9680_v8  ;;  %vm15145_vm6 = vcmp.gt.f32.partialorder %v15007_v29, 0.0001  ;;  %v15149_v25 = vld [vmem:[#allocation177_spill] sm:$0xff]  ;;  %v15153_v30 = vld [vmem:[#allocation184_spill] sm:$0xff] }
 0x2e9   : > { %15139 = vst [vmem:[#allocation148_spill] sm:$0xff] %v9683_v33  ;;  %vm9699_vm0 = vmand %vm15145_vm6, %vm15144_vm9  ;;  %v9704_v14 = vmul.f32 0.6931472, %v15149_v25  ;;  %v15151_v33 = vld [vmem:[#allocation181_spill] sm:$0xff]  ;;  %4588 = vlog2.f32 %v15153_v30  ;;  %v9713_v32 = vsel %vm9675_vm12, 1.0, %v15063_v49  ;;  %v15155_v29 = vld [vmem:[#allocation150_spill] sm:$0xff] }
 0x2ea   : > { %v15147_v45 = vsel %vm9699_vm0, 4294967295, %v15146_v45  ;;  %v9707_v8 = vmul.f32 0.6931472, %v15151_v33  ;;  %15154 = vst [vmem:[#allocation149_spill] sm:$0xff] %v9713_v32  ;;  %v15156_v18 = vld [vmem:[#allocation16_spill] sm:$0xff]  ;;  %vm15157_vm15 = vcmp.lt.s32.totalorder %v15018_v16, 512  ;;  %v9739_v16 = vpop.eup %4572 }
 0x2eb   : > { %15148 = vst [vmem:[#allocation173_spill] sm:$0xff] %v15147_v45  ;;  %15150 = vst [vmem:[#allocation174_spill] sm:$0xff] %v9704_v14  ;;  %vm15158_vm14 = vcmp.gt.f32.partialorder %v15019_v63, 0.0001  ;;  %v15159_v33 = vmov 0  ;;  %v15162_v30 = vld [vmem:[#allocation276_spill] sm:$0xff] }
 0x2ec   : > { %15152 = vst [vmem:[#allocation183_spill] sm:$0xff] %v9707_v8  ;;  %vm9723_vm5 = vmand %vm15158_vm14, %vm15157_vm15  ;;  %v9728_v25 = vmul.f32 0.6931472, %v15162_v30  ;;  %v15164_v8 = vld [vmem:[#allocation285_spill] sm:$0xff]  ;;  %v15166_v32 = vld [vmem:[#allocation232_spill] sm:$0xff]  ;;  %v9737_v53 = vsel %vm9699_vm0, 1.0, %v15063_v49 }
 0x2ed   : > { %v15160_v33 = vsel %vm9723_vm5, 4294967295, %v15159_v33  ;;  %v9731_v14 = vmul.f32 0.6931472, %v15164_v8  ;;  %4590 = vlog2.f32 %v15166_v32  ;;  %15167 = vst [vmem:[#allocation184_spill] sm:$0xff] %v9737_v53  ;;  %v15168_v63 = vld [vmem:[#allocation151_spill] sm:$0xff]  ;;  %v15169_v17 = vld [vmem:[#allocation257_spill] sm:$0xff] }
 0x2ee   : > { %15161 = vst [vmem:[#allocation256_spill] sm:$0xff] %v15160_v33  ;;  %15163 = vst [vmem:[#allocation177_spill] sm:$0xff] %v9728_v25  ;;  %vm15170_vm9 = vcmp.lt.s32.totalorder %v15029_v23, 512  ;;  %vm15171_vm6 = vcmp.gt.f32.partialorder %v15030_v40, 0.0001  ;;  %v15172_v8 = vmov 0  ;;  %v9763_v23 = vpop.eup %4574 }
 0x2ef   : > { %15165 = vst [vmem:[#allocation181_spill] sm:$0xff] %v9731_v14  ;;  %vm9747_vm12 = vmand %vm15171_vm6, %vm15170_vm9  ;;  %v9752_v32 = vmul.f32 0.6931472, %v8909_v62  ;;  %v15176_v30 = vld [vmem:[#allocation299_spill] sm:$0xff]  ;;  %v15178_v25 = vld [vmem:[#allocation185_spill] sm:$0xff]  ;;  %v9761_v53 = vsel %vm9723_vm5, 1.0, %v15063_v49 }
 0x2f0   : > { %v15173_v8 = vsel %vm9747_vm12, 4294967295, %v15172_v8  ;;  %v9755_v14 = vmul.f32 0.6931472, %v15176_v30  ;;  %4592 = vlog2.f32 %v15178_v25  ;;  %15179 = vst [vmem:[#allocation285_spill] sm:$0xff] %v9761_v53  ;;  %v15180_v45 = vld [vmem:[#allocation152_spill] sm:$0xff]  ;;  %v15181_v40 = vld [vmem:[#allocation258_spill] sm:$0xff] }
 0x2f1   : > { %15174 = vst [vmem:[#allocation150_spill] sm:$0xff] %v15173_v8  ;;  %15175 = vst [vmem:[#allocation16_spill] sm:$0xff] %v9752_v32  ;;  %vm15182_vm15 = vcmp.lt.s32.totalorder %v15040_v19, 512  ;;  %vm15183_vm14 = vcmp.gt.f32.partialorder %v15041_v51, 0.0001  ;;  %v15184_v62 = vmov 0  ;;  %v9787_v19 = vpop.eup %4576 }
 0x2f2   : > { %15177 = vst [vmem:[#allocation276_spill] sm:$0xff] %v9755_v14  ;;  %vm9771_vm0 = vmand %vm15183_vm14, %vm15182_vm15  ;;  %v9776_v25 = vmul.f32 0.6931472, %v8945_v48  ;;  %v9779_v30 = vmul.f32 0.6931472, %v8975_v50  ;;  %v15189_v14 = vld [vmem:[#allocation233_spill] sm:$0xff] }
 0x2f3   : > { %v15185_v62 = vsel %vm9771_vm0, 4294967295, %v15184_v62  ;;  %4594 = vlog2.f32 %v15189_v14  ;;  %v9785_v32 = vsel %vm9747_vm12, 1.0, %v15063_v49  ;;  %v15191_v53 = vld [vmem:[#allocation153_spill] sm:$0xff]  ;;  %v15192_v33 = vld [vmem:[#allocation259_spill] sm:$0xff]  ;;  %vm15193_vm9 = vcmp.lt.s32.totalorder %v15051_v1, 512  ;;  %v9811_v1 = vpop.eup %4578 }
 0x2f4   : > { %15186 = vst [vmem:[#allocation232_spill] sm:$0xff] %v15185_v62  ;;  %15187 = vst [vmem:[#allocation151_spill] sm:$0xff] %v9776_v25  ;;  %vm15194_vm6 = vcmp.gt.f32.partialorder %v15052_v43, 0.0001  ;;  %v15195_v50 = vmov 0  ;;  %v9809_v25 = vsel %vm9771_vm0, 1.0, %v15063_v49 }
 0x2f5   : > { %15188 = vst [vmem:[#allocation257_spill] sm:$0xff] %v9779_v30  ;;  %15190 = vst [vmem:[#allocation299_spill] sm:$0xff] %v9785_v32  ;;  %v9800_v48 = vmul.f32 0.6931472, %v9005_v47  ;;  %v9803_v14 = vmul.f32 0.6931472, %v9035_v34 }
 0x2f6   : > { %vm9795_vm5 = vmand %vm15194_vm6, %vm15193_vm9  ;;  %v15200_v30 = vld [vmem:[#allocation186_spill] sm:$0xff]  ;;  %15201 = vst [vmem:[#allocation233_spill] sm:$0xff] %v9809_v25  ;;  %v15203_v8 = vld [vmem:[#allocation17_spill] sm:$0xff]  ;;  %vm15204_vm15 = vcmp.lt.s32.totalorder %v15065_v9, 512  ;;  %vm15205_vm14 = vcmp.gt.f32.partialorder %v15066_v12, 0.0001  ;;  %v9835_v9 = vpop.eup %4580 }
 0x2f7   : > { %v15196_v50 = vsel %vm9795_vm5, 4294967295, %v15195_v50  ;;  %15198 = vst [vmem:[#allocation152_spill] sm:$0xff] %v9800_v48  ;;  %15199 = vst [vmem:[#allocation258_spill] sm:$0xff] %v9803_v14  ;;  %4596 = vlog2.f32 %v15200_v30  ;;  %v15202_v32 = vld [vmem:[#allocation154_spill] sm:$0xff]  ;;  %v15206_v47 = vmov 0  ;;  %v15210_v30 = vld [vmem:[#allocation208_spill] sm:$0xff] }
 0x2f8   : > { %15197 = vst [vmem:[#allocation185_spill] sm:$0xff] %v15196_v50  ;;  %vm9819_vm12 = vmand %vm15205_vm14, %vm15204_vm15  ;;  %v9824_v34 = vmul.f32 0.6931472, %v9065_v5  ;;  %v9827_v14 = vmul.f32 0.6931472, %v15210_v30  ;;  %v15212_v48 = vld [vmem:[#allocation234_spill] sm:$0xff] }
 0x2f9   : > { %v15207_v47 = vsel %vm9819_vm12, 4294967295, %v15206_v47  ;;  %4598 = vlog2.f32 %v15212_v48  ;;  %v9833_v25 = vsel %vm9795_vm5, 1.0, %v15063_v49  ;;  %v15214_v62 = vld [vmem:[#allocation155_spill] sm:$0xff]  ;;  %v15215_v12 = vld [vmem:[#allocation260_spill] sm:$0xff]  ;;  %vm15216_vm9 = vcmp.lt.s32.totalorder %v15078_v55, 512  ;;  %v15221_v48 = vld [vmem:[#allocation209_spill] sm:$0xff]  ;;  %v9859_v55 = vpop.eup %4582 }
 0x2fa   : > { %15208 = vst [vmem:[#allocation153_spill] sm:$0xff] %v15207_v47  ;;  %15209 = vst [vmem:[#allocation259_spill] sm:$0xff] %v9824_v34  ;;  %vm15217_vm6 = vcmp.gt.f32.partialorder %v15079_v22, 0.0001  ;;  %v15218_v5 = vmov 0  ;;  %v9857_v50 = vsel %vm9819_vm12, 1.0, %v15063_v49 }
 0x2fb   : > { %15211 = vst [vmem:[#allocation186_spill] sm:$0xff] %v9827_v14  ;;  %15213 = vst [vmem:[#allocation154_spill] sm:$0xff] %v9833_v25  ;;  %v9848_v30 = vmul.f32 0.6931472, %v15221_v48  ;;  %v15223_v14 = vld [vmem:[#allocation210_spill] sm:$0xff]  ;;  %v15225_v25 = vld [vmem:[#allocation187_spill] sm:$0xff] }
 0x2fc   : > { %vm9843_vm0 = vmand %vm15217_vm6, %vm15216_vm9  ;;  %v9851_v34 = vmul.f32 0.6931472, %v15223_v14  ;;  %4600 = vlog2.f32 %v15225_v25  ;;  %15226 = vst [vmem:[#allocation155_spill] sm:$0xff] %v9857_v50  ;;  %v15227_v22 = vld [vmem:[#allocation156_spill] sm:$0xff]  ;;  %v15228_v43 = vld [vmem:[#allocation261_spill] sm:$0xff]  ;;  %vm15229_vm15 = vcmp.lt.s32.totalorder %v15091_v58, 512  ;;  %v9883_v58 = vpop.eup %4584 }
 0x2fd   : > { %v15219_v5 = vsel %vm9843_vm0, 4294967295, %v15218_v5  ;;  %15222 = vst [vmem:[#allocation208_spill] sm:$0xff] %v9848_v30  ;;  %vm15230_vm14 = vcmp.gt.f32.partialorder %v15092_v59, 0.0001  ;;  %v15231_v14 = vmov 0  ;;  %v9881_v30 = vsel %vm9843_vm0, 1.0, %v15063_v49 }
 0x2fe   : > { %15220 = vst [vmem:[#allocation17_spill] sm:$0xff] %v15219_v5  ;;  %15224 = vst [vmem:[#allocation234_spill] sm:$0xff] %v9851_v34  ;;  %v9872_v25 = vmul.f32 0.6931472, %v9161_v57  ;;  %v9875_v48 = vmul.f32 0.6931472, %v9185_v21 }
 0x2ff   : > { %vm9867_vm5 = vmand %vm15230_vm14, %vm15229_vm15  ;;  %v15236_v34 = vld [vmem:[#allocation235_spill] sm:$0xff]  ;;  %15237 = vst [vmem:[#allocation187_spill] sm:$0xff] %v9881_v30  ;;  %v15238_v50 = vld [vmem:[#allocation157_spill] sm:$0xff]  ;;  %vm15240_vm9 = vcmp.lt.s32.totalorder %v15104_v38, 512  ;;  %vm15241_vm6 = vcmp.gt.f32.partialorder %v15105_v54, 0.0001  ;;  %v9907_v38 = vpop.eup %4586 }
 0x300   : > { %v15232_v14 = vsel %vm9867_vm5, 4294967295, %v15231_v14  ;;  %15234 = vst [vmem:[#allocation209_spill] sm:$0xff] %v9872_v25  ;;  %15235 = vst [vmem:[#allocation210_spill] sm:$0xff] %v9875_v48  ;;  %4602 = vlog2.f32 %v15236_v34  ;;  %v15239_v47 = vld [vmem:[#allocation262_spill] sm:$0xff]  ;;  %v15242_v57 = vmov 0  ;;  %v15247_v48 = vld [vmem:[#allocation188_spill] sm:$0xff] }
 0x301   : > { %15233 = vst [vmem:[#allocation260_spill] sm:$0xff] %v15232_v14  ;;  %vm9891_vm12 = vmand %vm15241_vm6, %vm15240_vm9  ;;  %v9896_v21 = vmul.f32 0.6931472, %v9211_v39  ;;  %v9899_v34 = vmul.f32 0.6931472, %v9237_v26  ;;  %4604 = vlog2.f32 %v15247_v48  ;;  %v9905_v25 = vsel %vm9867_vm5, 1.0, %v15063_v49 }
 0x302   : > { %v15243_v57 = vsel %vm9891_vm12, 4294967295, %v15242_v57  ;;  %15248 = vst [vmem:[#allocation157_spill] sm:$0xff] %v9905_v25  ;;  %v15249_v30 = vld [vmem:[#allocation158_spill] sm:$0xff]  ;;  %vm15251_vm15 = vcmp.lt.s32.totalorder %v15116_v3, 512  ;;  %vm15252_vm14 = vcmp.gt.f32.partialorder %v15117_v44, 0.0001  ;;  %v9931_v3 = vpop.eup %4588 }
 0x303   : > { %15244 = vst [vmem:[#allocation156_spill] sm:$0xff] %v15243_v57  ;;  %15245 = vst [vmem:[#allocation261_spill] sm:$0xff] %v9896_v21  ;;  %v15250_v5 = vld [vmem:[#allocation18_spill] sm:$0xff]  ;;  %v15253_v39 = vmov 0  ;;  %v9920_v26 = vmul.f32 0.6931472, %v9263_v41 }
 0x304   : > { %15246 = vst [vmem:[#allocation235_spill] sm:$0xff] %v9899_v34  ;;  %vm9915_vm0 = vmand %vm15252_vm14, %vm15251_vm15  ;;  %v9923_v48 = vmul.f32 0.6931472, %v9289_v37  ;;  %v15258_v34 = vld [vmem:[#allocation236_spill] sm:$0xff]  ;;  %v9929_v21 = vsel %vm9891_vm12, 1.0, %v15063_v49  ;;  %v15260_v25 = vld [vmem:[#allocation159_spill] sm:$0xff] }
 0x305   : > { %v15254_v39 = vsel %vm9915_vm0, 4294967295, %v15253_v39  ;;  %15256 = vst [vmem:[#allocation188_spill] sm:$0xff] %v9920_v26  ;;  %4606 = vlog2.f32 %v15258_v34  ;;  %15259 = vst [vmem:[#allocation18_spill] sm:$0xff] %v9929_v21  ;;  %v15261_v14 = vld [vmem:[#allocation263_spill] sm:$0xff]  ;;  %vm15262_vm9 = vcmp.lt.s32.totalorder %v15129_v27, 512  ;;  %v15264_v41 = vmov 0  ;;  %v9955_v27 = vpop.eup %4590 }
 0x306   : > { %15255 = vst [vmem:[#allocation262_spill] sm:$0xff] %v15254_v39  ;;  %15257 = vst [vmem:[#allocation158_spill] sm:$0xff] %v9923_v48  ;;  %vm15263_vm6 = vcmp.gt.f32.partialorder %v15130_v2, 0.0001  ;;  %v9944_v37 = vmul.f32 0.6931472, %v9315_v52 }
 0x307   : > { %vm9939_vm5 = vmand %vm15263_vm6, %vm15262_vm9  ;;  %v9947_v34 = vmul.f32 0.6931472, %v9341_v7  ;;  %v15269_v48 = vld [vmem:[#allocation308_spill] sm:$0xff]  ;;  %v9953_v26 = vsel %vm9915_vm0, 1.0, %v15063_v49  ;;  %vm15273_vm15 = vcmp.lt.s32.totalorder %v15142_v61, 512  ;;  %v15275_v52 = vmov 0  ;;  %v9979_v61 = vpop.eup %4592 }
 0x308   : > { %v15265_v41 = vsel %vm9939_vm5, 4294967295, %v15264_v41  ;;  %15267 = vst [vmem:[#allocation159_spill] sm:$0xff] %v9944_v37  ;;  %4608 = vlog2.f32 %v15269_v48  ;;  %15270 = vst [vmem:[#allocation308_spill] sm:$0xff] %v9953_v26  ;;  %v15271_v21 = vld [vmem:[#allocation160_spill] sm:$0xff]  ;;  %vm15274_vm14 = vcmp.gt.f32.partialorder %v15143_v31, 0.0001 }
 0x309   : > { %15266 = vst [vmem:[#allocation236_spill] sm:$0xff] %v15265_v41  ;;  %15268 = vst [vmem:[#allocation263_spill] sm:$0xff] %v9947_v34  ;;  %v15272_v57 = vld [vmem:[#allocation264_spill] sm:$0xff]  ;;  %v9968_v7 = vmul.f32 0.6931472, %v9367_v11  ;;  %v15280_v34 = vld [vmem:[#allocation311_spill] sm:$0xff] }
 0x30a   : > { %vm9963_vm12 = vmand %vm15274_vm14, %vm15273_vm15  ;;  %v9971_v48 = vmul.f32 0.6931472, %v9393_v24  ;;  %4610 = vlog2.f32 %v15280_v34  ;;  %v9977_v37 = vsel %vm9939_vm5, 1.0, %v15063_v49  ;;  %v15282_v26 = vld [vmem:[#allocation161_spill] sm:$0xff]  ;;  %vm15284_vm9 = vcmp.lt.s32.totalorder %v15155_v29, 512  ;;  %v10003_v29 = vpop.eup %4594  ;;  %v15294_v41 = vld [vmem:[#allocation19_spill] sm:$0xff] }
 0x30b   : > { %v15276_v52 = vsel %vm9963_vm12, 4294967295, %v15275_v52  ;;  %15278 = vst [vmem:[#allocation378_spill] sm:$0xff] %v9968_v7  ;;  %15281 = vst [vmem:[#allocation311_spill] sm:$0xff] %v9977_v37  ;;  %v15283_v39 = vld [vmem:[#allocation265_spill] sm:$0xff]  ;;  %vm15285_vm6 = vcmp.gt.f32.partialorder %v15156_v18, 0.0001 }
 0x30c   : > { %15277 = vst [vmem:[#allocation160_spill] sm:$0xff] %v15276_v52  ;;  %15279 = vst [vmem:[#allocation379_spill] sm:$0xff] %v9971_v48  ;;  %v15286_v11 = vmov 0  ;;  %v9992_v24 = vmul.f32 0.6931472, %v9419_v36  ;;  %v15291_v48 = vld [vmem:[#allocation312_spill] sm:$0xff] }
 0x30d   : > { %vm9987_vm0 = vmand %vm15285_vm6, %vm15284_vm9  ;;  %v9995_v34 = vmul.f32 0.6931472, %v9445_v15  ;;  %4612 = vlog2.f32 %v15291_v48  ;;  %v10001_v7 = vsel %vm9963_vm12, 1.0, %v15063_v49  ;;  %v15293_v37 = vld [vmem:[#allocation162_spill] sm:$0xff]  ;;  %vm15295_vm15 = vcmp.lt.s32.totalorder %v15168_v63, 512  ;;  %v10027_v63 = vpop.eup %4596  ;;  %v15524_v52 = vld [vmem:[#allocation44_spill] sm:$0xff] }
 0x30e   : > { %v15287_v11 = vsel %vm9987_vm0, 4294967295, %v15286_v11  ;;  %15289 = vst [vmem:[#allocation380_spill] sm:$0xff] %v9992_v24  ;;  %15292 = vst [vmem:[#allocation312_spill] sm:$0xff] %v10001_v7  ;;  %vm15296_vm14 = vcmp.gt.f32.partialorder %v15169_v17, 0.0001  ;;  %v15297_v36 = vmov 0 }
 0x30f   : > { %15288 = vst [vmem:[#allocation161_spill] sm:$0xff] %v15287_v11  ;;  %15290 = vst [vmem:[#allocation381_spill] sm:$0xff] %v9995_v34  ;;  %v10016_v15 = vmul.f32 0.6931472, %v9471_v0  ;;  %v10019_v48 = vmul.f32 0.6931472, %v9497_v46 }
 0x310   : > { %vm10011_vm5 = vmand %vm15296_vm14, %vm15295_vm15  ;;  %v15302_v34 = vld [vmem:[#allocation314_spill] sm:$0xff]  ;;  %v10025_v24 = vsel %vm9987_vm0, 1.0, %v15063_v49  ;;  %vm15304_vm14 = vcmp.lt.s32.totalorder %v15180_v45, 512  ;;  %vm15305_vm15 = vcmp.gt.f32.partialorder %v15181_v40, 0.0001  ;;  %v15306_v7 = vmov 0  ;;  %v10049_v45 = vpop.eup %4598 }
 0x311   : > { %v15298_v36 = vsel %vm10011_vm5, 4294967295, %v15297_v36  ;;  %15300 = vst [vmem:[#allocation382_spill] sm:$0xff] %v10016_v15  ;;  %15301 = vst [vmem:[#allocation383_spill] sm:$0xff] %v10019_v48  ;;  %4614 = vlog2.f32 %v15302_v34  ;;  %v10038_v0 = vmul.f32 0.6931472, %v9523_v10  ;;  %v15311_v34 = vld [vmem:[#allocation315_spill] sm:$0xff] }
 0x312   : > { %15299 = vst [vmem:[#allocation162_spill] sm:$0xff] %v15298_v36  ;;  %15303 = vst [vmem:[#allocation314_spill] sm:$0xff] %v10025_v24  ;;  %v10041_v46 = vmul.f32 0.6931472, %v9547_v4  ;;  %4616 = vlog2.f32 %v15311_v34  ;;  %v10047_v48 = vsel %vm10011_vm5, 1.0, %v15063_v49  ;;  %v15313_v15 = vld [vmem:[#allocation163_spill] sm:$0xff] }
 0x313   : > { %vm10033_vm9 = vmand %vm15305_vm15, %vm15304_vm14  ;;  %15309 = vst [vmem:[#allocation385_spill] sm:$0xff] %v10038_v0  ;;  %v15314_v24 = vld [vmem:[#allocation266_spill] sm:$0xff]  ;;  %vm15315_vm6 = vcmp.lt.s32.totalorder %v15191_v53, 512  ;;  %vm15316_vm0 = vcmp.gt.f32.partialorder %v15192_v33, 0.0001  ;;  %v15317_v10 = vmov 0  ;;  %v10073_v53 = vpop.eup %4600 }
 0x314   : > { %v15307_v7 = vsel %vm10033_vm9, 4294967295, %v15306_v7  ;;  %15310 = vst [vmem:[#allocation386_spill] sm:$0xff] %v10041_v46  ;;  %15312 = vst [vmem:[#allocation315_spill] sm:$0xff] %v10047_v48  ;;  %v10062_v4 = vmul.f32 0.6931472, %v9571_v20  ;;  %v15322_v46 = vld [vmem:[#allocation316_spill] sm:$0xff] }
 0x315   : > { %15308 = vst [vmem:[#allocation384_spill] sm:$0xff] %v15307_v7  ;;  %vm10057_vm12 = vmand %vm15316_vm0, %vm15315_vm6  ;;  %v10065_v34 = vmul.f32 0.6931472, %v9595_v42  ;;  %4618 = vlog2.f32 %v15322_v46  ;;  %v10071_v0 = vsel %vm10033_vm9, 1.0, %v15063_v49  ;;  %vm15324_vm0 = vcmp.lt.s32.totalorder %v15202_v32, 512  ;;  %v15331_v46 = vld [vmem:[#allocation317_spill] sm:$0xff]  ;;  %v4603_v32 = vpop.eup %4602 }
 0x316   : > { %v15318_v10 = vsel %vm10057_vm12, 4294967295, %v15317_v10  ;;  %15320 = vst [vmem:[#allocation387_spill] sm:$0xff] %v10062_v4  ;;  %15323 = vst [vmem:[#allocation316_spill] sm:$0xff] %v10071_v0  ;;  %vm15325_vm6 = vcmp.gt.f32.partialorder %v15203_v8, 0.0001  ;;  %v15326_v48 = vmov 0  ;;  %4620 = vlog2.f32 %v15331_v46 }
 0x317   : > { %15319 = vst [vmem:[#allocation163_spill] sm:$0xff] %v15318_v10  ;;  %15321 = vst [vmem:[#allocation388_spill] sm:$0xff] %v10065_v34  ;;  %v10084_v20 = vmul.f32 0.6931472, %v9619_v35  ;;  %v10087_v42 = vmul.f32 0.6931472, %v9643_v56 }
 0x318   : > { %vm10079_vm15 = vmand %vm15325_vm6, %vm15324_vm0  ;;  %v10093_v34 = vsel %vm10057_vm12, 1.0, %v15063_v49  ;;  %v15333_v4 = vld [vmem:[#allocation164_spill] sm:$0xff]  ;;  %v15334_v0 = vld [vmem:[#allocation267_spill] sm:$0xff]  ;;  %vm15335_vm6 = vcmp.lt.s32.totalorder %v15214_v62, 512  ;;  %vm15336_vm9 = vcmp.gt.f32.partialorder %v15215_v12, 0.0001  ;;  %v10117_v62 = vpop.eup %4604 }
 0x319   : > { %v15327_v48 = vsel %vm10079_vm15, 4294967295, %v15326_v48  ;;  %15329 = vst [vmem:[#allocation390_spill] sm:$0xff] %v10084_v20  ;;  %15330 = vst [vmem:[#allocation391_spill] sm:$0xff] %v10087_v42  ;;  %v15337_v35 = vmov 0  ;;  %v10106_v56 = vmul.f32 0.6931472, %v9667_v13 }
 0x31a   : > { %15328 = vst [vmem:[#allocation389_spill] sm:$0xff] %v15327_v48  ;;  %15332 = vst [vmem:[#allocation317_spill] sm:$0xff] %v10093_v34  ;;  %v10109_v46 = vmul.f32 0.6931472, %v9691_v6  ;;  %v15342_v42 = vld [vmem:[#allocation318_spill] sm:$0xff]  ;;  %v10115_v20 = vsel %vm10079_vm15, 1.0, %v15063_v49 }
 0x31b   : > { %vm10101_vm5 = vmand %vm15336_vm9, %vm15335_vm6  ;;  %15340 = vst [vmem:[#allocation392_spill] sm:$0xff] %v10106_v56  ;;  %4622 = vlog2.f32 %v15342_v42  ;;  %v15344_v34 = vld [vmem:[#allocation165_spill] sm:$0xff]  ;;  %v15345_v10 = vld [vmem:[#allocation268_spill] sm:$0xff]  ;;  %vm15346_vm0 = vcmp.lt.s32.totalorder %v15227_v22, 512  ;;  %vm15347_vm14 = vcmp.gt.f32.partialorder %v15228_v43, 0.0001  ;;  %v4607_v22 = vpop.eup %4606 }
 0x31c   : > { %v15338_v35 = vsel %vm10101_vm5, 4294967295, %v15337_v35  ;;  %15341 = vst [vmem:[#allocation393_spill] sm:$0xff] %v10109_v46  ;;  %15343 = vst [vmem:[#allocation318_spill] sm:$0xff] %v10115_v20  ;;  %v15348_v13 = vmov 0  ;;  %v10130_v6 = vmul.f32 0.6931472, %v9715_v60 }
 0x31d   : > { %15339 = vst [vmem:[#allocation164_spill] sm:$0xff] %v15338_v35  ;;  %vm10125_vm12 = vmand %vm15347_vm14, %vm15346_vm0  ;;  %v10133_v42 = vmul.f32 0.6931472, %v9739_v16  ;;  %v15353_v46 = vld [vmem:[#allocation319_spill] sm:$0xff]  ;;  %v10139_v56 = vsel %vm10101_vm5, 1.0, %v15063_v49  ;;  %vm15355_vm6 = vcmp.lt.s32.totalorder %v15238_v50, 512  ;;  %v4609_v50 = vpop.eup %4608 }
 0x31e   : > { %v15349_v13 = vsel %vm10125_vm12, 4294967295, %v15348_v13  ;;  %15351 = vst [vmem:[#allocation394_spill] sm:$0xff] %v10130_v6  ;;  %4624 = vlog2.f32 %v15353_v46  ;;  %15354 = vst [vmem:[#allocation319_spill] sm:$0xff] %v10139_v56  ;;  %vm15356_vm14 = vcmp.gt.f32.partialorder %v15239_v47, 0.0001  ;;  %v15357_v20 = vmov 0 }
 0x31f   : > { %15350 = vst [vmem:[#allocation165_spill] sm:$0xff] %v15349_v13  ;;  %15352 = vst [vmem:[#allocation395_spill] sm:$0xff] %v10133_v42  ;;  %v10150_v60 = vmul.f32 0.6931472, %v9763_v23  ;;  %v10153_v16 = vmul.f32 0.6931472, %v9787_v19 }
 0x320   : > { %vm10145_vm0 = vmand %vm15356_vm14, %vm15355_vm6  ;;  %v15362_v46 = vld [vmem:[#allocation320_spill] sm:$0xff]  ;;  %v10159_v42 = vsel %vm10125_vm12, 1.0, %v15063_v49  ;;  %vm15364_vm9 = vcmp.lt.s32.totalorder %v15249_v30, 512  ;;  %vm15365_vm6 = vcmp.gt.f32.partialorder %v15250_v5, 0.0001  ;;  %v15366_v6 = vmov 0  ;;  %v4611_v30 = vpop.eup %4610 }
 0x321   : > { %v15358_v20 = vsel %vm10145_vm0, 4294967295, %v15357_v20  ;;  %15360 = vst [vmem:[#allocation397_spill] sm:$0xff] %v10150_v60  ;;  %15361 = vst [vmem:[#allocation398_spill] sm:$0xff] %v10153_v16  ;;  %4626 = vlog2.f32 %v15362_v46  ;;  %v10170_v23 = vmul.f32 0.6931472, %v9811_v1  ;;  %v15371_v46 = vld [vmem:[#allocation321_spill] sm:$0xff] }
 0x322   : > { %15359 = vst [vmem:[#allocation396_spill] sm:$0xff] %v15358_v20  ;;  %15363 = vst [vmem:[#allocation320_spill] sm:$0xff] %v10159_v42  ;;  %v10173_v19 = vmul.f32 0.6931472, %v9835_v9  ;;  %4628 = vlog2.f32 %v15371_v46  ;;  %v10179_v16 = vsel %vm10145_vm0, 1.0, %v15063_v49  ;;  %vm15373_vm12 = vcmp.lt.s32.totalorder %v15260_v25, 512 }
 0x323   : > { %vm10165_vm14 = vmand %vm15365_vm6, %vm15364_vm9  ;;  %15369 = vst [vmem:[#allocation400_spill] sm:$0xff] %v10170_v23  ;;  %vm15374_vm9 = vcmp.gt.f32.partialorder %v15261_v14, 0.0001  ;;  %v15375_v60 = vmov 0  ;;  %v10190_v1 = vmul.f32 0.6931472, %v9859_v55  ;;  %v4613_v23 = vpop.eup %4612 }
 0x324   : > { %v15367_v6 = vsel %vm10165_vm14, 4294967295, %v15366_v6  ;;  %15370 = vst [vmem:[#allocation401_spill] sm:$0xff] %v10173_v19  ;;  %15372 = vst [vmem:[#allocation321_spill] sm:$0xff] %v10179_v16  ;;  %v10193_v9 = vmul.f32 0.6931472, %v9883_v58  ;;  %v15381_v19 = vld [vmem:[#allocation323_spill] sm:$0xff] }
 0x325   : > { %15368 = vst [vmem:[#allocation399_spill] sm:$0xff] %v15367_v6  ;;  %vm10185_vm6 = vmand %vm15374_vm9, %vm15373_vm12  ;;  %v10196_v46 = vmul.f32 0.6931472, %v9907_v38  ;;  %4630 = vlog2.f32 %v15381_v19  ;;  %v15382_v16 = vld [vmem:[#allocation166_spill] sm:$0xff]  ;;  %v15383_v25 = vld [vmem:[#allocation20_spill] sm:$0xff]  ;;  %vm15384_vm12 = vcmp.lt.s32.totalorder %v15271_v21, 512 }
 0x326   : > { %v15376_v60 = vsel %vm10185_vm6, 4294967295, %v15375_v60  ;;  %15378 = vst [vmem:[#allocation403_spill] sm:$0xff] %v10190_v1  ;;  %15379 = vst [vmem:[#allocation404_spill] sm:$0xff] %v10193_v9  ;;  %vm15385_vm9 = vcmp.gt.f32.partialorder %v15272_v57, 0.0001  ;;  %v15386_v55 = vmov 0 }
 0x327   : > { %15377 = vst [vmem:[#allocation402_spill] sm:$0xff] %v15376_v60  ;;  %15380 = vst [vmem:[#allocation405_spill] sm:$0xff] %v10196_v46  ;;  %v10210_v58 = vmul.f32 0.6931472, %v9931_v3  ;;  %v10213_v38 = vmul.f32 0.6931472, %v9955_v27  ;;  %v4615_v46 = vpop.eup %4614 }
 0x328   : > { %vm10205_vm15 = vmand %vm15385_vm9, %vm15384_vm12  ;;  %v10218_v19 = vsel %vm10165_vm14, 1.0, %v15063_v49  ;;  %v10223_v21 = vsel %vm10185_vm6, 1.0, %v15063_v49  ;;  %vm15393_vm12 = vcmp.lt.s32.totalorder %v15282_v26, 512  ;;  %vm15394_vm9 = vcmp.gt.f32.partialorder %v15283_v39, 0.0001  ;;  %v4617_v1 = vpop.eup %4616  ;;  %v15446_v56 = vld [vmem:[#allocation180_spill] sm:$0xff] }
 0x329   : > { %v15387_v55 = vsel %vm10205_vm15, 4294967295, %v15386_v55  ;;  %15389 = vst [vmem:[#allocation166_spill] sm:$0xff] %v10210_v58  ;;  %15390 = vst [vmem:[#allocation406_spill] sm:$0xff] %v10213_v38  ;;  %v15395_v3 = vmov 0  ;;  %v10234_v27 = vmul.f32 0.6931472, %v9979_v61 }
 0x32a   : > { %15388 = vst [vmem:[#allocation323_spill] sm:$0xff] %v15387_v55  ;;  %15391 = vst [vmem:[#allocation407_spill] sm:$0xff] %v10218_v19  ;;  %v2442_v38 = vmul.f32 0.6931472, %v4609_v50  ;;  %v15399_v58 = vld [vmem:[#allocation324_spill] sm:$0xff]  ;;  %v10240_v9 = vsel %vm10205_vm15, 1.0, %v15063_v49 }
 0x32b   : > { %15392 = vst [vmem:[#allocation408_spill] sm:$0xff] %v10223_v21  ;;  %vm10229_vm5 = vmand %vm15394_vm9, %vm15393_vm12  ;;  %4632 = vlog2.f32 %v15399_v58  ;;  %vm15401_vm0 = vcmp.lt.s32.totalorder %v15293_v37, 512  ;;  %vm15402_vm6 = vcmp.gt.f32.partialorder %v15294_v41, 0.0001  ;;  %v15403_v26 = vmov 0  ;;  %v15411_v19 = vld [vmem:[#allocation326_spill] sm:$0xff] }
 0x32c   : > { %v15396_v3 = vsel %vm10229_vm5, 4294967295, %v15395_v3  ;;  %15398 = vst [vmem:[#allocation410_spill] sm:$0xff] %v10234_v27  ;;  %15400 = vst [vmem:[#allocation324_spill] sm:$0xff] %v10240_v9  ;;  %v10251_v61 = vmul.f32 0.6931472, %v10003_v29  ;;  %v15407_v27 = vld [vmem:[#allocation325_spill] sm:$0xff]  ;;  %v4619_v9 = vpop.eup %4618 }
 0x32d   : > { %15397 = vst [vmem:[#allocation409_spill] sm:$0xff] %v15396_v3  ;;  %vm10246_vm12 = vmand %vm15402_vm6, %vm15401_vm0  ;;  %v2444_v50 = vmul.f32 0.6931472, %v4611_v30  ;;  %4634 = vlog2.f32 %v15407_v27  ;;  %v10257_v58 = vsel %vm10229_vm5, 1.0, %v15063_v49  ;;  %v10260_v37 = vmul.f32 0.6931472, %v10027_v63  ;;  %v4621_v30 = vpop.eup %4620 }
 0x32e   : > { %v15404_v26 = vsel %vm10246_vm12, 4294967295, %v15403_v26  ;;  %15406 = vst [vmem:[#allocation412_spill] sm:$0xff] %v10251_v61  ;;  %15408 = vst [vmem:[#allocation325_spill] sm:$0xff] %v10257_v58  ;;  %v10263_v21 = vmul.f32 0.6931472, %v10049_v45  ;;  %4636 = vlog2.f32 %v15411_v19  ;;  %v10269_v29 = vsel %vm10246_vm12, 1.0, %v15063_v49 }
 0x32f   : > { %15405 = vst [vmem:[#allocation411_spill] sm:$0xff] %v15404_v26  ;;  %15409 = vst [vmem:[#allocation413_spill] sm:$0xff] %v10260_v37  ;;  %vm15413_vm0 = vcmp.lt.s32.totalorder %v15313_v15, 512  ;;  %vm15414_vm6 = vcmp.gt.f32.partialorder %v15314_v24, 0.0001  ;;  %v15415_v27 = vmov 0  ;;  %4638 = vlog2.f32 %v14747_v28 }
 0x330   : > { %15410 = vst [vmem:[#allocation414_spill] sm:$0xff] %v10263_v21  ;;  %15412 = vst [vmem:[#allocation326_spill] sm:$0xff] %v10269_v29  ;;  %v10280_v63 = vmul.f32 0.6931472, %v10073_v53  ;;  %v10282_v45 = vmul.f32 0.6931472, %v4603_v32  ;;  %v4623_v21 = vpop.eup %4622 }
 0x331   : > { %vm10275_vm9 = vmand %vm15414_vm6, %vm15413_vm0  ;;  %v2446_v19 = vmul.f32 0.6931472, %v4613_v23  ;;  %v2448_v37 = vmul.f32 0.6931472, %v4615_v46  ;;  %v15420_v61 = vld [vmem:[#allocation328_spill] sm:$0xff]  ;;  %v15421_v29 = vld [vmem:[#allocation175_spill] sm:$0xff]  ;;  %v4625_v42 = vpop.eup %4624 }
 0x332   : > { %v15416_v27 = vsel %vm10275_vm9, 4294967295, %v15415_v27  ;;  %15418 = vst [vmem:[#allocation416_spill] sm:$0xff] %v10280_v63  ;;  %15419 = vst [vmem:[#allocation417_spill] sm:$0xff] %v10282_v45  ;;  %4640 = vlog2.f32 %v15420_v61  ;;  %v2697_v15 = vsub.f32 %v15421_v29, %v2442_v38  ;;  %v10290_v58 = vsel %vm10275_vm9, 1.0, %v15063_v49  ;;  %v15429_v23 = vld [vmem:[#allocation329_spill] sm:$0xff]  ;;  %v15430_v46 = vld [vmem:[#allocation176_spill] sm:$0xff]  ;;  %v4627_v61 = vpop.eup %4626 }
 0x333   : > { %15417 = vst [vmem:[#allocation415_spill] sm:$0xff] %v15416_v27  ;;  %15422 = vst [vmem:[#allocation328_spill] sm:$0xff] %v10290_v58  ;;  %vm15423_vm0 = vcmp.lt.s32.totalorder %v15333_v4, 512  ;;  %vm15424_vm6 = vcmp.gt.f32.partialorder %v15334_v0, 0.0001  ;;  %v15425_v53 = vmov 0  ;;  %4642 = vlog2.f32 %v15429_v23 }
 0x334   : > { %vm10296_vm12 = vmand %vm15424_vm6, %vm15423_vm0  ;;  %v10301_v28 = vmul.f32 0.6931472, %v10117_v62  ;;  %v2450_v32 = vmul.f32 0.6931472, %v4617_v1  ;;  %v2698_v38 = vsub.f32 %v15430_v46, %v2444_v50  ;;  %vm15431_vm9 = vcmp.lt.s32.totalorder %v15344_v34, 512  ;;  %v15437_v62 = vld [vmem:[#allocation330_spill] sm:$0xff]  ;;  %v4629_v1 = vpop.eup %4628 }
 0x335   : > { %v15426_v53 = vsel %vm10296_vm12, 4294967295, %v15425_v53  ;;  %vm15432_vm5 = vcmp.gt.f32.partialorder %v15345_v10, 0.0001  ;;  %v15433_v4 = vmov 0  ;;  %v10313_v29 = vmul.f32 0.6931472, %v4607_v22  ;;  %v4631_v22 = vpop.eup %4630 }
 0x336   : > { %15427 = vst [vmem:[#allocation175_spill] sm:$0xff] %v15426_v53  ;;  %15428 = vst [vmem:[#allocation418_spill] sm:$0xff] %v10301_v28  ;;  %v2452_v45 = vmul.f32 0.6931472, %v4619_v9  ;;  %v2454_v63 = vmul.f32 0.6931472, %v4621_v30  ;;  %4644 = vlog2.f32 %v15437_v62  ;;  %v2701_v53 = vsub.f32 %v15446_v56, %v2450_v32 }
 0x337   : > { %vm10309_vm15 = vmand %vm15432_vm5, %vm15431_vm9  ;;  %15436 = vst [vmem:[#allocation176_spill] sm:$0xff] %v10313_v29  ;;  %v15438_v28 = vld [vmem:[#allocation331_spill] sm:$0xff]  ;;  %v15439_v23 = vld [vmem:[#allocation178_spill] sm:$0xff]  ;;  %v10321_v34 = vsel %vm10296_vm12, 1.0, %v15063_v49  ;;  %v2456_v9 = vmul.f32 0.6931472, %v4623_v21 }
 0x338   : > { %v15434_v4 = vsel %vm10309_vm15, 4294967295, %v15433_v4  ;;  %4646 = vlog2.f32 %v15438_v28  ;;  %v2699_v50 = vsub.f32 %v15439_v23, %v2446_v19  ;;  %15440 = vst [vmem:[#allocation330_spill] sm:$0xff] %v10321_v34  ;;  %v10326_v46 = vsel %vm10309_vm15, 1.0, %v15063_v49  ;;  %v15442_v30 = vld [vmem:[#allocation332_spill] sm:$0xff]  ;;  %v15443_v62 = vld [vmem:[#allocation179_spill] sm:$0xff]  ;;  %v15444_v58 = vld [vmem:[#allocation302_spill] sm:$0xff] }
 0x339   : > { %15435 = vst [vmem:[#allocation329_spill] sm:$0xff] %v15434_v4  ;;  %15441 = vst [vmem:[#allocation331_spill] sm:$0xff] %v10326_v46  ;;  %4648 = vlog2.f32 %v15442_v30  ;;  %v2700_v29 = vsub.f32 %v15443_v62, %v2448_v37  ;;  %vm15445_vm5 = vnez %v15444_v58  ;;  %v2458_v19 = vmul.f32 0.6931472, %v4625_v42  ;;  %v4633_v4 = vpop.eup %4632  ;;  %v15453_v58 = vld [vmem:[#allocation333_spill] sm:$0xff]  ;;  %v15454_v37 = vld [vmem:[#allocation182_spill] sm:$0xff] }
 0x33a   : > { %v10332_v28 = vsel %vm15445_vm5, %v2697_v15, 0.0  ;;  %v2460_v23 = vmul.f32 0.6931472, %v4627_v61  ;;  %v10337_v27 = vsel %vm8953_vm1, %v2698_v38, 0.0  ;;  %vm15448_vm9 = vcmp.lt.s32.totalorder %v15382_v16, 512  ;;  %v15455_v15 = vld [vmem:[#allocation198_spill] sm:$0xff]  ;;  %v4635_v32 = vpop.eup %4634 }
 0x33b   : > { %vm15449_vm0 = vcmp.gt.f32.partialorder %v15383_v25, 0.0001  ;;  %v15450_v21 = vmov 0  ;;  %4650 = vlog2.f32 %v15453_v58  ;;  %v2702_v42 = vsub.f32 %v15454_v37, %v2452_v45  ;;  %v15456_v30 = vld [vmem:[#allocation39_spill] sm:$0xff]  ;;  %v4637_v58 = vpop.eup %4636  ;;  %v15459_v46 = vld [vmem:[#allocation237_spill] sm:$0xff]  ;;  %v15476_v20 = vld [vmem:[#allocation240_spill] sm:$0xff] }
 0x33c   : > { %vm10343_vm6 = vmand %vm15449_vm0, %vm15448_vm9  ;;  %v2703_v61 = vsub.f32 %v15455_v15, %v2454_v63  ;;  %v3210_v56 = vadd.f32 %v10337_v27, %v10332_v28  ;;  %v2462_v38 = vmul.f32 0.6931472, %v4629_v1  ;;  %v2464_v34 = vmul.f32 0.6931472, %v4631_v22  ;;  %v15460_v45 = vld [vmem:[#allocation273_spill] sm:$0xff]  ;;  %v4639_v22 = vpop.eup %4638  ;;  %v15463_v3 = vld [vmem:[#allocation199_spill] sm:$0xff] }
 0x33d   : > { %v15451_v21 = vsel %vm10343_vm6, 4294967295, %v15450_v21  ;;  %vm15457_vm1 = vnez %v15456_v30  ;;  %v10359_v62 = vsel %vm10343_vm6, 1.0, %v15063_v49  ;;  %4652 = vlog2.f32 %v15459_v46  ;;  %v4641_v49 = vpop.eup %4640  ;;  %v15466_v46 = vld [vmem:[#allocation238_spill] sm:$0xff]  ;;  %v15478_v13 = vld [vmem:[#allocation351_spill] sm:$0xff]  ;;  %v15484_v35 = vld [vmem:[#allocation352_spill] sm:$0xff] }
 0x33e   : > { %15452 = vst [vmem:[#allocation178_spill] sm:$0xff] %v15451_v21  ;;  %v10354_v16 = vsel %vm15457_vm1, %v2699_v50, 0.0  ;;  %15458 = vst [vmem:[#allocation332_spill] sm:$0xff] %v10359_v62  ;;  %v2704_v63 = vsub.f32 %v15460_v45, %v2456_v9  ;;  %v10365_v15 = vsel %vm8983_vm4, %v2700_v29, 0.0  ;;  %v2466_v30 = vmul.f32 0.6931472, %v4633_v4 }
 0x33f   : > { %v3211_v1 = vadd.f32 %v3210_v56, %v10354_v16  ;;  %v15462_v50 = vld [vmem:[#allocation279_spill] sm:$0xff]  ;;  %v2706_v55 = vsub.f32 %v15463_v3, %v2460_v23  ;;  %v15464_v21 = vld [vmem:[#allocation204_spill] sm:$0xff]  ;;  %4654 = vlog2.f32 %v15466_v46  ;;  %v15467_v9 = vld [vmem:[#allocation205_spill] sm:$0xff]  ;;  %v2468_v37 = vmul.f32 0.6931472, %v4635_v32 }
 0x340   : > { %v2705_v26 = vsub.f32 %v15462_v50, %v2458_v19  ;;  %vm15465_vm5 = vnez %v15464_v21  ;;  %vm15468_vm9 = vnez %v15467_v9  ;;  %v15469_v29 = vld [vmem:[#allocation350_spill] sm:$0xff]  ;;  %v4643_v19 = vpop.eup %4642  ;;  %v15471_v3 = vld [vmem:[#allocation239_spill] sm:$0xff]  ;;  %v15473_v21 = vld [vmem:[#allocation288_spill] sm:$0xff]  ;;  %v2470_v46 = vmul.f32 0.6931472, %v4637_v58 }
 0x341   : > { %v10372_v62 = vsel %vm15465_vm5, %v2701_v53, 0.0  ;;  %v10377_v45 = vsel %vm15468_vm9, %v2702_v42, 0.0  ;;  %vm15470_vm4 = vnez %v15469_v29  ;;  %v3212_v4 = vadd.f32 %v3211_v1, %v10365_v15  ;;  %v15472_v23 = vld [vmem:[#allocation282_spill] sm:$0xff]  ;;  %v4645_v60 = vpop.eup %4644  ;;  %v15477_v1 = vld [vmem:[#allocation200_spill] sm:$0xff]  ;;  %v15511_v11 = vld [vmem:[#allocation247_spill] sm:$0xff] }
 0x342   : > { %v10381_v56 = vsel %vm15470_vm4, %v2703_v61, 0.0  ;;  %4656 = vlog2.f32 %v15471_v3  ;;  %v2707_v53 = vsub.f32 %v15472_v23, %v2462_v38  ;;  %v2708_v50 = vsub.f32 %v15473_v21, %v2464_v34  ;;  %v15474_v9 = vld [vmem:[#allocation206_spill] sm:$0xff]  ;;  %v4647_v29 = vpop.eup %4646  ;;  %v15480_v38 = vld [vmem:[#allocation207_spill] sm:$0xff] }
 0x343   : > { %v2472_v6 = vmul.f32 0.6931472, %v4639_v22  ;;  %vm15475_vm0 = vnez %v15474_v9  ;;  %v3213_v61 = vadd.f32 %v3212_v4, %v10372_v62  ;;  %4658 = vlog2.f32 %v15476_v20  ;;  %v4649_v58 = vpop.eup %4648  ;;  %v15483_v9 = vld [vmem:[#allocation291_spill] sm:$0xff]  ;;  %v15529_v24 = vld [vmem:[#allocation58_spill] sm:$0xff] }
 0x344   : > { %v10389_v42 = vsel %vm15475_vm0, %v2704_v63, 0.0  ;;  %v2709_v32 = vsub.f32 %v15477_v1, %v2466_v30  ;;  %vm15479_vm1 = vnez %v15478_v13  ;;  %vm15481_vm5 = vnez %v15480_v38  ;;  %v15482_v63 = vld [vmem:[#allocation241_spill] sm:$0xff]  ;;  %v15488_v1 = vld [vmem:[#allocation11_spill] sm:$0xff] }
 0x345   : > { %v10396_v3 = vsel %vm15479_vm1, %v2705_v26, 0.0  ;;  %v10400_v34 = vsel %vm15481_vm5, %v2706_v55, 0.0  ;;  %v2474_v22 = vmul.f32 0.6931472, %v4641_v49  ;;  %v2476_v23 = vmul.f32 0.6931472, %v4643_v19  ;;  %v4651_v55 = vpop.eup %4650 }
 0x346   : > { %4660 = vlog2.f32 %v15482_v63  ;;  %v3214_v4 = vadd.f32 %v3213_v61, %v10377_v45  ;;  %v2478_v21 = vmul.f32 0.6931472, %v4645_v60  ;;  %v2710_v20 = vsub.f32 %v15483_v9, %v2468_v37  ;;  %v15486_v13 = vld [vmem:[#allocation353_spill] sm:$0xff]  ;;  %v15489_v49 = vld [vmem:[#allocation296_spill] sm:$0xff]  ;;  %v15491_v37 = vld [vmem:[#allocation242_spill] sm:$0xff] }
 0x347   : > { %vm15485_vm9 = vnez %v15484_v35  ;;  %vm15487_vm4 = vnez %v15486_v13  ;;  %4662 = vlog2.f32 %v15488_v1  ;;  %v2711_v19 = vsub.f32 %v15489_v49, %v2470_v46  ;;  %v15490_v38 = vld [vmem:[#allocation201_spill] sm:$0xff]  ;;  %v15492_v35 = vld [vmem:[#allocation354_spill] sm:$0xff]  ;;  %v4653_v9 = vpop.eup %4652  ;;  %v15495_v13 = vld [vmem:[#allocation327_spill] sm:$0xff] }
 0x348   : > { %v10407_v30 = vsel %vm15485_vm9, %v2707_v53, 0.0  ;;  %v10411_v26 = vsel %vm15487_vm4, %v2708_v50, 0.0  ;;  %v2712_v63 = vsub.f32 %v15490_v38, %v2472_v6  ;;  %v3215_v61 = vadd.f32 %v3214_v4, %v10381_v56  ;;  %v15494_v50 = vld [vmem:[#allocation243_spill] sm:$0xff]  ;;  %v15496_v1 = vld [vmem:[#allocation305_spill] sm:$0xff]  ;;  %v15497_v49 = vld [vmem:[#allocation244_spill] sm:$0xff] }
 0x349   : > { %v2480_v60 = vmul.f32 0.6931472, %v4647_v29  ;;  %v2482_v48 = vmul.f32 0.6931472, %v4649_v58  ;;  %4664 = vlog2.f32 %v15491_v37  ;;  %vm15493_vm0 = vnez %v15492_v35  ;;  %v15498_v29 = vld [vmem:[#allocation202_spill] sm:$0xff]  ;;  %v15500_v37 = vld [vmem:[#allocation12_spill] sm:$0xff] }
 0x34a   : > { %v10420_v53 = vsel %vm15493_vm0, %v2709_v32, 0.0  ;;  %4666 = vlog2.f32 %v15494_v50  ;;  %v2713_v7 = vsub.f32 %v15495_v13, %v2474_v22  ;;  %v2714_v36 = vsub.f32 %v15496_v1, %v2476_v23  ;;  %v4655_v32 = vpop.eup %4654  ;;  %v15501_v35 = vld [vmem:[#allocation211_spill] sm:$0xff]  ;;  %v15505_v1 = vld [vmem:[#allocation309_spill] sm:$0xff]  ;;  %v15507_v4 = vld [vmem:[#allocation246_spill] sm:$0xff] }
 0x34b   : > { %v3216_v46 = vadd.f32 %v3215_v61, %v10389_v42  ;;  %v2484_v6 = vmul.f32 0.6931472, %v4651_v55  ;;  %4668 = vlog2.f32 %v15497_v49  ;;  %v2715_v58 = vsub.f32 %v15498_v29, %v2478_v21  ;;  %v15504_v21 = vld [vmem:[#allocation245_spill] sm:$0xff]  ;;  %v15506_v49 = vld [vmem:[#allocation203_spill] sm:$0xff] }
 0x34c   : > { %v10430_v38 = vsel %vm14978_vm7, %v2710_v20, 0.0  ;;  %4670 = vlog2.f32 %v15500_v37  ;;  %vm15502_vm1 = vnez %v15501_v35  ;;  %v10439_v23 = vsel %vm9193_vm8, %v2712_v63, 0.0  ;;  %v4657_v61 = vpop.eup %4656  ;;  %v15508_v37 = vld [vmem:[#allocation358_spill] sm:$0xff] }
 0x34d   : > { %v10435_v50 = vsel %vm15502_vm1, %v2711_v19, 0.0  ;;  %v3217_v55 = vadd.f32 %v3216_v46, %v10396_v3  ;;  %v2486_v13 = vmul.f32 0.6931472, %v4653_v9  ;;  %4672 = vlog2.f32 %v15504_v21  ;;  %v4659_v22 = vpop.eup %4658  ;;  %v15512_v21 = vld [vmem:[#allocation40_spill] sm:$0xff] }
 0x34e   : > { %v2716_v20 = vsub.f32 %v15505_v1, %v2480_v60  ;;  %v2717_v29 = vsub.f32 %v15506_v49, %v2482_v48  ;;  %4674 = vlog2.f32 %v15507_v4  ;;  %vm15509_vm7 = vnez %v15508_v37  ;;  %v15513_v1 = vld [vmem:[#allocation362_spill] sm:$0xff]  ;;  %v15515_v37 = vld [vmem:[#allocation13_spill] sm:$0xff] }
 0x34f   : > { %v10448_v19 = vsel %vm15509_vm7, %v2713_v7, 0.0  ;;  %v10452_v63 = vsel %vm9245_vm13, %v2714_v36, 0.0  ;;  %v3218_v46 = vadd.f32 %v3217_v55, %v10400_v34  ;;  %v2488_v9 = vmul.f32 0.6931472, %v4655_v32  ;;  %v15516_v32 = vld [vmem:[#allocation41_spill] sm:$0xff] }
 0x350   : > { %4676 = vlog2.f32 %v15511_v11  ;;  %v2718_v60 = vsub.f32 %v15512_v21, %v2484_v6  ;;  %vm15514_vm8 = vnez %v15513_v1  ;;  %v4661_v49 = vpop.eup %4660  ;;  %v2490_v4 = vmul.f32 0.6931472, %v4657_v61  ;;  %v15520_v1 = vld [vmem:[#allocation248_spill] sm:$0xff] }
 0x351   : > { %v10459_v48 = vsel %vm15514_vm8, %v2715_v58, 0.0  ;;  %v3219_v7 = vadd.f32 %v3218_v46, %v10407_v30  ;;  %v3341_v36 = vmul.f32 %v10332_v28, %v10332_v28  ;;  %v3342_v55 = vmul.f32 %v10337_v27, %v10337_v27  ;;  %v15518_v58 = vld [vmem:[#allocation366_spill] sm:$0xff]  ;;  %v4663_v61 = vpop.eup %4662 }
 0x352   : > { %4678 = vlog2.f32 %v15515_v37  ;;  %v2719_v11 = vsub.f32 %v15516_v32, %v2486_v13  ;;  %v10470_v6 = vsel %vm9297_vm3, %v2716_v20, 0.0  ;;  %vm15519_vm13 = vnez %v15518_v58  ;;  %v15521_v13 = vld [vmem:[#allocation249_spill] sm:$0xff]  ;;  %v15522_v32 = vld [vmem:[#allocation43_spill] sm:$0xff] }
 0x353   : > { %v10474_v21 = vsel %vm15519_vm13, %v2717_v29, 0.0  ;;  %v2492_v46 = vmul.f32 0.6931472, %v4659_v22  ;;  %4680 = vlog2.f32 %v15520_v1  ;;  %v3220_v28 = vadd.f32 %v3219_v7, %v10411_v26  ;;  %v4665_v37 = vpop.eup %4664 }
 0x354   : > { %v3343_v27 = vmul.f32 %v10354_v16, %v10354_v16  ;;  %v2494_v25 = vmul.f32 0.6931472, %v4661_v49  ;;  %4682 = vlog2.f32 %v15521_v13  ;;  %v2720_v20 = vsub.f32 %v15522_v32, %v2488_v9  ;;  %v4667_v29 = vpop.eup %4666  ;;  %v15525_v49 = vld [vmem:[#allocation136_spill] sm:$0xff] }
 0x355   : > { %v10484_v58 = vsel %vm9349_vm2, %v2718_v60, 0.0  ;;  %v2721_v22 = vsub.f32 %v15524_v52, %v2490_v4  ;;  %v3221_v1 = vadd.f32 %v3220_v28, %v10420_v53  ;;  %v3344_v7 = vmul.f32 %v10365_v15, %v10365_v15  ;;  %v4669_v16 = vpop.eup %4668  ;;  %v15527_v13 = vld [vmem:[#allocation212_spill] sm:$0xff]  ;;  %v15528_v60 = vld [vmem:[#allocation213_spill] sm:$0xff]  ;;  %v15530_v28 = vld [vmem:[#allocation14_spill] sm:$0xff] }
 0x356   : > { %v3469_v10 = vadd.f32 %v3342_v55, %v3341_v36  ;;  %v2496_v0 = vmul.f32 0.6931472, %v4663_v61  ;;  %4684 = vlog2.f32 %v15041_v51  ;;  %vm15526_vm3 = vnez %v15525_v49  ;;  %v4671_v35 = vpop.eup %4670  ;;  %v15532_v49 = vld [vmem:[#allocation357_spill] sm:$0xff] }
 0x357   : > { %v10493_v9 = vsel %vm15526_vm3, %v2719_v11, 0.0  ;;  %v3600_v32 = vadd.f32 %v15528_v60, %v15527_v13  ;;  %v2722_v52 = vsub.f32 %v15529_v24, %v2492_v46  ;;  %v3222_v4 = vadd.f32 %v3221_v1, %v10430_v38  ;;  %v4673_v55 = vpop.eup %4672  ;;  %v15533_v60 = vld [vmem:[#allocation45_spill] sm:$0xff]  ;;  %v15535_v1 = vld [vmem:[#allocation138_spill] sm:$0xff] }
 0x358   : > { %v3345_v15 = vmul.f32 %v10372_v62, %v10372_v62  ;;  %v3470_v36 = vadd.f32 %v3469_v10, %v3343_v27  ;;  %v2498_v61 = vmul.f32 0.6931472, %v4665_v37  ;;  %4686 = vlog2.f32 %v15530_v28  ;;  %v4675_v13 = vpop.eup %4674  ;;  %v15534_v37 = vld [vmem:[#allocation251_spill] sm:$0xff] }
 0x359   : > { %v10504_v11 = vsel %vm9401_vm10, %v2720_v20, 0.0  ;;  %v3601_v41 = vadd.f32 %v15532_v49, %v3600_v32  ;;  %v2723_v39 = vsub.f32 %v15533_v60, %v2494_v25  ;;  %v3223_v24 = vadd.f32 %v3222_v4, %v10435_v50  ;;  %v15537_v20 = vld [vmem:[#allocation214_spill] sm:$0xff] }
 0x35a   : > { %v3346_v46 = vmul.f32 %v10377_v45, %v10377_v45  ;;  %v3471_v62 = vadd.f32 %v3470_v36, %v3344_v7  ;;  %v4677_v10 = vpop.eup %4676  ;;  %v2500_v27 = vmul.f32 0.6931472, %v4667_v29  ;;  %4688 = vlog2.f32 %v15534_v37  ;;  %v15538_v32 = vld [vmem:[#allocation46_spill] sm:$0xff]  ;;  %v15539_v36 = vld [vmem:[#allocation252_spill] sm:$0xff] }
 0x35b   : > { %vm15536_vm2 = vnez %v15535_v1  ;;  %v3602_v51 = vadd.f32 %v15537_v20, %v3601_v41  ;;  %v2724_v49 = vsub.f32 %v15538_v32, %v2496_v0  ;;  %v3224_v25 = vadd.f32 %v3223_v24, %v10439_v23  ;;  %v15542_v41 = vld [vmem:[#allocation47_spill] sm:$0xff] }
 0x35c   : > { %v10514_v28 = vsel %vm15536_vm2, %v2721_v22, 0.0  ;;  %v3347_v4 = vmul.f32 %v10381_v56, %v10381_v56  ;;  %v3472_v60 = vadd.f32 %v3471_v62, %v3345_v15  ;;  %v4679_v45 = vpop.eup %4678  ;;  %v2502_v7 = vmul.f32 0.6931472, %v4669_v16  ;;  %v15541_v22 = vld [vmem:[#allocation359_spill] sm:$0xff]  ;;  %v15543_v16 = vld [vmem:[#allocation140_spill] sm:$0xff] }
 0x35d   : > { %4690 = vlog2.f32 %v15539_v36  ;;  %v10524_v37 = vsel %vm9453_vm11, %v2722_v52, 0.0  ;;  %v3603_v1 = vadd.f32 %v15541_v22, %v3602_v51  ;;  %v4681_v57 = vpop.eup %4680  ;;  %v2725_v20 = vsub.f32 %v15542_v41, %v2498_v61  ;;  %v15545_v52 = vld [vmem:[#allocation215_spill] sm:$0xff]  ;;  %v15546_v51 = vld [vmem:[#allocation48_spill] sm:$0xff]  ;;  %v15550_v41 = vld [vmem:[#allocation49_spill] sm:$0xff] }
 0x35e   : > { %v3225_v0 = vadd.f32 %v3224_v25, %v10448_v19  ;;  %v3348_v24 = vmul.f32 %v10389_v42, %v10389_v42  ;;  %v3473_v56 = vadd.f32 %v3472_v60, %v3346_v46  ;;  %v4683_v15 = vpop.eup %4682  ;;  %v2504_v62 = vmul.f32 0.6931472, %v4671_v35  ;;  %v15547_v35 = vld [vmem:[#allocation141_spill] sm:$0xff] }
 0x35f   : > { %4692 = vlog2.f32 %v15092_v59  ;;  %vm15544_vm10 = vnez %v15543_v16  ;;  %v3604_v36 = vadd.f32 %v15545_v52, %v3603_v1  ;;  %v2726_v29 = vsub.f32 %v15546_v51, %v2500_v27  ;;  %v15554_v52 = vld [vmem:[#allocation50_spill] sm:$0xff] }
 0x360   : > { %v10534_v32 = vsel %vm15544_vm10, %v2723_v39, 0.0  ;;  %v3226_v61 = vadd.f32 %v3225_v0, %v10452_v63  ;;  %v3349_v25 = vmul.f32 %v10396_v3, %v10396_v3  ;;  %v3474_v22 = vadd.f32 %v3473_v56, %v3347_v4  ;;  %v4685_v42 = vpop.eup %4684  ;;  %v15549_v39 = vld [vmem:[#allocation361_spill] sm:$0xff] }
 0x361   : > { %v2506_v46 = vmul.f32 0.6931472, %v4673_v55  ;;  %4694 = vlog2.f32 %v15105_v54  ;;  %vm15548_vm11 = vnez %v15547_v35  ;;  %v3605_v60 = vadd.f32 %v15549_v39, %v3604_v36  ;;  %v15551_v55 = vld [vmem:[#allocation142_spill] sm:$0xff]  ;;  %v15558_v35 = vld [vmem:[#allocation51_spill] sm:$0xff] }
 0x362   : > { %v10544_v59 = vsel %vm15548_vm11, %v2724_v49, 0.0  ;;  %v2727_v1 = vsub.f32 %v15550_v41, %v2502_v7  ;;  %v3227_v27 = vadd.f32 %v3226_v61, %v10459_v48  ;;  %v3350_v0 = vmul.f32 %v10400_v34, %v10400_v34  ;;  %v4687_v3 = vpop.eup %4686  ;;  %v15553_v49 = vld [vmem:[#allocation216_spill] sm:$0xff] }
 0x363   : > { %v3475_v16 = vadd.f32 %v3474_v22, %v3348_v24  ;;  %v2508_v4 = vmul.f32 0.6931472, %v4675_v13  ;;  %4696 = vlog2.f32 %v15117_v44  ;;  %vm15552_vm5 = vnez %v15551_v55  ;;  %v15555_v13 = vld [vmem:[#allocation143_spill] sm:$0xff] }
 0x364   : > { %v10554_v54 = vsel %vm15552_vm5, %v2725_v20, 0.0  ;;  %v3606_v56 = vadd.f32 %v15553_v49, %v3605_v60  ;;  %v2728_v36 = vsub.f32 %v15554_v52, %v2504_v62  ;;  %v3228_v7 = vadd.f32 %v3227_v27, %v10470_v6  ;;  %v4689_v34 = vpop.eup %4688  ;;  %v15557_v20 = vld [vmem:[#allocation363_spill] sm:$0xff] }
 0x365   : > { %v3351_v51 = vmul.f32 %v10407_v30, %v10407_v30  ;;  %v3476_v61 = vadd.f32 %v3475_v16, %v3349_v25  ;;  %v2510_v24 = vmul.f32 0.6931472, %v4677_v10  ;;  %4698 = vlog2.f32 %v15130_v2  ;;  %v15559_v10 = vld [vmem:[#allocation144_spill] sm:$0xff] }
 0x366   : > { %vm15556_vm9 = vnez %v15555_v13  ;;  %v3607_v22 = vadd.f32 %v15557_v20, %v3606_v56  ;;  %v2729_v39 = vsub.f32 %v15558_v35, %v2506_v46  ;;  %v3229_v62 = vadd.f32 %v3228_v7, %v10474_v21  ;;  %v15562_v16 = vld [vmem:[#allocation52_spill] sm:$0xff]  ;;  %v15566_v7 = vld [vmem:[#allocation53_spill] sm:$0xff] }
 0x367   : > { %v10564_v44 = vsel %vm15556_vm9, %v2726_v29, 0.0  ;;  %v3352_v60 = vmul.f32 %v10411_v26, %v10411_v26  ;;  %v3477_v41 = vadd.f32 %v3476_v61, %v3350_v0  ;;  %v4691_v30 = vpop.eup %4690  ;;  %v2512_v25 = vmul.f32 0.6931472, %v4679_v45  ;;  %v15561_v29 = vld [vmem:[#allocation217_spill] sm:$0xff] }
 0x368   : > { %4700 = vlog2.f32 %v15143_v31  ;;  %vm15560_vm4 = vnez %v15559_v10  ;;  %v3608_v27 = vadd.f32 %v15561_v29, %v3607_v22  ;;  %v2730_v55 = vsub.f32 %v15562_v16, %v2508_v4  ;;  %v15563_v45 = vld [vmem:[#allocation145_spill] sm:$0xff] }
 0x369   : > { %v10574_v2 = vsel %vm15560_vm4, %v2727_v1, 0.0  ;;  %v3230_v46 = vadd.f32 %v3229_v62, %v10484_v58  ;;  %v3353_v49 = vmul.f32 %v10420_v53, %v10420_v53  ;;  %v3478_v56 = vadd.f32 %v3477_v41, %v3351_v51  ;;  %v4693_v26 = vpop.eup %4692  ;;  %v15565_v1 = vld [vmem:[#allocation365_spill] sm:$0xff] }
 0x36a   : > { %v2514_v0 = vmul.f32 0.6931472, %v4681_v57  ;;  %4702 = vlog2.f32 %v15156_v18  ;;  %vm15564_vm0 = vnez %v15563_v45  ;;  %v3609_v52 = vadd.f32 %v15565_v1, %v3608_v27  ;;  %v15567_v57 = vld [vmem:[#allocation229_spill] sm:$0xff]  ;;  %v15574_v27 = vld [vmem:[#allocation190_spill] sm:$0xff]  ;;  %v15578_v1 = vld [vmem:[#allocation56_spill] sm:$0xff] }
 0x36b   : > { %v10584_v31 = vsel %vm15564_vm0, %v2728_v36, 0.0  ;;  %v2731_v61 = vsub.f32 %v15566_v7, %v2510_v24  ;;  %v3231_v4 = vadd.f32 %v3230_v46, %v10493_v9  ;;  %v3354_v13 = vmul.f32 %v10430_v38, %v10430_v38  ;;  %v4695_v53 = vpop.eup %4694  ;;  %v15569_v36 = vld [vmem:[#allocation218_spill] sm:$0xff]  ;;  %v15570_v35 = vld [vmem:[#allocation189_spill] sm:$0xff] }
 0x36c   : > { %v3479_v20 = vadd.f32 %v3478_v56, %v3352_v60  ;;  %v2516_v51 = vmul.f32 0.6931472, %v4683_v15  ;;  %4704 = vlog2.f32 %v15169_v17  ;;  %vm15568_vm1 = vnez %v15567_v57  ;;  %v15571_v15 = vld [vmem:[#allocation230_spill] sm:$0xff]  ;;  %v15582_v57 = vld [vmem:[#allocation191_spill] sm:$0xff] }
 0x36d   : > { %v10594_v18 = vsel %vm15568_vm1, %v2729_v39, 0.0  ;;  %v3610_v22 = vadd.f32 %v15569_v36, %v3609_v52  ;;  %v2732_v62 = vsub.f32 %v15570_v35, %v2512_v25  ;;  %v3232_v24 = vadd.f32 %v3231_v4, %v10504_v11  ;;  %v4697_v38 = vpop.eup %4696  ;;  %v15573_v39 = vld [vmem:[#allocation367_spill] sm:$0xff] }
 0x36e   : > { %v3355_v41 = vmul.f32 %v10435_v50, %v10435_v50  ;;  %v3480_v10 = vadd.f32 %v3479_v20, %v3353_v49  ;;  %v2518_v60 = vmul.f32 0.6931472, %v4685_v42  ;;  %4706 = vlog2.f32 %v15181_v40  ;;  %v15575_v42 = vld [vmem:[#allocation172_spill] sm:$0xff] }
 0x36f   : > { %vm15572_vm7 = vnez %v15571_v15  ;;  %v3611_v29 = vadd.f32 %v15573_v39, %v3610_v22  ;;  %v2733_v16 = vsub.f32 %v15574_v27, %v2514_v0  ;;  %v3233_v25 = vadd.f32 %v3232_v24, %v10514_v28  ;;  %v4699_v50 = vpop.eup %4698 }
 0x370   : > { %v10604_v17 = vsel %vm15572_vm7, %v2730_v55, 0.0  ;;  %v3356_v46 = vmul.f32 %v10439_v23, %v10439_v23  ;;  %v3481_v56 = vadd.f32 %v3480_v10, %v3354_v13  ;;  %v2520_v49 = vmul.f32 0.6931472, %v4687_v3  ;;  %v15577_v55 = vld [vmem:[#allocation219_spill] sm:$0xff]  ;;  %v15579_v3 = vld [vmem:[#allocation173_spill] sm:$0xff]  ;;  %v15586_v10 = vld [vmem:[#allocation62_spill] sm:$0xff] }
 0x371   : > { %4708 = vlog2.f32 %v15192_v33  ;;  %vm15576_vm8 = vnez %v15575_v42  ;;  %v3612_v45 = vadd.f32 %v15577_v55, %v3611_v29  ;;  %v2734_v52 = vsub.f32 %v15578_v1, %v2516_v51  ;;  %v15593_v1 = vld [vmem:[#allocation221_spill] sm:$0xff] }
 0x372   : > { %v10614_v40 = vsel %vm15576_vm8, %v2731_v61, 0.0  ;;  %v3234_v0 = vadd.f32 %v3233_v25, %v10524_v37  ;;  %v3357_v7 = vmul.f32 %v10448_v19, %v10448_v19  ;;  %v3482_v4 = vadd.f32 %v3481_v56, %v3355_v41  ;;  %v4701_v23 = vpop.eup %4700  ;;  %v15581_v61 = vld [vmem:[#allocation369_spill] sm:$0xff] }
 0x373   : > { %v2522_v13 = vmul.f32 0.6931472, %v4689_v34  ;;  %4710 = vlog2.f32 %v15203_v8  ;;  %vm15580_vm13 = vnez %v15579_v3  ;;  %v3613_v20 = vadd.f32 %v15581_v61, %v3612_v45  ;;  %v15583_v34 = vld [vmem:[#allocation256_spill] sm:$0xff] }
 0x374   : > { %v10624_v33 = vsel %vm15580_vm13, %v2732_v62, 0.0  ;;  %v2735_v36 = vsub.f32 %v15582_v57, %v2518_v60  ;;  %v3235_v51 = vadd.f32 %v3234_v0, %v10534_v32  ;;  %v3358_v22 = vmul.f32 %v10452_v63, %v10452_v63  ;;  %v4703_v19 = vpop.eup %4702  ;;  %v15585_v62 = vld [vmem:[#allocation220_spill] sm:$0xff]  ;;  %v15594_v0 = vld [vmem:[#allocation193_spill] sm:$0xff] }
 0x375   : > { %v3483_v35 = vadd.f32 %v3482_v4, %v3356_v46  ;;  %v2524_v24 = vmul.f32 0.6931472, %v4691_v30  ;;  %4712 = vlog2.f32 %v15215_v12  ;;  %vm15584_vm3 = vnez %v15583_v34  ;;  %v15587_v30 = vld [vmem:[#allocation150_spill] sm:$0xff]  ;;  %v15590_v46 = vld [vmem:[#allocation192_spill] sm:$0xff] }
 0x376   : > { %v10634_v8 = vsel %vm15584_vm3, %v2733_v16, 0.0  ;;  %v3614_v41 = vadd.f32 %v15585_v62, %v3613_v20  ;;  %v2736_v15 = vsub.f32 %v15586_v10, %v2520_v49  ;;  %v3236_v60 = vadd.f32 %v3235_v51, %v10544_v59  ;;  %v4705_v63 = vpop.eup %4704  ;;  %v15589_v16 = vld [vmem:[#allocation370_spill] sm:$0xff]  ;;  %v15597_v20 = vld [vmem:[#allocation371_spill] sm:$0xff] }
 0x377   : > { %v3359_v39 = vmul.f32 %v10459_v48, %v10459_v48  ;;  %v3484_v29 = vadd.f32 %v3483_v35, %v3357_v7  ;;  %v2526_v27 = vmul.f32 0.6931472, %v4693_v26  ;;  %4714 = vlog2.f32 %v15228_v43  ;;  %v15591_v26 = vld [vmem:[#allocation232_spill] sm:$0xff]  ;;  %v15601_v62 = vld [vmem:[#allocation222_spill] sm:$0xff] }
 0x378   : > { %vm15588_vm2 = vnez %v15587_v30  ;;  %v3615_v25 = vadd.f32 %v15589_v16, %v3614_v41  ;;  %v2737_v56 = vsub.f32 %v15590_v46, %v2522_v13  ;;  %v3237_v49 = vadd.f32 %v3236_v60, %v10554_v54  ;;  %v4707_v48 = vpop.eup %4706  ;;  %v15602_v10 = vld [vmem:[#allocation194_spill] sm:$0xff]  ;;  %v15603_v30 = vld [vmem:[#allocation264_spill] sm:$0xff]  ;;  %v15607_v46 = vld [vmem:[#allocation195_spill] sm:$0xff] }
 0x379   : > { %v10644_v12 = vsel %vm15588_vm2, %v2734_v52, 0.0  ;;  %v3360_v42 = vmul.f32 %v10470_v6, %v10470_v6  ;;  %v3485_v55 = vadd.f32 %v3484_v29, %v3358_v22  ;;  %v2528_v45 = vmul.f32 0.6931472, %v4695_v53  ;;  %v15595_v53 = vld [vmem:[#allocation185_spill] sm:$0xff]  ;;  %v15606_v16 = vld [vmem:[#allocation372_spill] sm:$0xff] }
 0x37a   : > { %4716 = vlog2.f32 %v15239_v47  ;;  %vm15592_vm10 = vnez %v15591_v26  ;;  %v3616_v52 = vadd.f32 %v15593_v1, %v3615_v25  ;;  %v2738_v7 = vsub.f32 %v15594_v0, %v2524_v24  ;;  %v15608_v26 = vld [vmem:[#allocation265_spill] sm:$0xff] }
 0x37b   : > { %v10654_v43 = vsel %vm15592_vm10, %v2735_v36, 0.0  ;;  %v3238_v4 = vadd.f32 %v3237_v49, %v10564_v44  ;;  %v3361_v13 = vmul.f32 %v10474_v21, %v10474_v21  ;;  %v3486_v3 = vadd.f32 %v3485_v55, %v3359_v39  ;;  %v4709_v6 = vpop.eup %4708  ;;  %v15598_v36 = vld [vmem:[#allocation61_spill] sm:$0xff] }
 0x37c   : > { %v2530_v61 = vmul.f32 0.6931472, %v4697_v38  ;;  %4718 = vlog2.f32 %v15250_v5  ;;  %vm15596_vm11 = vnez %v15595_v53  ;;  %v3617_v57 = vadd.f32 %v15597_v20, %v3616_v52  ;;  %v15599_v38 = vld [vmem:[#allocation153_spill] sm:$0xff]  ;;  %v15611_v52 = vld [vmem:[#allocation223_spill] sm:$0xff] }
 0x37d   : > { %v10664_v47 = vsel %vm15596_vm11, %v2736_v15, 0.0  ;;  %v2739_v51 = vsub.f32 %v15598_v36, %v2526_v27  ;;  %v3239_v22 = vadd.f32 %v3238_v4, %v10574_v2  ;;  %v3362_v35 = vmul.f32 %v10484_v58, %v10484_v58  ;;  %v4711_v21 = vpop.eup %4710  ;;  %v15613_v20 = vld [vmem:[#allocation19_spill] sm:$0xff]  ;;  %v15616_v36 = vld [vmem:[#allocation374_spill] sm:$0xff] }
 0x37e   : > { %v3487_v24 = vadd.f32 %v3486_v3, %v3360_v42  ;;  %v2532_v34 = vmul.f32 0.6931472, %v4699_v50  ;;  %4720 = vlog2.f32 %v15261_v14  ;;  %vm15600_vm5 = vnez %v15599_v38  ;;  %v15604_v50 = vld [vmem:[#allocation17_spill] sm:$0xff] }
 0x37f   : > { %v10674_v5 = vsel %vm15600_vm5, %v2737_v56, 0.0  ;;  %v3618_v41 = vadd.f32 %v15601_v62, %v3617_v57  ;;  %v2740_v15 = vsub.f32 %v15602_v10, %v2528_v45  ;;  %v3240_v60 = vadd.f32 %v3239_v22, %v10584_v31  ;;  %v4713_v58 = vpop.eup %4712  ;;  %v15617_v22 = vld [vmem:[#allocation197_spill] sm:$0xff] }
 0x380   : > { %v3363_v39 = vmul.f32 %v10493_v9, %v10493_v9  ;;  %v3488_v29 = vadd.f32 %v3487_v24, %v3361_v13  ;;  %v2534_v27 = vmul.f32 0.6931472, %v4701_v23  ;;  %4722 = vlog2.f32 %v15603_v30  ;;  %v15609_v23 = vld [vmem:[#allocation260_spill] sm:$0xff] }
 0x381   : > { %vm15605_vm9 = vnez %v15604_v50  ;;  %v3619_v25 = vadd.f32 %v15606_v16, %v3618_v41  ;;  %v2741_v56 = vsub.f32 %v15607_v46, %v2530_v61  ;;  %v3241_v49 = vadd.f32 %v3240_v60, %v10594_v18  ;;  %v4715_v9 = vpop.eup %4714  ;;  %v15618_v41 = vld [vmem:[#allocation266_spill] sm:$0xff] }
 0x382   : > { %v10684_v14 = vsel %vm15605_vm9, %v2738_v7, 0.0  ;;  %v3364_v42 = vmul.f32 %v10504_v11, %v10504_v11  ;;  %v3489_v55 = vadd.f32 %v3488_v29, %v3362_v35  ;;  %v2536_v45 = vmul.f32 0.6931472, %v4703_v19  ;;  %v15612_v7 = vld [vmem:[#allocation196_spill] sm:$0xff] }
 0x383   : > { %4724 = vlog2.f32 %v15608_v26  ;;  %vm15610_vm4 = vnez %v15609_v23  ;;  %v3620_v0 = vadd.f32 %v15611_v52, %v3619_v25  ;;  %v2742_v4 = vsub.f32 %v15612_v7, %v2532_v34  ;;  %v15614_v19 = vld [vmem:[#allocation156_spill] sm:$0xff]  ;;  %v15623_v25 = vld [vmem:[#allocation267_spill] sm:$0xff] }
 0x384   : > { %v10694_v1 = vsel %vm15610_vm4, %v2739_v51, 0.0  ;;  %v3242_v13 = vadd.f32 %v3241_v49, %v10604_v17  ;;  %v3365_v3 = vmul.f32 %v10514_v28, %v10514_v28  ;;  %v3490_v61 = vadd.f32 %v3489_v55, %v3363_v39  ;;  %v4717_v11 = vpop.eup %4716  ;;  %v15622_v39 = vld [vmem:[#allocation126_spill] sm:$0xff] }
 0x385   : > { %v2538_v53 = vmul.f32 0.6931472, %v4705_v63  ;;  %4726 = vlog2.f32 %v15613_v20  ;;  %vm15615_vm0 = vnez %v15614_v19  ;;  %v3621_v51 = vadd.f32 %v15616_v36, %v3620_v0  ;;  %v15619_v63 = vld [vmem:[#allocation262_spill] sm:$0xff]  ;;  %v15628_v0 = vld [vmem:[#allocation268_spill] sm:$0xff] }
 0x386   : > { %v10704_v57 = vsel %vm15615_vm0, %v2740_v15, 0.0  ;;  %v2743_v35 = vsub.f32 %v15617_v22, %v2534_v27  ;;  %v3243_v24 = vadd.f32 %v3242_v13, %v10614_v40  ;;  %v3366_v34 = vmul.f32 %v10524_v37, %v10524_v37  ;;  %v4719_v28 = vpop.eup %4718  ;;  %v15621_v15 = vld [vmem:[#allocation224_spill] sm:$0xff] }
 0x387   : > { %v3491_v38 = vadd.f32 %v3490_v61, %v3364_v42  ;;  %v2540_v62 = vmul.f32 0.6931472, %v4707_v48  ;;  %4728 = vlog2.f32 %v15618_v41  ;;  %vm15620_vm1 = vnez %v15619_v63  ;;  %v15624_v48 = vld [vmem:[#allocation236_spill] sm:$0xff] }
 0x388   : > { %v10714_v10 = vsel %vm15620_vm1, %v2741_v56, 0.0  ;;  %v3622_v60 = vadd.f32 %v15621_v15, %v3621_v51  ;;  %v2744_v29 = vsub.f32 %v15622_v39, %v2536_v45  ;;  %v3244_v27 = vadd.f32 %v3243_v24, %v10624_v33  ;;  %v4721_v37 = vpop.eup %4720  ;;  %v15626_v56 = vld [vmem:[#allocation376_spill] sm:$0xff] }
 0x389   : > { %v3367_v30 = vmul.f32 %v10534_v32, %v10534_v32  ;;  %v3492_v50 = vadd.f32 %v3491_v38, %v3365_v3  ;;  %v2542_v16 = vmul.f32 0.6931472, %v4709_v6  ;;  %4730 = vlog2.f32 %v15623_v25  ;;  %v15627_v42 = vld [vmem:[#allocation128_spill] sm:$0xff]  ;;  %v15632_v3 = vld [vmem:[#allocation54_spill] sm:$0xff] }
 0x38a   : > { %vm15625_vm7 = vnez %v15624_v48  ;;  %v3623_v49 = vadd.f32 %v15626_v56, %v3622_v60  ;;  %v2745_v55 = vsub.f32 %v15627_v42, %v2538_v53  ;;  %v3245_v45 = vadd.f32 %v3244_v27, %v10634_v8  ;;  %v4723_v32 = vpop.eup %4722  ;;  %v15629_v6 = vld [vmem:[#allocation160_spill] sm:$0xff]  ;;  %v15638_v60 = vld [vmem:[#allocation269_spill] sm:$0xff] }
 0x38b   : > { %v10724_v46 = vsel %vm15625_vm7, %v2742_v4, 0.0  ;;  %v3368_v26 = vmul.f32 %v10544_v59, %v10544_v59  ;;  %v3493_v23 = vadd.f32 %v3492_v50, %v3366_v34  ;;  %v2544_v52 = vmul.f32 0.6931472, %v4711_v21  ;;  %v15631_v4 = vld [vmem:[#allocation225_spill] sm:$0xff]  ;;  %v15633_v51 = vld [vmem:[#allocation20_spill] sm:$0xff]  ;;  %v15637_v34 = vld [vmem:[#allocation55_spill] sm:$0xff] }
 0x38c   : > { %4732 = vlog2.f32 %v15628_v0  ;;  %vm15630_vm8 = vnez %v15629_v6  ;;  %v3624_v13 = vadd.f32 %v15631_v4, %v3623_v49  ;;  %v2746_v61 = vsub.f32 %v15632_v3, %v2540_v62  ;;  %v15634_v21 = vld [vmem:[#allocation161_spill] sm:$0xff]  ;;  %v15643_v49 = vld [vmem:[#allocation270_spill] sm:$0xff] }
 0x38d   : > { %v10734_v7 = vsel %vm15630_vm8, %v2743_v35, 0.0  ;;  %v3246_v53 = vadd.f32 %v3245_v45, %v10644_v12  ;;  %v3369_v20 = vmul.f32 %v10554_v54, %v10554_v54  ;;  %v3494_v19 = vadd.f32 %v3493_v23, %v3367_v30  ;;  %v4725_v59 = vpop.eup %4724  ;;  %v15636_v35 = vld [vmem:[#allocation377_spill] sm:$0xff] }
 0x38e   : > { %v2546_v36 = vmul.f32 0.6931472, %v4713_v58  ;;  %4734 = vlog2.f32 %v15633_v51  ;;  %vm15635_vm13 = vnez %v15634_v21  ;;  %v3625_v24 = vadd.f32 %v15636_v35, %v3624_v13  ;;  %v15639_v58 = vld [vmem:[#allocation162_spill] sm:$0xff]  ;;  %v15642_v30 = vld [vmem:[#allocation57_spill] sm:$0xff]  ;;  %v15648_v13 = vld [vmem:[#allocation271_spill] sm:$0xff] }
 0x38f   : > { %v10744_v22 = vsel %vm15635_vm13, %v2744_v29, 0.0  ;;  %v2747_v38 = vsub.f32 %v15637_v34, %v2542_v16  ;;  %v3247_v62 = vadd.f32 %v3246_v53, %v10654_v43  ;;  %v3370_v41 = vmul.f32 %v10564_v44, %v10564_v44  ;;  %v4727_v54 = vpop.eup %4726  ;;  %v15641_v29 = vld [vmem:[#allocation226_spill] sm:$0xff] }
 0x390   : > { %v3495_v63 = vadd.f32 %v3494_v19, %v3368_v26  ;;  %v2548_v15 = vmul.f32 0.6931472, %v4715_v9  ;;  %4736 = vlog2.f32 %v15638_v60  ;;  %vm15640_vm3 = vnez %v15639_v58  ;;  %v15644_v9 = vld [vmem:[#allocation384_spill] sm:$0xff]  ;;  %v15647_v26 = vld [vmem:[#allocation59_spill] sm:$0xff] }
 0x391   : > { %v10754_v39 = vsel %vm15640_vm3, %v2745_v55, 0.0  ;;  %v3626_v27 = vadd.f32 %v15641_v29, %v3625_v24  ;;  %v2748_v50 = vsub.f32 %v15642_v30, %v2544_v52  ;;  %v3248_v16 = vadd.f32 %v3247_v62, %v10664_v47  ;;  %v4729_v44 = vpop.eup %4728  ;;  %v15646_v55 = vld [vmem:[#allocation227_spill] sm:$0xff]  ;;  %v15653_v24 = vld [vmem:[#allocation21_spill] sm:$0xff]  ;;  %v15659_v30 = vld [vmem:[#allocation272_spill] sm:$0xff] }
 0x392   : > { %v3371_v25 = vmul.f32 %v10574_v2, %v10574_v2  ;;  %v3496_v48 = vadd.f32 %v3495_v63, %v3369_v20  ;;  %v2550_v56 = vmul.f32 0.6931472, %v4717_v11  ;;  %4738 = vlog2.f32 %v15643_v49  ;;  %v15649_v11 = vld [vmem:[#allocation163_spill] sm:$0xff]  ;;  %v15652_v20 = vld [vmem:[#allocation60_spill] sm:$0xff] }
 0x393   : > { %vm15645_vm2 = vnez %v15644_v9  ;;  %v3627_v45 = vadd.f32 %v15646_v55, %v3626_v27  ;;  %v2749_v23 = vsub.f32 %v15647_v26, %v2546_v36  ;;  %v3249_v52 = vadd.f32 %v3248_v16, %v10674_v5  ;;  %v4731_v2 = vpop.eup %4730 }
 0x394   : > { %v10764_v42 = vsel %vm15645_vm2, %v2746_v61, 0.0  ;;  %v3372_v0 = vmul.f32 %v10584_v31, %v10584_v31  ;;  %v3497_v6 = vadd.f32 %v3496_v48, %v3370_v41  ;;  %v2552_v4 = vmul.f32 0.6931472, %v4719_v28  ;;  %v15651_v61 = vld [vmem:[#allocation228_spill] sm:$0xff]  ;;  %v15654_v28 = vld [vmem:[#allocation389_spill] sm:$0xff]  ;;  %v15658_v41 = vld [vmem:[#allocation130_spill] sm:$0xff] }
 0x395   : > { %4740 = vlog2.f32 %v15648_v13  ;;  %vm15650_vm10 = vnez %v15649_v11  ;;  %v3628_v53 = vadd.f32 %v15651_v61, %v3627_v45  ;;  %v2750_v19 = vsub.f32 %v15652_v20, %v2548_v15  ;;  %v15663_v48 = vld [vmem:[#allocation131_spill] sm:$0xff]  ;;  %v15668_v11 = vld [vmem:[#allocation373_spill] sm:$0xff] }
 0x396   : > { %v10774_v3 = vsel %vm15650_vm10, %v2747_v38, 0.0  ;;  %v3250_v36 = vadd.f32 %v3249_v52, %v10684_v14  ;;  %v3373_v51 = vmul.f32 %v10594_v18, %v10594_v18  ;;  %v3498_v21 = vadd.f32 %v3497_v6, %v3371_v25  ;;  %v4733_v31 = vpop.eup %4732  ;;  %v15657_v38 = vld [vmem:[#allocation169_spill] sm:$0xff]  ;;  %v15664_v52 = vld [vmem:[#allocation274_spill] sm:$0xff] }
 0x397   : > { %v2554_v35 = vmul.f32 0.6931472, %v4721_v37  ;;  %4742 = vlog2.f32 %v15653_v24  ;;  %vm15655_vm11 = vnez %v15654_v28  ;;  %v3629_v62 = vadd.f32 %v15657_v38, %v3628_v53  ;;  %v15660_v37 = vld [vmem:[#allocation164_spill] sm:$0xff]  ;;  %v15673_v38 = vld [vmem:[#allocation375_spill] sm:$0xff] }
 0x398   : > { %v10784_v34 = vsel %vm15655_vm11, %v2748_v50, 0.0  ;;  %v2751_v63 = vsub.f32 %v15658_v41, %v2550_v56  ;;  %v3251_v15 = vadd.f32 %v3250_v36, %v10694_v1  ;;  %v3374_v58 = vmul.f32 %v10604_v17, %v10604_v17  ;;  %v4735_v18 = vpop.eup %4734  ;;  %v15662_v50 = vld [vmem:[#allocation170_spill] sm:$0xff] }
 0x399   : > { %15656 = vst [vmem:[#allocation179_spill] sm:$0xff] %v10784_v34  ;;  %v3499_v29 = vadd.f32 %v3498_v21, %v3372_v0  ;;  %v2556_v27 = vmul.f32 0.6931472, %v4723_v32  ;;  %4744 = vlog2.f32 %v15659_v30  ;;  %vm15661_vm5 = vnez %v15660_v37  ;;  %v15665_v32 = vld [vmem:[#allocation165_spill] sm:$0xff] }
 0x39a   : > { %v10794_v16 = vsel %vm15661_vm5, %v2749_v23, 0.0  ;;  %v3630_v25 = vadd.f32 %v15662_v50, %v3629_v62  ;;  %v2752_v9 = vsub.f32 %v15663_v48, %v2552_v4  ;;  %v3252_v56 = vadd.f32 %v3251_v15, %v10704_v57  ;;  %v4737_v17 = vpop.eup %4736  ;;  %v15667_v23 = vld [vmem:[#allocation171_spill] sm:$0xff] }
 0x39b   : > { %v3375_v55 = vmul.f32 %v10614_v40, %v10614_v40  ;;  %v3500_v45 = vadd.f32 %v3499_v29, %v3373_v51  ;;  %v2558_v26 = vmul.f32 0.6931472, %v4725_v59  ;;  %4746 = vlog2.f32 %v15664_v52  ;;  %v15669_v51 = vld [vmem:[#allocation22_spill] sm:$0xff]  ;;  %v15670_v59 = vld [vmem:[#allocation396_spill] sm:$0xff] }
 0x39c   : > { %vm15666_vm9 = vnez %v15665_v32  ;;  %v3631_v6 = vadd.f32 %v15667_v23, %v3630_v25  ;;  %v2753_v61 = vsub.f32 %v15668_v11, %v2554_v35  ;;  %v3253_v4 = vadd.f32 %v3252_v56, %v10714_v10  ;;  %v4739_v40 = vpop.eup %4738  ;;  %v15677_v25 = vld [vmem:[#allocation250_spill] sm:$0xff]  ;;  %v15682_v11 = vld [vmem:[#allocation132_spill] sm:$0xff] }
 0x39d   : > { %v10804_v0 = vsel %vm15666_vm9, %v2750_v19, 0.0  ;;  %v3376_v53 = vmul.f32 %v10624_v33, %v10624_v33  ;;  %v3501_v20 = vadd.f32 %v3500_v45, %v3374_v58  ;;  %v2560_v36 = vmul.f32 0.6931472, %v4727_v54  ;;  %v15672_v19 = vld [vmem:[#allocation255_spill] sm:$0xff]  ;;  %v15679_v32 = vld [vmem:[#allocation402_spill] sm:$0xff] }
 0x39e   : > { %4748 = vlog2.f32 %v15669_v51  ;;  %vm15671_vm4 = vnez %v15670_v59  ;;  %v3632_v28 = vadd.f32 %v15672_v19, %v3631_v6  ;;  %v2754_v62 = vsub.f32 %v15673_v38, %v2556_v27  ;;  %v15674_v54 = vld [vmem:[#allocation275_spill] sm:$0xff]  ;;  %v15683_v59 = vld [vmem:[#allocation104_spill] sm:$0xff] }
 0x39f   : > { %v10814_v21 = vsel %vm15671_vm4, %v2751_v63, 0.0  ;;  %v3254_v35 = vadd.f32 %v3253_v4, %v10724_v46  ;;  %v3377_v41 = vmul.f32 %v10634_v8, %v10634_v8  ;;  %v3502_v15 = vadd.f32 %v3501_v20, %v3375_v55  ;;  %v10821_v33 = vpop.eup %4740  ;;  %v15676_v63 = vld [vmem:[#allocation149_spill] sm:$0xff]  ;;  %v15684_v19 = vld [vmem:[#allocation23_spill] sm:$0xff] }
 0x3a0   : > { %v2562_v58 = vmul.f32 0.6931472, %v4729_v44  ;;  %4750 = vlog2.f32 %v15674_v54  ;;  %v10826_v37 = vsel %vm10165_vm14, %v2752_v9, 0.0  ;;  %v3633_v50 = vadd.f32 %v15676_v63, %v3632_v28  ;;  %v15678_v44 = vld [vmem:[#allocation277_spill] sm:$0xff]  ;;  %v15681_v9 = vld [vmem:[#allocation184_spill] sm:$0xff] }
 0x3a1   : > { %v2755_v48 = vsub.f32 %v15677_v25, %v2558_v26  ;;  %v3255_v27 = vadd.f32 %v3254_v35, %v10734_v7  ;;  %v3378_v56 = vmul.f32 %v10644_v12, %v10644_v12  ;;  %v3503_v8 = vadd.f32 %v3502_v15, %v3376_v53  ;;  %v10833_v55 = vpop.eup %4742  ;;  %v15688_v35 = vld [vmem:[#allocation133_spill] sm:$0xff]  ;;  %v15690_v25 = vld [vmem:[#allocation278_spill] sm:$0xff] }
 0x3a2   : > { %v2564_v45 = vmul.f32 0.6931472, %v4731_v2  ;;  %4752 = vlog2.f32 %v15678_v44  ;;  %vm15680_vm0 = vnez %v15679_v32  ;;  %v3634_v6 = vadd.f32 %v15681_v9, %v3633_v50  ;;  %v15689_v50 = vld [vmem:[#allocation105_spill] sm:$0xff]  ;;  %v15694_v32 = vld [vmem:[#allocation134_spill] sm:$0xff] }
 0x3a3   : > { %v10838_v23 = vsel %vm15680_vm0, %v2753_v61, 0.0  ;;  %v2756_v4 = vsub.f32 %v15682_v11, %v2560_v36  ;;  %v3256_v26 = vadd.f32 %v3255_v27, %v10744_v22  ;;  %v3379_v20 = vmul.f32 %v10654_v43, %v10654_v43  ;;  %v10845_v53 = vpop.eup %4744  ;;  %v15685_v61 = vld [vmem:[#allocation323_spill] sm:$0xff]  ;;  %v15687_v36 = vld [vmem:[#allocation285_spill] sm:$0xff] }
 0x3a4   : > { %v3504_v12 = vadd.f32 %v3503_v8, %v3377_v41  ;;  %vm1865_vm14 = vcmp.lt.s32.totalorder %v15683_v59, 512  ;;  %vm1993_vm1 = vcmp.gt.f32.partialorder %v15638_v60, 0.0001  ;;  %v2566_v2 = vmul.f32 0.6931472, %v4733_v31  ;;  %v15722_v59 = vld [vmem:[#allocation25_spill] sm:$0xff] }
 0x3a5   : > { %4754 = vlog2.f32 %v15684_v19  ;;  %vm15686_vm7 = vnez %v15685_v61  ;;  %v3635_v38 = vadd.f32 %v15687_v36, %v3634_v6  ;;  %v2757_v15 = vsub.f32 %v15688_v35, %v2562_v58  ;;  %v10859_v63 = vpop.eup %4746  ;;  %v15693_v58 = vld [vmem:[#allocation299_spill] sm:$0xff] }
 0x3a6   : > { %v10852_v28 = vsel %vm15686_vm7, %v2754_v62, 0.0  ;;  %v3257_v43 = vadd.f32 %v3256_v26, %v10754_v39  ;;  %v3380_v41 = vmul.f32 %v10664_v47, %v10664_v47  ;;  %v3505_v29 = vadd.f32 %v3504_v12, %v3378_v56  ;;  %v15691_v62 = vld [vmem:[#allocation409_spill] sm:$0xff]  ;;  %v15695_v26 = vld [vmem:[#allocation106_spill] sm:$0xff]  ;;  %v15696_v12 = vld [vmem:[#allocation280_spill] sm:$0xff] }
 0x3a7   : > { %vm1866_vm8 = vcmp.lt.s32.totalorder %v15689_v50, 512  ;;  %vm1994_vm13 = vcmp.gt.f32.partialorder %v15643_v49, 0.0001  ;;  %v2568_v31 = vmul.f32 0.6931472, %v4735_v18  ;;  %4756 = vlog2.f32 %v15690_v25  ;;  %v15731_v50 = vld [vmem:[#allocation284_spill] sm:$0xff] }
 0x3a8   : > { %vm15692_vm3 = vnez %v15691_v62  ;;  %v3636_v8 = vadd.f32 %v15693_v58, %v3635_v38  ;;  %v2758_v9 = vsub.f32 %v15694_v32, %v2564_v45  ;;  %v3258_v47 = vadd.f32 %v3257_v43, %v10764_v42  ;;  %v10873_v11 = vpop.eup %4748  ;;  %v15699_v45 = vld [vmem:[#allocation233_spill] sm:$0xff]  ;;  %v15700_v38 = vld [vmem:[#allocation135_spill] sm:$0xff]  ;;  %v15702_v58 = vld [vmem:[#allocation24_spill] sm:$0xff] }
 0x3a9   : > { %v10866_v27 = vsel %vm15692_vm3, %v2755_v48, 0.0  ;;  %v3381_v56 = vmul.f32 %v10674_v5, %v10674_v5  ;;  %v3506_v6 = vadd.f32 %v3505_v29, %v3379_v20  ;;  %vm1867_vm2 = vcmp.lt.s32.totalorder %v15695_v26, 512  ;;  %v15697_v48 = vld [vmem:[#allocation411_spill] sm:$0xff]  ;;  %v15738_v26 = vld [vmem:[#allocation286_spill] sm:$0xff] }
 0x3aa   : > { %vm1995_vm10 = vcmp.gt.f32.partialorder %v15648_v13, 0.0001  ;;  %v2570_v18 = vmul.f32 0.6931472, %v4737_v17  ;;  %4758 = vlog2.f32 %v15696_v12  ;;  %vm15698_vm11 = vnez %v15697_v48  ;;  %v10887_v29 = vpop.eup %4750  ;;  %v15701_v62 = vld [vmem:[#allocation107_spill] sm:$0xff] }
 0x3ab   : > { %v10880_v61 = vsel %vm15698_vm11, %v2756_v4, 0.0  ;;  %v3637_v36 = vadd.f32 %v15699_v45, %v3636_v8  ;;  %v2759_v35 = vsub.f32 %v15700_v38, %v2566_v2  ;;  %v3259_v5 = vadd.f32 %v3258_v47, %v10774_v3  ;;  %v15703_v4 = vld [vmem:[#allocation415_spill] sm:$0xff]  ;;  %v15706_v2 = vld [vmem:[#allocation154_spill] sm:$0xff]  ;;  %v15707_v47 = vld [vmem:[#allocation129_spill] sm:$0xff] }
 0x3ac   : > { %v3382_v20 = vmul.f32 %v10684_v14, %v10684_v14  ;;  %v3507_v43 = vadd.f32 %v3506_v6, %v3380_v41  ;;  %vm1868_vm5 = vcmp.lt.s32.totalorder %v15701_v62, 512  ;;  %vm1996_vm9 = vcmp.gt.f32.partialorder %v15653_v24, 0.0001  ;;  %v10901_v45 = vpop.eup %4752  ;;  %v15708_v38 = vld [vmem:[#allocation108_spill] sm:$0xff]  ;;  %v15745_v62 = vld [vmem:[#allocation26_spill] sm:$0xff] }
 0x3ad   : > { %v2572_v17 = vmul.f32 0.6931472, %v4739_v40  ;;  %4760 = vlog2.f32 %v15702_v58  ;;  %vm15704_vm4 = vnez %v15703_v4  ;;  %v3638_v32 = vadd.f32 %v15706_v2, %v3637_v36  ;;  %v15712_v2 = vld [vmem:[#allocation167_spill] sm:$0xff] }
 0x3ae   : > { %v10894_v8 = vsel %vm15704_vm4, %v2757_v15, 0.0  ;;  %v2760_v48 = vsub.f32 %v15707_v47, %v2568_v31  ;;  %v3260_v14 = vadd.f32 %v3259_v5, %v10784_v34  ;;  %v3383_v41 = vmul.f32 %v10694_v1, %v10694_v1  ;;  %v15709_v15 = vld [vmem:[#allocation281_spill] sm:$0xff]  ;;  %v15711_v31 = vld [vmem:[#allocation155_spill] sm:$0xff] }
 0x3af   : > { %15705 = vst [vmem:[#allocation302_spill] sm:$0xff] %v10894_v8  ;;  %v3508_v6 = vadd.f32 %v3507_v43, %v3381_v56  ;;  %vm1869_vm0 = vcmp.lt.s32.totalorder %v15708_v38, 512  ;;  %vm1997_vm7 = vcmp.gt.f32.partialorder %v15659_v30, 0.0001  ;;  %v2574_v40 = vmul.f32 0.6931472, %v10821_v33  ;;  %v10916_v34 = vpop.eup %4754 }
 0x3b0   : > { %4762 = vlog2.f32 %v15709_v15  ;;  %v10909_v36 = vsel %vm10296_vm12, %v2758_v9, 0.0  ;;  %v3639_v5 = vadd.f32 %v15711_v31, %v3638_v32  ;;  %v2761_v47 = vsub.f32 %v15712_v2, %v2570_v18  ;;  %v15713_v8 = vld [vmem:[#allocation109_spill] sm:$0xff]  ;;  %v15714_v9 = vld [vmem:[#allocation283_spill] sm:$0xff]  ;;  %vm10933_vm12 = vmand %vm1993_vm1, %vm1865_vm14 }
 0x3b1   : > { %v3261_v1 = vadd.f32 %v3260_v14, %v10794_v16  ;;  %v3384_v56 = vmul.f32 %v10704_v57, %v10704_v57  ;;  %v3509_v43 = vadd.f32 %v3508_v6, %v3382_v20  ;;  %vm1870_vm3 = vcmp.lt.s32.totalorder %v15713_v8, 512  ;;  %v15716_v14 = vld [vmem:[#allocation187_spill] sm:$0xff]  ;;  %v15720_v20 = vld [vmem:[#allocation253_spill] sm:$0xff]  ;;  %v15721_v32 = vld [vmem:[#allocation110_spill] sm:$0xff] }
 0x3b2   : > { %vm1998_vm11 = vcmp.gt.f32.partialorder %v15664_v52, 0.0001  ;;  %v10921_v33 = vmul.f32 0.6931472, %v10833_v55  ;;  %4764 = vlog2.f32 %v15714_v9  ;;  %v10926_v18 = vsel %vm10309_vm15, %v2759_v35, 0.0  ;;  %v10941_v35 = vpop.eup %4756  ;;  %vm10958_vm14 = vmand %vm1994_vm13, %vm1866_vm8  ;;  %v15752_v38 = vld [vmem:[#allocation287_spill] sm:$0xff] }
 0x3b3   : > { %v3640_v4 = vadd.f32 %v15716_v14, %v3639_v5  ;;  %v15717_v57 = vmov 0  ;;  %v2762_v6 = vsub.f32 %v15720_v20, %v2572_v17  ;;  %v3262_v55 = vadd.f32 %v3261_v1, %v10804_v0  ;;  %v15725_v1 = vld [vmem:[#allocation157_spill] sm:$0xff]  ;;  %vm10983_vm8 = vmand %vm1995_vm10, %vm1867_vm2 }
 0x3b4   : > { %v15718_v57 = vsel %vm10933_vm12, 4294967295, %v15717_v57  ;;  %v3385_v31 = vmul.f32 %v10714_v10, %v10714_v10  ;;  %v3510_v2 = vadd.f32 %v3509_v43, %v3383_v41  ;;  %vm1871_vm15 = vcmp.lt.s32.totalorder %v15721_v32, 512  ;;  %v15729_v41 = vld [vmem:[#allocation168_spill] sm:$0xff]  ;;  %vm11009_vm2 = vmand %vm1996_vm9, %vm1868_vm5  ;;  %v15759_v8 = vld [vmem:[#allocation289_spill] sm:$0xff] }
 0x3b5   : > { %15719 = vst [vmem:[#allocation180_spill] sm:$0xff] %v15718_v57  ;;  %vm1999_vm4 = vcmp.gt.f32.partialorder %v15669_v51, 0.0001  ;;  %v10946_v60 = vmul.f32 0.6931472, %v10845_v53  ;;  %4766 = vlog2.f32 %v15722_v59  ;;  %v10951_v17 = vsel %vm10343_vm6, %v2760_v48, 0.0  ;;  %v10966_v48 = vpop.eup %4758  ;;  %vm11035_vm5 = vmand %vm1997_vm7, %vm1869_vm0 }
 0x3b6   : > { %15724 = vst [vmem:[#allocation35_spill] sm:$0xff] %v10951_v17  ;;  %v3641_v14 = vadd.f32 %v15725_v1, %v3640_v4  ;;  %v15726_v10 = vmov 0  ;;  %v2763_v43 = vsub.f32 %v15729_v41, %v2574_v40  ;;  %v3263_v53 = vadd.f32 %v3262_v55, %v10814_v21  ;;  %v15730_v17 = vld [vmem:[#allocation111_spill] sm:$0xff]  ;;  %v15732_v4 = vld [vmem:[#allocation18_spill] sm:$0xff]  ;;  %vm11061_vm0 = vmand %vm1998_vm11, %vm1870_vm3 }
 0x3b7   : > { %v15727_v10 = vsel %vm10958_vm14, 4294967295, %v15726_v10  ;;  %v3386_v20 = vmul.f32 %v10724_v46, %v10724_v46  ;;  %v3511_v5 = vadd.f32 %v3510_v2, %v3384_v56  ;;  %vm1872_vm6 = vcmp.lt.s32.totalorder %v15730_v17, 512  ;;  %v15736_v56 = vld [vmem:[#allocation146_spill] sm:$0xff]  ;;  %v10992_v41 = vpop.eup %4760  ;;  %vm11087_vm3 = vmand %vm1999_vm4, %vm1871_vm15  ;;  %v15766_v32 = vld [vmem:[#allocation27_spill] sm:$0xff] }
 0x3b8   : > { %15728 = vst [vmem:[#allocation333_spill] sm:$0xff] %v15727_v10  ;;  %v10971_v49 = vmul.f32 0.6931472, %v10859_v63  ;;  %4768 = vlog2.f32 %v15731_v50  ;;  %v10976_v40 = vsel %vm10933_vm12, %v2761_v47, 0.0  ;;  %v3642_v55 = vadd.f32 %v15732_v4, %v3641_v14  ;;  %v15737_v14 = vld [vmem:[#allocation112_spill] sm:$0xff]  ;;  %v15775_v57 = vld [vmem:[#allocation179_spill] sm:$0xff] }
 0x3b9   : > { %v15733_v46 = vmov 0  ;;  %v2764_v63 = vsub.f32 %v15736_v56, %v10921_v33  ;;  %v3264_v2 = vadd.f32 %v3263_v53, %v10826_v37  ;;  %v3387_v1 = vmul.f32 %v10734_v7, %v10734_v7  ;;  %v15739_v53 = vld [vmem:[#allocation308_spill] sm:$0xff]  ;;  %v15777_v17 = vld [vmem:[#allocation290_spill] sm:$0xff] }
 0x3ba   : > { %v15734_v46 = vsel %vm10983_vm8, 4294967295, %v15733_v46  ;;  %v3512_v47 = vadd.f32 %v3511_v5, %v3385_v31  ;;  %vm1873_vm13 = vcmp.lt.s32.totalorder %v15737_v14, 512  ;;  %v10997_v13 = vmul.f32 0.6931472, %v10873_v11  ;;  %v15743_v31 = vld [vmem:[#allocation15_spill] sm:$0xff]  ;;  %v11018_v10 = vpop.eup %4762  ;;  %v15785_v14 = vld [vmem:[#allocation292_spill] sm:$0xff] }
 0x3bb   : > { %15735 = vst [vmem:[#allocation182_spill] sm:$0xff] %v15734_v46  ;;  %4770 = vlog2.f32 %v15738_v26  ;;  %v11002_v33 = vsel %vm10958_vm14, %v2762_v6, 0.0  ;;  %v3643_v4 = vadd.f32 %v15739_v53, %v3642_v55  ;;  %v15740_v7 = vmov 0  ;;  %v15744_v55 = vld [vmem:[#allocation113_spill] sm:$0xff] }
 0x3bc   : > { %v15741_v7 = vsel %vm11009_vm2, 4294967295, %v15740_v7  ;;  %v2765_v11 = vsub.f32 %v15743_v31, %v10946_v60  ;;  %v3265_v5 = vadd.f32 %v3264_v2, %v10838_v23  ;;  %v3388_v56 = vmul.f32 %v10744_v22, %v10744_v22  ;;  %v15746_v2 = vld [vmem:[#allocation311_spill] sm:$0xff]  ;;  %v11044_v46 = vpop.eup %4764 }
 0x3bd   : > { %15742 = vst [vmem:[#allocation198_spill] sm:$0xff] %v15741_v7  ;;  %v3513_v6 = vadd.f32 %v3512_v47, %v3386_v20  ;;  %vm1874_vm10 = vcmp.lt.s32.totalorder %v15744_v55, 512  ;;  %v11023_v24 = vmul.f32 0.6931472, %v10887_v29  ;;  %4772 = vlog2.f32 %v15745_v62  ;;  %v15750_v20 = vld [vmem:[#allocation147_spill] sm:$0xff]  ;;  %v15793_v55 = vld [vmem:[#allocation28_spill] sm:$0xff] }
 0x3be   : > { %v11028_v60 = vsel %vm10983_vm8, %v2763_v43, 0.0  ;;  %v3644_v53 = vadd.f32 %v15746_v2, %v3643_v4  ;;  %v15747_v22 = vmov 0  ;;  %v2766_v29 = vsub.f32 %v15750_v20, %v10971_v49  ;;  %v15751_v4 = vld [vmem:[#allocation114_spill] sm:$0xff] }
 0x3bf   : > { %v15748_v22 = vsel %vm11035_vm5, 4294967295, %v15747_v22  ;;  %v3266_v47 = vadd.f32 %v3265_v5, %v10852_v28  ;;  %v3389_v31 = vmul.f32 %v10754_v39, %v10754_v39  ;;  %v3514_v43 = vadd.f32 %v3513_v6, %v3387_v1  ;;  %v15753_v5 = vld [vmem:[#allocation312_spill] sm:$0xff]  ;;  %v15757_v1 = vld [vmem:[#allocation254_spill] sm:$0xff]  ;;  %v11070_v7 = vpop.eup %4766 }
 0x3c0   : > { %15749 = vst [vmem:[#allocation39_spill] sm:$0xff] %v15748_v22  ;;  %vm1875_vm9 = vcmp.lt.s32.totalorder %v15751_v4, 512  ;;  %v11049_v30 = vmul.f32 0.6931472, %v10901_v45  ;;  %4774 = vlog2.f32 %v15752_v38  ;;  %v11054_v49 = vsel %vm11009_vm2, %v2764_v63, 0.0  ;;  %v15802_v4 = vld [vmem:[#allocation293_spill] sm:$0xff] }
 0x3c1   : > { %v3645_v2 = vadd.f32 %v15753_v5, %v3644_v53  ;;  %v15754_v39 = vmov 0  ;;  %v2767_v45 = vsub.f32 %v15757_v1, %v10997_v13  ;;  %v3267_v6 = vadd.f32 %v3266_v47, %v10866_v27  ;;  %v15758_v53 = vld [vmem:[#allocation115_spill] sm:$0xff]  ;;  %v15760_v47 = vld [vmem:[#allocation314_spill] sm:$0xff] }
 0x3c2   : > { %v15755_v39 = vsel %vm11061_vm0, 4294967295, %v15754_v39  ;;  %v3390_v20 = vmul.f32 %v10764_v42, %v10764_v42  ;;  %v3515_v63 = vadd.f32 %v3514_v43, %v3388_v56  ;;  %vm1876_vm7 = vcmp.lt.s32.totalorder %v15758_v53, 512  ;;  %v15764_v56 = vld [vmem:[#allocation231_spill] sm:$0xff]  ;;  %v11096_v22 = vpop.eup %4768  ;;  %v15810_v53 = vld [vmem:[#allocation294_spill] sm:$0xff] }
 0x3c3   : > { %15756 = vst [vmem:[#allocation237_spill] sm:$0xff] %v15755_v39  ;;  %v11075_v52 = vmul.f32 0.6931472, %v10916_v34  ;;  %4776 = vlog2.f32 %v15759_v8  ;;  %v11080_v13 = vsel %vm11035_vm5, %v2765_v11, 0.0  ;;  %v3646_v5 = vadd.f32 %v15760_v47, %v3645_v2  ;;  %v15765_v2 = vld [vmem:[#allocation116_spill] sm:$0xff] }
 0x3c4   : > { %v15761_v42 = vmov 0  ;;  %v2768_v34 = vsub.f32 %v15764_v56, %v11023_v24  ;;  %v3268_v43 = vadd.f32 %v3267_v6, %v10880_v61  ;;  %v3391_v1 = vmul.f32 %v10774_v3, %v10774_v3  ;;  %v15768_v6 = vld [vmem:[#allocation315_spill] sm:$0xff] }
 0x3c5   : > { %v15762_v42 = vsel %vm11087_vm3, 4294967295, %v15761_v42  ;;  %v3516_v11 = vadd.f32 %v3515_v63, %v3389_v31  ;;  %v11101_v51 = vmul.f32 0.6931472, %v10941_v35  ;;  %4778 = vlog2.f32 %v15766_v32  ;;  %v15773_v31 = vld [vmem:[#allocation148_spill] sm:$0xff]  ;;  %v15774_v63 = vld [vmem:[#allocation302_spill] sm:$0xff] }
 0x3c6   : > { %15763 = vst [vmem:[#allocation273_spill] sm:$0xff] %v15762_v42  ;;  %v11106_v24 = vsel %vm11061_vm0, %v2766_v29, 0.0  ;;  %v3647_v47 = vadd.f32 %v15768_v6, %v3646_v5  ;;  %vm15769_vm15 = vcmp.gt.f32.partialorder %v15674_v54, 0.0001  ;;  %v15770_v3 = vmov 0  ;;  %v15776_v5 = vld [vmem:[#allocation117_spill] sm:$0xff] }
 0x3c7   : > { %15767 = vst [vmem:[#allocation42_spill] sm:$0xff] %v11106_v24  ;;  %vm11113_vm4 = vmand %vm15769_vm15, %vm1872_vm6  ;;  %v2769_v35 = vsub.f32 %v15773_v31, %v11049_v30  ;;  %v3269_v56 = vadd.f32 %v3268_v43, %v15774_v63  ;;  %v3392_v39 = vmul.f32 %v15775_v57, %v15775_v57  ;;  %v3517_v29 = vadd.f32 %v3516_v11, %v3390_v20  ;;  %v11122_v24 = vpop.eup %4770  ;;  %v15778_v43 = vld [vmem:[#allocation316_spill] sm:$0xff]  ;;  %v15783_v20 = vld [vmem:[#allocation174_spill] sm:$0xff] }
 0x3c8   : > { %v15771_v3 = vsel %vm11113_vm4, 4294967295, %v15770_v3  ;;  %v11127_v54 = vmul.f32 0.6931472, %v10966_v48  ;;  %4780 = vlog2.f32 %v15777_v17  ;;  %v11132_v30 = vsel %vm11087_vm3, %v2767_v45, 0.0  ;;  %v11148_v42 = vpop.eup %4772 }
 0x3c9   : > { %15772 = vst [vmem:[#allocation279_spill] sm:$0xff] %v15771_v3  ;;  %v3648_v6 = vadd.f32 %v15778_v43, %v3647_v47  ;;  %vm15779_vm6 = vcmp.gt.f32.partialorder %v15678_v44, 0.0001  ;;  %v15780_v57 = vmov 0  ;;  %v2770_v48 = vsub.f32 %v15783_v20, %v11075_v52  ;;  %v15784_v47 = vld [vmem:[#allocation118_spill] sm:$0xff] }
 0x3ca   : > { %vm11139_vm15 = vmand %vm15779_vm6, %vm1873_vm13  ;;  %v3270_v11 = vadd.f32 %v3269_v56, %v10909_v36  ;;  %v3393_v31 = vmul.f32 %v10794_v16, %v10794_v16  ;;  %v3518_v45 = vadd.f32 %v3517_v29, %v3391_v1  ;;  %v11153_v44 = vmul.f32 0.6931472, %v10992_v41  ;;  %v15786_v56 = vld [vmem:[#allocation317_spill] sm:$0xff]  ;;  %v15791_v1 = vld [vmem:[#allocation183_spill] sm:$0xff]  ;;  %v11174_v3 = vpop.eup %4774 }
 0x3cb   : > { %v15781_v57 = vsel %vm11139_vm15, 4294967295, %v15780_v57  ;;  %4782 = vlog2.f32 %v15785_v14  ;;  %v11158_v52 = vsel %vm11113_vm4, %v2768_v34, 0.0  ;;  %v3649_v43 = vadd.f32 %v15786_v56, %v3648_v6  ;;  %v15792_v6 = vld [vmem:[#allocation119_spill] sm:$0xff] }
 0x3cc   : > { %15782 = vst [vmem:[#allocation199_spill] sm:$0xff] %v15781_v57  ;;  %vm15787_vm13 = vcmp.gt.f32.partialorder %v15684_v19, 0.0001  ;;  %v15788_v16 = vmov 0  ;;  %v2771_v41 = vsub.f32 %v15791_v1, %v11101_v51  ;;  %v3271_v29 = vadd.f32 %v3270_v11, %v10926_v18  ;;  %v15794_v11 = vld [vmem:[#allocation318_spill] sm:$0xff] }
 0x3cd   : > { %vm11165_vm6 = vmand %vm15787_vm13, %vm1874_vm10  ;;  %v3394_v20 = vmul.f32 %v10804_v0, %v10804_v0  ;;  %v3519_v34 = vadd.f32 %v3518_v45, %v3392_v39  ;;  %v11179_v19 = vmul.f32 0.6931472, %v11018_v10  ;;  %4784 = vlog2.f32 %v15793_v55  ;;  %v15799_v39 = vld [vmem:[#allocation177_spill] sm:$0xff]  ;;  %v15800_v45 = vld [vmem:[#allocation35_spill] sm:$0xff]  ;;  %v11200_v55 = vpop.eup %4776 }
 0x3ce   : > { %v15789_v16 = vsel %vm11165_vm6, 4294967295, %v15788_v16  ;;  %v11184_v51 = vsel %vm11139_vm15, %v2769_v35, 0.0  ;;  %v3650_v56 = vadd.f32 %v15794_v11, %v3649_v43  ;;  %vm15795_vm10 = vcmp.gt.f32.partialorder %v15690_v25, 0.0001  ;;  %v15801_v43 = vld [vmem:[#allocation120_spill] sm:$0xff] }
 0x3cf   : > { %15790 = vst [vmem:[#allocation204_spill] sm:$0xff] %v15789_v16  ;;  %vm11191_vm13 = vmand %vm15795_vm10, %vm1875_vm9  ;;  %v15796_v0 = vmov 0  ;;  %v2772_v10 = vsub.f32 %v15799_v39, %v11127_v54  ;;  %v3272_v1 = vadd.f32 %v3271_v29, %v15800_v45  ;;  %v3395_v57 = vmul.f32 %v10814_v21, %v10814_v21  ;;  %v15803_v29 = vld [vmem:[#allocation319_spill] sm:$0xff]  ;;  %v11226_v16 = vpop.eup %4778 }
 0x3d0   : > { %v15797_v0 = vsel %vm11191_vm13, 4294967295, %v15796_v0  ;;  %v3520_v35 = vadd.f32 %v3519_v34, %v3393_v31  ;;  %v11205_v25 = vmul.f32 0.6931472, %v11044_v46  ;;  %4786 = vlog2.f32 %v15802_v4  ;;  %v15808_v31 = vld [vmem:[#allocation181_spill] sm:$0xff] }
 0x3d1   : > { %15798 = vst [vmem:[#allocation238_spill] sm:$0xff] %v15797_v0  ;;  %v11210_v54 = vsel %vm11165_vm6, %v2770_v48, 0.0  ;;  %v3651_v11 = vadd.f32 %v15803_v29, %v3650_v56  ;;  %vm15804_vm9 = vcmp.gt.f32.partialorder %v15696_v12, 0.0001  ;;  %v15805_v21 = vmov 0  ;;  %v15809_v56 = vld [vmem:[#allocation63_spill] sm:$0xff] }
 0x3d2   : > { %vm11217_vm10 = vmand %vm15804_vm9, %vm1876_vm7  ;;  %v2773_v46 = vsub.f32 %v15808_v31, %v11153_v44  ;;  %v3273_v34 = vadd.f32 %v3272_v1, %v10976_v40  ;;  %v3396_v39 = vmul.f32 %v10826_v37, %v10826_v37  ;;  %v3521_v48 = vadd.f32 %v3520_v35, %v3394_v20  ;;  %v15811_v44 = vld [vmem:[#allocation320_spill] sm:$0xff]  ;;  %v11250_v0 = vpop.eup %4780 }
 0x3d3   : > { %v15806_v21 = vsel %vm11217_vm10, 4294967295, %v15805_v21  ;;  %v2600_v12 = vmul.f32 0.6931472, %v11070_v7  ;;  %4788 = vlog2.f32 %v15810_v53  ;;  %v11234_v29 = vsel %vm11191_vm13, %v2771_v41, 0.0  ;;  %v15817_v20 = vld [vmem:[#allocation16_spill] sm:$0xff] }
 0x3d4   : > { %15807 = vst [vmem:[#allocation205_spill] sm:$0xff] %v15806_v21  ;;  %v3652_v1 = vadd.f32 %v15811_v44, %v3651_v11  ;;  %vm15812_vm7 = vcmp.lt.s32.totalorder %v15765_v2, 512  ;;  %vm15813_vm9 = vcmp.gt.f32.partialorder %v15702_v58, 0.0001  ;;  %v15814_v37 = vmov 0  ;;  %v15818_v11 = vld [vmem:[#allocation121_spill] sm:$0xff] }
 0x3d5   : > { %vm11241_vm6 = vmand %vm15813_vm9, %vm15812_vm7  ;;  %v2774_v35 = vsub.f32 %v15817_v20, %v11179_v19  ;;  %v3274_v7 = vadd.f32 %v3273_v34, %v11002_v33  ;;  %v3397_v31 = vmul.f32 %v10838_v23, %v10838_v23  ;;  %v3522_v41 = vadd.f32 %v3521_v48, %v3395_v57  ;;  %v15819_v2 = vld [vmem:[#allocation295_spill] sm:$0xff]  ;;  %v15820_v19 = vld [vmem:[#allocation321_spill] sm:$0xff]  ;;  %v11274_v21 = vpop.eup %4782 }
 0x3d6   : > { %v15815_v37 = vsel %vm11241_vm6, 4294967295, %v15814_v37  ;;  %v2602_v58 = vmul.f32 0.6931472, %v11096_v22  ;;  %4790 = vlog2.f32 %v15819_v2  ;;  %v11258_v44 = vsel %vm11217_vm10, %v2772_v10, 0.0  ;;  %v15826_v57 = vld [vmem:[#allocation276_spill] sm:$0xff] }
 0x3d7   : > { %15816 = vst [vmem:[#allocation350_spill] sm:$0xff] %v15815_v37  ;;  %v3653_v34 = vadd.f32 %v15820_v19, %v3652_v1  ;;  %vm15821_vm7 = vcmp.lt.s32.totalorder %v15776_v5, 512  ;;  %vm15822_vm9 = vcmp.gt.f32.partialorder %v15709_v15, 0.0001  ;;  %v15823_v23 = vmov 0  ;;  %v15827_v1 = vld [vmem:[#allocation64_spill] sm:$0xff] }
 0x3d8   : > { %vm11265_vm13 = vmand %vm15822_vm9, %vm15821_vm7  ;;  %v2775_v48 = vsub.f32 %v15826_v57, %v11205_v25  ;;  %v3275_v22 = vadd.f32 %v3274_v7, %v11028_v60  ;;  %v3398_v20 = vmul.f32 %v10852_v28, %v10852_v28  ;;  %v3523_v10 = vadd.f32 %v3522_v41, %v3396_v39  ;;  %v15828_v5 = vld [vmem:[#allocation29_spill] sm:$0xff]  ;;  %v15829_v25 = vld [vmem:[#allocation407_spill] sm:$0xff] }
 0x3d9   : > { %v15824_v23 = vsel %vm11265_vm13, 4294967295, %v15823_v23  ;;  %v2604_v15 = vmul.f32 0.6931472, %v11122_v24  ;;  %4792 = vlog2.f32 %v15828_v5  ;;  %v11282_v19 = vsel %vm11241_vm6, %v2773_v46, 0.0  ;;  %v15835_v39 = vld [vmem:[#allocation151_spill] sm:$0xff]  ;;  %v11297_v46 = vpop.eup %4784  ;;  %v15836_v5 = vld [vmem:[#allocation65_spill] sm:$0xff] }
 0x3da   : > { %15825 = vst [vmem:[#allocation239_spill] sm:$0xff] %v15824_v23  ;;  %v3654_v7 = vadd.f32 %v15829_v25, %v3653_v34  ;;  %vm15830_vm7 = vcmp.lt.s32.totalorder %v15784_v47, 512  ;;  %vm15831_vm9 = vcmp.gt.f32.partialorder %v15714_v9, 0.0001  ;;  %v15832_v28 = vmov 0  ;;  %v15837_v47 = vld [vmem:[#allocation297_spill] sm:$0xff] }
 0x3db   : > { %vm11289_vm10 = vmand %vm15831_vm9, %vm15830_vm7  ;;  %v2776_v41 = vsub.f32 %v15835_v39, %v2600_v12  ;;  %v3276_v24 = vadd.f32 %v3275_v22, %v11054_v49  ;;  %v3399_v57 = vmul.f32 %v10866_v27, %v10866_v27  ;;  %v3524_v37 = vadd.f32 %v3523_v10, %v3397_v31  ;;  %v15838_v12 = vld [vmem:[#allocation408_spill] sm:$0xff]  ;;  %v15844_v31 = vld [vmem:[#allocation257_spill] sm:$0xff] }
 0x3dc   : > { %v15833_v28 = vsel %vm11289_vm10, 4294967295, %v15832_v28  ;;  %v2606_v9 = vmul.f32 0.6931472, %v11148_v42  ;;  %4794 = vlog2.f32 %v15837_v47  ;;  %v11305_v34 = vsel %vm11265_vm13, %v2774_v35, 0.0  ;;  %v11320_v35 = vpop.eup %4786  ;;  %v15845_v23 = vld [vmem:[#allocation66_spill] sm:$0xff] }
 0x3dd   : > { %15834 = vst [vmem:[#allocation282_spill] sm:$0xff] %v15833_v28  ;;  %v3655_v22 = vadd.f32 %v15838_v12, %v3654_v7  ;;  %vm15839_vm7 = vcmp.lt.s32.totalorder %v15792_v6, 512  ;;  %vm15840_vm9 = vcmp.gt.f32.partialorder %v15722_v59, 0.0001  ;;  %v15841_v27 = vmov 0  ;;  %v15846_v6 = vld [vmem:[#allocation298_spill] sm:$0xff] }
 0x3de   : > { %vm11312_vm6 = vmand %vm15840_vm9, %vm15839_vm7  ;;  %v2777_v10 = vsub.f32 %v15844_v31, %v2602_v58  ;;  %v3277_v42 = vadd.f32 %v3276_v24, %v11080_v13  ;;  %v3400_v25 = vmul.f32 %v10880_v61, %v10880_v61  ;;  %v3525_v39 = vadd.f32 %v3524_v37, %v3398_v20  ;;  %v15847_v58 = vld [vmem:[#allocation324_spill] sm:$0xff]  ;;  %v15854_v12 = vld [vmem:[#allocation42_spill] sm:$0xff] }
 0x3df   : > { %v15842_v27 = vsel %vm11312_vm6, 4294967295, %v15841_v27  ;;  %v2608_v59 = vmul.f32 0.6931472, %v11174_v3  ;;  %4796 = vlog2.f32 %v15846_v6  ;;  %v11328_v7 = vsel %vm11289_vm10, %v2775_v48, 0.0  ;;  %v15853_v37 = vld [vmem:[#allocation152_spill] sm:$0xff]  ;;  %v11343_v48 = vpop.eup %4788 }
 0x3e0   : > { %15843 = vst [vmem:[#allocation288_spill] sm:$0xff] %v15842_v27  ;;  %v3656_v24 = vadd.f32 %v15847_v58, %v3655_v22  ;;  %vm15848_vm7 = vcmp.lt.s32.totalorder %v15801_v43, 512  ;;  %vm15849_vm9 = vcmp.gt.f32.partialorder %v15731_v50, 0.0001  ;;  %v15850_v61 = vmov 0  ;;  %v15855_v58 = vld [vmem:[#allocation30_spill] sm:$0xff] }
 0x3e1   : > { %vm11335_vm13 = vmand %vm15849_vm9, %vm15848_vm7  ;;  %v2778_v20 = vsub.f32 %v15853_v37, %v2604_v15  ;;  %v3278_v3 = vadd.f32 %v3277_v42, %v15854_v12  ;;  %v3401_v31 = vmul.f32 %v15774_v63, %v15774_v63  ;;  %v3526_v28 = vadd.f32 %v3525_v39, %v3399_v57  ;;  %v15856_v43 = vld [vmem:[#allocation325_spill] sm:$0xff]  ;;  %v15862_v63 = vld [vmem:[#allocation258_spill] sm:$0xff] }
 0x3e2   : > { %v15851_v61 = vsel %vm11335_vm13, 4294967295, %v15850_v61  ;;  %v2610_v22 = vmul.f32 0.6931472, %v11200_v55  ;;  %4798 = vlog2.f32 %v15855_v58  ;;  %v11349_v50 = vsel %vm11312_vm6, %v2776_v41, 0.0  ;;  %v11364_v41 = vpop.eup %4790  ;;  %v15863_v37 = vld [vmem:[#allocation67_spill] sm:$0xff] }
 0x3e3   : > { %15852 = vst [vmem:[#allocation206_spill] sm:$0xff] %v15851_v61  ;;  %v3657_v6 = vadd.f32 %v15856_v43, %v3656_v24  ;;  %vm15857_vm7 = vcmp.lt.s32.totalorder %v15809_v56, 512  ;;  %vm15858_vm9 = vcmp.gt.f32.partialorder %v15738_v26, 0.0001  ;;  %v15859_v15 = vmov 0  ;;  %v15864_v56 = vld [vmem:[#allocation300_spill] sm:$0xff] }
 0x3e4   : > { %vm11356_vm11 = vmand %vm15858_vm9, %vm15857_vm7  ;;  %v2779_v57 = vsub.f32 %v15862_v63, %v2606_v9  ;;  %v3279_v55 = vadd.f32 %v3278_v3, %v11132_v30  ;;  %v3402_v42 = vmul.f32 %v10909_v36, %v10909_v36  ;;  %v3527_v39 = vadd.f32 %v3526_v28, %v3400_v25  ;;  %v15865_v9 = vld [vmem:[#allocation326_spill] sm:$0xff]  ;;  %v15871_v28 = vld [vmem:[#allocation259_spill] sm:$0xff] }
 0x3e5   : > { %v15860_v15 = vsel %vm11356_vm11, 4294967295, %v15859_v15  ;;  %v2612_v26 = vmul.f32 0.6931472, %v11226_v16  ;;  %4800 = vlog2.f32 %v15864_v56  ;;  %v11372_v24 = vsel %vm11335_vm13, %v2777_v10, 0.0  ;;  %v11387_v10 = vpop.eup %4792  ;;  %v15872_v61 = vld [vmem:[#allocation68_spill] sm:$0xff] }
 0x3e6   : > { %15861 = vst [vmem:[#allocation240_spill] sm:$0xff] %v15860_v15  ;;  %v3658_v3 = vadd.f32 %v15865_v9, %v3657_v6  ;;  %vm15866_vm7 = vcmp.lt.s32.totalorder %v15818_v11, 512  ;;  %vm15867_vm9 = vcmp.gt.f32.partialorder %v15745_v62, 0.0001  ;;  %v15868_v36 = vmov 0  ;;  %v15873_v11 = vld [vmem:[#allocation301_spill] sm:$0xff] }
 0x3e7   : > { %vm11379_vm10 = vmand %vm15867_vm9, %vm15866_vm7  ;;  %v2780_v25 = vsub.f32 %v15871_v28, %v2608_v59  ;;  %v3280_v16 = vadd.f32 %v3279_v55, %v11158_v52  ;;  %v3403_v43 = vmul.f32 %v10926_v18, %v10926_v18  ;;  %v3528_v63 = vadd.f32 %v3527_v39, %v3401_v31  ;;  %v15874_v6 = vld [vmem:[#allocation328_spill] sm:$0xff]  ;;  %v15880_v31 = vld [vmem:[#allocation186_spill] sm:$0xff] }
 0x3e8   : > { %v15869_v36 = vsel %vm11379_vm10, 4294967295, %v15868_v36  ;;  %v11392_v62 = vmul.f32 0.6931472, %v11250_v0  ;;  %4802 = vlog2.f32 %v15873_v11  ;;  %v11397_v59 = vsel %vm11356_vm11, %v2778_v20, 0.0  ;;  %v11412_v20 = vpop.eup %4794  ;;  %v15881_v15 = vld [vmem:[#allocation69_spill] sm:$0xff]  ;;  %v15904_v11 = vld [vmem:[#allocation71_spill] sm:$0xff] }
 0x3e9   : > { %15870 = vst [vmem:[#allocation200_spill] sm:$0xff] %v15869_v36  ;;  %v3659_v55 = vadd.f32 %v15874_v6, %v3658_v3  ;;  %vm15875_vm7 = vcmp.lt.s32.totalorder %v15827_v1, 512  ;;  %vm15876_vm9 = vcmp.gt.f32.partialorder %v15752_v38, 0.0001  ;;  %v15877_v18 = vmov 0  ;;  %v15882_v3 = vld [vmem:[#allocation28_spill] sm:$0xff] }
 0x3ea   : > { %vm11404_vm13 = vmand %vm15876_vm9, %vm15875_vm7  ;;  %v2781_v39 = vsub.f32 %v15880_v31, %v2610_v22  ;;  %v3281_v0 = vadd.f32 %v3280_v16, %v11184_v51  ;;  %v3404_v9 = vmul.f32 %v15800_v45, %v15800_v45  ;;  %v3529_v28 = vadd.f32 %v3528_v63, %v3402_v42  ;;  %v15883_v1 = vld [vmem:[#allocation31_spill] sm:$0xff]  ;;  %v15884_v16 = vld [vmem:[#allocation330_spill] sm:$0xff] }
 0x3eb   : > { %v15878_v18 = vsel %vm11404_vm13, 4294967295, %v15877_v18  ;;  %v11417_v38 = vmul.f32 0.6931472, %v11274_v21  ;;  %4804 = vlog2.f32 %v15883_v1  ;;  %v11422_v22 = vsel %vm11379_vm10, %v2779_v57, 0.0  ;;  %v15890_v42 = vld [vmem:[#allocation208_spill] sm:$0xff]  ;;  %v11437_v57 = vpop.eup %4796 }
 0x3ec   : > { %15879 = vst [vmem:[#allocation351_spill] sm:$0xff] %v15878_v18  ;;  %v3660_v6 = vadd.f32 %v15884_v16, %v3659_v55  ;;  %vm15885_vm7 = vcmp.lt.s32.totalorder %v15836_v5, 512  ;;  %vm15886_vm9 = vcmp.gt.f32.partialorder %v15759_v8, 0.0001  ;;  %v15887_v45 = vmov 0  ;;  %v15891_v5 = vld [vmem:[#allocation303_spill] sm:$0xff] }
 0x3ed   : > { %vm11429_vm11 = vmand %vm15886_vm9, %vm15885_vm7  ;;  %v2782_v63 = vsub.f32 %v15890_v42, %v2612_v26  ;;  %v3282_v21 = vadd.f32 %v3281_v0, %v11210_v54  ;;  %v3405_v31 = vmul.f32 %v10976_v40, %v10976_v40  ;;  %v3530_v36 = vadd.f32 %v3529_v28, %v3403_v43  ;;  %v15892_v16 = vld [vmem:[#allocation331_spill] sm:$0xff]  ;;  %v11462_v42 = vpop.eup %4798 }
 0x3ee   : > { %v15888_v45 = vsel %vm11429_vm11, 4294967295, %v15887_v45  ;;  %v11440_v55 = vmul.f32 0.6931472, %v11297_v46  ;;  %4806 = vlog2.f32 %v15891_v5  ;;  %v11445_v8 = vsel %vm11404_vm13, %v2780_v25, 0.0 }
 0x3ef   : > { %15889 = vst [vmem:[#allocation207_spill] sm:$0xff] %v15888_v45  ;;  %v3661_v27 = vadd.f32 %v15892_v16, %v3660_v6  ;;  %vm15893_vm7 = vcmp.lt.s32.totalorder %v15845_v23, 512  ;;  %vm15894_vm9 = vcmp.gt.f32.partialorder %v15766_v32, 0.0001  ;;  %v15895_v40 = vmov 0  ;;  %v15900_v6 = vld [vmem:[#allocation70_spill] sm:$0xff]  ;;  %v11482_v1 = vpop.eup %4800 }
 0x3f0   : > { %vm11452_vm6 = vmand %vm15894_vm9, %vm15893_vm7  ;;  %v15898_v26 = vmov 0.0   ;;  %v3283_v0 = vadd.f32 %v3282_v21, %v11234_v29  ;;  %v3406_v25 = vmul.f32 %v11002_v33, %v11002_v33  ;;  %v3531_v28 = vadd.f32 %v3530_v36, %v3404_v9  ;;  %v15901_v23 = vld [vmem:[#allocation234_spill] sm:$0xff]  ;;  %v15902_v21 = vld [vmem:[#allocation332_spill] sm:$0xff] }
 0x3f1   : > { %v15896_v40 = vsel %vm11452_vm6, 4294967295, %v15895_v40  ;;  %v4189_v46 = vsel %vm10933_vm12, 1.0, %v15898_v26  ;;  %vm1890_vm1 = vcmp.lt.s32.totalorder %v15900_v6, 512  ;;  %v11467_v32 = vmul.f32 0.6931472, %v11320_v35  ;;  %v15942_v6 = vld [vmem:[#allocation298_spill] sm:$0xff] }
 0x3f2   : > { %15897 = vst [vmem:[#allocation241_spill] sm:$0xff] %v15896_v40  ;;  %v2783_v16 = vsub.f32 %v15901_v23, %v11392_v62  ;;  %v11473_v43 = vsel %vm11429_vm11, %v2781_v39, 0.0  ;;  %v3662_v18 = vadd.f32 %v15902_v21, %v3661_v27  ;;  %v4190_v36 = vsel %vm10958_vm14, 1.0, %v15898_v26  ;;  %v15905_v62 = vld [vmem:[#allocation304_spill] sm:$0xff]  ;;  %v15906_v27 = vld [vmem:[#allocation209_spill] sm:$0xff]  ;;  %v11507_v33 = vpop.eup %4802 }
 0x3f3   : > { %v3284_v9 = vadd.f32 %v3283_v0, %v11258_v44  ;;  %v3407_v5 = vmul.f32 %v11028_v60, %v11028_v60  ;;  %v3532_v35 = vadd.f32 %v3531_v28, %v3405_v31  ;;  %4808 = vlog2.f32 %v15905_v62 }
 0x3f4   : > { %v2784_v39 = vsub.f32 %v15906_v27, %v11417_v38  ;;  %v11491_v23 = vsel %vm11452_vm6, %v2782_v63, 0.0  ;;  %v3663_v0 = vadd.f32 %v4189_v46, %v3662_v18  ;;  %vm15907_vm14 = vcmp.lt.s32.totalorder %v15863_v37, 512  ;;  %v15913_v18 = vld [vmem:[#allocation72_spill] sm:$0xff]  ;;  %v15915_v46 = vld [vmem:[#allocation210_spill] sm:$0xff] }
 0x3f5   : > { %vm15908_vm9 = vcmp.gt.f32.partialorder %v15777_v17, 0.0001  ;;  %v15909_v60 = vmov 0  ;;  %v4191_v28 = vsel %vm10983_vm8, 1.0, %v15898_v26  ;;  %v3285_v21 = vadd.f32 %v3284_v9, %v11282_v19  ;;  %v15914_v37 = vld [vmem:[#allocation32_spill] sm:$0xff] }
 0x3f6   : > { %vm11497_vm13 = vmand %vm15908_vm9, %vm15907_vm14  ;;  %v3408_v38 = vmul.f32 %v11054_v49, %v11054_v49  ;;  %v3533_v63 = vadd.f32 %v3532_v35, %v3406_v25  ;;  %v11512_v17 = vmul.f32 0.6931472, %v11343_v48  ;;  %4810 = vlog2.f32 %v15914_v37 }
 0x3f7   : > { %v15910_v60 = vsel %vm11497_vm13, 4294967295, %v15909_v60  ;;  %v2785_v27 = vsub.f32 %v15915_v46, %v11440_v55  ;;  %v3664_v31 = vadd.f32 %v4190_v36, %v3663_v0  ;;  %vm15916_vm8 = vcmp.lt.s32.totalorder %v15872_v61, 512  ;;  %v11531_v55 = vpop.eup %4804 }
 0x3f8   : > { %15911 = vst [vmem:[#allocation291_spill] sm:$0xff] %v15910_v60  ;;  %vm15917_vm14 = vcmp.gt.f32.partialorder %v15785_v14, 0.0001  ;;  %v15918_v49 = vmov 0  ;;  %v4192_v9 = vsel %vm11009_vm2, 1.0, %v15898_v26  ;;  %v3286_v48 = vadd.f32 %v3285_v21, %v11305_v34  ;;  %v15922_v14 = vld [vmem:[#allocation306_spill] sm:$0xff]  ;;  %v11555_v46 = vpop.eup %4806 }
 0x3f9   : > { %vm11521_vm9 = vmand %vm15917_vm14, %vm15916_vm8  ;;  %v3409_v35 = vmul.f32 %v11080_v13, %v11080_v13  ;;  %v3534_v40 = vadd.f32 %v3533_v63, %v3407_v5  ;;  %v11534_v61 = vmul.f32 0.6931472, %v11364_v41  ;;  %4812 = vlog2.f32 %v15922_v14 }
 0x3fa   : > { %v15919_v49 = vsel %vm11521_vm9, 4294967295, %v15918_v49  ;;  %v11539_v36 = vsel %vm11497_vm13, %v2783_v16, 0.0  ;;  %v3665_v0 = vadd.f32 %v4191_v28, %v3664_v31  ;;  %vm15923_vm2 = vcmp.lt.s32.totalorder %v15881_v15, 512  ;;  %v15929_v28 = vld [vmem:[#allocation73_spill] sm:$0xff] }
 0x3fb   : > { %15920 = vst [vmem:[#allocation352_spill] sm:$0xff] %v15919_v49  ;;  %vm15924_vm8 = vcmp.gt.f32.partialorder %v15882_v3, 0.0001  ;;  %v15925_v21 = vmov 0  ;;  %v4193_v41 = vsel %vm11035_vm5, 1.0, %v15898_v26  ;;  %v3287_v5 = vadd.f32 %v3286_v48, %v11328_v7  ;;  %v15930_v15 = vld [vmem:[#allocation29_spill] sm:$0xff] }
 0x3fc   : > { %vm11545_vm14 = vmand %vm15924_vm8, %vm15923_vm2  ;;  %v3410_v63 = vmul.f32 %v15854_v12, %v15854_v12  ;;  %v3535_v16 = vadd.f32 %v3534_v40, %v3408_v38  ;;  %vm1893_vm12 = vcmp.lt.s32.totalorder %v15929_v28, 512  ;;  %vm2021_vm7 = vcmp.gt.f32.partialorder %v15930_v15, 0.0001  ;;  %v15931_v31 = vld [vmem:[#allocation261_spill] sm:$0xff] }
 0x3fd   : > { %v15926_v21 = vsel %vm11545_vm14, 4294967295, %v15925_v21  ;;  %v11560_v3 = vmul.f32 0.6931472, %v11387_v10  ;;  %v2786_v25 = vsub.f32 %v15931_v31, %v11467_v32  ;;  %v11566_v13 = vsel %vm11521_vm9, %v2784_v39, 0.0  ;;  %v15933_v10 = vld [vmem:[#allocation74_spill] sm:$0xff]  ;;  %v15934_v32 = vld [vmem:[#allocation307_spill] sm:$0xff]  ;;  %v11597_v12 = vpop.eup %4808 }
 0x3fe   : > { %15927 = vst [vmem:[#allocation353_spill] sm:$0xff] %v15926_v21  ;;  %v3666_v48 = vadd.f32 %v4192_v9, %v3665_v0  ;;  %v4194_v40 = vsel %vm11061_vm0, 1.0, %v15898_v26  ;;  %v3288_v38 = vadd.f32 %v3287_v5, %v11349_v50  ;;  %v3411_v60 = vmul.f32 %v11132_v30, %v11132_v30  ;;  %v15935_v39 = vld [vmem:[#allocation235_spill] sm:$0xff]  ;;  %v15971_v28 = vld [vmem:[#allocation301_spill] sm:$0xff] }
 0x3ff   : > { %v3536_v45 = vadd.f32 %v3535_v16, %v3409_v35  ;;  %4814 = vlog2.f32 %v15934_v32  ;;  %v2787_v31 = vsub.f32 %v15935_v39, %v11512_v17  ;;  %v11581_v9 = vsel %vm11545_vm14, %v2785_v27, 0.0  ;;  %v15944_v39 = vld [vmem:[#allocation188_spill] sm:$0xff] }
 0x400   : > { %v3667_v0 = vadd.f32 %v4193_v41, %v3666_v48  ;;  %vm15936_vm0 = vcmp.gt.f32.partialorder %v15802_v4, 0.0001  ;;  %v15937_v30 = vmov 0  ;;  %v4195_v5 = vsel %vm11087_vm3, 1.0, %v15898_v26  ;;  %v15941_v41 = vld [vmem:[#allocation75_spill] sm:$0xff]  ;;  %v15943_v48 = vld [vmem:[#allocation33_spill] sm:$0xff] }
 0x401   : > { %vm11587_vm8 = vmand %vm15936_vm0, %vm1890_vm1  ;;  %v3289_v16 = vadd.f32 %v3288_v38, %v11372_v24  ;;  %v3412_v17 = vmul.f32 %v11158_v52, %v11158_v52  ;;  %v3537_v27 = vadd.f32 %v3536_v45, %v3410_v63  ;;  %v11602_v4 = vmul.f32 0.6931472, %v11412_v20 }
 0x402   : > { %v15938_v30 = vsel %vm11587_vm8, 4294967295, %v15937_v30  ;;  %4816 = vlog2.f32 %v15943_v48  ;;  %v2788_v35 = vsub.f32 %v15944_v39, %v11534_v61  ;;  %v3668_v21 = vadd.f32 %v4194_v40, %v3667_v0  ;;  %v11621_v61 = vpop.eup %4810 }
 0x403   : > { %15939 = vst [vmem:[#allocation11_spill] sm:$0xff] %v15938_v30  ;;  %vm15945_vm1 = vcmp.lt.s32.totalorder %v15904_v11, 512  ;;  %vm15946_vm3 = vcmp.gt.f32.partialorder %v15810_v53, 0.0001  ;;  %v15947_v52 = vmov 0  ;;  %v4196_v63 = vsel %vm11113_vm4, 1.0, %v15898_v26  ;;  %v11645_v39 = vpop.eup %4812 }
 0x404   : > { %vm11611_vm0 = vmand %vm15946_vm3, %vm15945_vm1  ;;  %v3290_v20 = vadd.f32 %v3289_v16, %v11397_v59  ;;  %v3413_v38 = vmul.f32 %v11184_v51, %v11184_v51  ;;  %v3538_v49 = vadd.f32 %v3537_v27, %v3411_v60  ;;  %v11624_v11 = vmul.f32 0.6931472, %v11437_v57  ;;  %v15951_v53 = vld [vmem:[#allocation310_spill] sm:$0xff] }
 0x405   : > { %v15948_v52 = vsel %vm11611_vm0, 4294967295, %v15947_v52  ;;  %4818 = vlog2.f32 %v15951_v53  ;;  %v11629_v40 = vsel %vm11587_vm8, %v2786_v25, 0.0  ;;  %v3669_v0 = vadd.f32 %v4195_v5, %v3668_v21  ;;  %v15958_v21 = vld [vmem:[#allocation76_spill] sm:$0xff] }
 0x406   : > { %15949 = vst [vmem:[#allocation296_spill] sm:$0xff] %v15948_v52  ;;  %vm15952_vm4 = vcmp.lt.s32.totalorder %v15913_v18, 512  ;;  %vm15953_vm1 = vcmp.gt.f32.partialorder %v15819_v2, 0.0001  ;;  %v15954_v16 = vmov 0  ;;  %v4197_v57 = vsel %vm11139_vm15, 1.0, %v15898_v26 }
 0x407   : > { %vm11635_vm3 = vmand %vm15953_vm1, %vm15952_vm4  ;;  %v3291_v60 = vadd.f32 %v3290_v20, %v11422_v22  ;;  %v3414_v27 = vmul.f32 %v11210_v54, %v11210_v54  ;;  %v3539_v25 = vadd.f32 %v3538_v49, %v3412_v17  ;;  %v11650_v2 = vmul.f32 0.6931472, %v11462_v42  ;;  %v15959_v18 = vld [vmem:[#allocation158_spill] sm:$0xff]  ;;  %v15960_v54 = vld [vmem:[#allocation204_spill] sm:$0xff] }
 0x408   : > { %v15955_v16 = vsel %vm11635_vm3, 4294967295, %v15954_v16  ;;  %v2789_v5 = vsub.f32 %v15959_v18, %v11560_v3  ;;  %v11656_v45 = vsel %vm11611_vm0, %v2787_v31, 0.0  ;;  %v3670_v20 = vadd.f32 %v4196_v63, %v3669_v0  ;;  %v15962_v42 = vld [vmem:[#allocation77_spill] sm:$0xff]  ;;  %v15963_v3 = vld [vmem:[#allocation34_spill] sm:$0xff]  ;;  %v15964_v31 = vld [vmem:[#allocation159_spill] sm:$0xff] }
 0x409   : > { %15956 = vst [vmem:[#allocation201_spill] sm:$0xff] %v15955_v16  ;;  %vm15961_vm15 = vnez %v15960_v54  ;;  %v3292_v17 = vadd.f32 %v3291_v60, %v11445_v8  ;;  %v3415_v51 = vmul.f32 %v11234_v29, %v11234_v29  ;;  %v3540_v30 = vadd.f32 %v3539_v25, %v3413_v38  ;;  %v15968_v38 = vld [vmem:[#allocation238_spill] sm:$0xff]  ;;  %v11687_v54 = vpop.eup %4814 }
 0x40a   : > { %v4198_v49 = vsel %vm15961_vm15, 1.0, %v15898_v26  ;;  %4820 = vlog2.f32 %v15963_v3  ;;  %v2790_v18 = vsub.f32 %v15964_v31, %v11602_v4  ;;  %v11671_v63 = vsel %vm11635_vm3, %v2788_v35, 0.0  ;;  %vm11677_vm15 = vmand %vm2021_vm7, %vm1893_vm12  ;;  %v15973_v31 = vld [vmem:[#allocation263_spill] sm:$0xff] }
 0x40b   : > { %v3671_v0 = vadd.f32 %v4197_v57, %v3670_v20  ;;  %v15965_v29 = vmov 0  ;;  %vm15969_vm1 = vnez %v15968_v38  ;;  %v3293_v25 = vadd.f32 %v3292_v17, %v11473_v43  ;;  %v15970_v57 = vld [vmem:[#allocation78_spill] sm:$0xff]  ;;  %v15972_v20 = vld [vmem:[#allocation313_spill] sm:$0xff] }
 0x40c   : > { %v15966_v29 = vsel %vm11677_vm15, 4294967295, %v15965_v29  ;;  %v4199_v60 = vsel %vm15969_vm1, 1.0, %v15898_v26  ;;  %v3416_v4 = vmul.f32 %v11258_v44, %v11258_v44  ;;  %v3541_v35 = vadd.f32 %v3540_v30, %v3414_v27  ;;  %v15978_v30 = vld [vmem:[#allocation205_spill] sm:$0xff] }
 0x40d   : > { %15967 = vst [vmem:[#allocation242_spill] sm:$0xff] %v15966_v29  ;;  %v11692_v15 = vmul.f32 0.6931472, %v11482_v1  ;;  %4822 = vlog2.f32 %v15972_v20  ;;  %v2791_v38 = vsub.f32 %v15973_v31, %v11624_v11  ;;  %v3672_v16 = vadd.f32 %v4198_v49, %v3671_v0  ;;  %v11711_v11 = vpop.eup %4816  ;;  %v15994_v20 = vld [vmem:[#allocation303_spill] sm:$0xff] }
 0x40e   : > { %vm15974_vm12 = vcmp.lt.s32.totalorder %v15933_v10, 512  ;;  %vm15975_vm7 = vcmp.gt.f32.partialorder %v15837_v47, 0.0001  ;;  %v15976_v44 = vmov 0  ;;  %vm15979_vm2 = vnez %v15978_v30  ;;  %v15980_v47 = vld [vmem:[#allocation36_spill] sm:$0xff] }
 0x40f   : > { %vm11701_vm1 = vmand %vm15975_vm7, %vm15974_vm12  ;;  %v4200_v27 = vsel %vm15979_vm2, 1.0, %v15898_v26  ;;  %v3294_v1 = vadd.f32 %v3293_v25, %v11491_v23  ;;  %v3417_v17 = vmul.f32 %v11282_v19, %v11282_v19  ;;  %v3542_v52 = vadd.f32 %v3541_v35, %v3415_v51  ;;  %v15986_v19 = vld [vmem:[#allocation350_spill] sm:$0xff]  ;;  %v11735_v31 = vpop.eup %4818 }
 0x410   : > { %v15977_v44 = vsel %vm11701_vm1, 4294967295, %v15976_v44  ;;  %v11714_v10 = vmul.f32 0.6931472, %v11507_v33  ;;  %4824 = vlog2.f32 %v15980_v47  ;;  %v11719_v49 = vsel %vm11677_vm15, %v2789_v5, 0.0 }
 0x411   : > { %v3673_v0 = vadd.f32 %v4199_v60, %v3672_v16  ;;  %vm15981_vm2 = vcmp.lt.s32.totalorder %v15941_v41, 512  ;;  %vm15982_vm12 = vcmp.gt.f32.partialorder %v15942_v6, 0.0001  ;;  %v15983_v25 = vmov 0  ;;  %v15988_v16 = vld [vmem:[#allocation79_spill] sm:$0xff]  ;;  %v15990_v60 = vld [vmem:[#allocation378_spill] sm:$0xff] }
 0x412   : > { %vm11725_vm7 = vmand %vm15982_vm12, %vm15981_vm2  ;;  %vm15987_vm4 = vnez %v15986_v19  ;;  %v3295_v51 = vadd.f32 %v3294_v1, %v11539_v36  ;;  %v3418_v35 = vmul.f32 %v11305_v34, %v11305_v34  ;;  %v3543_v5 = vadd.f32 %v3542_v52, %v3416_v4  ;;  %v15989_v41 = vld [vmem:[#allocation31_spill] sm:$0xff] }
 0x413   : > { %v15984_v25 = vsel %vm11725_vm7, 4294967295, %v15983_v25  ;;  %v4201_v33 = vsel %vm15987_vm4, 1.0, %v15898_v26  ;;  %v11740_v6 = vmul.f32 0.6931472, %v11531_v55  ;;  %v2792_v30 = vsub.f32 %v15990_v60, %v11650_v2  ;;  %v15991_v34 = vld [vmem:[#allocation239_spill] sm:$0xff]  ;;  %v15993_v55 = vld [vmem:[#allocation80_spill] sm:$0xff] }
 0x414   : > { %15985 = vst [vmem:[#allocation354_spill] sm:$0xff] %v15984_v25  ;;  %v11746_v19 = vsel %vm11701_vm1, %v2790_v18, 0.0  ;;  %v3674_v1 = vadd.f32 %v4200_v27, %v3673_v0  ;;  %vm15992_vm4 = vnez %v15991_v34  ;;  %v3296_v4 = vadd.f32 %v3295_v51, %v11566_v13  ;;  %v15995_v2 = vld [vmem:[#allocation37_spill] sm:$0xff]  ;;  %v15996_v18 = vld [vmem:[#allocation379_spill] sm:$0xff]  ;;  %v11777_v34 = vpop.eup %4820 }
 0x415   : > { %v4202_v52 = vsel %vm15992_vm4, 1.0, %v15898_v26  ;;  %v3419_v29 = vmul.f32 %v11328_v7, %v11328_v7  ;;  %v3544_v47 = vadd.f32 %v3543_v5, %v3417_v17  ;;  %4826 = vlog2.f32 %v15995_v2  ;;  %v16002_v17 = vld [vmem:[#allocation282_spill] sm:$0xff] }
 0x416   : > { %v2793_v60 = vsub.f32 %v15996_v18, %v11692_v15  ;;  %v11761_v27 = vsel %vm11725_vm7, %v2791_v38, 0.0  ;;  %v3675_v0 = vadd.f32 %v4201_v33, %v3674_v1  ;;  %vm15997_vm4 = vcmp.lt.s32.totalorder %v15958_v21, 512  ;;  %v16004_v33 = vld [vmem:[#allocation81_spill] sm:$0xff]  ;;  %v16005_v21 = vld [vmem:[#allocation38_spill] sm:$0xff]  ;;  %v16006_v1 = vld [vmem:[#allocation380_spill] sm:$0xff] }
 0x417   : > { %vm15998_vm15 = vcmp.gt.f32.partialorder %v15855_v58, 0.0001  ;;  %v15999_v7 = vmov 0  ;;  %vm16003_vm12 = vnez %v16002_v17  ;;  %v3297_v5 = vadd.f32 %v3296_v4, %v11581_v9 }
 0x418   : > { %vm11767_vm5 = vmand %vm15998_vm15, %vm15997_vm4  ;;  %v4203_v51 = vsel %vm16003_vm12, 1.0, %v15898_v26  ;;  %v3420_v15 = vmul.f32 %v11349_v50, %v11349_v50  ;;  %v3545_v38 = vadd.f32 %v3544_v47, %v3418_v35  ;;  %v11782_v58 = vmul.f32 0.6931472, %v11555_v46  ;;  %v16011_v47 = vld [vmem:[#allocation288_spill] sm:$0xff] }
 0x419   : > { %v16000_v7 = vsel %vm11767_vm5, 4294967295, %v15999_v7  ;;  %4828 = vlog2.f32 %v16005_v21  ;;  %v2794_v18 = vsub.f32 %v16006_v1, %v11714_v10  ;;  %v3676_v17 = vadd.f32 %v4202_v52, %v3675_v0  ;;  %v11801_v10 = vpop.eup %4822 }
 0x41a   : > { %16001 = vst [vmem:[#allocation243_spill] sm:$0xff] %v16000_v7  ;;  %vm16007_vm15 = vcmp.lt.s32.totalorder %v15962_v42, 512  ;;  %vm16008_vm12 = vcmp.gt.f32.partialorder %v15864_v56, 0.0001  ;;  %vm16012_vm7 = vnez %v16011_v47  ;;  %v3298_v46 = vadd.f32 %v3297_v5, %v11629_v40  ;;  %v16013_v56 = vld [vmem:[#allocation334_spill] sm:$0xff]  ;;  %v11825_v1 = vpop.eup %4824 }
 0x41b   : > { %vm11791_vm4 = vmand %vm16008_vm12, %vm16007_vm15  ;;  %v4204_v35 = vsel %vm16012_vm7, 1.0, %v15898_v26  ;;  %v3421_v4 = vmul.f32 %v11372_v24, %v11372_v24  ;;  %v3546_v25 = vadd.f32 %v3545_v38, %v3419_v29  ;;  %v11804_v42 = vmul.f32 0.6931472, %v11597_v12  ;;  %v16019_v24 = vld [vmem:[#allocation206_spill] sm:$0xff] }
 0x41c   : > { %4830 = vlog2.f32 %v16013_v56  ;;  %v11809_v52 = vsel %vm11767_vm5, %v2792_v30, 0.0  ;;  %v3677_v0 = vadd.f32 %v4203_v51, %v3676_v17  ;;  %vm16014_vm7 = vcmp.lt.s32.totalorder %v15970_v57, 512  ;;  %v16021_v51 = vld [vmem:[#allocation82_spill] sm:$0xff] }
 0x41d   : > { %vm16015_vm15 = vcmp.gt.f32.partialorder %v15971_v28, 0.0001  ;;  %v16016_v5 = vmov 0  ;;  %vm16020_vm2 = vnez %v16019_v24  ;;  %v3299_v29 = vadd.f32 %v3298_v46, %v11656_v45  ;;  %v16022_v28 = vld [vmem:[#allocation381_spill] sm:$0xff] }
 0x41e   : > { %vm11815_vm12 = vmand %vm16015_vm15, %vm16014_vm7  ;;  %v4205_v12 = vsel %vm16020_vm2, 1.0, %v15898_v26  ;;  %v3422_v38 = vmul.f32 %v11397_v59, %v11397_v59  ;;  %v3547_v30 = vadd.f32 %v3546_v25, %v3420_v15  ;;  %v11830_v57 = vmul.f32 0.6931472, %v11621_v61  ;;  %v16023_v59 = vld [vmem:[#allocation240_spill] sm:$0xff]  ;;  %v16025_v61 = vld [vmem:[#allocation83_spill] sm:$0xff] }
 0x41f   : > { %v16017_v5 = vsel %vm11815_vm12, 4294967295, %v16016_v5  ;;  %v2795_v17 = vsub.f32 %v16022_v28, %v11740_v6  ;;  %v11836_v47 = vsel %vm11791_vm4, %v2793_v60, 0.0  ;;  %v3678_v46 = vadd.f32 %v4204_v35, %v3677_v0  ;;  %v16026_v6 = vld [vmem:[#allocation335_spill] sm:$0xff]  ;;  %v16027_v60 = vld [vmem:[#allocation382_spill] sm:$0xff] }
 0x420   : > { %16018 = vst [vmem:[#allocation327_spill] sm:$0xff] %v16017_v5  ;;  %vm16024_vm2 = vnez %v16023_v59  ;;  %v3300_v15 = vadd.f32 %v3299_v29, %v11671_v63  ;;  %v3423_v24 = vmul.f32 %v11422_v22, %v11422_v22  ;;  %v3548_v7 = vadd.f32 %v3547_v30, %v3421_v4  ;;  %v11867_v59 = vpop.eup %4826 }
 0x421   : > { %v4206_v25 = vsel %vm16024_vm2, 1.0, %v15898_v26  ;;  %4832 = vlog2.f32 %v16026_v6  ;;  %v2796_v28 = vsub.f32 %v16027_v60, %v11782_v58  ;;  %v11851_v35 = vsel %vm11815_vm12, %v2794_v18, 0.0 }
 0x422   : > { %v3679_v0 = vadd.f32 %v4205_v12, %v3678_v46  ;;  %vm16028_vm2 = vcmp.lt.s32.totalorder %v15988_v16, 512  ;;  %vm16029_vm1 = vcmp.gt.f32.partialorder %v15989_v41, 0.0001  ;;  %v16030_v22 = vmov 0  ;;  %v16034_v12 = vld [vmem:[#allocation84_spill] sm:$0xff]  ;;  %v16036_v46 = vld [vmem:[#allocation383_spill] sm:$0xff] }
 0x423   : > { %vm11857_vm5 = vmand %vm16029_vm1, %vm16028_vm2  ;;  %v4207_v29 = vsel %vm11379_vm10, 1.0, %v15898_v26  ;;  %v3301_v30 = vadd.f32 %v3300_v15, %v11719_v49  ;;  %v3424_v58 = vmul.f32 %v11445_v8, %v11445_v8  ;;  %v3549_v18 = vadd.f32 %v3548_v7, %v3422_v38  ;;  %v16035_v41 = vld [vmem:[#allocation336_spill] sm:$0xff]  ;;  %v16042_v7 = vld [vmem:[#allocation351_spill] sm:$0xff] }
 0x424   : > { %v16031_v22 = vsel %vm11857_vm5, 4294967295, %v16030_v22  ;;  %v11872_v16 = vmul.f32 0.6931472, %v11645_v39  ;;  %4834 = vlog2.f32 %v16035_v41  ;;  %v2797_v60 = vsub.f32 %v16036_v46, %v11804_v42  ;;  %v11891_v42 = vpop.eup %4828 }
 0x425   : > { %16032 = vst [vmem:[#allocation305_spill] sm:$0xff] %v16031_v22  ;;  %v3680_v4 = vadd.f32 %v4206_v25, %v3679_v0  ;;  %vm16037_vm10 = vcmp.lt.s32.totalorder %v15993_v55, 512  ;;  %vm16038_vm1 = vcmp.gt.f32.partialorder %v15994_v20, 0.0001  ;;  %v16039_v8 = vmov 0  ;;  %v16044_v20 = vld [vmem:[#allocation337_spill] sm:$0xff] }
 0x426   : > { %vm11881_vm2 = vmand %vm16038_vm1, %vm16037_vm10  ;;  %vm16043_vm7 = vnez %v16042_v7  ;;  %v3302_v39 = vadd.f32 %v3301_v30, %v11746_v19  ;;  %v3425_v15 = vmul.f32 %v11473_v43, %v11473_v43  ;;  %v3550_v5 = vadd.f32 %v3549_v18, %v3423_v24  ;;  %v11915_v46 = vpop.eup %4830 }
 0x427   : > { %v16040_v8 = vsel %vm11881_vm2, 4294967295, %v16039_v8  ;;  %v4208_v38 = vsel %vm16043_vm7, 1.0, %v15898_v26  ;;  %v11894_v55 = vmul.f32 0.6931472, %v11687_v54  ;;  %4836 = vlog2.f32 %v16044_v20 }
 0x428   : > { %16041 = vst [vmem:[#allocation244_spill] sm:$0xff] %v16040_v8  ;;  %v11899_v25 = vsel %vm11857_vm5, %v2795_v17, 0.0  ;;  %v3681_v0 = vadd.f32 %v4207_v29, %v3680_v4  ;;  %vm16045_vm7 = vcmp.lt.s32.totalorder %v16004_v33, 512  ;;  %vm16046_vm10 = vcmp.gt.f32.partialorder %v15905_v62, 0.0001  ;;  %v16051_v29 = vld [vmem:[#allocation85_spill] sm:$0xff] }
 0x429   : > { %vm11905_vm1 = vmand %vm16046_vm10, %vm16045_vm7  ;;  %v16047_v30 = vmov 0  ;;  %v4209_v54 = vsel %vm11429_vm11, 1.0, %v15898_v26  ;;  %v3303_v24 = vadd.f32 %v3302_v39, %v11761_v27  ;;  %v3426_v18 = vmul.f32 %v11491_v23, %v11491_v23  ;;  %v16052_v33 = vld [vmem:[#allocation385_spill] sm:$0xff]  ;;  %v16083_v8 = vld [vmem:[#allocation36_spill] sm:$0xff] }
 0x42a   : > { %v16048_v30 = vsel %vm11905_vm1, 4294967295, %v16047_v30  ;;  %v3551_v17 = vadd.f32 %v3550_v5, %v3424_v58  ;;  %vm1905_vm15 = vcmp.lt.s32.totalorder %v16051_v29, 512  ;;  %v11920_v62 = vmul.f32 0.6931472, %v11711_v11  ;;  %v16054_v11 = vld [vmem:[#allocation86_spill] sm:$0xff]  ;;  %v16091_v29 = vld [vmem:[#allocation341_spill] sm:$0xff] }
 0x42b   : > { %16049 = vst [vmem:[#allocation202_spill] sm:$0xff] %v16048_v30  ;;  %v2798_v4 = vsub.f32 %v16052_v33, %v11830_v57  ;;  %v11926_v7 = vsel %vm11881_vm2, %v2796_v28, 0.0  ;;  %v3682_v39 = vadd.f32 %v4208_v38, %v3681_v0  ;;  %v4210_v5 = vsel %vm11452_vm6, 1.0, %v15898_v26  ;;  %v16055_v57 = vld [vmem:[#allocation338_spill] sm:$0xff]  ;;  %v11957_v23 = vpop.eup %4832 }
 0x42c   : > { %v3304_v58 = vadd.f32 %v3303_v24, %v11809_v52  ;;  %v3427_v43 = vmul.f32 %v11539_v36, %v11539_v36  ;;  %v3552_v22 = vadd.f32 %v3551_v17, %v3425_v15  ;;  %4838 = vlog2.f32 %v16055_v57  ;;  %v16056_v28 = vld [vmem:[#allocation386_spill] sm:$0xff] }
 0x42d   : > { %v2799_v33 = vsub.f32 %v16056_v28, %v11872_v16  ;;  %v11941_v38 = vsel %vm11905_vm1, %v2797_v60, 0.0  ;;  %v3683_v0 = vadd.f32 %v4209_v54, %v3682_v39  ;;  %vm16057_vm6 = vcmp.lt.s32.totalorder %v16021_v51, 512  ;;  %v16063_v54 = vld [vmem:[#allocation87_spill] sm:$0xff] }
 0x42e   : > { %vm16058_vm10 = vcmp.gt.f32.partialorder %v15914_v37, 0.0001  ;;  %v16059_v36 = vmov 0  ;;  %v4211_v24 = vsel %vm11497_vm13, 1.0, %v15898_v26  ;;  %v3305_v17 = vadd.f32 %v3304_v58, %v11836_v47  ;;  %v16064_v51 = vld [vmem:[#allocation339_spill] sm:$0xff] }
 0x42f   : > { %vm11947_vm5 = vmand %vm16058_vm10, %vm16057_vm6  ;;  %v3428_v16 = vmul.f32 %v11566_v13, %v11566_v13  ;;  %v3553_v60 = vadd.f32 %v3552_v22, %v3426_v18  ;;  %v11962_v37 = vmul.f32 0.6931472, %v11735_v31  ;;  %4840 = vlog2.f32 %v16064_v51  ;;  %v16065_v39 = vld [vmem:[#allocation387_spill] sm:$0xff] }
 0x430   : > { %v16060_v36 = vsel %vm11947_vm5, 4294967295, %v16059_v36  ;;  %v2800_v28 = vsub.f32 %v16065_v39, %v11894_v55  ;;  %v3684_v15 = vadd.f32 %v4210_v5, %v3683_v0  ;;  %vm16066_vm13 = vcmp.lt.s32.totalorder %v16025_v61, 512  ;;  %v11981_v55 = vpop.eup %4834 }
 0x431   : > { %16061 = vst [vmem:[#allocation355_spill] sm:$0xff] %v16060_v36  ;;  %vm16067_vm6 = vcmp.gt.f32.partialorder %v15922_v14, 0.0001  ;;  %v4212_v18 = vsel %vm11521_vm9, 1.0, %v15898_v26  ;;  %v3306_v31 = vadd.f32 %v3305_v17, %v11851_v35  ;;  %v3429_v58 = vmul.f32 %v11581_v9, %v11581_v9  ;;  %v16071_v14 = vld [vmem:[#allocation340_spill] sm:$0xff]  ;;  %v12005_v39 = vpop.eup %4836 }
 0x432   : > { %vm11971_vm10 = vmand %vm16067_vm6, %vm16066_vm13  ;;  %v3554_v30 = vadd.f32 %v3553_v60, %v3427_v43  ;;  %v11984_v61 = vmul.f32 0.6931472, %v11777_v34  ;;  %4842 = vlog2.f32 %v16071_v14  ;;  %v11989_v5 = vsel %vm11947_vm5, %v2798_v4, 0.0 }
 0x433   : > { %v3685_v0 = vadd.f32 %v4211_v24, %v3684_v15  ;;  %vm16072_vm9 = vcmp.lt.s32.totalorder %v16034_v12, 512  ;;  %vm16073_vm13 = vcmp.gt.f32.partialorder %v15934_v32, 0.0001  ;;  %v16074_v17 = vmov 0  ;;  %v16078_v24 = vld [vmem:[#allocation88_spill] sm:$0xff]  ;;  %v16079_v12 = vld [vmem:[#allocation313_spill] sm:$0xff] }
 0x434   : > { %vm11995_vm6 = vmand %vm16073_vm13, %vm16072_vm9  ;;  %v4213_v34 = vsel %vm11545_vm14, 1.0, %v15898_v26  ;;  %v3307_v43 = vadd.f32 %v3306_v31, %v11899_v25  ;;  %v3430_v60 = vmul.f32 %v11629_v40, %v11629_v40  ;;  %v3555_v4 = vadd.f32 %v3554_v30, %v3428_v16  ;;  %v16080_v15 = vld [vmem:[#allocation388_spill] sm:$0xff] }
 0x435   : > { %v16075_v17 = vsel %vm11995_vm6, 4294967295, %v16074_v17  ;;  %vm1908_vm11 = vcmp.lt.s32.totalorder %v16078_v24, 512  ;;  %v12010_v32 = vmul.f32 0.6931472, %v11801_v10  ;;  %v2801_v22 = vsub.f32 %v16080_v15, %v11920_v62  ;;  %v16082_v10 = vld [vmem:[#allocation89_spill] sm:$0xff]  ;;  %v16084_v62 = vld [vmem:[#allocation322_spill] sm:$0xff] }
 0x436   : > { %16076 = vst [vmem:[#allocation12_spill] sm:$0xff] %v16075_v17  ;;  %v12016_v9 = vsel %vm11971_vm10, %v2799_v33, 0.0  ;;  %v3686_v31 = vadd.f32 %v4212_v18, %v3685_v0  ;;  %v4214_v30 = vsel %vm11587_vm8, 1.0, %v15898_v26  ;;  %v3308_v16 = vadd.f32 %v3307_v43, %v11926_v7  ;;  %v16085_v33 = vld [vmem:[#allocation390_spill] sm:$0xff]  ;;  %v12047_v40 = vpop.eup %4838 }
 0x437   : > { %v3431_v36 = vmul.f32 %v11656_v45, %v11656_v45  ;;  %v3556_v14 = vadd.f32 %v3555_v4, %v3429_v58  ;;  %4844 = vlog2.f32 %v16084_v62  ;;  %v2802_v15 = vsub.f32 %v16085_v33, %v11962_v37 }
 0x438   : > { %v12031_v18 = vsel %vm11995_vm6, %v2800_v28, 0.0  ;;  %v3687_v0 = vadd.f32 %v4213_v34, %v3686_v31  ;;  %vm16086_vm8 = vcmp.gt.f32.partialorder %v15943_v48, 0.0001  ;;  %v4215_v43 = vsel %vm11611_vm0, 1.0, %v15898_v26  ;;  %v16090_v34 = vld [vmem:[#allocation90_spill] sm:$0xff]  ;;  %v16092_v31 = vld [vmem:[#allocation391_spill] sm:$0xff] }
 0x439   : > { %vm12037_vm13 = vmand %vm16086_vm8, %vm1905_vm15  ;;  %v3309_v4 = vadd.f32 %v3308_v16, %v11941_v38  ;;  %v3432_v37 = vmul.f32 %v11671_v63, %v11671_v63  ;;  %v3557_v28 = vadd.f32 %v3556_v14, %v3430_v60  ;;  %v12052_v48 = vmul.f32 0.6931472, %v11825_v1 }
 0x43a   : > { %4846 = vlog2.f32 %v16091_v29  ;;  %v2803_v33 = vsub.f32 %v16092_v31, %v11984_v61  ;;  %v3688_v58 = vadd.f32 %v4214_v30, %v3687_v0  ;;  %vm16093_vm0 = vcmp.lt.s32.totalorder %v16054_v11, 512  ;;  %v12071_v61 = vpop.eup %4840 }
 0x43b   : > { %vm16094_vm15 = vcmp.gt.f32.partialorder %v15951_v53, 0.0001  ;;  %v4216_v60 = vsel %vm11635_vm3, 1.0, %v15898_v26  ;;  %v3310_v1 = vadd.f32 %v3309_v4, %v11989_v5  ;;  %v3433_v16 = vmul.f32 %v11719_v49, %v11719_v49  ;;  %v16098_v53 = vld [vmem:[#allocation342_spill] sm:$0xff] }
 0x43c   : > { %vm12061_vm8 = vmand %vm16094_vm15, %vm16093_vm0  ;;  %v3558_v17 = vadd.f32 %v3557_v28, %v3431_v36  ;;  %v12074_v11 = vmul.f32 0.6931472, %v11867_v59  ;;  %4848 = vlog2.f32 %v16098_v53  ;;  %v12079_v30 = vsel %vm12037_vm13, %v2801_v22, 0.0  ;;  %v16104_v49 = vld [vmem:[#allocation242_spill] sm:$0xff]  ;;  %v12095_v31 = vpop.eup %4842 }
 0x43d   : > { %v3689_v0 = vadd.f32 %v4215_v43, %v3688_v58  ;;  %vm16099_vm3 = vcmp.lt.s32.totalorder %v16063_v54, 512  ;;  %vm16100_vm0 = vcmp.gt.f32.partialorder %v15963_v3, 0.0001  ;;  %v16101_v4 = vmov 0  ;;  %v16106_v43 = vld [vmem:[#allocation91_spill] sm:$0xff]  ;;  %v16107_v54 = vld [vmem:[#allocation392_spill] sm:$0xff] }
 0x43e   : > { %vm12085_vm15 = vmand %vm16100_vm0, %vm16099_vm3  ;;  %vm16105_vm14 = vnez %v16104_v49  ;;  %v3311_v36 = vadd.f32 %v3310_v1, %v12016_v9  ;;  %v3434_v28 = vmul.f32 %v11746_v19, %v11746_v19  ;;  %v3559_v22 = vadd.f32 %v3558_v17, %v3432_v37 }
 0x43f   : > { %v16102_v4 = vsel %vm12085_vm15, 4294967295, %v16101_v4  ;;  %v4217_v59 = vsel %vm16105_vm14, 1.0, %v15898_v26  ;;  %v12100_v3 = vmul.f32 0.6931472, %v11891_v42  ;;  %v2804_v58 = vsub.f32 %v16107_v54, %v12010_v32  ;;  %v16109_v42 = vld [vmem:[#allocation92_spill] sm:$0xff]  ;;  %v16110_v32 = vld [vmem:[#allocation343_spill] sm:$0xff] }
 0x440   : > { %16103 = vst [vmem:[#allocation211_spill] sm:$0xff] %v16102_v4  ;;  %v12106_v14 = vsel %vm12061_vm8, %v2802_v15, 0.0  ;;  %v3690_v1 = vadd.f32 %v4216_v60, %v3689_v0  ;;  %vm16108_vm14 = vnez %v15977_v44  ;;  %v3312_v17 = vadd.f32 %v3311_v36, %v12031_v18  ;;  %v16111_v15 = vld [vmem:[#allocation393_spill] sm:$0xff] }
 0x441   : > { %v4218_v19 = vsel %vm16108_vm14, 1.0, %v15898_v26  ;;  %v3435_v37 = vmul.f32 %v11761_v27, %v11761_v27  ;;  %v3560_v49 = vadd.f32 %v3559_v22, %v3433_v16  ;;  %4850 = vlog2.f32 %v16110_v32  ;;  %v16116_v16 = vld [vmem:[#allocation354_spill] sm:$0xff]  ;;  %v12137_v22 = vpop.eup %4844 }
 0x442   : > { %v2805_v54 = vsub.f32 %v16111_v15, %v12052_v48  ;;  %v12121_v60 = vsel %vm12085_vm15, %v2803_v33, 0.0  ;;  %v3691_v44 = vadd.f32 %v4217_v59, %v3690_v1  ;;  %vm16112_vm14 = vcmp.gt.f32.partialorder %v16079_v12, 0.0001  ;;  %v16118_v59 = vld [vmem:[#allocation93_spill] sm:$0xff]  ;;  %v16119_v12 = vld [vmem:[#allocation344_spill] sm:$0xff]  ;;  %v16120_v1 = vld [vmem:[#allocation394_spill] sm:$0xff] }
 0x443   : > { %vm12127_vm7 = vmand %vm16112_vm14, %vm1908_vm11  ;;  %v16113_v27 = vmov 0  ;;  %vm16117_vm0 = vnez %v16116_v16  ;;  %v3313_v36 = vadd.f32 %v3312_v17, %v12079_v30  ;;  %v3436_v48 = vmul.f32 %v11809_v52, %v11809_v52 }
 0x444   : > { %v16114_v27 = vsel %vm12127_vm7, 4294967295, %v16113_v27  ;;  %v4219_v0 = vsel %vm16117_vm0, 1.0, %v15898_v26  ;;  %v3561_v33 = vadd.f32 %v3560_v49, %v3434_v28  ;;  %v12142_v24 = vmul.f32 0.6931472, %v11915_v46  ;;  %v16125_v28 = vld [vmem:[#allocation243_spill] sm:$0xff] }
 0x445   : > { %16115 = vst [vmem:[#allocation356_spill] sm:$0xff] %v16114_v27  ;;  %4852 = vlog2.f32 %v16119_v12  ;;  %v2806_v15 = vsub.f32 %v16120_v1, %v12074_v11  ;;  %v3692_v16 = vadd.f32 %v4218_v19, %v3691_v44  ;;  %vm16121_vm11 = vcmp.lt.s32.totalorder %v16082_v10, 512  ;;  %v12161_v11 = vpop.eup %4846  ;;  %v16127_v19 = vld [vmem:[#allocation94_spill] sm:$0xff]  ;;  %v16128_v10 = vld [vmem:[#allocation345_spill] sm:$0xff] }
 0x446   : > { %vm16122_vm0 = vcmp.gt.f32.partialorder %v16083_v8, 0.0001  ;;  %vm16126_vm9 = vnez %v16125_v28  ;;  %v3314_v46 = vadd.f32 %v3313_v36, %v12106_v14  ;;  %v3437_v49 = vmul.f32 %v11836_v47, %v11836_v47  ;;  %v12187_v1 = vpop.eup %4848 }
 0x447   : > { %vm12151_vm14 = vmand %vm16122_vm0, %vm16121_vm11  ;;  %v4220_v17 = vsel %vm16126_vm9, 1.0, %v15898_v26  ;;  %v3562_v4 = vadd.f32 %v3561_v33, %v3435_v37  ;;  %v12166_v8 = vmul.f32 0.6931472, %v11957_v23  ;;  %4854 = vlog2.f32 %v16128_v10 }
 0x448   : > { %v12171_v44 = vsel %vm12127_vm7, %v2804_v58, 0.0  ;;  %v3693_v36 = vadd.f32 %v4219_v0, %v3692_v16  ;;  %vm16129_vm9 = vcmp.lt.s32.totalorder %v16090_v34, 512  ;;  %vm16130_vm11 = vcmp.gt.f32.partialorder %v15995_v2, 0.0001  ;;  %v16134_v0 = vld [vmem:[#allocation95_spill] sm:$0xff] }
 0x449   : > { %vm12177_vm0 = vmand %vm16130_vm11, %vm16129_vm9  ;;  %v16131_v47 = vmov 0  ;;  %v4221_v23 = vsel %vm11791_vm4, 1.0, %v15898_v26  ;;  %v3315_v37 = vadd.f32 %v3314_v46, %v12121_v60  ;;  %v3438_v33 = vmul.f32 %v11851_v35, %v11851_v35  ;;  %v16135_v34 = vld [vmem:[#allocation395_spill] sm:$0xff] }
 0x44a   : > { %v16132_v47 = vsel %vm12177_vm0, 4294967295, %v16131_v47  ;;  %v3563_v58 = vadd.f32 %v3562_v4, %v3436_v48  ;;  %v12192_v2 = vmul.f32 0.6931472, %v11981_v55  ;;  %v2807_v16 = vsub.f32 %v16135_v34, %v12100_v3  ;;  %v16137_v55 = vld [vmem:[#allocation96_spill] sm:$0xff]  ;;  %v16138_v3 = vld [vmem:[#allocation346_spill] sm:$0xff]  ;;  %vm16203_vm4 = vmmov %vm12085_vm15 }
 0x44b   : > { %16133 = vst [vmem:[#allocation245_spill] sm:$0xff] %v16132_v47  ;;  %v12198_v50 = vsel %vm12151_vm14, %v2805_v54, 0.0  ;;  %v3694_v28 = vadd.f32 %v4220_v17, %v3693_v36  ;;  %v4222_v4 = vsel %vm11815_vm12, 1.0, %v15898_v26  ;;  %v3316_v48 = vadd.f32 %v3315_v37, %v12171_v44  ;;  %v16139_v54 = vld [vmem:[#allocation397_spill] sm:$0xff]  ;;  %v12229_v35 = vpop.eup %4850 }
 0x44c   : > { %v3439_v46 = vmul.f32 %v11899_v25, %v11899_v25  ;;  %v3564_v27 = vadd.f32 %v3563_v58, %v3437_v49  ;;  %4856 = vlog2.f32 %v16138_v3  ;;  %v2808_v34 = vsub.f32 %v16139_v54, %v12142_v24  ;;  %v16145_v49 = vld [vmem:[#allocation305_spill] sm:$0xff] }
 0x44d   : > { %v12213_v17 = vsel %vm12177_vm0, %v2806_v15, 0.0  ;;  %v3695_v36 = vadd.f32 %v4221_v23, %v3694_v28  ;;  %vm16140_vm12 = vcmp.lt.s32.totalorder %v16106_v43, 512  ;;  %vm16141_vm11 = vcmp.gt.f32.partialorder %v16005_v21, 0.0001  ;;  %v16147_v23 = vld [vmem:[#allocation97_spill] sm:$0xff]  ;;  %v16148_v43 = vld [vmem:[#allocation347_spill] sm:$0xff] }
 0x44e   : > { %vm12219_vm3 = vmand %vm16141_vm11, %vm16140_vm12  ;;  %v16142_v25 = vmov 0  ;;  %vm16146_vm9 = vnez %v16145_v49  ;;  %v3317_v58 = vadd.f32 %v3316_v48, %v12198_v50  ;;  %v3440_v24 = vmul.f32 %v11926_v7, %v11926_v7  ;;  %v16149_v28 = vld [vmem:[#allocation398_spill] sm:$0xff] }
 0x44f   : > { %v16143_v25 = vsel %vm12219_vm3, 4294967295, %v16142_v25  ;;  %v4223_v37 = vsel %vm16146_vm9, 1.0, %v15898_v26  ;;  %v3565_v15 = vadd.f32 %v3564_v27, %v3438_v33  ;;  %v2670_v21 = vmul.f32 0.6931472, %v12005_v39 }
 0x450   : > { %16144 = vst [vmem:[#allocation309_spill] sm:$0xff] %v16143_v25  ;;  %4858 = vlog2.f32 %v16148_v43  ;;  %v2809_v54 = vsub.f32 %v16149_v28, %v12166_v8  ;;  %v3696_v49 = vadd.f32 %v4222_v4, %v3695_v36  ;;  %vm16150_vm9 = vcmp.lt.s32.totalorder %v16109_v42, 512  ;;  %v12251_v8 = vpop.eup %4852  ;;  %v16155_v4 = vld [vmem:[#allocation98_spill] sm:$0xff]  ;;  %v16156_v42 = vld [vmem:[#allocation340_spill] sm:$0xff] }
 0x451   : > { %vm16151_vm12 = vcmp.gt.f32.partialorder %v16013_v56, 0.0001  ;;  %v4224_v33 = vsel %vm11881_vm2, 1.0, %v15898_v26  ;;  %v3318_v39 = vadd.f32 %v3317_v58, %v12213_v17  ;;  %v3441_v48 = vmul.f32 %v11941_v38, %v11941_v38  ;;  %v16157_v36 = vld [vmem:[#allocation348_spill] sm:$0xff]  ;;  %v12275_v25 = vpop.eup %4854 }
 0x452   : > { %vm12241_vm11 = vmand %vm16151_vm12, %vm16150_vm9  ;;  %v3566_v47 = vadd.f32 %v3565_v15, %v3439_v46  ;;  %v2672_v56 = vmul.f32 0.6931472, %v12047_v40  ;;  %4860 = vlog2.f32 %v16157_v36  ;;  %v12259_v28 = vsel %vm12219_vm3, %v2807_v16, 0.0 }
 0x453   : > { %v3697_v27 = vadd.f32 %v4223_v37, %v3696_v49  ;;  %vm16158_vm2 = vcmp.lt.s32.totalorder %v16118_v59, 512  ;;  %vm16159_vm9 = vcmp.gt.f32.partialorder %v16026_v6, 0.0001  ;;  %v4225_v58 = vsel %vm11905_vm1, 1.0, %v15898_v26  ;;  %v16163_v37 = vld [vmem:[#allocation99_spill] sm:$0xff]  ;;  %v16164_v59 = vld [vmem:[#allocation400_spill] sm:$0xff] }
 0x454   : > { %vm12265_vm12 = vmand %vm16159_vm9, %vm16158_vm2  ;;  %v3319_v40 = vadd.f32 %v3318_v39, %v12259_v28  ;;  %v3442_v15 = vmul.f32 %v11989_v5, %v11989_v5  ;;  %v3567_v16 = vadd.f32 %v3566_v47, %v3440_v24  ;;  %v2674_v6 = vmul.f32 0.6931472, %v12071_v61 }
 0x455   : > { %v2810_v49 = vsub.f32 %v16164_v59, %v12192_v2  ;;  %v12284_v46 = vsel %vm12241_vm11, %v2808_v34, 0.0  ;;  %v3698_v39 = vadd.f32 %v4224_v33, %v3697_v27  ;;  %vm16165_vm1 = vcmp.lt.s32.totalorder %v16127_v19, 512  ;;  %v16170_v59 = vld [vmem:[#allocation100_spill] sm:$0xff]  ;;  %v16171_v19 = vld [vmem:[#allocation349_spill] sm:$0xff] }
 0x456   : > { %vm16166_vm2 = vcmp.gt.f32.partialorder %v16035_v41, 0.0001  ;;  %v4226_v61 = vsel %vm11947_vm5, 1.0, %v15898_v26  ;;  %v3320_v24 = vadd.f32 %v3319_v40, %v12284_v46  ;;  %v3443_v2 = vmul.f32 %v12016_v9, %v12016_v9  ;;  %v16172_v41 = vld [vmem:[#allocation401_spill] sm:$0xff] }
 0x457   : > { %vm12290_vm9 = vmand %vm16166_vm2, %vm16165_vm1  ;;  %v3568_v34 = vadd.f32 %v3567_v16, %v3441_v48  ;;  %4862 = vlog2.f32 %v16171_v19  ;;  %v2811_v33 = vsub.f32 %v16172_v41, %v2670_v21  ;;  %v12306_v27 = vsel %vm12265_vm12, %v2809_v54, 0.0  ;;  %v12322_v16 = vpop.eup %4856 }
 0x458   : > { %v3699_v47 = vadd.f32 %v4225_v58, %v3698_v39  ;;  %vm16173_vm5 = vcmp.lt.s32.totalorder %v16134_v0, 512  ;;  %vm16174_vm1 = vcmp.gt.f32.partialorder %v16044_v20, 0.0001  ;;  %v4227_v48 = vsel %vm11971_vm10, 1.0, %v15898_v26  ;;  %v16177_v58 = vld [vmem:[#allocation101_spill] sm:$0xff]  ;;  %v16178_v0 = vld [vmem:[#allocation403_spill] sm:$0xff] }
 0x459   : > { %vm12312_vm2 = vmand %vm16174_vm1, %vm16173_vm5  ;;  %v3321_v40 = vadd.f32 %v3320_v24, %v12306_v27  ;;  %v3444_v21 = vmul.f32 %v12031_v18, %v12031_v18  ;;  %v3569_v54 = vadd.f32 %v3568_v34, %v3442_v15  ;;  %v2676_v20 = vmul.f32 0.6931472, %v12095_v31 }
 0x45a   : > { %v2812_v39 = vsub.f32 %v16178_v0, %v2672_v56  ;;  %v12330_v13 = vsel %vm12290_vm9, %v2810_v49, 0.0  ;;  %v3700_v41 = vadd.f32 %v4226_v61, %v3699_v47  ;;  %vm16179_vm10 = vcmp.lt.s32.totalorder %v16137_v55, 512  ;;  %v12346_v34 = vpop.eup %4858  ;;  %v16184_v61 = vld [vmem:[#allocation102_spill] sm:$0xff]  ;;  %v16185_v55 = vld [vmem:[#allocation404_spill] sm:$0xff] }
 0x45b   : > { %vm16180_vm5 = vcmp.gt.f32.partialorder %v16055_v57, 0.0001  ;;  %v4228_v24 = vsel %vm11995_vm6, 1.0, %v15898_v26  ;;  %v3322_v31 = vadd.f32 %v3321_v40, %v12330_v13  ;;  %v3445_v56 = vmul.f32 %v12079_v30, %v12079_v30 }
 0x45c   : > { %vm12336_vm1 = vmand %vm16180_vm5, %vm16179_vm10  ;;  %v3570_v49 = vadd.f32 %v3569_v54, %v3443_v2  ;;  %v2678_v57 = vmul.f32 0.6931472, %v12137_v22  ;;  %v2813_v47 = vsub.f32 %v16185_v55, %v2674_v6  ;;  %v12354_v0 = vsel %vm12312_vm2, %v2811_v33, 0.0  ;;  %v12370_v40 = vpop.eup %4860 }
 0x45d   : > { %v3701_v15 = vadd.f32 %v4227_v48, %v3700_v41  ;;  %vm16186_vm6 = vcmp.lt.s32.totalorder %v16147_v23, 512  ;;  %vm16187_vm10 = vcmp.gt.f32.partialorder %v16064_v51, 0.0001  ;;  %v16188_v30 = vmov 0  ;;  %v16190_v48 = vld [vmem:[#allocation103_spill] sm:$0xff]  ;;  %v16191_v23 = vld [vmem:[#allocation405_spill] sm:$0xff] }
 0x45e   : > { %vm12360_vm5 = vmand %vm16187_vm10, %vm16186_vm6  ;;  %v4229_v2 = vsel %vm12037_vm13, 1.0, %v15898_v26  ;;  %v3323_v22 = vadd.f32 %v3322_v31, %v12354_v0  ;;  %v3446_v6 = vmul.f32 %v12106_v14, %v12106_v14  ;;  %v3571_v33 = vadd.f32 %v3570_v49, %v3444_v21  ;;  %v16196_v31 = vld [vmem:[#allocation122_spill] sm:$0xff] }
 0x45f   : > { %v16189_v30 = vsel %vm12360_vm5, 4294967295, %v16188_v30  ;;  %v2680_v51 = vmul.f32 0.6931472, %v12161_v11  ;;  %v2814_v54 = vsub.f32 %v16191_v23, %v2676_v20  ;;  %v12378_v45 = vsel %vm12336_vm1, %v2812_v39, 0.0 }
 0x460   : > { %v3702_v41 = vadd.f32 %v4228_v24, %v3701_v15  ;;  %vm16192_vm13 = vcmp.lt.s32.totalorder %v16155_v4, 512  ;;  %vm16193_vm6 = vcmp.gt.f32.partialorder %v16156_v42, 0.0001  ;;  %v4230_v21 = vsel %vm12061_vm8, 1.0, %v15898_v26  ;;  %v16197_v42 = vld [vmem:[#allocation166_spill] sm:$0xff] }
 0x461   : > { %vm12384_vm10 = vmand %vm16193_vm6, %vm16192_vm13  ;;  %v3324_v11 = vadd.f32 %v3323_v22, %v12378_v45  ;;  %v3447_v20 = vmul.f32 %v12121_v60, %v12121_v60  ;;  %v3572_v39 = vadd.f32 %v3571_v33, %v3445_v56  ;;  %v2682_v4 = vmul.f32 0.6931472, %v12187_v1  ;;  %v4863_v15 = vpop.eup %4862 }
 0x462   : > { %v2815_v24 = vsub.f32 %v16197_v42, %v2678_v57  ;;  %v12400_v49 = vsel %vm12360_vm5, %v2813_v47, 0.0  ;;  %v3703_v63 = vadd.f32 %v4229_v2, %v3702_v41  ;;  %vm16198_vm8 = vcmp.lt.s32.totalorder %v16163_v37, 512  ;;  %v16204_v2 = vld [vmem:[#allocation123_spill] sm:$0xff]  ;;  %v16205_v37 = vld [vmem:[#allocation406_spill] sm:$0xff] }
 0x463   : > { %vm16199_vm13 = vcmp.gt.f32.partialorder %v16084_v62, 0.0001  ;;  %v4231_v55 = vsel %vm16203_vm4, 1.0, %v15898_v26  ;;  %v3325_v1 = vadd.f32 %v3324_v11, %v12400_v49  ;;  %v3448_v57 = vmul.f32 %v12171_v44, %v12171_v44  ;;  %v16211_v11 = vld [vmem:[#allocation124_spill] sm:$0xff] }
 0x464   : > { %vm12406_vm6 = vmand %vm16199_vm13, %vm16198_vm8  ;;  %v3573_v47 = vadd.f32 %v3572_v39, %v3446_v6  ;;  %v2684_v62 = vmul.f32 0.6931472, %v12229_v35  ;;  %v2816_v22 = vsub.f32 %v16205_v37, %v2680_v51  ;;  %v12422_v33 = vsel %vm12384_vm10, %v2814_v54, 0.0  ;;  %v16224_v37 = vld [vmem:[#allocation127_spill] sm:$0xff] }
 0x465   : > { %v3704_v23 = vadd.f32 %v4230_v21, %v3703_v63  ;;  %vm16206_vm4 = vcmp.lt.s32.totalorder %v16170_v59, 512  ;;  %vm16207_vm8 = vcmp.gt.f32.partialorder %v16091_v29, 0.0001  ;;  %v4232_v41 = vsel %vm12127_vm7, 1.0, %v15898_v26  ;;  %v16212_v59 = vld [vmem:[#allocation410_spill] sm:$0xff]  ;;  %v16217_v63 = vld [vmem:[#allocation125_spill] sm:$0xff] }
 0x466   : > { %vm12428_vm13 = vmand %vm16207_vm8, %vm16206_vm4  ;;  %v3326_v35 = vadd.f32 %v3325_v1, %v12422_v33  ;;  %v3449_v51 = vmul.f32 %v12198_v50, %v12198_v50  ;;  %v3574_v54 = vadd.f32 %v3573_v47, %v3447_v20  ;;  %v2686_v29 = vmul.f32 0.6931472, %v12251_v8  ;;  %v16241_v1 = vld [vmem:[#allocation417_spill] sm:$0xff] }
 0x467   : > { %v2817_v21 = vsub.f32 %v16212_v59, %v2682_v4  ;;  %v12444_v39 = vsel %vm12406_vm6, %v2815_v24, 0.0  ;;  %v3705_v42 = vadd.f32 %v4231_v55, %v3704_v23  ;;  %vm16213_vm7 = vcmp.lt.s32.totalorder %v16177_v58, 512  ;;  %v16218_v58 = vld [vmem:[#allocation412_spill] sm:$0xff]  ;;  %v16231_v59 = vld [vmem:[#allocation414_spill] sm:$0xff] }
 0x468   : > { %vm16214_vm4 = vcmp.gt.f32.partialorder %v16098_v53, 0.0001  ;;  %v4233_v20 = vsel %vm12151_vm14, 1.0, %v15898_v26  ;;  %v3327_v8 = vadd.f32 %v3326_v35, %v12444_v39  ;;  %v3450_v4 = vmul.f32 %v12213_v17, %v12213_v17 }
 0x469   : > { %vm12450_vm8 = vmand %vm16214_vm4, %vm16213_vm7  ;;  %v3575_v24 = vadd.f32 %v3574_v54, %v3448_v57  ;;  %vm1927_vm15 = vcmp.lt.s32.totalorder %v16217_v63, 512  ;;  %v2688_v53 = vmul.f32 0.6931472, %v12275_v25  ;;  %v2818_v56 = vsub.f32 %v16218_v58, %v2684_v62 }
 0x46a   : > { %v12466_v55 = vsel %vm12428_vm13, %v2816_v22, 0.0  ;;  %v3706_v52 = vadd.f32 %v4232_v41, %v3705_v42  ;;  %vm16219_vm14 = vcmp.lt.s32.totalorder %v16184_v61, 512  ;;  %vm16220_vm7 = vcmp.gt.f32.partialorder %v16110_v32, 0.0001  ;;  %v16225_v22 = vld [vmem:[#allocation413_spill] sm:$0xff] }
 0x46b   : > { %vm12472_vm4 = vmand %vm16220_vm7, %vm16219_vm14  ;;  %v4234_v57 = vsel %vm12177_vm0, 1.0, %v15898_v26  ;;  %v3328_v25 = vadd.f32 %v3327_v8, %v12466_v55  ;;  %v3451_v47 = vmul.f32 %v12259_v28, %v12259_v28  ;;  %v3576_v62 = vadd.f32 %v3575_v24, %v3449_v51  ;;  %v16236_v24 = vld [vmem:[#allocation416_spill] sm:$0xff] }
 0x46c   : > { %v2690_v61 = vmul.f32 0.6931472, %v12322_v16  ;;  %v2819_v32 = vsub.f32 %v16225_v22, %v2686_v29  ;;  %v12487_v23 = vsel %vm12450_vm8, %v2817_v21, 0.0  ;;  %v3707_v6 = vadd.f32 %v4233_v20, %v3706_v52 }
 0x46d   : > { %vm16226_vm14 = vcmp.lt.s32.totalorder %v16190_v48, 512  ;;  %vm16227_vm0 = vcmp.gt.f32.partialorder %v16119_v12, 0.0001  ;;  %v4235_v35 = vsel %vm12219_vm3, 1.0, %v15898_v26  ;;  %v3329_v16 = vadd.f32 %v3328_v25, %v12487_v23 }
 0x46e   : > { %vm12493_vm7 = vmand %vm16227_vm0, %vm16226_vm14  ;;  %v3452_v51 = vmul.f32 %v12284_v46, %v12284_v46  ;;  %v3577_v54 = vadd.f32 %v3576_v62, %v3450_v4  ;;  %v2692_v29 = vmul.f32 0.6931472, %v12346_v34  ;;  %v2820_v48 = vsub.f32 %v16231_v59, %v2688_v53  ;;  %v16246_v62 = vld [vmem:[#allocation418_spill] sm:$0xff] }
 0x46f   : > { %v12507_v12 = vsel %vm12472_vm4, %v2818_v56, 0.0  ;;  %v3708_v21 = vadd.f32 %v4234_v57, %v3707_v6  ;;  %vm16232_vm14 = vcmp.lt.s32.totalorder %v16196_v31, 512  ;;  %vm16233_vm0 = vcmp.gt.f32.partialorder %v16128_v10, 0.0001  ;;  %v16250_v6 = vld [vmem:[#allocation176_spill] sm:$0xff] }
 0x470   : > { %vm12513_vm3 = vmand %vm16233_vm0, %vm16232_vm14  ;;  %v4236_v46 = vsel %vm12241_vm11, 1.0, %v15898_v26  ;;  %v3330_v34 = vadd.f32 %v3329_v16, %v12507_v12  ;;  %v3453_v20 = vmul.f32 %v12306_v27, %v12306_v27  ;;  %v3578_v8 = vadd.f32 %v3577_v54, %v3451_v47 }
 0x471   : > { %v2694_v4 = vmul.f32 0.6931472, %v12370_v40  ;;  %v2821_v31 = vsub.f32 %v16236_v24, %v2690_v61  ;;  %v12527_v10 = vsel %vm12493_vm7, %v2819_v32, 0.0  ;;  %v3709_v53 = vadd.f32 %v4235_v35, %v3708_v21 }
 0x472   : > { %vm16237_vm14 = vcmp.lt.s32.totalorder %v16204_v2, 512  ;;  %vm16238_vm0 = vcmp.gt.f32.partialorder %v16138_v3, 0.0001  ;;  %v4237_v27 = vsel %vm12265_vm12, 1.0, %v15898_v26  ;;  %v3331_v40 = vadd.f32 %v3330_v34, %v12527_v10 }
 0x473   : > { %vm12533_vm11 = vmand %vm16238_vm0, %vm16237_vm14  ;;  %v3454_v58 = vmul.f32 %v12330_v13, %v12330_v13  ;;  %v3579_v56 = vadd.f32 %v3578_v8, %v3452_v51  ;;  %v2696_v52 = vmul.f32 0.6931472, %v4863_v15  ;;  %v2822_v2 = vsub.f32 %v16241_v1, %v2692_v29 }
 0x474   : > { %v2948_v3 = vsel %vm12513_vm3, %v2820_v48, 0.0  ;;  %v3710_v57 = vadd.f32 %v4236_v46, %v3709_v53  ;;  %vm16242_vm14 = vcmp.lt.s32.totalorder %v16211_v11, 512  ;;  %vm16243_vm0 = vcmp.gt.f32.partialorder %v16148_v43, 0.0001 }
 0x475   : > { %vm12550_vm5 = vmand %vm16243_vm0, %vm16242_vm14  ;;  %v4238_v13 = vsel %vm12290_vm9, 1.0, %v15898_v26  ;;  %v3332_v25 = vadd.f32 %v3331_v40, %v2948_v3  ;;  %v3455_v15 = vmul.f32 %v12354_v0, %v12354_v0  ;;  %v3580_v47 = vadd.f32 %v3579_v56, %v3453_v20 }
 0x476   : > { %vm2056_vm12 = vcmp.gt.f32.partialorder %v16171_v19, 0.0001  ;;  %v2823_v61 = vsub.f32 %v16246_v62, %v2694_v4  ;;  %v2949_v43 = vsel %vm12533_vm11, %v2821_v31, 0.0  ;;  %v3711_v11 = vadd.f32 %v4237_v27, %v3710_v57 }
 0x477   : > { %vm16247_vm14 = vcmp.gt.f32.partialorder %v16157_v36, 0.0001  ;;  %v4239_v19 = vsel %vm12312_vm2, 1.0, %v15898_v26  ;;  %v3333_v0 = vadd.f32 %v3332_v25, %v2949_v43  ;;  %v3456_v22 = vmul.f32 %v12378_v45, %v12378_v45 }
 0x478   : > { %vm12568_vm9 = vmand %vm16247_vm14, %vm1927_vm15  ;;  %v3581_v32 = vadd.f32 %v3580_v47, %v3454_v58  ;;  %v2824_v28 = vsub.f32 %v16250_v6, %v2696_v52  ;;  %v2950_v63 = vsel %vm12550_vm5, %v2822_v2, 0.0  ;;  %v3712_v35 = vadd.f32 %v4238_v13, %v3711_v11 }
 0x479   : > { %vm16251_vm15 = vcmp.lt.s32.totalorder %v16224_v37, 512  ;;  %v4240_v9 = vsel %vm12336_vm1, 1.0, %v15898_v26  ;;  %v3334_v16 = vadd.f32 %v3333_v0, %v2950_v63  ;;  %v3457_v45 = vmul.f32 %v12400_v49, %v12400_v49 }
 0x47a   : > { %vm12582_vm0 = vmand %vm2056_vm12, %vm16251_vm15  ;;  %v3582_v51 = vadd.f32 %v3581_v32, %v3455_v15  ;;  %v2951_v54 = vsel %vm12568_vm9, %v2823_v61, 0.0  ;;  %v3713_v29 = vadd.f32 %v4239_v19, %v3712_v35  ;;  %vm16254_vm2 = vnez %v16189_v30 }
 0x47b   : > { %v4241_v37 = vsel %vm16254_vm2, 1.0, %v15898_v26  ;;  %v3335_v59 = vadd.f32 %v3334_v16, %v2951_v54  ;;  %v3458_v18 = vmul.f32 %v12422_v33, %v12422_v33  ;;  %v2952_v21 = vsel %vm12582_vm0, %v2824_v28, 0.0 }
 0x47c   : > { %v3583_v48 = vadd.f32 %v3582_v51, %v3456_v22  ;;  %v3714_v49 = vadd.f32 %v4240_v9, %v3713_v29  ;;  %v4242_v46 = vsel %vm12384_vm10, 1.0, %v15898_v26  ;;  %v3459_v20 = vmul.f32 %v12444_v39, %v12444_v39 }
 0x47d   : > { %v3336_v34 = vadd.f32 %v3335_v59, %v2952_v21  ;;  %v4243_v4 = vsel %vm12406_vm6, 1.0, %v15898_v26  ;;  %v3460_v33 = vmul.f32 %v12466_v55, %v12466_v55  ;;  %v4244_v14 = vsel %vm12428_vm13, 1.0, %v15898_v26 }
 0x47e   : > { %v3584_v8 = vadd.f32 %v3583_v48, %v3457_v45  ;;  %v3715_v30 = vadd.f32 %v4241_v37, %v3714_v49  ;;  %v3461_v39 = vmul.f32 %v12487_v23, %v12487_v23  ;;  %v4245_v60 = vsel %vm12450_vm8, 1.0, %v15898_v26 }
 0x47f   : > { %3338 = vst [vmem:[%s12615_s7] sm:$0xff] %v3336_v34  ;;  %v3462_v55 = vmul.f32 %v12507_v12, %v12507_v12  ;;  %v4246_v44 = vsel %vm12472_vm4, 1.0, %v15898_v26  ;;  %v3463_v56 = vmul.f32 %v12527_v10, %v12527_v10  ;;  %v4247_v1 = vsel %vm12493_vm7, 1.0, %v15898_v26 }
 0x480   : > { %v3585_v24 = vadd.f32 %v3584_v8, %v3458_v18  ;;  %v3716_v31 = vadd.f32 %v4242_v46, %v3715_v30  ;;  %v3464_v50 = vmul.f32 %v2948_v3, %v2948_v3  ;;  %v4248_v12 = vsel %vm12513_vm3, 1.0, %v15898_v26 }
 0x481   : > { %v3465_v13 = vmul.f32 %v2949_v43, %v2949_v43  ;;  %v4249_v10 = vsel %vm12533_vm11, 1.0, %v15898_v26  ;;  %v3466_v15 = vmul.f32 %v2950_v63, %v2950_v63  ;;  %v4250_v3 = vsel %vm12550_vm5, 1.0, %v15898_v26 }
 0x482   : > { %v3586_v53 = vadd.f32 %v3585_v24, %v3459_v20  ;;  %v3717_v27 = vadd.f32 %v4243_v4, %v3716_v31  ;;  %v3467_v62 = vmul.f32 %v2951_v54, %v2951_v54  ;;  %v4251_v43 = vsel %vm12568_vm9, 1.0, %v15898_v26 }
 0x483   : > { %v3468_v7 = vmul.f32 %v2952_v21, %v2952_v21  ;;  %v4252_v0 = vsel %vm12582_vm0, 1.0, %v15898_v26 }
 0x484   : > { %v3587_v40 = vadd.f32 %v3586_v53, %v3460_v33  ;;  %v3718_v58 = vadd.f32 %v4244_v14, %v3717_v27 }
 0x486   : > { %v3588_v52 = vadd.f32 %v3587_v40, %v3461_v39  ;;  %v3719_v23 = vadd.f32 %v4245_v60, %v3718_v58 }
 0x488   : > { %v3589_v2 = vadd.f32 %v3588_v52, %v3462_v55  ;;  %v3720_v57 = vadd.f32 %v4246_v44, %v3719_v23 }
 0x48a   : > { %v3590_v25 = vadd.f32 %v3589_v2, %v3463_v56  ;;  %v3721_v17 = vadd.f32 %v4247_v1, %v3720_v57 }
 0x48c   : > { %v3591_v47 = vadd.f32 %v3590_v25, %v3464_v50  ;;  %v3722_v41 = vadd.f32 %v4248_v12, %v3721_v17 }
 0x48e   : > { %v3592_v42 = vadd.f32 %v3591_v47, %v3465_v13  ;;  %v3723_v61 = vadd.f32 %v4249_v10, %v3722_v41 }
 0x490   : > { %v3593_v11 = vadd.f32 %v3592_v42, %v3466_v15  ;;  %v3724_v19 = vadd.f32 %v4250_v3, %v3723_v61 }
 0x492   : > { %v3594_v38 = vadd.f32 %v3593_v11, %v3467_v62  ;;  %v3725_v22 = vadd.f32 %v4251_v43, %v3724_v19 }
 0x494   : > { %v3595_v32 = vadd.f32 %v3594_v38, %v3468_v7  ;;  %v3726_v6 = vadd.f32 %v4252_v0, %v3725_v22 }
 0x496   : > { %4254 = vst [vmem:[%s12615_s7 + $0x8] sm:$0xff] %v3595_v32  ;;  %4256 = vst [vmem:[%s12615_s7 + $0x10] sm:$0xff] %v3726_v6 }
 0x497   : > { %4933 = shalt.err (!%p4930_p8)
}
 0x498   : > { %s4934_s30 = scalar_lea.hbm %s12653_s17, 384  ;;  %s4938_s4 = scalar_lea.hbm %s12715_s2, 768 }
 0x499   : > { %p4935_p9 = scmp.ne.s32.totalorder %s12653_s17, %s4934_s30  ;;  %p4939_p0 = scmp.lt.u32.totalorder %s12653_s17, %s12715_s2 }
 0x49a   : > { %p4940_p1 = scmp.lt.u32.totalorder %s4938_s4, %s4934_s30  ;;  %p4942_p2 = scmp.lt.u32.totalorder %s4934_s30, %s12653_s17 }
 0x49b   : > { %p4936_p10 = pnand %p4935_p9, %p5122_p12 }
 0x49c   : > { %p4941_p6 = por %p4940_p1, %p4939_p0 }
 0x49d   : > { %p4937_p11 = pneg %p4936_p10 }
 0x49e   : > { %p4943_p3 = por %p4942_p2, %p4941_p6 }
 0x4a0   : > { %p4944_p5 = pnand %p4943_p3, %p4937_p11 }
 0x4a2   : > { %4947 = shalt.err (!%p4944_p5)
}
 0x4a3   : > { %s5041_s6 = smov 128   ;;  %s5042_s7 = smov 8  }
 0x4a4   : > { %4266 = dma.vmem_to_hbm [thread:$0]  (%p5122_p12), %s12655_s20, 384, %s12653_s17, %s12661_s18, %s5041_s6, %s5041_s6, %s5042_s7  }
 0x4a5 PF: > { %s3758_s8 = sand.u32 1, %s5003_s9   ;;  %p16255_p4 = scmp.ge.s32.totalorder %s5031_s16, 2 }
 0x4a6   : > { %s3759_s28 = scalar_lea.sflag [#allocation4], %s3758_s8 }
 0x4a7   : > { %p4269_p7 = pnand %p16255_p4, %p5126_p13 }
 0x4a9   : > { %4993 = dma.done.wait (!%p4269_p7), %s3759_s28, 384  }
 0x4aa   : > { %4995 = vsyncadd (!%p4269_p7), %s3759_s28, 4294966912  ;;  %s21_s16 = sadd.s32 1, %s5031_s16   ;;  %s16256_s9 = smov %s5007_s10 }
 0x4ab   : > { %p18_p8 = scmp.ge.s32.totalorder %s21_s16, 4   ;;  %s16257_s10 = smov %s5011_s11 }
 0x4ac   : > { %s16258_s11 = smov %s5116_s24  ;;  %s16259_s12 = smov %s5019_s13 }
 0x4ad   : > { %s12703_s13 = smov 0   ;;  %s16260_s14 = smov %s5027_s15 }
 0x4ae   : > { %s16261_s15 = smov %s16263_s19  ;;  %20 = sbr.rel (!%p18_p8) target bundleno = 9 (0x9), region = 92 }
 0x4b5   :  { %3764 = vsyncpa [#allocation3], 1 }
 0x4b6   :  { %3766 = vsyncpa [#allocation3 + $0x1], 1 }
 0x4b7   :  { %3767 = vsyncpa [#allocation6], 1 }
 0x4b8   :  { %3769 = vsyncpa [#allocation6 + $0x1], 1 }
 0x4b9   :  { %3770 = vsyncpa [#allocation4], 1 }
 0x4ba   :  { %3772 = vsyncpa [#allocation4 + $0x1], 1 }

</bundles_post_ra>
